<compile_context>
chip_gen: v7x
topology: tpu7x:2x2x1
jax: 0.10.0
libtpu: 0.0.40
codegen_flags: <defaults>
</compile_context>

<pallas_src>
import functools

import numpy as np
import jax
import jax.numpy as jnp
from jax import lax
from jax.experimental import pallas as pl
from jax.experimental.pallas import tpu as pltpu  # noqa: F401  (TPU backend assumed)

P_LANE = 128  # lane-dense padded feature width for the whole model


def _round_up(x, m):
    return (x + m - 1) // m * m


# ----------------------------------------------------------------------------
# Kernel 1: fused CNN encoder  (conv3x3 s2 p1 + ReLU) x2  ->  fc + ReLU
# ----------------------------------------------------------------------------
def _cnn_kernel(col1_ref, w1_ref, b1_ref, src2_ref, w2_ref, b2_ref,
                wfc_ref, bfc_ref, o_ref, *, n_taps, s2, r1, r2, pad_width):
    P = pad_width
    bf16 = jnp.bfloat16
    dot = functools.partial(jnp.dot, preferred_element_type=jnp.float32)
    B = o_ref.shape[0]

    # conv1: im2col done in wrapper -> one matmul. Padded lanes (>= C1) stay 0.
    h1 = jnp.maximum(dot(col1_ref[...], w1_ref[...]) + b1_ref[...], 0.0)
    h1b = h1.astype(bf16)                                       # [R1, P]

    # conv2: 9 taps; per-tap row-gather of conv1 output via one-hot matmul.
    # src index -1 == zero-padding row -> all-zero selection row (free pad).
    acc2 = jnp.zeros((r2, P), jnp.float32)
    for t in range(n_taps):
        sel = (lax.broadcasted_iota(jnp.int32, (r2, r1), 1)
               == src2_ref[t]).astype(bf16)                     # [R2, R1]
        g = dot(sel, h1b).astype(bf16)                          # [R2, P]
        acc2 = acc2 + dot(g, w2_ref[t * P:(t + 1) * P, :])      # static ref slice
    h2 = jnp.maximum(acc2 + b2_ref[...], 0.0)
    h2b = h2.astype(bf16)                                       # [R2, P]

    # fc over flattened (spatial, channel): accumulate per spatial position.
    r_iota = lax.broadcasted_iota(jnp.int32, (B, r2), 1)
    b_iota = lax.broadcasted_iota(jnp.int32, (B, r2), 0)
    accf = jnp.zeros((B, P), jnp.float32)
    for s in range(s2):
        selb = (r_iota == b_iota * s2 + s).astype(bf16)         # [B, R2]
        xb = dot(selb, h2b).astype(bf16)                        # [B, P]
        accf = accf + dot(xb, wfc_ref[s * P:(s + 1) * P, :])
    o_ref[...] = jnp.maximum(accf + bfc_ref[...], 0.0)          # [B, P], lane-dense


def cnn_forward_fused(p, image_nchw):
    B, C, H, W = image_nchw.shape
    OH1, OW1 = (H - 1) // 2 + 1, (W - 1) // 2 + 1
    OH2, OW2 = (OH1 - 1) // 2 + 1, (OW1 - 1) // 2 + 1
    R1, R2, S2 = B * OH1 * OW1, B * OH2 * OW2, OH2 * OW2

    # conv1 im2col (XLA glue, fused under jit); K padded to lane multiple.
    x = jnp.transpose(image_nchw, (0, 2, 3, 1))                 # NHWC
    xp = jnp.pad(x, ((0, 0), (1, 1), (1, 1), (0, 0)))
    cols = []
    for kh in range(3):
        for kw in range(3):
            cols.append(xp[:, kh:kh + 2 * OH1:2, kw:kw + 2 * OW1:2, :])
    col1 = jnp.concatenate(cols, axis=-1).reshape(R1, 9 * C)
    k1p = p['w1'].shape[0]
    col1 = jnp.pad(col1, ((0, 0), (0, k1p - 9 * C))).astype(jnp.bfloat16)

    # conv2 tap-gather indices: pure static-shape constants (trace time numpy).
    src = np.full((9, R2, 1), -1, np.int32)
    for kh in range(3):
        for kw in range(3):
            t = kh * 3 + kw
            for b in range(B):
                for oh in range(OH2):
                    for ow in range(OW2):
                        ih, iw = 2 * oh - 1 + kh, 2 * ow - 1 + kw
                        if 0 <= ih < OH1 and 0 <= iw < OW1:
                            src[t, b * S2 + oh * OW2 + ow, 0] = (
                                b * OH1 * OW1 + ih * OW1 + iw)
    src2 = jnp.asarray(src)

    kern = functools.partial(_cnn_kernel, n_taps=9, s2=S2, r1=R1, r2=R2,
                             pad_width=P_LANE)
    return pl.pallas_call(
        kern, out_shape=jax.ShapeDtypeStruct((B, P_LANE), jnp.float32),
    )(col1, p['w1'], p['b1'], src2, p['w2'], p['b2'], p['wfc'], p['bfc'])


# ----------------------------------------------------------------------------
# Kernel 2: ALL GN layers fused into one kernel
# ----------------------------------------------------------------------------
def _gn_stack_kernel(glob_ref, node_ref, edge_ref,
                     src_c_ref, dst_c_ref, dst_r_ref,
                     ge_c_ref, ge_r_ref, gn_c_ref, gn_r_ref,
                     inv_e2n_ref, inv_n2g_ref, inv_e2g_ref,
                     we_ref, wn_ref, wg_ref, eb_ref, nb_ref, gb_ref,
                     og_ref, on_ref, oe_ref,
                     *, num_layers, pad_width, use_avg):
    P = pad_width
    bf16 = jnp.bfloat16
    dot = functools.partial(jnp.dot, preferred_element_type=jnp.float32)

    glob = glob_ref[...].astype(jnp.float32)   # [G, P] carried in f32
    node = node_ref[...].astype(jnp.float32)   # [N, P]
    edge = edge_ref[...].astype(jnp.float32)   # [E, P]
    E, N, G = edge.shape[0], node.shape[0], glob.shape[0]

    def sel_mask(shape, axis, idx):
        it = lax.broadcasted_iota(jnp.int32, shape, axis)
        return (it == idx).astype(bf16)

    # Gather (selection) and segment-sum (aggregation) masks — built once,
    # reused by every layer.
    sel_src = sel_mask((E, N), 1, src_c_ref[...])   # [E, N]
    sel_dst = sel_mask((E, N), 1, dst_c_ref[...])   # [E, N]
    sel_ge = sel_mask((E, G), 1, ge_c_ref[...])     # [E, G]
    sel_gn = sel_mask((N, G), 1, gn_c_ref[...])     # [N, G]
    agg_en = sel_mask((N, E), 0, dst_r_ref[...])    # [N, E]
    agg_gn = sel_mask((G, N), 0, gn_r_ref[...])     # [G, N]
    agg_ge = sel_mask((G, E), 0, ge_r_ref[...])     # [G, E]

    inv_e2n = inv_e2n_ref[...]                      # [N, 1]
    inv_n2g = inv_n2g_ref[...]                      # [G, 1]
    inv_e2g = inv_e2g_ref[...]                      # [G, 1]

    for l in range(num_layers):
        glob_b = glob.astype(bf16)
        node_b = node.astype(bf16)
        edge_b = edge.astype(bf16)

        def we_blk(b):
            return we_ref[(l * 4 + b) * P:(l * 4 + b + 1) * P, :]

        def wn_blk(b):
            return wn_ref[(l * 3 + b) * P:(l * 3 + b + 1) * P, :]

        def wg_blk(b):
            return wg_ref[(l * 3 + b) * P:(l * 3 + b + 1) * P, :]

        # --- edge update (linear first, then one-hot gather) ---
        t_e = dot(edge_b, we_blk(0))                          # [E, P]
        t_src = dot(node_b, we_blk(1)).astype(bf16)           # [N, P]
        t_dst = dot(node_b, we_blk(2)).astype(bf16)           # [N, P]
        t_ge = dot(glob_b, we_blk(3)).astype(bf16)            # [G, P]
        new_edge = (t_e + dot(sel_src, t_src) + dot(sel_dst, t_dst)
                    + dot(sel_ge, t_ge) + eb_ref[l])
        new_edge = jnp.maximum(new_edge, 0.0)                 # [E, P] f32
        new_edge_b = new_edge.astype(bf16)

        # --- node update (aggregate incoming edges at destination node) ---
        e2n = dot(agg_en, new_edge_b)                         # [N, P] f32
        if use_avg:
            e2n = e2n * inv_e2n
        t_n = dot(node_b, wn_blk(0))
        t_ne = dot(e2n.astype(bf16), wn_blk(1))
        t_gn = dot(glob_b, wn_blk(2)).astype(bf16)            # [G, P]
        new_node = t_n + t_ne + dot(sel_gn, t_gn) + nb_ref[l]
        new_node = jnp.maximum(new_node, 0.0)                 # [N, P] f32
        new_node_b = new_node.astype(bf16)

        # --- global update ---
        n2g = dot(agg_gn, new_node_b)                         # [G, P] f32
        e2g = dot(agg_ge, new_edge_b)                         # [G, P] f32
        if use_avg:
            n2g = n2g * inv_n2g
            e2g = e2g * inv_e2g
        new_glob = (dot(glob_b, wg_blk(0))
                    + dot(n2g.astype(bf16), wg_blk(1))
                    + dot(e2g.astype(bf16), wg_blk(2)) + gb_ref[l])
        new_glob = jnp.maximum(new_glob, 0.0)                 # [G, P] f32

        glob, node, edge = new_glob, new_node, new_edge

    og_ref[...] = glob.astype(og_ref.dtype)
    on_ref[...] = node.astype(on_ref.dtype)
    oe_ref[...] = edge.astype(oe_ref.dtype)


def gn_stack_pallas(glob, node, edge, idx, invs, stack, *, num_layers, use_avg):
    kern = functools.partial(_gn_stack_kernel, num_layers=num_layers,
                             pad_width=glob.shape[1], use_avg=use_avg)
    out_shape = (jax.ShapeDtypeStruct(glob.shape, jnp.float32),
                 jax.ShapeDtypeStruct(node.shape, jnp.float32),
                 jax.ShapeDtypeStruct(edge.shape, jnp.float32))
    return pl.pallas_call(kern, out_shape=out_shape)(
        glob, node, edge,
        idx['src_c'], idx['dst_c'], idx['dst_r'],
        idx['ge_c'], idx['ge_r'], idx['gn_c'], idx['gn_r'],
        invs['e2n'], invs['n2g'], invs['e2g'],
        stack['we'], stack['wn'], stack['wg'],
        stack['eb'], stack['nb'], stack['gb'])


# ----------------------------------------------------------------------------
# Parameter initialization (deterministic; stored padded / packed)
# ----------------------------------------------------------------------------
def _dense_init(key, fan_in, fan_out):
    w = jax.random.normal(key, (fan_in, fan_out), jnp.float32) / jnp.sqrt(float(fan_in))
    b = jnp.zeros((fan_out,), jnp.float32)
    return w, b


def _pad_cols(x, p):
    return jnp.pad(x, ((0, 0), (0, p - x.shape[1])))


def init_cnn_block(key, in_channels, out_dim, spatial, p=P_LANE):
    c1, c2 = 8, 16
    k1, k2, k3 = jax.random.split(key, 3)
    conv1_w = (jax.random.normal(k1, (3, 3, in_channels, c1), jnp.float32)
               / jnp.sqrt(9.0 * in_channels))
    conv2_w = (jax.random.normal(k2, (3, 3, c1, c2), jnp.float32)
               / jnp.sqrt(9.0 * c1))
    oh2 = spatial // 4
    s2 = oh2 * oh2
    flat = c2 * s2
    fc_w, fc_b = _dense_init(k3, flat, out_dim)

    # conv1 packed as one [K1P, P] matmul weight; rows ordered (kh, kw, c).
    k1p = _round_up(9 * in_channels, p)
    w1 = jnp.zeros((k1p, p), jnp.float32)
    w1 = w1.at[:9 * in_channels, :c1].set(conv1_w.reshape(9 * in_channels, c1))
    # conv2 packed per tap: [9*P, P].
    w2 = jnp.zeros((9 * p, p), jnp.float32)
    for kh in range(3):
        for kw in range(3):
            t = kh * 3 + kw
            w2 = w2.at[t * p:t * p + c1, :c2].set(conv2_w[kh, kw])
    # fc packed per spatial position: [S2*P, P]; flatten order is (s, c).
    wfc = jnp.zeros((s2 * p, p), jnp.float32)
    for s in range(s2):
        wfc = wfc.at[s * p:s * p + c2, :out_dim].set(fc_w[s * c2:(s + 1) * c2, :])
    bfc = jnp.zeros((1, p), jnp.float32).at[0, :out_dim].set(fc_b)
    return dict(w1=w1.astype(jnp.bfloat16), b1=jnp.zeros((1, p), jnp.float32),
                w2=w2.astype(jnp.bfloat16), b2=jnp.zeros((1, p), jnp.float32),
                wfc=wfc.astype(jnp.bfloat16), bfc=bfc)


def init_gn_block(key, in_g, in_n, in_e, out_g, out_n, out_e, p):
    k1, k2, k3 = jax.random.split(key, 3)
    ew, eb = _dense_init(k1, in_e + 2 * in_n + in_g, out_e)
    nw, nb = _dense_init(k2, in_n + out_e + in_g, out_n)
    gw, gb = _dense_init(k3, in_g + out_n + out_e, out_g)

    # Edge-update weight, split per input block and zero-padded to [4P, P].
    we = jnp.zeros((4 * p, p), jnp.float32)
    we = we.at[0:in_e, :out_e].set(ew[0:in_e])
    we = we.at[p:p + in_n, :out_e].set(ew[in_e:in_e + in_n])
    we = we.at[2 * p:2 * p + in_n, :out_e].set(ew[in_e + in_n:in_e + 2 * in_n])
    we = we.at[3 * p:3 * p + in_g, :out_e].set(ew[in_e + 2 * in_n:])
    # Node-update weight [3P, P].
    wn = jnp.zeros((3 * p, p), jnp.float32)
    wn = wn.at[0:in_n, :out_n].set(nw[0:in_n])
    wn = wn.at[p:p + out_e, :out_n].set(nw[in_n:in_n + out_e])
    wn = wn.at[2 * p:2 * p + in_g, :out_n].set(nw[in_n + out_e:])
    # Global-update weight [3P, P].
    wg = jnp.zeros((3 * p, p), jnp.float32)
    wg = wg.at[0:in_g, :out_g].set(gw[0:in_g])
    wg = wg.at[p:p + out_n, :out_g].set(gw[in_g:in_g + out_n])
    wg = wg.at[2 * p:2 * p + out_e, :out_g].set(gw[in_g + out_n:])

    return dict(
        we=we.astype(jnp.bfloat16), wn=wn.astype(jnp.bfloat16),
        wg=wg.astype(jnp.bfloat16),
        eb=jnp.zeros((1, p), jnp.float32).at[0, :out_e].set(eb),
        nb=jnp.zeros((1, p), jnp.float32).at[0, :out_n].set(nb),
        gb=jnp.zeros((1, p), jnp.float32).at[0, :out_g].set(gb))


def init_graph_net(key, *, img_in_channels, spatial, num_layers,
                   in_global, in_node, in_edge, mid_global, mid_node, mid_edge,
                   out_global, out_node, out_edge,
                   num_room_categories=8, num_behavior_categories=6, p=P_LANE):
    if out_node is None:
        out_node = 1
    if out_edge is None:
        out_edge = 1
    assert max(in_global, in_node, in_edge, mid_global, mid_node, mid_edge,
               out_global, out_node, out_edge) <= p
    keys = jax.random.split(key, 3 + num_layers)
    node_emb = jax.random.normal(keys[1], (num_room_categories, in_node), jnp.float32)
    edge_emb = jax.random.normal(keys[2], (num_behavior_categories, in_edge), jnp.float32)

    gn_layers = []
    for layer_idx in range(num_layers):
        ig, inn, ie = mid_global, mid_node, mid_edge
        og, on, oe = mid_global, mid_node, mid_edge
        if layer_idx == 0:
            ig, inn, ie = in_global, in_node, in_edge
        elif layer_idx == num_layers - 1:
            og, on, oe = out_global, out_node, out_edge
        gn_layers.append(init_gn_block(keys[3 + layer_idx], ig, inn, ie, og, on, oe, p))

    # Stack all layers into contiguous slabs so ONE kernel handles the whole GN.
    gn_stack = dict(
        we=jnp.concatenate([l['we'] for l in gn_layers], axis=0),   # [L*4P, P]
        wn=jnp.concatenate([l['wn'] for l in gn_layers], axis=0),   # [L*3P, P]
        wg=jnp.concatenate([l['wg'] for l in gn_layers], axis=0),   # [L*3P, P]
        eb=jnp.stack([l['eb'] for l in gn_layers], axis=0),         # [L, 1, P]
        nb=jnp.stack([l['nb'] for l in gn_layers], axis=0),
        gb=jnp.stack([l['gb'] for l in gn_layers], axis=0),
    )
    return {
        'cnn': init_cnn_block(keys[0], img_in_channels, in_global, spatial, p),
        'node_emb': _pad_cols(node_emb, p),   # f32, lane-padded
        'edge_emb': _pad_cols(edge_emb, p),
        'gn_stack': gn_stack,
    }


# ----------------------------------------------------------------------------
# Forward pass
# ----------------------------------------------------------------------------
@functools.partial(jax.jit, static_argnames=('aggregate_method', 'out_sizes'))
def graph_net_forward(params, image_stack, input_dict, aggregate_method, out_sizes):
    glob = cnn_forward_fused(params['cnn'], image_stack)            # [B, P] f32
    node = jnp.take(params['node_emb'], input_dict['node_categories'], axis=0)
    edge = jnp.take(params['edge_emb'], input_dict['edge_categories'], axis=0)

    src = input_dict['edge_connections'][:, 0].astype(jnp.int32)
    dst = input_dict['edge_connections'][:, 1].astype(jnp.int32)
    g_of_n = input_dict['graph_idx_of_node'].astype(jnp.int32)
    g_of_e = input_dict['graph_idx_of_edge'].astype(jnp.int32)
    N, E, G = node.shape[0], edge.shape[0], glob.shape[0]

    idx = dict(src_c=src.reshape(E, 1), dst_c=dst.reshape(E, 1),
               dst_r=dst.reshape(1, E),
               ge_c=g_of_e.reshape(E, 1), ge_r=g_of_e.reshape(1, E),
               gn_c=g_of_n.reshape(N, 1), gn_r=g_of_n.reshape(1, N))

    # Inverse segment counts: computed ONCE, reused by every fused layer.
    # Empty segments are clamped to count 1 (0-valued average, not NaN).
    cnt_e2n = jnp.zeros((N,), jnp.float32).at[dst].add(1.0)
    cnt_n2g = jnp.zeros((G,), jnp.float32).at[g_of_n].add(1.0)
    cnt_e2g = jnp.zeros((G,), jnp.float32).at[g_of_e].add(1.0)
    invs = dict(e2n=(1.0 / jnp.maximum(cnt_e2n, 1.0)).reshape(N, 1),
                n2g=(1.0 / jnp.maximum(cnt_n2g, 1.0)).reshape(G, 1),
                e2g=(1.0 / jnp.maximum(cnt_e2g, 1.0)).reshape(G, 1))

    num_layers = params['gn_stack']['we'].shape[0] // (4 * P_LANE)
    glob, node, edge = gn_stack_pallas(
        glob, node, edge, idx, invs, params['gn_stack'],
        num_layers=num_layers, use_avg=(aggregate_method == 'avg'))

    og, on, oe = out_sizes
    return glob[:, :og], node[:, :on], edge[:, :oe]


# ----------------------------------------------------------------------------
# Main
# ----------------------------------------------------------------------------
if __name__ == "__main__":
    key = jax.random.PRNGKey(0)
    k_img, k_param = jax.random.split(key)

    B, C, H, W = 2, 4, 16, 16
    num_nodes, num_edges = 6, 8
    out_sizes = (8, 1, 1)   # (out_global, out_node, out_edge)

    params = init_graph_net(
        k_param,
        img_in_channels=C, spatial=H, num_layers=3,
        in_global=32, in_node=16, in_edge=16,
        mid_global=32, mid_node=32, mid_edge=32,
        out_global=8, out_node=1, out_edge=1,
        num_room_categories=8, num_behavior_categories=6)

    image_stack = jax.random.normal(k_img, (B, C, H, W), jnp.float32)  # NCHW API
    input_dict = {
        'node_categories': jnp.array([0, 3, 5, 1, 2, 7], jnp.int32),
        'edge_categories': jnp.array([0, 1, 2, 3, 4, 5, 0, 1], jnp.int32),
        'edge_connections': jnp.array(
            [[0, 1], [1, 2], [2, 0], [1, 0],
             [3, 4], [4, 5], [5, 3], [4, 3]], jnp.int32),
        'graph_idx_of_node': jnp.array([0, 0, 0, 1, 1, 1], jnp.int32),
        'graph_idx_of_edge': jnp.array([0, 0, 0, 0, 1, 1, 1, 1], jnp.int32),
    }

    g, n, e = graph_net_forward(params, image_stack, input_dict,
                                aggregate_method='avg', out_sizes=out_sizes)
    jax.block_until_ready((g, n, e))
    assert g.shape == (B, 8) and n.shape == (num_nodes, 1) and e.shape == (num_edges, 1)
    assert bool(jnp.all(jnp.isfinite(g))) and bool(jnp.all(jnp.isfinite(n)))
    print("KERNEL_OK")
</pallas_src>

<mosaic_0001>
module attributes {stable_mosaic.version = 11 : i64} {
  func.func @_cnn_kernel(%arg0: memref<128x128xbf16, #tpu.memory_space<vmem>>, %arg1: memref<128x128xbf16, #tpu.memory_space<vmem>>, %arg2: memref<1x128xf32, #tpu.memory_space<vmem>>, %arg3: memref<9x32x1xi32, #tpu.memory_space<vmem>>, %arg4: memref<1152x128xbf16, #tpu.memory_space<vmem>>, %arg5: memref<1x128xf32, #tpu.memory_space<vmem>>, %arg6: memref<2048x128xbf16, #tpu.memory_space<vmem>>, %arg7: memref<1x128xf32, #tpu.memory_space<vmem>>, %arg8: memref<2x128xf32, #tpu.memory_space<vmem>>) attributes {dimension_semantics = [], scalar_prefetch = 0 : i64, scratch_operands = 0 : i64, tpu.core_type = #tpu.core_type<tc>} {
    %c0 = arith.constant 0 : index
    %c0_0 = arith.constant 0 : index
    %0 = vector.load %arg0[%c0, %c0_0] : memref<128x128xbf16, #tpu.memory_space<vmem>>, vector<128x128xbf16>
    %c0_1 = arith.constant 0 : index
    %c0_2 = arith.constant 0 : index
    %1 = vector.load %arg1[%c0_1, %c0_2] : memref<128x128xbf16, #tpu.memory_space<vmem>>, vector<128x128xbf16>
    %cst = arith.constant dense<0.000000e+00> : vector<128x128xf32>
    %2 = tpu.matmul %0, %1, %cst {dimension_numbers = #tpu.dot_dimension_numbers<[1], [0], [0], [1], [0, 0, 1, 1], [], []>} : vector<128x128xbf16>, vector<128x128xbf16>, vector<128x128xf32> -> vector<128x128xf32>
    %c0_3 = arith.constant 0 : index
    %c0_4 = arith.constant 0 : index
    %3 = vector.load %arg2[%c0_3, %c0_4] : memref<1x128xf32, #tpu.memory_space<vmem>>, vector<1x128xf32>
    %4 = vector.broadcast %3 : vector<1x128xf32> to vector<128x128xf32>
    %5 = arith.addf %2, %4 : vector<128x128xf32>
    %cst_5 = arith.constant 0.000000e+00 : f32
    %6 = vector.broadcast %cst_5 : f32 to vector<128x128xf32>
    %7 = arith.maximumf %5, %6 : vector<128x128xf32>
    %8 = arith.truncf %7 : vector<128x128xf32> to vector<128x128xbf16>
    %cst_6 = arith.constant 0.000000e+00 : f32
    %9 = vector.broadcast %cst_6 : f32 to vector<32x128xf32>
    %10 = tpu.iota {dimensions = array<i32: 1>} : vector<32x128xi32>
    %c0_7 = arith.constant 0 : index
    %c0_8 = arith.constant 0 : index
    %c0_9 = arith.constant 0 : index
    %11 = vector.load %arg3[%c0_7, %c0_8, %c0_9] : memref<9x32x1xi32, #tpu.memory_space<vmem>>, vector<1x32x1xi32>
    %12 = vector.shape_cast %11 : vector<1x32x1xi32> to vector<32x1xi32>
    %13 = vector.broadcast %12 : vector<32x1xi32> to vector<32x128xi32>
    %14 = arith.cmpi eq, %10, %13 : vector<32x128xi32>
    %15 = arith.extui %14 : vector<32x128xi1> to vector<32x128xi32>
    %16 = arith.sitofp %15 : vector<32x128xi32> to vector<32x128xf32>
    %17 = arith.truncf %16 : vector<32x128xf32> to vector<32x128xbf16>
    %cst_10 = arith.constant dense<0.000000e+00> : vector<32x128xf32>
    %18 = tpu.matmul %17, %8, %cst_10 {dimension_numbers = #tpu.dot_dimension_numbers<[1], [0], [0], [1], [0, 0, 1, 1], [], []>} : vector<32x128xbf16>, vector<128x128xbf16>, vector<32x128xf32> -> vector<32x128xf32>
    %19 = arith.truncf %18 : vector<32x128xf32> to vector<32x128xbf16>
    %c0_11 = arith.constant 0 : index
    %c0_12 = arith.constant 0 : index
    %20 = vector.load %arg4[%c0_11, %c0_12] : memref<1152x128xbf16, #tpu.memory_space<vmem>>, vector<128x128xbf16>
    %cst_13 = arith.constant dense<0.000000e+00> : vector<32x128xf32>
    %21 = tpu.matmul %19, %20, %cst_13 {dimension_numbers = #tpu.dot_dimension_numbers<[1], [0], [0], [1], [0, 0, 1, 1], [], []>} : vector<32x128xbf16>, vector<128x128xbf16>, vector<32x128xf32> -> vector<32x128xf32>
    %22 = arith.addf %9, %21 : vector<32x128xf32>
    %23 = tpu.iota {dimensions = array<i32: 1>} : vector<32x128xi32>
    %c1 = arith.constant 1 : index
    %c0_14 = arith.constant 0 : index
    %c0_15 = arith.constant 0 : index
    %24 = vector.load %arg3[%c1, %c0_14, %c0_15] : memref<9x32x1xi32, #tpu.memory_space<vmem>>, vector<1x32x1xi32>
    %25 = vector.shape_cast %24 : vector<1x32x1xi32> to vector<32x1xi32>
    %26 = vector.broadcast %25 : vector<32x1xi32> to vector<32x128xi32>
    %27 = arith.cmpi eq, %23, %26 : vector<32x128xi32>
    %28 = arith.extui %27 : vector<32x128xi1> to vector<32x128xi32>
    %29 = arith.sitofp %28 : vector<32x128xi32> to vector<32x128xf32>
    %30 = arith.truncf %29 : vector<32x128xf32> to vector<32x128xbf16>
    %cst_16 = arith.constant dense<0.000000e+00> : vector<32x128xf32>
    %31 = tpu.matmul %30, %8, %cst_16 {dimension_numbers = #tpu.dot_dimension_numbers<[1], [0], [0], [1], [0, 0, 1, 1], [], []>} : vector<32x128xbf16>, vector<128x128xbf16>, vector<32x128xf32> -> vector<32x128xf32>
    %32 = arith.truncf %31 : vector<32x128xf32> to vector<32x128xbf16>
    %c128 = arith.constant 128 : index
    %c0_17 = arith.constant 0 : index
    %33 = vector.load %arg4[%c128, %c0_17] : memref<1152x128xbf16, #tpu.memory_space<vmem>>, vector<128x128xbf16>
    %cst_18 = arith.constant dense<0.000000e+00> : vector<32x128xf32>
    %34 = tpu.matmul %32, %33, %cst_18 {dimension_numbers = #tpu.dot_dimension_numbers<[1], [0], [0], [1], [0, 0, 1, 1], [], []>} : vector<32x128xbf16>, vector<128x128xbf16>, vector<32x128xf32> -> vector<32x128xf32>
    %35 = arith.addf %22, %34 : vector<32x128xf32>
    %36 = tpu.iota {dimensions = array<i32: 1>} : vector<32x128xi32>
    %c2 = arith.constant 2 : index
    %c0_19 = arith.constant 0 : index
    %c0_20 = arith.constant 0 : index
    %37 = vector.load %arg3[%c2, %c0_19, %c0_20] : memref<9x32x1xi32, #tpu.memory_space<vmem>>, vector<1x32x1xi32>
    %38 = vector.shape_cast %37 : vector<1x32x1xi32> to vector<32x1xi32>
    %39 = vector.broadcast %38 : vector<32x1xi32> to vector<32x128xi32>
    %40 = arith.cmpi eq, %36, %39 : vector<32x128xi32>
    %41 = arith.extui %40 : vector<32x128xi1> to vector<32x128xi32>
    %42 = arith.sitofp %41 : vector<32x128xi32> to vector<32x128xf32>
    %43 = arith.truncf %42 : vector<32x128xf32> to vector<32x128xbf16>
    %cst_21 = arith.constant dense<0.000000e+00> : vector<32x128xf32>
    %44 = tpu.matmul %43, %8, %cst_21 {dimension_numbers = #tpu.dot_dimension_numbers<[1], [0], [0], [1], [0, 0, 1, 1], [], []>} : vector<32x128xbf16>, vector<128x128xbf16>, vector<32x128xf32> -> vector<32x128xf32>
    %45 = arith.truncf %44 : vector<32x128xf32> to vector<32x128xbf16>
    %c256 = arith.constant 256 : index
    %c0_22 = arith.constant 0 : index
    %46 = vector.load %arg4[%c256, %c0_22] : memref<1152x128xbf16, #tpu.memory_space<vmem>>, vector<128x128xbf16>
    %cst_23 = arith.constant dense<0.000000e+00> : vector<32x128xf32>
    %47 = tpu.matmul %45, %46, %cst_23 {dimension_numbers = #tpu.dot_dimension_numbers<[1], [0], [0], [1], [0, 0, 1, 1], [], []>} : vector<32x128xbf16>, vector<128x128xbf16>, vector<32x128xf32> -> vector<32x128xf32>
    %48 = arith.addf %35, %47 : vector<32x128xf32>
    %49 = tpu.iota {dimensions = array<i32: 1>} : vector<32x128xi32>
    %c3 = arith.constant 3 : index
    %c0_24 = arith.constant 0 : index
    %c0_25 = arith.constant 0 : index
    %50 = vector.load %arg3[%c3, %c0_24, %c0_25] : memref<9x32x1xi32, #tpu.memory_space<vmem>>, vector<1x32x1xi32>
    %51 = vector.shape_cast %50 : vector<1x32x1xi32> to vector<32x1xi32>
    %52 = vector.broadcast %51 : vector<32x1xi32> to vector<32x128xi32>
    %53 = arith.cmpi eq, %49, %52 : vector<32x128xi32>
    %54 = arith.extui %53 : vector<32x128xi1> to vector<32x128xi32>
    %55 = arith.sitofp %54 : vector<32x128xi32> to vector<32x128xf32>
    %56 = arith.truncf %55 : vector<32x128xf32> to vector<32x128xbf16>
    %cst_26 = arith.constant dense<0.000000e+00> : vector<32x128xf32>
    %57 = tpu.matmul %56, %8, %cst_26 {dimension_numbers = #tpu.dot_dimension_numbers<[1], [0], [0], [1], [0, 0, 1, 1], [], []>} : vector<32x128xbf16>, vector<128x128xbf16>, vector<32x128xf32> -> vector<32x128xf32>
    %58 = arith.truncf %57 : vector<32x128xf32> to vector<32x128xbf16>
    %c384 = arith.constant 384 : index
    %c0_27 = arith.constant 0 : index
    %59 = vector.load %arg4[%c384, %c0_27] : memref<1152x128xbf16, #tpu.memory_space<vmem>>, vector<128x128xbf16>
    %cst_28 = arith.constant dense<0.000000e+00> : vector<32x128xf32>
    %60 = tpu.matmul %58, %59, %cst_28 {dimension_numbers = #tpu.dot_dimension_numbers<[1], [0], [0], [1], [0, 0, 1, 1], [], []>} : vector<32x128xbf16>, vector<128x128xbf16>, vector<32x128xf32> -> vector<32x128xf32>
    %61 = arith.addf %48, %60 : vector<32x128xf32>
    %62 = tpu.iota {dimensions = array<i32: 1>} : vector<32x128xi32>
    %c4 = arith.constant 4 : index
    %c0_29 = arith.constant 0 : index
    %c0_30 = arith.constant 0 : index
    %63 = vector.load %arg3[%c4, %c0_29, %c0_30] : memref<9x32x1xi32, #tpu.memory_space<vmem>>, vector<1x32x1xi32>
    %64 = vector.shape_cast %63 : vector<1x32x1xi32> to vector<32x1xi32>
    %65 = vector.broadcast %64 : vector<32x1xi32> to vector<32x128xi32>
    %66 = arith.cmpi eq, %62, %65 : vector<32x128xi32>
    %67 = arith.extui %66 : vector<32x128xi1> to vector<32x128xi32>
    %68 = arith.sitofp %67 : vector<32x128xi32> to vector<32x128xf32>
    %69 = arith.truncf %68 : vector<32x128xf32> to vector<32x128xbf16>
    %cst_31 = arith.constant dense<0.000000e+00> : vector<32x128xf32>
    %70 = tpu.matmul %69, %8, %cst_31 {dimension_numbers = #tpu.dot_dimension_numbers<[1], [0], [0], [1], [0, 0, 1, 1], [], []>} : vector<32x128xbf16>, vector<128x128xbf16>, vector<32x128xf32> -> vector<32x128xf32>
    %71 = arith.truncf %70 : vector<32x128xf32> to vector<32x128xbf16>
    %c512 = arith.constant 512 : index
    %c0_32 = arith.constant 0 : index
    %72 = vector.load %arg4[%c512, %c0_32] : memref<1152x128xbf16, #tpu.memory_space<vmem>>, vector<128x128xbf16>
    %cst_33 = arith.constant dense<0.000000e+00> : vector<32x128xf32>
    %73 = tpu.matmul %71, %72, %cst_33 {dimension_numbers = #tpu.dot_dimension_numbers<[1], [0], [0], [1], [0, 0, 1, 1], [], []>} : vector<32x128xbf16>, vector<128x128xbf16>, vector<32x128xf32> -> vector<32x128xf32>
    %74 = arith.addf %61, %73 : vector<32x128xf32>
    %75 = tpu.iota {dimensions = array<i32: 1>} : vector<32x128xi32>
    %c5 = arith.constant 5 : index
    %c0_34 = arith.constant 0 : index
    %c0_35 = arith.constant 0 : index
    %76 = vector.load %arg3[%c5, %c0_34, %c0_35] : memref<9x32x1xi32, #tpu.memory_space<vmem>>, vector<1x32x1xi32>
    %77 = vector.shape_cast %76 : vector<1x32x1xi32> to vector<32x1xi32>
    %78 = vector.broadcast %77 : vector<32x1xi32> to vector<32x128xi32>
    %79 = arith.cmpi eq, %75, %78 : vector<32x128xi32>
    %80 = arith.extui %79 : vector<32x128xi1> to vector<32x128xi32>
    %81 = arith.sitofp %80 : vector<32x128xi32> to vector<32x128xf32>
    %82 = arith.truncf %81 : vector<32x128xf32> to vector<32x128xbf16>
    %cst_36 = arith.constant dense<0.000000e+00> : vector<32x128xf32>
    %83 = tpu.matmul %82, %8, %cst_36 {dimension_numbers = #tpu.dot_dimension_numbers<[1], [0], [0], [1], [0, 0, 1, 1], [], []>} : vector<32x128xbf16>, vector<128x128xbf16>, vector<32x128xf32> -> vector<32x128xf32>
    %84 = arith.truncf %83 : vector<32x128xf32> to vector<32x128xbf16>
    %c640 = arith.constant 640 : index
    %c0_37 = arith.constant 0 : index
    %85 = vector.load %arg4[%c640, %c0_37] : memref<1152x128xbf16, #tpu.memory_space<vmem>>, vector<128x128xbf16>
    %cst_38 = arith.constant dense<0.000000e+00> : vector<32x128xf32>
    %86 = tpu.matmul %84, %85, %cst_38 {dimension_numbers = #tpu.dot_dimension_numbers<[1], [0], [0], [1], [0, 0, 1, 1], [], []>} : vector<32x128xbf16>, vector<128x128xbf16>, vector<32x128xf32> -> vector<32x128xf32>
    %87 = arith.addf %74, %86 : vector<32x128xf32>
    %88 = tpu.iota {dimensions = array<i32: 1>} : vector<32x128xi32>
    %c6 = arith.constant 6 : index
    %c0_39 = arith.constant 0 : index
    %c0_40 = arith.constant 0 : index
    %89 = vector.load %arg3[%c6, %c0_39, %c0_40] : memref<9x32x1xi32, #tpu.memory_space<vmem>>, vector<1x32x1xi32>
    %90 = vector.shape_cast %89 : vector<1x32x1xi32> to vector<32x1xi32>
    %91 = vector.broadcast %90 : vector<32x1xi32> to vector<32x128xi32>
    %92 = arith.cmpi eq, %88, %91 : vector<32x128xi32>
    %93 = arith.extui %92 : vector<32x128xi1> to vector<32x128xi32>
    %94 = arith.sitofp %93 : vector<32x128xi32> to vector<32x128xf32>
    %95 = arith.truncf %94 : vector<32x128xf32> to vector<32x128xbf16>
    %cst_41 = arith.constant dense<0.000000e+00> : vector<32x128xf32>
    %96 = tpu.matmul %95, %8, %cst_41 {dimension_numbers = #tpu.dot_dimension_numbers<[1], [0], [0], [1], [0, 0, 1, 1], [], []>} : vector<32x128xbf16>, vector<128x128xbf16>, vector<32x128xf32> -> vector<32x128xf32>
    %97 = arith.truncf %96 : vector<32x128xf32> to vector<32x128xbf16>
    %c768 = arith.constant 768 : index
    %c0_42 = arith.constant 0 : index
    %98 = vector.load %arg4[%c768, %c0_42] : memref<1152x128xbf16, #tpu.memory_space<vmem>>, vector<128x128xbf16>
    %cst_43 = arith.constant dense<0.000000e+00> : vector<32x128xf32>
    %99 = tpu.matmul %97, %98, %cst_43 {dimension_numbers = #tpu.dot_dimension_numbers<[1], [0], [0], [1], [0, 0, 1, 1], [], []>} : vector<32x128xbf16>, vector<128x128xbf16>, vector<32x128xf32> -> vector<32x128xf32>
    %100 = arith.addf %87, %99 : vector<32x128xf32>
    %101 = tpu.iota {dimensions = array<i32: 1>} : vector<32x128xi32>
    %c7 = arith.constant 7 : index
    %c0_44 = arith.constant 0 : index
    %c0_45 = arith.constant 0 : index
    %102 = vector.load %arg3[%c7, %c0_44, %c0_45] : memref<9x32x1xi32, #tpu.memory_space<vmem>>, vector<1x32x1xi32>
    %103 = vector.shape_cast %102 : vector<1x32x1xi32> to vector<32x1xi32>
    %104 = vector.broadcast %103 : vector<32x1xi32> to vector<32x128xi32>
    %105 = arith.cmpi eq, %101, %104 : vector<32x128xi32>
    %106 = arith.extui %105 : vector<32x128xi1> to vector<32x128xi32>
    %107 = arith.sitofp %106 : vector<32x128xi32> to vector<32x128xf32>
    %108 = arith.truncf %107 : vector<32x128xf32> to vector<32x128xbf16>
    %cst_46 = arith.constant dense<0.000000e+00> : vector<32x128xf32>
    %109 = tpu.matmul %108, %8, %cst_46 {dimension_numbers = #tpu.dot_dimension_numbers<[1], [0], [0], [1], [0, 0, 1, 1], [], []>} : vector<32x128xbf16>, vector<128x128xbf16>, vector<32x128xf32> -> vector<32x128xf32>
    %110 = arith.truncf %109 : vector<32x128xf32> to vector<32x128xbf16>
    %c896 = arith.constant 896 : index
    %c0_47 = arith.constant 0 : index
    %111 = vector.load %arg4[%c896, %c0_47] : memref<1152x128xbf16, #tpu.memory_space<vmem>>, vector<128x128xbf16>
    %cst_48 = arith.constant dense<0.000000e+00> : vector<32x128xf32>
    %112 = tpu.matmul %110, %111, %cst_48 {dimension_numbers = #tpu.dot_dimension_numbers<[1], [0], [0], [1], [0, 0, 1, 1], [], []>} : vector<32x128xbf16>, vector<128x128xbf16>, vector<32x128xf32> -> vector<32x128xf32>
    %113 = arith.addf %100, %112 : vector<32x128xf32>
    %114 = tpu.iota {dimensions = array<i32: 1>} : vector<32x128xi32>
    %c8 = arith.constant 8 : index
    %c0_49 = arith.constant 0 : index
    %c0_50 = arith.constant 0 : index
    %115 = vector.load %arg3[%c8, %c0_49, %c0_50] : memref<9x32x1xi32, #tpu.memory_space<vmem>>, vector<1x32x1xi32>
    %116 = vector.shape_cast %115 : vector<1x32x1xi32> to vector<32x1xi32>
    %117 = vector.broadcast %116 : vector<32x1xi32> to vector<32x128xi32>
    %118 = arith.cmpi eq, %114, %117 : vector<32x128xi32>
    %119 = arith.extui %118 : vector<32x128xi1> to vector<32x128xi32>
    %120 = arith.sitofp %119 : vector<32x128xi32> to vector<32x128xf32>
    %121 = arith.truncf %120 : vector<32x128xf32> to vector<32x128xbf16>
    %cst_51 = arith.constant dense<0.000000e+00> : vector<32x128xf32>
    %122 = tpu.matmul %121, %8, %cst_51 {dimension_numbers = #tpu.dot_dimension_numbers<[1], [0], [0], [1], [0, 0, 1, 1], [], []>} : vector<32x128xbf16>, vector<128x128xbf16>, vector<32x128xf32> -> vector<32x128xf32>
    %123 = arith.truncf %122 : vector<32x128xf32> to vector<32x128xbf16>
    %c1024 = arith.constant 1024 : index
    %c0_52 = arith.constant 0 : index
    %124 = vector.load %arg4[%c1024, %c0_52] : memref<1152x128xbf16, #tpu.memory_space<vmem>>, vector<128x128xbf16>
    %cst_53 = arith.constant dense<0.000000e+00> : vector<32x128xf32>
    %125 = tpu.matmul %123, %124, %cst_53 {dimension_numbers = #tpu.dot_dimension_numbers<[1], [0], [0], [1], [0, 0, 1, 1], [], []>} : vector<32x128xbf16>, vector<128x128xbf16>, vector<32x128xf32> -> vector<32x128xf32>
    %126 = arith.addf %113, %125 : vector<32x128xf32>
    %c0_54 = arith.constant 0 : index
    %c0_55 = arith.constant 0 : index
    %127 = vector.load %arg5[%c0_54, %c0_55] : memref<1x128xf32, #tpu.memory_space<vmem>>, vector<1x128xf32>
    %128 = vector.broadcast %127 : vector<1x128xf32> to vector<32x128xf32>
    %129 = arith.addf %126, %128 : vector<32x128xf32>
    %cst_56 = arith.constant 0.000000e+00 : f32
    %130 = vector.broadcast %cst_56 : f32 to vector<32x128xf32>
    %131 = arith.maximumf %129, %130 : vector<32x128xf32>
    %132 = arith.truncf %131 : vector<32x128xf32> to vector<32x128xbf16>
    %133 = tpu.iota {dimensions = array<i32: 1>} : vector<2x32xi32>
    %134 = tpu.iota {dimensions = array<i32: 0>} : vector<2x32xi32>
    %cst_57 = arith.constant 0.000000e+00 : f32
    %135 = vector.broadcast %cst_57 : f32 to vector<2x128xf32>
    %c16_i32 = arith.constant 16 : i32
    %136 = vector.broadcast %c16_i32 : i32 to vector<2x32xi32>
    %137 = arith.muli %134, %136 : vector<2x32xi32>
    %c0_i32 = arith.constant 0 : i32
    %138 = vector.broadcast %c0_i32 : i32 to vector<2x32xi32>
    %139 = arith.addi %137, %138 : vector<2x32xi32>
    %140 = arith.cmpi eq, %133, %139 : vector<2x32xi32>
    %141 = arith.extui %140 : vector<2x32xi1> to vector<2x32xi32>
    %142 = arith.sitofp %141 : vector<2x32xi32> to vector<2x32xf32>
    %143 = arith.truncf %142 : vector<2x32xf32> to vector<2x32xbf16>
    %cst_58 = arith.constant dense<0.000000e+00> : vector<2x128xf32>
    %144 = tpu.matmul %143, %132, %cst_58 {dimension_numbers = #tpu.dot_dimension_numbers<[1], [0], [0], [1], [0, 0, 1, 1], [], []>} : vector<2x32xbf16>, vector<32x128xbf16>, vector<2x128xf32> -> vector<2x128xf32>
    %145 = arith.truncf %144 : vector<2x128xf32> to vector<2x128xbf16>
    %c0_59 = arith.constant 0 : index
    %c0_60 = arith.constant 0 : index
    %146 = vector.load %arg6[%c0_59, %c0_60] : memref<2048x128xbf16, #tpu.memory_space<vmem>>, vector<128x128xbf16>
    %cst_61 = arith.constant dense<0.000000e+00> : vector<2x128xf32>
    %147 = tpu.matmul %145, %146, %cst_61 {dimension_numbers = #tpu.dot_dimension_numbers<[1], [0], [0], [1], [0, 0, 1, 1], [], []>} : vector<2x128xbf16>, vector<128x128xbf16>, vector<2x128xf32> -> vector<2x128xf32>
    %148 = arith.addf %135, %147 : vector<2x128xf32>
    %c16_i32_62 = arith.constant 16 : i32
    %149 = vector.broadcast %c16_i32_62 : i32 to vector<2x32xi32>
    %150 = arith.muli %134, %149 : vector<2x32xi32>
    %c1_i32 = arith.constant 1 : i32
    %151 = vector.broadcast %c1_i32 : i32 to vector<2x32xi32>
    %152 = arith.addi %150, %151 : vector<2x32xi32>
    %153 = arith.cmpi eq, %133, %152 : vector<2x32xi32>
    %154 = arith.extui %153 : vector<2x32xi1> to vector<2x32xi32>
    %155 = arith.sitofp %154 : vector<2x32xi32> to vector<2x32xf32>
    %156 = arith.truncf %155 : vector<2x32xf32> to vector<2x32xbf16>
    %cst_63 = arith.constant dense<0.000000e+00> : vector<2x128xf32>
    %157 = tpu.matmul %156, %132, %cst_63 {dimension_numbers = #tpu.dot_dimension_numbers<[1], [0], [0], [1], [0, 0, 1, 1], [], []>} : vector<2x32xbf16>, vector<32x128xbf16>, vector<2x128xf32> -> vector<2x128xf32>
    %158 = arith.truncf %157 : vector<2x128xf32> to vector<2x128xbf16>
    %c128_64 = arith.constant 128 : index
    %c0_65 = arith.constant 0 : index
    %159 = vector.load %arg6[%c128_64, %c0_65] : memref<2048x128xbf16, #tpu.memory_space<vmem>>, vector<128x128xbf16>
    %cst_66 = arith.constant dense<0.000000e+00> : vector<2x128xf32>
    %160 = tpu.matmul %158, %159, %cst_66 {dimension_numbers = #tpu.dot_dimension_numbers<[1], [0], [0], [1], [0, 0, 1, 1], [], []>} : vector<2x128xbf16>, vector<128x128xbf16>, vector<2x128xf32> -> vector<2x128xf32>
    %161 = arith.addf %148, %160 : vector<2x128xf32>
    %c16_i32_67 = arith.constant 16 : i32
    %162 = vector.broadcast %c16_i32_67 : i32 to vector<2x32xi32>
    %163 = arith.muli %134, %162 : vector<2x32xi32>
    %c2_i32 = arith.constant 2 : i32
    %164 = vector.broadcast %c2_i32 : i32 to vector<2x32xi32>
    %165 = arith.addi %163, %164 : vector<2x32xi32>
    %166 = arith.cmpi eq, %133, %165 : vector<2x32xi32>
    %167 = arith.extui %166 : vector<2x32xi1> to vector<2x32xi32>
    %168 = arith.sitofp %167 : vector<2x32xi32> to vector<2x32xf32>
    %169 = arith.truncf %168 : vector<2x32xf32> to vector<2x32xbf16>
    %cst_68 = arith.constant dense<0.000000e+00> : vector<2x128xf32>
    %170 = tpu.matmul %169, %132, %cst_68 {dimension_numbers = #tpu.dot_dimension_numbers<[1], [0], [0], [1], [0, 0, 1, 1], [], []>} : vector<2x32xbf16>, vector<32x128xbf16>, vector<2x128xf32> -> vector<2x128xf32>
    %171 = arith.truncf %170 : vector<2x128xf32> to vector<2x128xbf16>
    %c256_69 = arith.constant 256 : index
    %c0_70 = arith.constant 0 : index
    %172 = vector.load %arg6[%c256_69, %c0_70] : memref<2048x128xbf16, #tpu.memory_space<vmem>>, vector<128x128xbf16>
    %cst_71 = arith.constant dense<0.000000e+00> : vector<2x128xf32>
    %173 = tpu.matmul %171, %172, %cst_71 {dimension_numbers = #tpu.dot_dimension_numbers<[1], [0], [0], [1], [0, 0, 1, 1], [], []>} : vector<2x128xbf16>, vector<128x128xbf16>, vector<2x128xf32> -> vector<2x128xf32>
    %174 = arith.addf %161, %173 : vector<2x128xf32>
    %c16_i32_72 = arith.constant 16 : i32
    %175 = vector.broadcast %c16_i32_72 : i32 to vector<2x32xi32>
    %176 = arith.muli %134, %175 : vector<2x32xi32>
    %c3_i32 = arith.constant 3 : i32
    %177 = vector.broadcast %c3_i32 : i32 to vector<2x32xi32>
    %178 = arith.addi %176, %177 : vector<2x32xi32>
    %179 = arith.cmpi eq, %133, %178 : vector<2x32xi32>
    %180 = arith.extui %179 : vector<2x32xi1> to vector<2x32xi32>
    %181 = arith.sitofp %180 : vector<2x32xi32> to vector<2x32xf32>
    %182 = arith.truncf %181 : vector<2x32xf32> to vector<2x32xbf16>
    %cst_73 = arith.constant dense<0.000000e+00> : vector<2x128xf32>
    %183 = tpu.matmul %182, %132, %cst_73 {dimension_numbers = #tpu.dot_dimension_numbers<[1], [0], [0], [1], [0, 0, 1, 1], [], []>} : vector<2x32xbf16>, vector<32x128xbf16>, vector<2x128xf32> -> vector<2x128xf32>
    %184 = arith.truncf %183 : vector<2x128xf32> to vector<2x128xbf16>
    %c384_74 = arith.constant 384 : index
    %c0_75 = arith.constant 0 : index
    %185 = vector.load %arg6[%c384_74, %c0_75] : memref<2048x128xbf16, #tpu.memory_space<vmem>>, vector<128x128xbf16>
    %cst_76 = arith.constant dense<0.000000e+00> : vector<2x128xf32>
    %186 = tpu.matmul %184, %185, %cst_76 {dimension_numbers = #tpu.dot_dimension_numbers<[1], [0], [0], [1], [0, 0, 1, 1], [], []>} : vector<2x128xbf16>, vector<128x128xbf16>, vector<2x128xf32> -> vector<2x128xf32>
    %187 = arith.addf %174, %186 : vector<2x128xf32>
    %c16_i32_77 = arith.constant 16 : i32
    %188 = vector.broadcast %c16_i32_77 : i32 to vector<2x32xi32>
    %189 = arith.muli %134, %188 : vector<2x32xi32>
    %c4_i32 = arith.constant 4 : i32
    %190 = vector.broadcast %c4_i32 : i32 to vector<2x32xi32>
    %191 = arith.addi %189, %190 : vector<2x32xi32>
    %192 = arith.cmpi eq, %133, %191 : vector<2x32xi32>
    %193 = arith.extui %192 : vector<2x32xi1> to vector<2x32xi32>
    %194 = arith.sitofp %193 : vector<2x32xi32> to vector<2x32xf32>
    %195 = arith.truncf %194 : vector<2x32xf32> to vector<2x32xbf16>
    %cst_78 = arith.constant dense<0.000000e+00> : vector<2x128xf32>
    %196 = tpu.matmul %195, %132, %cst_78 {dimension_numbers = #tpu.dot_dimension_numbers<[1], [0], [0], [1], [0, 0, 1, 1], [], []>} : vector<2x32xbf16>, vector<32x128xbf16>, vector<2x128xf32> -> vector<2x128xf32>
    %197 = arith.truncf %196 : vector<2x128xf32> to vector<2x128xbf16>
    %c512_79 = arith.constant 512 : index
    %c0_80 = arith.constant 0 : index
    %198 = vector.load %arg6[%c512_79, %c0_80] : memref<2048x128xbf16, #tpu.memory_space<vmem>>, vector<128x128xbf16>
    %cst_81 = arith.constant dense<0.000000e+00> : vector<2x128xf32>
    %199 = tpu.matmul %197, %198, %cst_81 {dimension_numbers = #tpu.dot_dimension_numbers<[1], [0], [0], [1], [0, 0, 1, 1], [], []>} : vector<2x128xbf16>, vector<128x128xbf16>, vector<2x128xf32> -> vector<2x128xf32>
    %200 = arith.addf %187, %199 : vector<2x128xf32>
    %c16_i32_82 = arith.constant 16 : i32
    %201 = vector.broadcast %c16_i32_82 : i32 to vector<2x32xi32>
    %202 = arith.muli %134, %201 : vector<2x32xi32>
    %c5_i32 = arith.constant 5 : i32
    %203 = vector.broadcast %c5_i32 : i32 to vector<2x32xi32>
    %204 = arith.addi %202, %203 : vector<2x32xi32>
    %205 = arith.cmpi eq, %133, %204 : vector<2x32xi32>
    %206 = arith.extui %205 : vector<2x32xi1> to vector<2x32xi32>
    %207 = arith.sitofp %206 : vector<2x32xi32> to vector<2x32xf32>
    %208 = arith.truncf %207 : vector<2x32xf32> to vector<2x32xbf16>
    %cst_83 = arith.constant dense<0.000000e+00> : vector<2x128xf32>
    %209 = tpu.matmul %208, %132, %cst_83 {dimension_numbers = #tpu.dot_dimension_numbers<[1], [0], [0], [1], [0, 0, 1, 1], [], []>} : vector<2x32xbf16>, vector<32x128xbf16>, vector<2x128xf32> -> vector<2x128xf32>
    %210 = arith.truncf %209 : vector<2x128xf32> to vector<2x128xbf16>
    %c640_84 = arith.constant 640 : index
    %c0_85 = arith.constant 0 : index
    %211 = vector.load %arg6[%c640_84, %c0_85] : memref<2048x128xbf16, #tpu.memory_space<vmem>>, vector<128x128xbf16>
    %cst_86 = arith.constant dense<0.000000e+00> : vector<2x128xf32>
    %212 = tpu.matmul %210, %211, %cst_86 {dimension_numbers = #tpu.dot_dimension_numbers<[1], [0], [0], [1], [0, 0, 1, 1], [], []>} : vector<2x128xbf16>, vector<128x128xbf16>, vector<2x128xf32> -> vector<2x128xf32>
    %213 = arith.addf %200, %212 : vector<2x128xf32>
    %c16_i32_87 = arith.constant 16 : i32
    %214 = vector.broadcast %c16_i32_87 : i32 to vector<2x32xi32>
    %215 = arith.muli %134, %214 : vector<2x32xi32>
    %c6_i32 = arith.constant 6 : i32
    %216 = vector.broadcast %c6_i32 : i32 to vector<2x32xi32>
    %217 = arith.addi %215, %216 : vector<2x32xi32>
    %218 = arith.cmpi eq, %133, %217 : vector<2x32xi32>
    %219 = arith.extui %218 : vector<2x32xi1> to vector<2x32xi32>
    %220 = arith.sitofp %219 : vector<2x32xi32> to vector<2x32xf32>
    %221 = arith.truncf %220 : vector<2x32xf32> to vector<2x32xbf16>
    %cst_88 = arith.constant dense<0.000000e+00> : vector<2x128xf32>
    %222 = tpu.matmul %221, %132, %cst_88 {dimension_numbers = #tpu.dot_dimension_numbers<[1], [0], [0], [1], [0, 0, 1, 1], [], []>} : vector<2x32xbf16>, vector<32x128xbf16>, vector<2x128xf32> -> vector<2x128xf32>
    %223 = arith.truncf %222 : vector<2x128xf32> to vector<2x128xbf16>
    %c768_89 = arith.constant 768 : index
    %c0_90 = arith.constant 0 : index
    %224 = vector.load %arg6[%c768_89, %c0_90] : memref<2048x128xbf16, #tpu.memory_space<vmem>>, vector<128x128xbf16>
    %cst_91 = arith.constant dense<0.000000e+00> : vector<2x128xf32>
    %225 = tpu.matmul %223, %224, %cst_91 {dimension_numbers = #tpu.dot_dimension_numbers<[1], [0], [0], [1], [0, 0, 1, 1], [], []>} : vector<2x128xbf16>, vector<128x128xbf16>, vector<2x128xf32> -> vector<2x128xf32>
    %226 = arith.addf %213, %225 : vector<2x128xf32>
    %c16_i32_92 = arith.constant 16 : i32
    %227 = vector.broadcast %c16_i32_92 : i32 to vector<2x32xi32>
    %228 = arith.muli %134, %227 : vector<2x32xi32>
    %c7_i32 = arith.constant 7 : i32
    %229 = vector.broadcast %c7_i32 : i32 to vector<2x32xi32>
    %230 = arith.addi %228, %229 : vector<2x32xi32>
    %231 = arith.cmpi eq, %133, %230 : vector<2x32xi32>
    %232 = arith.extui %231 : vector<2x32xi1> to vector<2x32xi32>
    %233 = arith.sitofp %232 : vector<2x32xi32> to vector<2x32xf32>
    %234 = arith.truncf %233 : vector<2x32xf32> to vector<2x32xbf16>
    %cst_93 = arith.constant dense<0.000000e+00> : vector<2x128xf32>
    %235 = tpu.matmul %234, %132, %cst_93 {dimension_numbers = #tpu.dot_dimension_numbers<[1], [0], [0], [1], [0, 0, 1, 1], [], []>} : vector<2x32xbf16>, vector<32x128xbf16>, vector<2x128xf32> -> vector<2x128xf32>
    %236 = arith.truncf %235 : vector<2x128xf32> to vector<2x128xbf16>
    %c896_94 = arith.constant 896 : index
    %c0_95 = arith.constant 0 : index
    %237 = vector.load %arg6[%c896_94, %c0_95] : memref<2048x128xbf16, #tpu.memory_space<vmem>>, vector<128x128xbf16>
    %cst_96 = arith.constant dense<0.000000e+00> : vector<2x128xf32>
    %238 = tpu.matmul %236, %237, %cst_96 {dimension_numbers = #tpu.dot_dimension_numbers<[1], [0], [0], [1], [0, 0, 1, 1], [], []>} : vector<2x128xbf16>, vector<128x128xbf16>, vector<2x128xf32> -> vector<2x128xf32>
    %239 = arith.addf %226, %238 : vector<2x128xf32>
    %c16_i32_97 = arith.constant 16 : i32
    %240 = vector.broadcast %c16_i32_97 : i32 to vector<2x32xi32>
    %241 = arith.muli %134, %240 : vector<2x32xi32>
    %c8_i32 = arith.constant 8 : i32
    %242 = vector.broadcast %c8_i32 : i32 to vector<2x32xi32>
    %243 = arith.addi %241, %242 : vector<2x32xi32>
    %244 = arith.cmpi eq, %133, %243 : vector<2x32xi32>
    %245 = arith.extui %244 : vector<2x32xi1> to vector<2x32xi32>
    %246 = arith.sitofp %245 : vector<2x32xi32> to vector<2x32xf32>
    %247 = arith.truncf %246 : vector<2x32xf32> to vector<2x32xbf16>
    %cst_98 = arith.constant dense<0.000000e+00> : vector<2x128xf32>
    %248 = tpu.matmul %247, %132, %cst_98 {dimension_numbers = #tpu.dot_dimension_numbers<[1], [0], [0], [1], [0, 0, 1, 1], [], []>} : vector<2x32xbf16>, vector<32x128xbf16>, vector<2x128xf32> -> vector<2x128xf32>
    %249 = arith.truncf %248 : vector<2x128xf32> to vector<2x128xbf16>
    %c1024_99 = arith.constant 1024 : index
    %c0_100 = arith.constant 0 : index
    %250 = vector.load %arg6[%c1024_99, %c0_100] : memref<2048x128xbf16, #tpu.memory_space<vmem>>, vector<128x128xbf16>
    %cst_101 = arith.constant dense<0.000000e+00> : vector<2x128xf32>
    %251 = tpu.matmul %249, %250, %cst_101 {dimension_numbers = #tpu.dot_dimension_numbers<[1], [0], [0], [1], [0, 0, 1, 1], [], []>} : vector<2x128xbf16>, vector<128x128xbf16>, vector<2x128xf32> -> vector<2x128xf32>
    %252 = arith.addf %239, %251 : vector<2x128xf32>
    %c16_i32_102 = arith.constant 16 : i32
    %253 = vector.broadcast %c16_i32_102 : i32 to vector<2x32xi32>
    %254 = arith.muli %134, %253 : vector<2x32xi32>
    %c9_i32 = arith.constant 9 : i32
    %255 = vector.broadcast %c9_i32 : i32 to vector<2x32xi32>
    %256 = arith.addi %254, %255 : vector<2x32xi32>
    %257 = arith.cmpi eq, %133, %256 : vector<2x32xi32>
    %258 = arith.extui %257 : vector<2x32xi1> to vector<2x32xi32>
    %259 = arith.sitofp %258 : vector<2x32xi32> to vector<2x32xf32>
    %260 = arith.truncf %259 : vector<2x32xf32> to vector<2x32xbf16>
    %cst_103 = arith.constant dense<0.000000e+00> : vector<2x128xf32>
    %261 = tpu.matmul %260, %132, %cst_103 {dimension_numbers = #tpu.dot_dimension_numbers<[1], [0], [0], [1], [0, 0, 1, 1], [], []>} : vector<2x32xbf16>, vector<32x128xbf16>, vector<2x128xf32> -> vector<2x128xf32>
    %262 = arith.truncf %261 : vector<2x128xf32> to vector<2x128xbf16>
    %c1152 = arith.constant 1152 : index
    %c0_104 = arith.constant 0 : index
    %263 = vector.load %arg6[%c1152, %c0_104] : memref<2048x128xbf16, #tpu.memory_space<vmem>>, vector<128x128xbf16>
    %cst_105 = arith.constant dense<0.000000e+00> : vector<2x128xf32>
    %264 = tpu.matmul %262, %263, %cst_105 {dimension_numbers = #tpu.dot_dimension_numbers<[1], [0], [0], [1], [0, 0, 1, 1], [], []>} : vector<2x128xbf16>, vector<128x128xbf16>, vector<2x128xf32> -> vector<2x128xf32>
    %265 = arith.addf %252, %264 : vector<2x128xf32>
    %c16_i32_106 = arith.constant 16 : i32
    %266 = vector.broadcast %c16_i32_106 : i32 to vector<2x32xi32>
    %267 = arith.muli %134, %266 : vector<2x32xi32>
    %c10_i32 = arith.constant 10 : i32
    %268 = vector.broadcast %c10_i32 : i32 to vector<2x32xi32>
    %269 = arith.addi %267, %268 : vector<2x32xi32>
    %270 = arith.cmpi eq, %133, %269 : vector<2x32xi32>
    %271 = arith.extui %270 : vector<2x32xi1> to vector<2x32xi32>
    %272 = arith.sitofp %271 : vector<2x32xi32> to vector<2x32xf32>
    %273 = arith.truncf %272 : vector<2x32xf32> to vector<2x32xbf16>
    %cst_107 = arith.constant dense<0.000000e+00> : vector<2x128xf32>
    %274 = tpu.matmul %273, %132, %cst_107 {dimension_numbers = #tpu.dot_dimension_numbers<[1], [0], [0], [1], [0, 0, 1, 1], [], []>} : vector<2x32xbf16>, vector<32x128xbf16>, vector<2x128xf32> -> vector<2x128xf32>
    %275 = arith.truncf %274 : vector<2x128xf32> to vector<2x128xbf16>
    %c1280 = arith.constant 1280 : index
    %c0_108 = arith.constant 0 : index
    %276 = vector.load %arg6[%c1280, %c0_108] : memref<2048x128xbf16, #tpu.memory_space<vmem>>, vector<128x128xbf16>
    %cst_109 = arith.constant dense<0.000000e+00> : vector<2x128xf32>
    %277 = tpu.matmul %275, %276, %cst_109 {dimension_numbers = #tpu.dot_dimension_numbers<[1], [0], [0], [1], [0, 0, 1, 1], [], []>} : vector<2x128xbf16>, vector<128x128xbf16>, vector<2x128xf32> -> vector<2x128xf32>
    %278 = arith.addf %265, %277 : vector<2x128xf32>
    %c16_i32_110 = arith.constant 16 : i32
    %279 = vector.broadcast %c16_i32_110 : i32 to vector<2x32xi32>
    %280 = arith.muli %134, %279 : vector<2x32xi32>
    %c11_i32 = arith.constant 11 : i32
    %281 = vector.broadcast %c11_i32 : i32 to vector<2x32xi32>
    %282 = arith.addi %280, %281 : vector<2x32xi32>
    %283 = arith.cmpi eq, %133, %282 : vector<2x32xi32>
    %284 = arith.extui %283 : vector<2x32xi1> to vector<2x32xi32>
    %285 = arith.sitofp %284 : vector<2x32xi32> to vector<2x32xf32>
    %286 = arith.truncf %285 : vector<2x32xf32> to vector<2x32xbf16>
    %cst_111 = arith.constant dense<0.000000e+00> : vector<2x128xf32>
    %287 = tpu.matmul %286, %132, %cst_111 {dimension_numbers = #tpu.dot_dimension_numbers<[1], [0], [0], [1], [0, 0, 1, 1], [], []>} : vector<2x32xbf16>, vector<32x128xbf16>, vector<2x128xf32> -> vector<2x128xf32>
    %288 = arith.truncf %287 : vector<2x128xf32> to vector<2x128xbf16>
    %c1408 = arith.constant 1408 : index
    %c0_112 = arith.constant 0 : index
    %289 = vector.load %arg6[%c1408, %c0_112] : memref<2048x128xbf16, #tpu.memory_space<vmem>>, vector<128x128xbf16>
    %cst_113 = arith.constant dense<0.000000e+00> : vector<2x128xf32>
    %290 = tpu.matmul %288, %289, %cst_113 {dimension_numbers = #tpu.dot_dimension_numbers<[1], [0], [0], [1], [0, 0, 1, 1], [], []>} : vector<2x128xbf16>, vector<128x128xbf16>, vector<2x128xf32> -> vector<2x128xf32>
    %291 = arith.addf %278, %290 : vector<2x128xf32>
    %c16_i32_114 = arith.constant 16 : i32
    %292 = vector.broadcast %c16_i32_114 : i32 to vector<2x32xi32>
    %293 = arith.muli %134, %292 : vector<2x32xi32>
    %c12_i32 = arith.constant 12 : i32
    %294 = vector.broadcast %c12_i32 : i32 to vector<2x32xi32>
    %295 = arith.addi %293, %294 : vector<2x32xi32>
    %296 = arith.cmpi eq, %133, %295 : vector<2x32xi32>
    %297 = arith.extui %296 : vector<2x32xi1> to vector<2x32xi32>
    %298 = arith.sitofp %297 : vector<2x32xi32> to vector<2x32xf32>
    %299 = arith.truncf %298 : vector<2x32xf32> to vector<2x32xbf16>
    %cst_115 = arith.constant dense<0.000000e+00> : vector<2x128xf32>
    %300 = tpu.matmul %299, %132, %cst_115 {dimension_numbers = #tpu.dot_dimension_numbers<[1], [0], [0], [1], [0, 0, 1, 1], [], []>} : vector<2x32xbf16>, vector<32x128xbf16>, vector<2x128xf32> -> vector<2x128xf32>
    %301 = arith.truncf %300 : vector<2x128xf32> to vector<2x128xbf16>
    %c1536 = arith.constant 1536 : index
    %c0_116 = arith.constant 0 : index
    %302 = vector.load %arg6[%c1536, %c0_116] : memref<2048x128xbf16, #tpu.memory_space<vmem>>, vector<128x128xbf16>
    %cst_117 = arith.constant dense<0.000000e+00> : vector<2x128xf32>
    %303 = tpu.matmul %301, %302, %cst_117 {dimension_numbers = #tpu.dot_dimension_numbers<[1], [0], [0], [1], [0, 0, 1, 1], [], []>} : vector<2x128xbf16>, vector<128x128xbf16>, vector<2x128xf32> -> vector<2x128xf32>
    %304 = arith.addf %291, %303 : vector<2x128xf32>
    %c16_i32_118 = arith.constant 16 : i32
    %305 = vector.broadcast %c16_i32_118 : i32 to vector<2x32xi32>
    %306 = arith.muli %134, %305 : vector<2x32xi32>
    %c13_i32 = arith.constant 13 : i32
    %307 = vector.broadcast %c13_i32 : i32 to vector<2x32xi32>
    %308 = arith.addi %306, %307 : vector<2x32xi32>
    %309 = arith.cmpi eq, %133, %308 : vector<2x32xi32>
    %310 = arith.extui %309 : vector<2x32xi1> to vector<2x32xi32>
    %311 = arith.sitofp %310 : vector<2x32xi32> to vector<2x32xf32>
    %312 = arith.truncf %311 : vector<2x32xf32> to vector<2x32xbf16>
    %cst_119 = arith.constant dense<0.000000e+00> : vector<2x128xf32>
    %313 = tpu.matmul %312, %132, %cst_119 {dimension_numbers = #tpu.dot_dimension_numbers<[1], [0], [0], [1], [0, 0, 1, 1], [], []>} : vector<2x32xbf16>, vector<32x128xbf16>, vector<2x128xf32> -> vector<2x128xf32>
    %314 = arith.truncf %313 : vector<2x128xf32> to vector<2x128xbf16>
    %c1664 = arith.constant 1664 : index
    %c0_120 = arith.constant 0 : index
    %315 = vector.load %arg6[%c1664, %c0_120] : memref<2048x128xbf16, #tpu.memory_space<vmem>>, vector<128x128xbf16>
    %cst_121 = arith.constant dense<0.000000e+00> : vector<2x128xf32>
    %316 = tpu.matmul %314, %315, %cst_121 {dimension_numbers = #tpu.dot_dimension_numbers<[1], [0], [0], [1], [0, 0, 1, 1], [], []>} : vector<2x128xbf16>, vector<128x128xbf16>, vector<2x128xf32> -> vector<2x128xf32>
    %317 = arith.addf %304, %316 : vector<2x128xf32>
    %c16_i32_122 = arith.constant 16 : i32
    %318 = vector.broadcast %c16_i32_122 : i32 to vector<2x32xi32>
    %319 = arith.muli %134, %318 : vector<2x32xi32>
    %c14_i32 = arith.constant 14 : i32
    %320 = vector.broadcast %c14_i32 : i32 to vector<2x32xi32>
    %321 = arith.addi %319, %320 : vector<2x32xi32>
    %322 = arith.cmpi eq, %133, %321 : vector<2x32xi32>
    %323 = arith.extui %322 : vector<2x32xi1> to vector<2x32xi32>
    %324 = arith.sitofp %323 : vector<2x32xi32> to vector<2x32xf32>
    %325 = arith.truncf %324 : vector<2x32xf32> to vector<2x32xbf16>
    %cst_123 = arith.constant dense<0.000000e+00> : vector<2x128xf32>
    %326 = tpu.matmul %325, %132, %cst_123 {dimension_numbers = #tpu.dot_dimension_numbers<[1], [0], [0], [1], [0, 0, 1, 1], [], []>} : vector<2x32xbf16>, vector<32x128xbf16>, vector<2x128xf32> -> vector<2x128xf32>
    %327 = arith.truncf %326 : vector<2x128xf32> to vector<2x128xbf16>
    %c1792 = arith.constant 1792 : index
    %c0_124 = arith.constant 0 : index
    %328 = vector.load %arg6[%c1792, %c0_124] : memref<2048x128xbf16, #tpu.memory_space<vmem>>, vector<128x128xbf16>
    %cst_125 = arith.constant dense<0.000000e+00> : vector<2x128xf32>
    %329 = tpu.matmul %327, %328, %cst_125 {dimension_numbers = #tpu.dot_dimension_numbers<[1], [0], [0], [1], [0, 0, 1, 1], [], []>} : vector<2x128xbf16>, vector<128x128xbf16>, vector<2x128xf32> -> vector<2x128xf32>
    %330 = arith.addf %317, %329 : vector<2x128xf32>
    %c16_i32_126 = arith.constant 16 : i32
    %331 = vector.broadcast %c16_i32_126 : i32 to vector<2x32xi32>
    %332 = arith.muli %134, %331 : vector<2x32xi32>
    %c15_i32 = arith.constant 15 : i32
    %333 = vector.broadcast %c15_i32 : i32 to vector<2x32xi32>
    %334 = arith.addi %332, %333 : vector<2x32xi32>
    %335 = arith.cmpi eq, %133, %334 : vector<2x32xi32>
    %336 = arith.extui %335 : vector<2x32xi1> to vector<2x32xi32>
    %337 = arith.sitofp %336 : vector<2x32xi32> to vector<2x32xf32>
    %338 = arith.truncf %337 : vector<2x32xf32> to vector<2x32xbf16>
    %cst_127 = arith.constant dense<0.000000e+00> : vector<2x128xf32>
    %339 = tpu.matmul %338, %132, %cst_127 {dimension_numbers = #tpu.dot_dimension_numbers<[1], [0], [0], [1], [0, 0, 1, 1], [], []>} : vector<2x32xbf16>, vector<32x128xbf16>, vector<2x128xf32> -> vector<2x128xf32>
    %340 = arith.truncf %339 : vector<2x128xf32> to vector<2x128xbf16>
    %c1920 = arith.constant 1920 : index
    %c0_128 = arith.constant 0 : index
    %341 = vector.load %arg6[%c1920, %c0_128] : memref<2048x128xbf16, #tpu.memory_space<vmem>>, vector<128x128xbf16>
    %cst_129 = arith.constant dense<0.000000e+00> : vector<2x128xf32>
    %342 = tpu.matmul %340, %341, %cst_129 {dimension_numbers = #tpu.dot_dimension_numbers<[1], [0], [0], [1], [0, 0, 1, 1], [], []>} : vector<2x128xbf16>, vector<128x128xbf16>, vector<2x128xf32> -> vector<2x128xf32>
    %343 = arith.addf %330, %342 : vector<2x128xf32>
    %c0_130 = arith.constant 0 : index
    %c0_131 = arith.constant 0 : index
    %344 = vector.load %arg7[%c0_130, %c0_131] : memref<1x128xf32, #tpu.memory_space<vmem>>, vector<1x128xf32>
    %345 = vector.broadcast %344 : vector<1x128xf32> to vector<2x128xf32>
    %346 = arith.addf %343, %345 : vector<2x128xf32>
    %cst_132 = arith.constant 0.000000e+00 : f32
    %347 = vector.broadcast %cst_132 : f32 to vector<2x128xf32>
    %348 = arith.maximumf %346, %347 : vector<2x128xf32>
    %c0_133 = arith.constant 0 : index
    %c0_134 = arith.constant 0 : index
    %349 = vector.load %arg8[%c0_133, %c0_134] : memref<2x128xf32, #tpu.memory_space<vmem>>, vector<2x128xf32>
    tpu.vector_store %arg8[%c0_133, %c0_134], %348 {strides = array<i32>} : memref<2x128xf32, #tpu.memory_space<vmem>>, vector<2x128xf32>,
    return
  }
}

module attributes {stable_mosaic.version = 11 : i64} {
  func.func @_gn_stack_kernel(%arg0: memref<2x128xf32, #tpu.memory_space<vmem>>, %arg1: memref<6x128xf32, #tpu.memory_space<vmem>>, %arg2: memref<8x128xf32, #tpu.memory_space<vmem>>, %arg3: memref<8x1xi32, #tpu.memory_space<vmem>>, %arg4: memref<8x1xi32, #tpu.memory_space<vmem>>, %arg5: memref<1x8xi32, #tpu.memory_space<vmem>>, %arg6: memref<8x1xi32, #tpu.memory_space<vmem>>, %arg7: memref<1x8xi32, #tpu.memory_space<vmem>>, %arg8: memref<6x1xi32, #tpu.memory_space<vmem>>, %arg9: memref<1x6xi32, #tpu.memory_space<vmem>>, %arg10: memref<6x1xf32, #tpu.memory_space<vmem>>, %arg11: memref<2x1xf32, #tpu.memory_space<vmem>>, %arg12: memref<2x1xf32, #tpu.memory_space<vmem>>, %arg13: memref<1536x128xbf16, #tpu.memory_space<vmem>>, %arg14: memref<1152x128xbf16, #tpu.memory_space<vmem>>, %arg15: memref<1152x128xbf16, #tpu.memory_space<vmem>>, %arg16: memref<3x1x128xf32, #tpu.memory_space<vmem>>, %arg17: memref<3x1x128xf32, #tpu.memory_space<vmem>>, %arg18: memref<3x1x128xf32, #tpu.memory_space<vmem>>, %arg19: memref<2x128xf32, #tpu.memory_space<vmem>>, %arg20: memref<6x128xf32, #tpu.memory_space<vmem>>, %arg21: memref<8x128xf32, #tpu.memory_space<vmem>>) attributes {dimension_semantics = [], scalar_prefetch = 0 : i64, scratch_operands = 0 : i64, tpu.core_type = #tpu.core_type<tc>} {
    %c0 = arith.constant 0 : index
    %c0_0 = arith.constant 0 : index
    %0 = vector.load %arg0[%c0, %c0_0] : memref<2x128xf32, #tpu.memory_space<vmem>>, vector<2x128xf32>
    %c0_1 = arith.constant 0 : index
    %c0_2 = arith.constant 0 : index
    %1 = vector.load %arg1[%c0_1, %c0_2] : memref<6x128xf32, #tpu.memory_space<vmem>>, vector<6x128xf32>
    %c0_3 = arith.constant 0 : index
    %c0_4 = arith.constant 0 : index
    %2 = vector.load %arg2[%c0_3, %c0_4] : memref<8x128xf32, #tpu.memory_space<vmem>>, vector<8x128xf32>
    %c0_5 = arith.constant 0 : index
    %c0_6 = arith.constant 0 : index
    %3 = vector.load %arg3[%c0_5, %c0_6] : memref<8x1xi32, #tpu.memory_space<vmem>>, vector<8x1xi32>
    %4 = tpu.iota {dimensions = array<i32: 1>} : vector<8x6xi32>
    %5 = vector.broadcast %3 : vector<8x1xi32> to vector<8x6xi32>
    %6 = arith.cmpi eq, %4, %5 : vector<8x6xi32>
    %7 = arith.extui %6 : vector<8x6xi1> to vector<8x6xi32>
    %8 = arith.sitofp %7 : vector<8x6xi32> to vector<8x6xf32>
    %9 = arith.truncf %8 : vector<8x6xf32> to vector<8x6xbf16>
    %c0_7 = arith.constant 0 : index
    %c0_8 = arith.constant 0 : index
    %10 = vector.load %arg4[%c0_7, %c0_8] : memref<8x1xi32, #tpu.memory_space<vmem>>, vector<8x1xi32>
    %11 = tpu.iota {dimensions = array<i32: 1>} : vector<8x6xi32>
    %12 = vector.broadcast %10 : vector<8x1xi32> to vector<8x6xi32>
    %13 = arith.cmpi eq, %11, %12 : vector<8x6xi32>
    %14 = arith.extui %13 : vector<8x6xi1> to vector<8x6xi32>
    %15 = arith.sitofp %14 : vector<8x6xi32> to vector<8x6xf32>
    %16 = arith.truncf %15 : vector<8x6xf32> to vector<8x6xbf16>
    %c0_9 = arith.constant 0 : index
    %c0_10 = arith.constant 0 : index
    %17 = vector.load %arg6[%c0_9, %c0_10] : memref<8x1xi32, #tpu.memory_space<vmem>>, vector<8x1xi32>
    %18 = tpu.iota {dimensions = array<i32: 1>} : vector<8x2xi32>
    %19 = vector.broadcast %17 : vector<8x1xi32> to vector<8x2xi32>
    %20 = arith.cmpi eq, %18, %19 : vector<8x2xi32>
    %21 = arith.extui %20 : vector<8x2xi1> to vector<8x2xi32>
    %22 = arith.sitofp %21 : vector<8x2xi32> to vector<8x2xf32>
    %23 = arith.truncf %22 : vector<8x2xf32> to vector<8x2xbf16>
    %c0_11 = arith.constant 0 : index
    %c0_12 = arith.constant 0 : index
    %24 = vector.load %arg8[%c0_11, %c0_12] : memref<6x1xi32, #tpu.memory_space<vmem>>, vector<6x1xi32>
    %25 = tpu.iota {dimensions = array<i32: 1>} : vector<6x2xi32>
    %26 = vector.broadcast %24 : vector<6x1xi32> to vector<6x2xi32>
    %27 = arith.cmpi eq, %25, %26 : vector<6x2xi32>
    %28 = arith.extui %27 : vector<6x2xi1> to vector<6x2xi32>
    %29 = arith.sitofp %28 : vector<6x2xi32> to vector<6x2xf32>
    %30 = arith.truncf %29 : vector<6x2xf32> to vector<6x2xbf16>
    %c0_13 = arith.constant 0 : index
    %c0_14 = arith.constant 0 : index
    %31 = vector.load %arg5[%c0_13, %c0_14] : memref<1x8xi32, #tpu.memory_space<vmem>>, vector<1x8xi32>
    %32 = tpu.iota {dimensions = array<i32: 0>} : vector<6x8xi32>
    %33 = vector.broadcast %31 : vector<1x8xi32> to vector<6x8xi32>
    %34 = arith.cmpi eq, %32, %33 : vector<6x8xi32>
    %35 = arith.extui %34 : vector<6x8xi1> to vector<6x8xi32>
    %36 = arith.sitofp %35 : vector<6x8xi32> to vector<6x8xf32>
    %37 = arith.truncf %36 : vector<6x8xf32> to vector<6x8xbf16>
    %c0_15 = arith.constant 0 : index
    %c0_16 = arith.constant 0 : index
    %38 = vector.load %arg9[%c0_15, %c0_16] : memref<1x6xi32, #tpu.memory_space<vmem>>, vector<1x6xi32>
    %39 = tpu.iota {dimensions = array<i32: 0>} : vector<2x6xi32>
    %40 = vector.broadcast %38 : vector<1x6xi32> to vector<2x6xi32>
    %41 = arith.cmpi eq, %39, %40 : vector<2x6xi32>
    %42 = arith.extui %41 : vector<2x6xi1> to vector<2x6xi32>
    %43 = arith.sitofp %42 : vector<2x6xi32> to vector<2x6xf32>
    %44 = arith.truncf %43 : vector<2x6xf32> to vector<2x6xbf16>
    %c0_17 = arith.constant 0 : index
    %c0_18 = arith.constant 0 : index
    %45 = vector.load %arg7[%c0_17, %c0_18] : memref<1x8xi32, #tpu.memory_space<vmem>>, vector<1x8xi32>
    %46 = tpu.iota {dimensions = array<i32: 0>} : vector<2x8xi32>
    %47 = vector.broadcast %45 : vector<1x8xi32> to vector<2x8xi32>
    %48 = arith.cmpi eq, %46, %47 : vector<2x8xi32>
    %49 = arith.extui %48 : vector<2x8xi1> to vector<2x8xi32>
    %50 = arith.sitofp %49 : vector<2x8xi32> to vector<2x8xf32>
    %51 = arith.truncf %50 : vector<2x8xf32> to vector<2x8xbf16>
    %c0_19 = arith.constant 0 : index
    %c0_20 = arith.constant 0 : index
    %52 = vector.load %arg10[%c0_19, %c0_20] : memref<6x1xf32, #tpu.memory_space<vmem>>, vector<6x1xf32>
    %c0_21 = arith.constant 0 : index
    %c0_22 = arith.constant 0 : index
    %53 = vector.load %arg11[%c0_21, %c0_22] : memref<2x1xf32, #tpu.memory_space<vmem>>, vector<2x1xf32>
    %c0_23 = arith.constant 0 : index
    %c0_24 = arith.constant 0 : index
    %54 = vector.load %arg12[%c0_23, %c0_24] : memref<2x1xf32, #tpu.memory_space<vmem>>, vector<2x1xf32>
    %55 = arith.truncf %0 : vector<2x128xf32> to vector<2x128xbf16>
    %56 = arith.truncf %1 : vector<6x128xf32> to vector<6x128xbf16>
    %57 = arith.truncf %2 : vector<8x128xf32> to vector<8x128xbf16>
    %c0_25 = arith.constant 0 : index
    %c0_26 = arith.constant 0 : index
    %58 = vector.load %arg13[%c0_25, %c0_26] : memref<1536x128xbf16, #tpu.memory_space<vmem>>, vector<128x128xbf16>
    %cst = arith.constant dense<0.000000e+00> : vector<8x128xf32>
    %59 = tpu.matmul %57, %58, %cst {dimension_numbers = #tpu.dot_dimension_numbers<[1], [0], [0], [1], [0, 0, 1, 1], [], []>} : vector<8x128xbf16>, vector<128x128xbf16>, vector<8x128xf32> -> vector<8x128xf32>
    %c128 = arith.constant 128 : index
    %c0_27 = arith.constant 0 : index
    %60 = vector.load %arg13[%c128, %c0_27] : memref<1536x128xbf16, #tpu.memory_space<vmem>>, vector<128x128xbf16>
    %cst_28 = arith.constant dense<0.000000e+00> : vector<6x128xf32>
    %61 = tpu.matmul %56, %60, %cst_28 {dimension_numbers = #tpu.dot_dimension_numbers<[1], [0], [0], [1], [0, 0, 1, 1], [], []>} : vector<6x128xbf16>, vector<128x128xbf16>, vector<6x128xf32> -> vector<6x128xf32>
    %62 = arith.truncf %61 : vector<6x128xf32> to vector<6x128xbf16>
    %c256 = arith.constant 256 : index
    %c0_29 = arith.constant 0 : index
    %63 = vector.load %arg13[%c256, %c0_29] : memref<1536x128xbf16, #tpu.memory_space<vmem>>, vector<128x128xbf16>
    %cst_30 = arith.constant dense<0.000000e+00> : vector<6x128xf32>
    %64 = tpu.matmul %56, %63, %cst_30 {dimension_numbers = #tpu.dot_dimension_numbers<[1], [0], [0], [1], [0, 0, 1, 1], [], []>} : vector<6x128xbf16>, vector<128x128xbf16>, vector<6x128xf32> -> vector<6x128xf32>
    %65 = arith.truncf %64 : vector<6x128xf32> to vector<6x128xbf16>
    %c384 = arith.constant 384 : index
    %c0_31 = arith.constant 0 : index
    %66 = vector.load %arg13[%c384, %c0_31] : memref<1536x128xbf16, #tpu.memory_space<vmem>>, vector<128x128xbf16>
    %cst_32 = arith.constant dense<0.000000e+00> : vector<2x128xf32>
    %67 = tpu.matmul %55, %66, %cst_32 {dimension_numbers = #tpu.dot_dimension_numbers<[1], [0], [0], [1], [0, 0, 1, 1], [], []>} : vector<2x128xbf16>, vector<128x128xbf16>, vector<2x128xf32> -> vector<2x128xf32>
    %68 = arith.truncf %67 : vector<2x128xf32> to vector<2x128xbf16>
    %cst_33 = arith.constant dense<0.000000e+00> : vector<8x128xf32>
    %69 = tpu.matmul %9, %62, %cst_33 {dimension_numbers = #tpu.dot_dimension_numbers<[1], [0], [0], [1], [0, 0, 1, 1], [], []>} : vector<8x6xbf16>, vector<6x128xbf16>, vector<8x128xf32> -> vector<8x128xf32>
    %70 = arith.addf %59, %69 : vector<8x128xf32>
    %cst_34 = arith.constant dense<0.000000e+00> : vector<8x128xf32>
    %71 = tpu.matmul %16, %65, %cst_34 {dimension_numbers = #tpu.dot_dimension_numbers<[1], [0], [0], [1], [0, 0, 1, 1], [], []>} : vector<8x6xbf16>, vector<6x128xbf16>, vector<8x128xf32> -> vector<8x128xf32>
    %72 = arith.addf %70, %71 : vector<8x128xf32>
    %cst_35 = arith.constant dense<0.000000e+00> : vector<8x128xf32>
    %73 = tpu.matmul %23, %68, %cst_35 {dimension_numbers = #tpu.dot_dimension_numbers<[1], [0], [0], [1], [0, 0, 1, 1], [], []>} : vector<8x2xbf16>, vector<2x128xbf16>, vector<8x128xf32> -> vector<8x128xf32>
    %74 = arith.addf %72, %73 : vector<8x128xf32>
    %c0_36 = arith.constant 0 : index
    %c0_37 = arith.constant 0 : index
    %c0_38 = arith.constant 0 : index
    %75 = vector.load %arg16[%c0_36, %c0_37, %c0_38] : memref<3x1x128xf32, #tpu.memory_space<vmem>>, vector<1x1x128xf32>
    %76 = vector.shape_cast %75 : vector<1x1x128xf32> to vector<1x128xf32>
    %77 = vector.broadcast %76 : vector<1x128xf32> to vector<8x128xf32>
    %78 = arith.addf %74, %77 : vector<8x128xf32>
    %cst_39 = arith.constant 0.000000e+00 : f32
    %79 = vector.broadcast %cst_39 : f32 to vector<8x128xf32>
    %80 = arith.maximumf %78, %79 : vector<8x128xf32>
    %81 = arith.truncf %80 : vector<8x128xf32> to vector<8x128xbf16>
    %cst_40 = arith.constant dense<0.000000e+00> : vector<6x128xf32>
    %82 = tpu.matmul %37, %81, %cst_40 {dimension_numbers = #tpu.dot_dimension_numbers<[1], [0], [0], [1], [0, 0, 1, 1], [], []>} : vector<6x8xbf16>, vector<8x128xbf16>, vector<6x128xf32> -> vector<6x128xf32>
    %83 = vector.broadcast %52 : vector<6x1xf32> to vector<6x128xf32>
    %84 = arith.mulf %82, %83 : vector<6x128xf32>
    %c0_41 = arith.constant 0 : index
    %c0_42 = arith.constant 0 : index
    %85 = vector.load %arg14[%c0_41, %c0_42] : memref<1152x128xbf16, #tpu.memory_space<vmem>>, vector<128x128xbf16>
    %cst_43 = arith.constant dense<0.000000e+00> : vector<6x128xf32>
    %86 = tpu.matmul %56, %85, %cst_43 {dimension_numbers = #tpu.dot_dimension_numbers<[1], [0], [0], [1], [0, 0, 1, 1], [], []>} : vector<6x128xbf16>, vector<128x128xbf16>, vector<6x128xf32> -> vector<6x128xf32>
    %87 = arith.truncf %84 : vector<6x128xf32> to vector<6x128xbf16>
    %c128_44 = arith.constant 128 : index
    %c0_45 = arith.constant 0 : index
    %88 = vector.load %arg14[%c128_44, %c0_45] : memref<1152x128xbf16, #tpu.memory_space<vmem>>, vector<128x128xbf16>
    %cst_46 = arith.constant dense<0.000000e+00> : vector<6x128xf32>
    %89 = tpu.matmul %87, %88, %cst_46 {dimension_numbers = #tpu.dot_dimension_numbers<[1], [0], [0], [1], [0, 0, 1, 1], [], []>} : vector<6x128xbf16>, vector<128x128xbf16>, vector<6x128xf32> -> vector<6x128xf32>
    %c256_47 = arith.constant 256 : index
    %c0_48 = arith.constant 0 : index
    %90 = vector.load %arg14[%c256_47, %c0_48] : memref<1152x128xbf16, #tpu.memory_space<vmem>>, vector<128x128xbf16>
    %cst_49 = arith.constant dense<0.000000e+00> : vector<2x128xf32>
    %91 = tpu.matmul %55, %90, %cst_49 {dimension_numbers = #tpu.dot_dimension_numbers<[1], [0], [0], [1], [0, 0, 1, 1], [], []>} : vector<2x128xbf16>, vector<128x128xbf16>, vector<2x128xf32> -> vector<2x128xf32>
    %92 = arith.truncf %91 : vector<2x128xf32> to vector<2x128xbf16>
    %93 = arith.addf %86, %89 : vector<6x128xf32>
    %cst_50 = arith.constant dense<0.000000e+00> : vector<6x128xf32>
    %94 = tpu.matmul %30, %92, %cst_50 {dimension_numbers = #tpu.dot_dimension_numbers<[1], [0], [0], [1], [0, 0, 1, 1], [], []>} : vector<6x2xbf16>, vector<2x128xbf16>, vector<6x128xf32> -> vector<6x128xf32>
    %95 = arith.addf %93, %94 : vector<6x128xf32>
    %c0_51 = arith.constant 0 : index
    %c0_52 = arith.constant 0 : index
    %c0_53 = arith.constant 0 : index
    %96 = vector.load %arg17[%c0_51, %c0_52, %c0_53] : memref<3x1x128xf32, #tpu.memory_space<vmem>>, vector<1x1x128xf32>
    %97 = vector.shape_cast %96 : vector<1x1x128xf32> to vector<1x128xf32>
    %98 = vector.broadcast %97 : vector<1x128xf32> to vector<6x128xf32>
    %99 = arith.addf %95, %98 : vector<6x128xf32>
    %cst_54 = arith.constant 0.000000e+00 : f32
    %100 = vector.broadcast %cst_54 : f32 to vector<6x128xf32>
    %101 = arith.maximumf %99, %100 : vector<6x128xf32>
    %102 = arith.truncf %101 : vector<6x128xf32> to vector<6x128xbf16>
    %cst_55 = arith.constant dense<0.000000e+00> : vector<2x128xf32>
    %103 = tpu.matmul %44, %102, %cst_55 {dimension_numbers = #tpu.dot_dimension_numbers<[1], [0], [0], [1], [0, 0, 1, 1], [], []>} : vector<2x6xbf16>, vector<6x128xbf16>, vector<2x128xf32> -> vector<2x128xf32>
    %cst_56 = arith.constant dense<0.000000e+00> : vector<2x128xf32>
    %104 = tpu.matmul %51, %81, %cst_56 {dimension_numbers = #tpu.dot_dimension_numbers<[1], [0], [0], [1], [0, 0, 1, 1], [], []>} : vector<2x8xbf16>, vector<8x128xbf16>, vector<2x128xf32> -> vector<2x128xf32>
    %105 = vector.broadcast %53 : vector<2x1xf32> to vector<2x128xf32>
    %106 = arith.mulf %103, %105 : vector<2x128xf32>
    %107 = vector.broadcast %54 : vector<2x1xf32> to vector<2x128xf32>
    %108 = arith.mulf %104, %107 : vector<2x128xf32>
    %c0_57 = arith.constant 0 : index
    %c0_58 = arith.constant 0 : index
    %109 = vector.load %arg15[%c0_57, %c0_58] : memref<1152x128xbf16, #tpu.memory_space<vmem>>, vector<128x128xbf16>
    %cst_59 = arith.constant dense<0.000000e+00> : vector<2x128xf32>
    %110 = tpu.matmul %55, %109, %cst_59 {dimension_numbers = #tpu.dot_dimension_numbers<[1], [0], [0], [1], [0, 0, 1, 1], [], []>} : vector<2x128xbf16>, vector<128x128xbf16>, vector<2x128xf32> -> vector<2x128xf32>
    %111 = arith.truncf %106 : vector<2x128xf32> to vector<2x128xbf16>
    %c128_60 = arith.constant 128 : index
    %c0_61 = arith.constant 0 : index
    %112 = vector.load %arg15[%c128_60, %c0_61] : memref<1152x128xbf16, #tpu.memory_space<vmem>>, vector<128x128xbf16>
    %cst_62 = arith.constant dense<0.000000e+00> : vector<2x128xf32>
    %113 = tpu.matmul %111, %112, %cst_62 {dimension_numbers = #tpu.dot_dimension_numbers<[1], [0], [0], [1], [0, 0, 1, 1], [], []>} : vector<2x128xbf16>, vector<128x128xbf16>, vector<2x128xf32> -> vector<2x128xf32>
    %114 = arith.addf %110, %113 : vector<2x128xf32>
    %115 = arith.truncf %108 : vector<2x128xf32> to vector<2x128xbf16>
    %c256_63 = arith.constant 256 : index
    %c0_64 = arith.constant 0 : index
    %116 = vector.load %arg15[%c256_63, %c0_64] : memref<1152x128xbf16, #tpu.memory_space<vmem>>, vector<128x128xbf16>
    %cst_65 = arith.constant dense<0.000000e+00> : vector<2x128xf32>
    %117 = tpu.matmul %115, %116, %cst_65 {dimension_numbers = #tpu.dot_dimension_numbers<[1], [0], [0], [1], [0, 0, 1, 1], [], []>} : vector<2x128xbf16>, vector<128x128xbf16>, vector<2x128xf32> -> vector<2x128xf32>
    %118 = arith.addf %114, %117 : vector<2x128xf32>
    %c0_66 = arith.constant 0 : index
    %c0_67 = arith.constant 0 : index
    %c0_68 = arith.constant 0 : index
    %119 = vector.load %arg18[%c0_66, %c0_67, %c0_68] : memref<3x1x128xf32, #tpu.memory_space<vmem>>, vector<1x1x128xf32>
    %120 = vector.shape_cast %119 : vector<1x1x128xf32> to vector<1x128xf32>
    %121 = vector.broadcast %120 : vector<1x128xf32> to vector<2x128xf32>
    %122 = arith.addf %118, %121 : vector<2x128xf32>
    %cst_69 = arith.constant 0.000000e+00 : f32
    %123 = vector.broadcast %cst_69 : f32 to vector<2x128xf32>
    %124 = arith.maximumf %122, %123 : vector<2x128xf32>
    %125 = arith.truncf %124 : vector<2x128xf32> to vector<2x128xbf16>
    %126 = arith.truncf %101 : vector<6x128xf32> to vector<6x128xbf16>
    %127 = arith.truncf %80 : vector<8x128xf32> to vector<8x128xbf16>
    %c512 = arith.constant 512 : index
    %c0_70 = arith.constant 0 : index
    %128 = vector.load %arg13[%c512, %c0_70] : memref<1536x128xbf16, #tpu.memory_space<vmem>>, vector<128x128xbf16>
    %cst_71 = arith.constant dense<0.000000e+00> : vector<8x128xf32>
    %129 = tpu.matmul %127, %128, %cst_71 {dimension_numbers = #tpu.dot_dimension_numbers<[1], [0], [0], [1], [0, 0, 1, 1], [], []>} : vector<8x128xbf16>, vector<128x128xbf16>, vector<8x128xf32> -> vector<8x128xf32>
    %c640 = arith.constant 640 : index
    %c0_72 = arith.constant 0 : index
    %130 = vector.load %arg13[%c640, %c0_72] : memref<1536x128xbf16, #tpu.memory_space<vmem>>, vector<128x128xbf16>
    %cst_73 = arith.constant dense<0.000000e+00> : vector<6x128xf32>
    %131 = tpu.matmul %126, %130, %cst_73 {dimension_numbers = #tpu.dot_dimension_numbers<[1], [0], [0], [1], [0, 0, 1, 1], [], []>} : vector<6x128xbf16>, vector<128x128xbf16>, vector<6x128xf32> -> vector<6x128xf32>
    %132 = arith.truncf %131 : vector<6x128xf32> to vector<6x128xbf16>
    %c768 = arith.constant 768 : index
    %c0_74 = arith.constant 0 : index
    %133 = vector.load %arg13[%c768, %c0_74] : memref<1536x128xbf16, #tpu.memory_space<vmem>>, vector<128x128xbf16>
    %cst_75 = arith.constant dense<0.000000e+00> : vector<6x128xf32>
    %134 = tpu.matmul %126, %133, %cst_75 {dimension_numbers = #tpu.dot_dimension_numbers<[1], [0], [0], [1], [0, 0, 1, 1], [], []>} : vector<6x128xbf16>, vector<128x128xbf16>, vector<6x128xf32> -> vector<6x128xf32>
    %135 = arith.truncf %134 : vector<6x128xf32> to vector<6x128xbf16>
    %c896 = arith.constant 896 : index
    %c0_76 = arith.constant 0 : index
    %136 = vector.load %arg13[%c896, %c0_76] : memref<1536x128xbf16, #tpu.memory_space<vmem>>, vector<128x128xbf16>
    %cst_77 = arith.constant dense<0.000000e+00> : vector<2x128xf32>
    %137 = tpu.matmul %125, %136, %cst_77 {dimension_numbers = #tpu.dot_dimension_numbers<[1], [0], [0], [1], [0, 0, 1, 1], [], []>} : vector<2x128xbf16>, vector<128x128xbf16>, vector<2x128xf32> -> vector<2x128xf32>
    %138 = arith.truncf %137 : vector<2x128xf32> to vector<2x128xbf16>
    %cst_78 = arith.constant dense<0.000000e+00> : vector<8x128xf32>
    %139 = tpu.matmul %9, %132, %cst_78 {dimension_numbers = #tpu.dot_dimension_numbers<[1], [0], [0], [1], [0, 0, 1, 1], [], []>} : vector<8x6xbf16>, vector<6x128xbf16>, vector<8x128xf32> -> vector<8x128xf32>
    %140 = arith.addf %129, %139 : vector<8x128xf32>
    %cst_79 = arith.constant dense<0.000000e+00> : vector<8x128xf32>
    %141 = tpu.matmul %16, %135, %cst_79 {dimension_numbers = #tpu.dot_dimension_numbers<[1], [0], [0], [1], [0, 0, 1, 1], [], []>} : vector<8x6xbf16>, vector<6x128xbf16>, vector<8x128xf32> -> vector<8x128xf32>
    %142 = arith.addf %140, %141 : vector<8x128xf32>
    %cst_80 = arith.constant dense<0.000000e+00> : vector<8x128xf32>
    %143 = tpu.matmul %23, %138, %cst_80 {dimension_numbers = #tpu.dot_dimension_numbers<[1], [0], [0], [1], [0, 0, 1, 1], [], []>} : vector<8x2xbf16>, vector<2x128xbf16>, vector<8x128xf32> -> vector<8x128xf32>
    %144 = arith.addf %142, %143 : vector<8x128xf32>
    %c1 = arith.constant 1 : index
    %c0_81 = arith.constant 0 : index
    %c0_82 = arith.constant 0 : index
    %145 = vector.load %arg16[%c1, %c0_81, %c0_82] : memref<3x1x128xf32, #tpu.memory_space<vmem>>, vector<1x1x128xf32>
    %146 = vector.shape_cast %145 : vector<1x1x128xf32> to vector<1x128xf32>
    %147 = vector.broadcast %146 : vector<1x128xf32> to vector<8x128xf32>
    %148 = arith.addf %144, %147 : vector<8x128xf32>
    %cst_83 = arith.constant 0.000000e+00 : f32
    %149 = vector.broadcast %cst_83 : f32 to vector<8x128xf32>
    %150 = arith.maximumf %148, %149 : vector<8x128xf32>
    %151 = arith.truncf %150 : vector<8x128xf32> to vector<8x128xbf16>
    %cst_84 = arith.constant dense<0.000000e+00> : vector<6x128xf32>
    %152 = tpu.matmul %37, %151, %cst_84 {dimension_numbers = #tpu.dot_dimension_numbers<[1], [0], [0], [1], [0, 0, 1, 1], [], []>} : vector<6x8xbf16>, vector<8x128xbf16>, vector<6x128xf32> -> vector<6x128xf32>
    %153 = vector.broadcast %52 : vector<6x1xf32> to vector<6x128xf32>
    %154 = arith.mulf %152, %153 : vector<6x128xf32>
    %c384_85 = arith.constant 384 : index
    %c0_86 = arith.constant 0 : index
    %155 = vector.load %arg14[%c384_85, %c0_86] : memref<1152x128xbf16, #tpu.memory_space<vmem>>, vector<128x128xbf16>
    %cst_87 = arith.constant dense<0.000000e+00> : vector<6x128xf32>
    %156 = tpu.matmul %126, %155, %cst_87 {dimension_numbers = #tpu.dot_dimension_numbers<[1], [0], [0], [1], [0, 0, 1, 1], [], []>} : vector<6x128xbf16>, vector<128x128xbf16>, vector<6x128xf32> -> vector<6x128xf32>
    %157 = arith.truncf %154 : vector<6x128xf32> to vector<6x128xbf16>
    %c512_88 = arith.constant 512 : index
    %c0_89 = arith.constant 0 : index
    %158 = vector.load %arg14[%c512_88, %c0_89] : memref<1152x128xbf16, #tpu.memory_space<vmem>>, vector<128x128xbf16>
    %cst_90 = arith.constant dense<0.000000e+00> : vector<6x128xf32>
    %159 = tpu.matmul %157, %158, %cst_90 {dimension_numbers = #tpu.dot_dimension_numbers<[1], [0], [0], [1], [0, 0, 1, 1], [], []>} : vector<6x128xbf16>, vector<128x128xbf16>, vector<6x128xf32> -> vector<6x128xf32>
    %c640_91 = arith.constant 640 : index
    %c0_92 = arith.constant 0 : index
    %160 = vector.load %arg14[%c640_91, %c0_92] : memref<1152x128xbf16, #tpu.memory_space<vmem>>, vector<128x128xbf16>
    %cst_93 = arith.constant dense<0.000000e+00> : vector<2x128xf32>
    %161 = tpu.matmul %125, %160, %cst_93 {dimension_numbers = #tpu.dot_dimension_numbers<[1], [0], [0], [1], [0, 0, 1, 1], [], []>} : vector<2x128xbf16>, vector<128x128xbf16>, vector<2x128xf32> -> vector<2x128xf32>
    %162 = arith.truncf %161 : vector<2x128xf32> to vector<2x128xbf16>
    %163 = arith.addf %156, %159 : vector<6x128xf32>
    %cst_94 = arith.constant dense<0.000000e+00> : vector<6x128xf32>
    %164 = tpu.matmul %30, %162, %cst_94 {dimension_numbers = #tpu.dot_dimension_numbers<[1], [0], [0], [1], [0, 0, 1, 1], [], []>} : vector<6x2xbf16>, vector<2x128xbf16>, vector<6x128xf32> -> vector<6x128xf32>
    %165 = arith.addf %163, %164 : vector<6x128xf32>
    %c1_95 = arith.constant 1 : index
    %c0_96 = arith.constant 0 : index
    %c0_97 = arith.constant 0 : index
    %166 = vector.load %arg17[%c1_95, %c0_96, %c0_97] : memref<3x1x128xf32, #tpu.memory_space<vmem>>, vector<1x1x128xf32>
    %167 = vector.shape_cast %166 : vector<1x1x128xf32> to vector<1x128xf32>
    %168 = vector.broadcast %167 : vector<1x128xf32> to vector<6x128xf32>
    %169 = arith.addf %165, %168 : vector<6x128xf32>
    %cst_98 = arith.constant 0.000000e+00 : f32
    %170 = vector.broadcast %cst_98 : f32 to vector<6x128xf32>
    %171 = arith.maximumf %169, %170 : vector<6x128xf32>
    %172 = arith.truncf %171 : vector<6x128xf32> to vector<6x128xbf16>
    %cst_99 = arith.constant dense<0.000000e+00> : vector<2x128xf32>
    %173 = tpu.matmul %44, %172, %cst_99 {dimension_numbers = #tpu.dot_dimension_numbers<[1], [0], [0], [1], [0, 0, 1, 1], [], []>} : vector<2x6xbf16>, vector<6x128xbf16>, vector<2x128xf32> -> vector<2x128xf32>
    %cst_100 = arith.constant dense<0.000000e+00> : vector<2x128xf32>
    %174 = tpu.matmul %51, %151, %cst_100 {dimension_numbers = #tpu.dot_dimension_numbers<[1], [0], [0], [1], [0, 0, 1, 1], [], []>} : vector<2x8xbf16>, vector<8x128xbf16>, vector<2x128xf32> -> vector<2x128xf32>
    %175 = vector.broadcast %53 : vector<2x1xf32> to vector<2x128xf32>
    %176 = arith.mulf %173, %175 : vector<2x128xf32>
    %177 = vector.broadcast %54 : vector<2x1xf32> to vector<2x128xf32>
    %178 = arith.mulf %174, %177 : vector<2x128xf32>
    %c384_101 = arith.constant 384 : index
    %c0_102 = arith.constant 0 : index
    %179 = vector.load %arg15[%c384_101, %c0_102] : memref<1152x128xbf16, #tpu.memory_space<vmem>>, vector<128x128xbf16>
    %cst_103 = arith.constant dense<0.000000e+00> : vector<2x128xf32>
    %180 = tpu.matmul %125, %179, %cst_103 {dimension_numbers = #tpu.dot_dimension_numbers<[1], [0], [0], [1], [0, 0, 1, 1], [], []>} : vector<2x128xbf16>, vector<128x128xbf16>, vector<2x128xf32> -> vector<2x128xf32>
    %181 = arith.truncf %176 : vector<2x128xf32> to vector<2x128xbf16>
    %c512_104 = arith.constant 512 : index
    %c0_105 = arith.constant 0 : index
    %182 = vector.load %arg15[%c512_104, %c0_105] : memref<1152x128xbf16, #tpu.memory_space<vmem>>, vector<128x128xbf16>
    %cst_106 = arith.constant dense<0.000000e+00> : vector<2x128xf32>
    %183 = tpu.matmul %181, %182, %cst_106 {dimension_numbers = #tpu.dot_dimension_numbers<[1], [0], [0], [1], [0, 0, 1, 1], [], []>} : vector<2x128xbf16>, vector<128x128xbf16>, vector<2x128xf32> -> vector<2x128xf32>
    %184 = arith.addf %180, %183 : vector<2x128xf32>
    %185 = arith.truncf %178 : vector<2x128xf32> to vector<2x128xbf16>
    %c640_107 = arith.constant 640 : index
    %c0_108 = arith.constant 0 : index
    %186 = vector.load %arg15[%c640_107, %c0_108] : memref<1152x128xbf16, #tpu.memory_space<vmem>>, vector<128x128xbf16>
    %cst_109 = arith.constant dense<0.000000e+00> : vector<2x128xf32>
    %187 = tpu.matmul %185, %186, %cst_109 {dimension_numbers = #tpu.dot_dimension_numbers<[1], [0], [0], [1], [0, 0, 1, 1], [], []>} : vector<2x128xbf16>, vector<128x128xbf16>, vector<2x128xf32> -> vector<2x128xf32>
    %188 = arith.addf %184, %187 : vector<2x128xf32>
    %c1_110 = arith.constant 1 : index
    %c0_111 = arith.constant 0 : index
    %c0_112 = arith.constant 0 : index
    %189 = vector.load %arg18[%c1_110, %c0_111, %c0_112] : memref<3x1x128xf32, #tpu.memory_space<vmem>>, vector<1x1x128xf32>
    %190 = vector.shape_cast %189 : vector<1x1x128xf32> to vector<1x128xf32>
    %191 = vector.broadcast %190 : vector<1x128xf32> to vector<2x128xf32>
    %192 = arith.addf %188, %191 : vector<2x128xf32>
    %cst_113 = arith.constant 0.000000e+00 : f32
    %193 = vector.broadcast %cst_113 : f32 to vector<2x128xf32>
    %194 = arith.maximumf %192, %193 : vector<2x128xf32>
    %195 = arith.truncf %194 : vector<2x128xf32> to vector<2x128xbf16>
    %196 = arith.truncf %171 : vector<6x128xf32> to vector<6x128xbf16>
    %197 = arith.truncf %150 : vector<8x128xf32> to vector<8x128xbf16>
    %c1024 = arith.constant 1024 : index
    %c0_114 = arith.constant 0 : index
    %198 = vector.load %arg13[%c1024, %c0_114] : memref<1536x128xbf16, #tpu.memory_space<vmem>>, vector<128x128xbf16>
    %cst_115 = arith.constant dense<0.000000e+00> : vector<8x128xf32>
    %199 = tpu.matmul %197, %198, %cst_115 {dimension_numbers = #tpu.dot_dimension_numbers<[1], [0], [0], [1], [0, 0, 1, 1], [], []>} : vector<8x128xbf16>, vector<128x128xbf16>, vector<8x128xf32> -> vector<8x128xf32>
    %c1152 = arith.constant 1152 : index
    %c0_116 = arith.constant 0 : index
    %200 = vector.load %arg13[%c1152, %c0_116] : memref<1536x128xbf16, #tpu.memory_space<vmem>>, vector<128x128xbf16>
    %cst_117 = arith.constant dense<0.000000e+00> : vector<6x128xf32>
    %201 = tpu.matmul %196, %200, %cst_117 {dimension_numbers = #tpu.dot_dimension_numbers<[1], [0], [0], [1], [0, 0, 1, 1], [], []>} : vector<6x128xbf16>, vector<128x128xbf16>, vector<6x128xf32> -> vector<6x128xf32>
    %202 = arith.truncf %201 : vector<6x128xf32> to vector<6x128xbf16>
    %c1280 = arith.constant 1280 : index
    %c0_118 = arith.constant 0 : index
    %203 = vector.load %arg13[%c1280, %c0_118] : memref<1536x128xbf16, #tpu.memory_space<vmem>>, vector<128x128xbf16>
    %cst_119 = arith.constant dense<0.000000e+00> : vector<6x128xf32>
    %204 = tpu.matmul %196, %203, %cst_119 {dimension_numbers = #tpu.dot_dimension_numbers<[1], [0], [0], [1], [0, 0, 1, 1], [], []>} : vector<6x128xbf16>, vector<128x128xbf16>, vector<6x128xf32> -> vector<6x128xf32>
    %205 = arith.truncf %204 : vector<6x128xf32> to vector<6x128xbf16>
    %c1408 = arith.constant 1408 : index
    %c0_120 = arith.constant 0 : index
    %206 = vector.load %arg13[%c1408, %c0_120] : memref<1536x128xbf16, #tpu.memory_space<vmem>>, vector<128x128xbf16>
    %cst_121 = arith.constant dense<0.000000e+00> : vector<2x128xf32>
    %207 = tpu.matmul %195, %206, %cst_121 {dimension_numbers = #tpu.dot_dimension_numbers<[1], [0], [0], [1], [0, 0, 1, 1], [], []>} : vector<2x128xbf16>, vector<128x128xbf16>, vector<2x128xf32> -> vector<2x128xf32>
    %208 = arith.truncf %207 : vector<2x128xf32> to vector<2x128xbf16>
    %cst_122 = arith.constant dense<0.000000e+00> : vector<8x128xf32>
    %209 = tpu.matmul %9, %202, %cst_122 {dimension_numbers = #tpu.dot_dimension_numbers<[1], [0], [0], [1], [0, 0, 1, 1], [], []>} : vector<8x6xbf16>, vector<6x128xbf16>, vector<8x128xf32> -> vector<8x128xf32>
    %210 = arith.addf %199, %209 : vector<8x128xf32>
    %cst_123 = arith.constant dense<0.000000e+00> : vector<8x128xf32>
    %211 = tpu.matmul %16, %205, %cst_123 {dimension_numbers = #tpu.dot_dimension_numbers<[1], [0], [0], [1], [0, 0, 1, 1], [], []>} : vector<8x6xbf16>, vector<6x128xbf16>, vector<8x128xf32> -> vector<8x128xf32>
    %212 = arith.addf %210, %211 : vector<8x128xf32>
    %cst_124 = arith.constant dense<0.000000e+00> : vector<8x128xf32>
    %213 = tpu.matmul %23, %208, %cst_124 {dimension_numbers = #tpu.dot_dimension_numbers<[1], [0], [0], [1], [0, 0, 1, 1], [], []>} : vector<8x2xbf16>, vector<2x128xbf16>, vector<8x128xf32> -> vector<8x128xf32>
    %214 = arith.addf %212, %213 : vector<8x128xf32>
    %c2 = arith.constant 2 : index
    %c0_125 = arith.constant 0 : index
    %c0_126 = arith.constant 0 : index
    %215 = vector.load %arg16[%c2, %c0_125, %c0_126] : memref<3x1x128xf32, #tpu.memory_space<vmem>>, vector<1x1x128xf32>
    %216 = vector.shape_cast %215 : vector<1x1x128xf32> to vector<1x128xf32>
    %217 = vector.broadcast %216 : vector<1x128xf32> to vector<8x128xf32>
    %218 = arith.addf %214, %217 : vector<8x128xf32>
    %cst_127 = arith.constant 0.000000e+00 : f32
    %219 = vector.broadcast %cst_127 : f32 to vector<8x128xf32>
    %220 = arith.maximumf %218, %219 : vector<8x128xf32>
    %221 = arith.truncf %220 : vector<8x128xf32> to vector<8x128xbf16>
    %cst_128 = arith.constant dense<0.000000e+00> : vector<6x128xf32>
    %222 = tpu.matmul %37, %221, %cst_128 {dimension_numbers = #tpu.dot_dimension_numbers<[1], [0], [0], [1], [0, 0, 1, 1], [], []>} : vector<6x8xbf16>, vector<8x128xbf16>, vector<6x128xf32> -> vector<6x128xf32>
    %223 = vector.broadcast %52 : vector<6x1xf32> to vector<6x128xf32>
    %224 = arith.mulf %222, %223 : vector<6x128xf32>
    %c768_129 = arith.constant 768 : index
    %c0_130 = arith.constant 0 : index
    %225 = vector.load %arg14[%c768_129, %c0_130] : memref<1152x128xbf16, #tpu.memory_space<vmem>>, vector<128x128xbf16>
    %cst_131 = arith.constant dense<0.000000e+00> : vector<6x128xf32>
    %226 = tpu.matmul %196, %225, %cst_131 {dimension_numbers = #tpu.dot_dimension_numbers<[1], [0], [0], [1], [0, 0, 1, 1], [], []>} : vector<6x128xbf16>, vector<128x128xbf16>, vector<6x128xf32> -> vector<6x128xf32>
    %227 = arith.truncf %224 : vector<6x128xf32> to vector<6x128xbf16>
    %c896_132 = arith.constant 896 : index
    %c0_133 = arith.constant 0 : index
    %228 = vector.load %arg14[%c896_132, %c0_133] : memref<1152x128xbf16, #tpu.memory_space<vmem>>, vector<128x128xbf16>
    %cst_134 = arith.constant dense<0.000000e+00> : vector<6x128xf32>
    %229 = tpu.matmul %227, %228, %cst_134 {dimension_numbers = #tpu.dot_dimension_numbers<[1], [0], [0], [1], [0, 0, 1, 1], [], []>} : vector<6x128xbf16>, vector<128x128xbf16>, vector<6x128xf32> -> vector<6x128xf32>
    %c1024_135 = arith.constant 1024 : index
    %c0_136 = arith.constant 0 : index
    %230 = vector.load %arg14[%c1024_135, %c0_136] : memref<1152x128xbf16, #tpu.memory_space<vmem>>, vector<128x128xbf16>
    %cst_137 = arith.constant dense<0.000000e+00> : vector<2x128xf32>
    %231 = tpu.matmul %195, %230, %cst_137 {dimension_numbers = #tpu.dot_dimension_numbers<[1], [0], [0], [1], [0, 0, 1, 1], [], []>} : vector<2x128xbf16>, vector<128x128xbf16>, vector<2x128xf32> -> vector<2x128xf32>
    %232 = arith.truncf %231 : vector<2x128xf32> to vector<2x128xbf16>
    %233 = arith.addf %226, %229 : vector<6x128xf32>
    %cst_138 = arith.constant dense<0.000000e+00> : vector<6x128xf32>
    %234 = tpu.matmul %30, %232, %cst_138 {dimension_numbers = #tpu.dot_dimension_numbers<[1], [0], [0], [1], [0, 0, 1, 1], [], []>} : vector<6x2xbf16>, vector<2x128xbf16>, vector<6x128xf32> -> vector<6x128xf32>
    %235 = arith.addf %233, %234 : vector<6x128xf32>
    %c2_139 = arith.constant 2 : index
    %c0_140 = arith.constant 0 : index
    %c0_141 = arith.constant 0 : index
    %236 = vector.load %arg17[%c2_139, %c0_140, %c0_141] : memref<3x1x128xf32, #tpu.memory_space<vmem>>, vector<1x1x128xf32>
    %237 = vector.shape_cast %236 : vector<1x1x128xf32> to vector<1x128xf32>
    %238 = vector.broadcast %237 : vector<1x128xf32> to vector<6x128xf32>
    %239 = arith.addf %235, %238 : vector<6x128xf32>
    %cst_142 = arith.constant 0.000000e+00 : f32
    %240 = vector.broadcast %cst_142 : f32 to vector<6x128xf32>
    %241 = arith.maximumf %239, %240 : vector<6x128xf32>
    %242 = arith.truncf %241 : vector<6x128xf32> to vector<6x128xbf16>
    %cst_143 = arith.constant dense<0.000000e+00> : vector<2x128xf32>
    %243 = tpu.matmul %44, %242, %cst_143 {dimension_numbers = #tpu.dot_dimension_numbers<[1], [0], [0], [1], [0, 0, 1, 1], [], []>} : vector<2x6xbf16>, vector<6x128xbf16>, vector<2x128xf32> -> vector<2x128xf32>
    %cst_144 = arith.constant dense<0.000000e+00> : vector<2x128xf32>
    %244 = tpu.matmul %51, %221, %cst_144 {dimension_numbers = #tpu.dot_dimension_numbers<[1], [0], [0], [1], [0, 0, 1, 1], [], []>} : vector<2x8xbf16>, vector<8x128xbf16>, vector<2x128xf32> -> vector<2x128xf32>
    %245 = vector.broadcast %53 : vector<2x1xf32> to vector<2x128xf32>
    %246 = arith.mulf %243, %245 : vector<2x128xf32>
    %247 = vector.broadcast %54 : vector<2x1xf32> to vector<2x128xf32>
    %248 = arith.mulf %244, %247 : vector<2x128xf32>
    %c768_145 = arith.constant 768 : index
    %c0_146 = arith.constant 0 : index
    %249 = vector.load %arg15[%c768_145, %c0_146] : memref<1152x128xbf16, #tpu.memory_space<vmem>>, vector<128x128xbf16>
    %cst_147 = arith.constant dense<0.000000e+00> : vector<2x128xf32>
    %250 = tpu.matmul %195, %249, %cst_147 {dimension_numbers = #tpu.dot_dimension_numbers<[1], [0], [0], [1], [0, 0, 1, 1], [], []>} : vector<2x128xbf16>, vector<128x128xbf16>, vector<2x128xf32> -> vector<2x128xf32>
    %251 = arith.truncf %246 : vector<2x128xf32> to vector<2x128xbf16>
    %c896_148 = arith.constant 896 : index
    %c0_149 = arith.constant 0 : index
    %252 = vector.load %arg15[%c896_148, %c0_149] : memref<1152x128xbf16, #tpu.memory_space<vmem>>, vector<128x128xbf16>
    %cst_150 = arith.constant dense<0.000000e+00> : vector<2x128xf32>
    %253 = tpu.matmul %251, %252, %cst_150 {dimension_numbers = #tpu.dot_dimension_numbers<[1], [0], [0], [1], [0, 0, 1, 1], [], []>} : vector<2x128xbf16>, vector<128x128xbf16>, vector<2x128xf32> -> vector<2x128xf32>
    %254 = arith.addf %250, %253 : vector<2x128xf32>
    %255 = arith.truncf %248 : vector<2x128xf32> to vector<2x128xbf16>
    %c1024_151 = arith.constant 1024 : index
    %c0_152 = arith.constant 0 : index
    %256 = vector.load %arg15[%c1024_151, %c0_152] : memref<1152x128xbf16, #tpu.memory_space<vmem>>, vector<128x128xbf16>
    %cst_153 = arith.constant dense<0.000000e+00> : vector<2x128xf32>
    %257 = tpu.matmul %255, %256, %cst_153 {dimension_numbers = #tpu.dot_dimension_numbers<[1], [0], [0], [1], [0, 0, 1, 1], [], []>} : vector<2x128xbf16>, vector<128x128xbf16>, vector<2x128xf32> -> vector<2x128xf32>
    %258 = arith.addf %254, %257 : vector<2x128xf32>
    %c2_154 = arith.constant 2 : index
    %c0_155 = arith.constant 0 : index
    %c0_156 = arith.constant 0 : index
    %259 = vector.load %arg18[%c2_154, %c0_155, %c0_156] : memref<3x1x128xf32, #tpu.memory_space<vmem>>, vector<1x1x128xf32>
    %260 = vector.shape_cast %259 : vector<1x1x128xf32> to vector<1x128xf32>
    %261 = vector.broadcast %260 : vector<1x128xf32> to vector<2x128xf32>
    %262 = arith.addf %258, %261 : vector<2x128xf32>
    %cst_157 = arith.constant 0.000000e+00 : f32
    %263 = vector.broadcast %cst_157 : f32 to vector<2x128xf32>
    %264 = arith.maximumf %262, %263 : vector<2x128xf32>
    %c0_158 = arith.constant 0 : index
    %c0_159 = arith.constant 0 : index
    %265 = vector.load %arg19[%c0_158, %c0_159] : memref<2x128xf32, #tpu.memory_space<vmem>>, vector<2x128xf32>
    tpu.vector_store %arg19[%c0_158, %c0_159], %264 {strides = array<i32>} : memref<2x128xf32, #tpu.memory_space<vmem>>, vector<2x128xf32>,
    %c0_160 = arith.constant 0 : index
    %c0_161 = arith.constant 0 : index
    %266 = vector.load %arg20[%c0_160, %c0_161] : memref<6x128xf32, #tpu.memory_space<vmem>>, vector<6x128xf32>
    tpu.vector_store %arg20[%c0_160, %c0_161], %241 {strides = array<i32>} : memref<6x128xf32, #tpu.memory_space<vmem>>, vector<6x128xf32>,
    %c0_162 = arith.constant 0 : index
    %c0_163 = arith.constant 0 : index
    %267 = vector.load %arg21[%c0_162, %c0_163] : memref<8x128xf32, #tpu.memory_space<vmem>>, vector<8x128xf32>
    tpu.vector_store %arg21[%c0_162, %c0_163], %220 {strides = array<i32>} : memref<8x128xf32, #tpu.memory_space<vmem>>, vector<8x128xf32>,
    return
  }
}

</mosaic_0001>

<bundles_post_ra>
// kernel: graph_net_forward.3
= control target key start
LH: loop header
LB: loop body
LE: loop exit
PB: predicated region body
PF: predicated region fallthrough
CT: control target
= control target key end

     0   :  { %s7413_s0 = inlined_call_operand.vmem [shape: f32[2,128], index: 0, kind: input, shape index: {}]   ;;  %s7414_s1 = inlined_call_operand.vmem [shape: f32[6,128], index: 1, kind: input, shape index: {}]   ;;  %s7415_s2 = inlined_call_operand.vmem [shape: f32[8,128], index: 2, kind: input, shape index: {}]   ;;  %s7416_s3 = inlined_call_operand.vmem [shape: s32[8,1], index: 3, kind: input, shape index: {}]   ;;  %s7417_s4 = inlined_call_operand.vmem [shape: s32[8,1], index: 4, kind: input, shape index: {}]   ;;  %s7418_s5 = inlined_call_operand.vmem [shape: s32[1,8], index: 5, kind: input, shape index: {}]   ;;  %s7419_s6 = inlined_call_operand.vmem [shape: s32[8,1], index: 6, kind: input, shape index: {}]   ;;  %s7420_s7 = inlined_call_operand.vmem [shape: s32[1,8], index: 7, kind: input, shape index: {}]   ;;  %s7421_s8 = inlined_call_operand.vmem [shape: s32[6,1], index: 8, kind: input, shape index: {}]   ;;  %s7422_s9 = inlined_call_operand.vmem [shape: s32[1,6], index: 9, kind: input, shape index: {}]   ;;  %s7423_s10 = inlined_call_operand.vmem [shape: f32[6,1], index: 10, kind: input, shape index: {}]   ;;  %s7424_s11 = inlined_call_operand.vmem [shape: f32[2,1], index: 11, kind: input, shape index: {}]   ;;  %s7425_s12 = inlined_call_operand.vmem [shape: f32[2,1], index: 12, kind: input, shape index: {}]   ;;  %s7426_s13 = inlined_call_operand.vmem [shape: bf16[1536,128], index: 13, kind: input, shape index: {}]   ;;  %s7427_s14 = inlined_call_operand.vmem [shape: bf16[1152,128], index: 14, kind: input, shape index: {}]   ;;  %s7428_s15 = inlined_call_operand.vmem [shape: bf16[1152,128], index: 15, kind: input, shape index: {}]   ;;  %s7429_s16 = inlined_call_operand.vmem [shape: f32[3,1,128], index: 16, kind: input, shape index: {}]   ;;  %s7430_s17 = inlined_call_operand.vmem [shape: f32[3,1,128], index: 17, kind: input, shape index: {}]   ;;  %s7431_s18 = inlined_call_operand.vmem [shape: f32[3,1,128], index: 18, kind: input, shape index: {}]   ;;  %s7432_s19 = inlined_call_operand.hbm [shape: f32[2,128], index: 19, kind: output, shape index: {0}]   ;;  %s7433_s20 = inlined_call_operand.vmem [shape: f32[6,128], index: 20, kind: output, shape index: {1}]   ;;  %s7434_s21 = inlined_call_operand.vmem [shape: f32[8,128], index: 21, kind: output, shape index: {2}]  }
   0x1   :  { %7435 = sst [smem:[#allocation5_spill]] %s7413_s0 }
   0x2   :  { %7436 = sst [smem:[#allocation6_spill]] %s7414_s1 }
   0x3   :  { %7437 = sst [smem:[#allocation7_spill]] %s7415_s2 }
   0x4   :  { %7438 = sst [smem:[#allocation8_spill]] %s7416_s3 }
   0x5   :  { %7439 = sst [smem:[#allocation9_spill]] %s7417_s4 }
   0x6   :  { %7440 = sst [smem:[#allocation10_spill]] %s7418_s5 }
   0x7   :  { %v5687_v0 = vld [vmem:[%s7426_s13 + $0x40] sm:$0xff]   ;;  %v5951_v1 = vmov 0.0   ;;  %v5688_v2 = vld [vmem:[%s7426_s13 + $0x48] sm:$0xff]   ;;  %vm5952_vm0 = vmmov 0   ;;  %v5953_v4 = vmov 0   ;;  %v5689_v5 = vld [vmem:[%s7426_s13 + $0x50] sm:$0xff]  }
   0x8   :  { %4955 = vmatprep.subr.bf16.mxu0 %v5951_v1  ;;  %4975 = vmatprep.subr.bf16.mxu1 %v5951_v1  ;;  %v5691_v3 = vld [vmem:[%s7426_s13 + $0x80] sm:$0xff]   ;;  %v5693_v6 = vld [vmem:[%s7426_s13 + $0x88] sm:$0xff]   ;;  %v5690_v7 = vld [vmem:[%s7426_s13 + $0x58] sm:$0xff]   ;;  %s7441_s1 = sld [smem:[#allocation8_spill]]  ;;  %s7442_s27 = sld [smem:[#allocation6_spill]] }
   0x9   :  { %4956 = vmatpush3.bf16.msra.mxu0 %v5687_v0  ;;  %4971 = vmatprep.mubr.msk.bf16.mxu0 %vm5952_vm0, %v5951_v1  ;;  %v5695_v8 = vld [vmem:[%s7426_s13 + $0x90] sm:$0xff]   ;;  %v5692_v9 = vld [vmem:[%s7426_s13 + $0x60] sm:$0xff]   ;;  %v5697_v10 = vld [vmem:[%s7426_s13 + $0x98] sm:$0xff]   ;;  %s7443_s4 = sld [smem:[#allocation9_spill]]  ;;  %s7445_s26 = sld [smem:[#allocation7_spill]] }
   0xa   :  { %4957 = vmatprep.subr.bf16.mxu0 %v5951_v1  ;;  %4991 = vmatprep.mubr.msk.bf16.mxu1 %vm5952_vm0, %v5951_v1  ;;  %v5694_v11 = vld [vmem:[%s7426_s13 + $0x68] sm:$0xff]   ;;  %v5699_v12 = vld [vmem:[%s7426_s13 + $0xa0] sm:$0xff]   ;;  %v5696_v13 = vld [vmem:[%s7426_s13 + $0x70] sm:$0xff]  }
   0xb   :  { %5685 = vset.pattern.permute.xlu0 %v5953_v4  ;;  %5686 = vset.pattern.permute.xlu1 %v5953_v4  ;;  %v5701_v14 = vld [vmem:[%s7426_s13 + $0xa8] sm:$0xff]   ;;  %v5698_v16 = vld [vmem:[%s7426_s13 + $0x78] sm:$0xff]   ;;  %v5703_v18 = vld [vmem:[%s7426_s13 + $0xb0] sm:$0xff]  }
   0xc   :  { %4976 = vmatpush3.bf16.msra.mxu1 %v5691_v3  ;;  %v88_v20 = vld [vmem:[%s7419_s6] sm:$0xff]  ;;  %v5705_v22 = vld [vmem:[%s7426_s13 + $0xb8] sm:$0xff]   ;;  %v5702_v27 = vld [vmem:[%s7426_s13 + $0xc8] sm:$0xff]  }
   0xd   :  { %4958 = vmatpush3.bf16.msra.mxu0 %v5688_v2  ;;  %4977 = vmatprep.subr.bf16.mxu1 %v5951_v1  ;;  %v5700_v21 = vld [vmem:[%s7426_s13 + $0xc0] sm:$0xff]   ;;  %v5704_v30 = vld [vmem:[%s7426_s13 + $0xd0] sm:$0xff]   ;;  %v5712_v31 = vld [vmem:[%s7426_s13 + $0x8] sm:$0xff]  }
   0xe   :  { %4959 = vmatprep.subr.bf16.mxu0 %v5951_v1  ;;  %v70_v15 = vld [vmem:[%s7441_s1] sm:$0xff]  ;;  %90 = vperm.xlu1 %5686, %v88_v20   ;;  %v5706_v32 = vld [vmem:[%s7426_s13 + $0xd8] sm:$0xff]   ;;  %v5713_v33 = vld [vmem:[%s7426_s13 + $0x10] sm:$0xff]  }
   0xf   :  { %v68_v17 = vld [vmem:[%s7442_s27] sm:$0x3f]  ;;  %74 = vperm.xlu0 %5685, %v70_v15   ;;  %v5708_v35 = vld [vmem:[%s7426_s13 + $0xe8] sm:$0xff]   ;;  %v5709_v36 = vld [vmem:[%s7426_s13 + $0xf0] sm:$0xff]  }
  0x10   :  { %4978 = vmatpush3.bf16.msra.mxu1 %v5693_v6  ;;  %v80_v19 = vld [vmem:[%s7443_s4] sm:$0xff]  ;;  %v6150_v24 = vpack.c.bf16 %v68_v17, %v68_v17  ;;  %v5710_v37 = vld [vmem:[%s7426_s13 + $0xf8] sm:$0xff]   ;;  %v5716_v42 = vld [vmem:[%s7426_s13 + $0x28] sm:$0xff]  }
  0x11   :  { %4960 = vmatpush3.bf16.msra.mxu0 %v5689_v5  ;;  %4979 = vmatprep.subr.bf16.mxu1 %v5951_v1  ;;  %v96_v23 = vld [vmem:[%s7421_s8] sm:$0x3f]  ;;  %v5714_v40 = vld [vmem:[%s7426_s13 + $0x18] sm:$0xff]   ;;  %v5717_v43 = vld [vmem:[%s7426_s13 + $0x30] sm:$0xff]  }
  0x12   :  { %4961 = vmatprep.subr.bf16.mxu0 %v5951_v1  ;;  %v133_v25 = vld [vmem:[%s7423_s10] sm:$0x3f]  ;;  %s7444_s10 = sld [smem:[#allocation5_spill]]  ;;  %v5718_v44 = vld [vmem:[%s7426_s13 + $0x38] sm:$0xff]  }
  0x13   :  { %82 = vperm.xlu0 %5685, %v80_v19   ;;  %v134_v26 = vld [vmem:[%s7424_s11] sm:$0x3]  ;;  %762 = vperm.xlu1 %5686, %v133_v25  }
  0x14   :  { %4980 = vmatpush3.bf16.msra.mxu1 %v5695_v8  ;;  %v135_v28 = vld [vmem:[%s7425_s12] sm:$0x3] }
  0x15   :  { %4962 = vmatpush3.bf16.msra.mxu0 %v5690_v7  ;;  %4981 = vmatprep.subr.bf16.mxu1 %v5951_v1  ;;  %v5711_v29 = vld [vmem:[%s7426_s13] sm:$0xff]  }
  0x16   :  { %4963 = vmatprep.subr.bf16.mxu0 %v5951_v1  ;;  %v5707_v34 = vld [vmem:[%s7426_s13 + $0xe0] sm:$0xff]  }
  0x17   :  { %98 = vperm.xlu0 %5685, %v96_v23   ;;  %1228 = vperm.xlu1 %5686, %v134_v26   ;;  %v5715_v41 = vld [vmem:[%s7426_s13 + $0x20] sm:$0xff]  }
  0x18   :  { %4982 = vmatpush3.bf16.msra.mxu1 %v5697_v10  ;;  %v67_v38 = vld [vmem:[%s7444_s10] sm:$0x3] }
  0x19   :  { %4964 = vmatpush3.bf16.msra.mxu0 %v5692_v9  ;;  %4983 = vmatprep.subr.bf16.mxu1 %v5951_v1  ;;  %v6213_v39 = vpack.c.bf16 %v67_v38, %v67_v38  ;;  %v69_v45 = vld [vmem:[%s7445_s26] sm:$0xff] }
  0x1a   :  { %4965 = vmatprep.subr.bf16.mxu0 %v5951_v1  ;;  %v138_v46 = vpack.c.bf16 %v69_v45, %v69_v45 }
  0x1b   :  { %1234 = vperm.xlu0 %5685, %v135_v28  }
  0x1c   :  { %4984 = vmatpush3.bf16.msra.mxu1 %v5699_v12 }
  0x1d   :  { %4966 = vmatpush3.bf16.msra.mxu0 %v5694_v11  ;;  %4985 = vmatprep.subr.bf16.mxu1 %v5951_v1 }
  0x1e   :  { %4967 = vmatprep.subr.bf16.mxu0 %v5951_v1 }
  0x20   :  { %4986 = vmatpush3.bf16.msra.mxu1 %v5701_v14 }
  0x21   :  { %4968 = vmatpush3.bf16.msra.mxu0 %v5696_v13  ;;  %4987 = vmatprep.subr.bf16.mxu1 %v5951_v1 }
  0x22   :  { %4969 = vmatprep.subr.bf16.mxu0 %v5951_v1 }
  0x24   :  { %4988 = vmatpush3.bf16.msra.mxu1 %v5703_v18 }
  0x25   :  { %4970 = vmatpush3.bf16.msra.mxu0 %v5698_v16  ;;  %4989 = vmatprep.subr.bf16.mxu1 %v5951_v1 }
  0x26   :  { %4995 = vmatprep.subr.bf16.mxu0 %v5951_v1 }
  0x28   :  { %4972 = vmatmul.mubr.bf16.vlgmr.msra.gmra.mrb[0].mxu0 %v6150_v24  ;;  %4990 = vmatpush3.bf16.msra.mxu1 %v5705_v22 }
  0x29   :  { %4996 = vmatpush3.bf16.msra.mxu0 %v5700_v21  ;;  %5011 = vmatprep.mubr.msk.bf16.mxu0 %vm5952_vm0, %v5951_v1 }
  0x2a   :  { %4997 = vmatprep.subr.bf16.mxu0 %v5951_v1  ;;  %5021 = vmatprep.subr.bf16.mxu1 %v5951_v1 }
  0x2b   :  { %4992 = vmatmul.mubr.bf16.vlgmr.msra.gmra.mrb[0].mxu1 %v6150_v24 }
  0x2c   :  { %5022 = vmatpush3.bf16.msra.mxu1 %v5711_v29  ;;  %5037 = vmatprep.mubr.msk.bf16.mxu1 %vm5952_vm0, %v5951_v1 }
  0x2d   :  { %4998 = vmatpush3.bf16.msra.mxu0 %v5702_v27  ;;  %5023 = vmatprep.subr.bf16.mxu1 %v5951_v1 }
  0x2e   :  { %4999 = vmatprep.subr.bf16.mxu0 %v5951_v1 }
  0x30   :  { %5024 = vmatpush3.bf16.msra.mxu1 %v5712_v31 }
  0x31   :  { %5000 = vmatpush3.bf16.msra.mxu0 %v5704_v30  ;;  %5025 = vmatprep.subr.bf16.mxu1 %v5951_v1 }
  0x32   :  { %5001 = vmatprep.subr.bf16.mxu0 %v5951_v1 }
  0x34   :  { %5026 = vmatpush3.bf16.msra.mxu1 %v5713_v33 }
  0x35   :  { %5002 = vmatpush3.bf16.msra.mxu0 %v5706_v32  ;;  %5027 = vmatprep.subr.bf16.mxu1 %v5951_v1 }
  0x36   :  { %5003 = vmatprep.subr.bf16.mxu0 %v5951_v1 }
  0x38   :  { %5028 = vmatpush3.bf16.msra.mxu1 %v5714_v40 }
  0x39   :  { %5004 = vmatpush3.bf16.msra.mxu0 %v5707_v34  ;;  %5029 = vmatprep.subr.bf16.mxu1 %v5951_v1 }
  0x3a   :  { %5005 = vmatprep.subr.bf16.mxu0 %v5951_v1 }
  0x3c   :  { %5030 = vmatpush3.bf16.msra.mxu1 %v5715_v41 }
  0x3d   :  { %5006 = vmatpush3.bf16.msra.mxu0 %v5708_v35  ;;  %5031 = vmatprep.subr.bf16.mxu1 %v5951_v1 }
  0x3e   :  { %5007 = vmatprep.subr.bf16.mxu0 %v5951_v1 }
  0x40   :  { %5032 = vmatpush3.bf16.msra.mxu1 %v5716_v42 }
  0x41   :  { %5008 = vmatpush3.bf16.msra.mxu0 %v5709_v36  ;;  %5033 = vmatprep.subr.bf16.mxu1 %v5951_v1 }
  0x42   :  { %5009 = vmatprep.subr.bf16.mxu0 %v5951_v1 }
  0x44   :  { %5034 = vmatpush3.bf16.msra.mxu1 %v5717_v43 }
  0x45   :  { %5010 = vmatpush3.bf16.msra.mxu0 %v5710_v37  ;;  %5035 = vmatprep.subr.bf16.mxu1 %v5951_v1 }
  0x46   :  { %5015 = vmatprep.subr.bf16.mxu0 %v5951_v1 }
  0x48   :  { %5012 = vmatmul.mubr.bf16.vlgmr.msra.gmra.mrb[4].mxu0 %v6213_v39  ;;  %5036 = vmatpush3.bf16.msra.mxu1 %v5718_v44 }
  0x49   :  { %5017 = vmatprep.mubr.msk.bf16.mxu0 %vm5952_vm0, %v5951_v1  ;;  %5053 = vmatprep.subr.bf16.mxu1 %v5951_v1 }
  0x4b   :  { %5038 = vmatmul.mubr.bf16.vlgmr.msra.gmra.mrb[4].mxu1 %v138_v46 }
  0x4c   :  { %5055 = vmatprep.mubr.msk.bf16.mxu1 %vm5952_vm0, %v5951_v1 }
  0x4d   :  { %27 = vsyncpa [#allocation3], 0  ;;  %v71_v47 = vlaneseq  ;;  %vm474_vm2 = vcmask 1042432   ;;  %vm470_vm3 = vcmask 48128   ;;  %vm657_vm6 = vcmask 1040384   ;;  %v5727_v17 = vld [vmem:[%s7427_s14 + $0x40] sm:$0xff]  }
  0x4e   :  { %vm653_vm7 = vcmask 15360   ;;  %v5728_v18 = vld [vmem:[%s7427_s14 + $0x48] sm:$0xff]   ;;  %v5729_v19 = vld [vmem:[%s7427_s14 + $0x50] sm:$0xff]   ;;  %v5730_v20 = vld [vmem:[%s7427_s14 + $0x58] sm:$0xff]   ;;  %s7446_s6 = sld [smem:[#allocation10_spill]]  ;;  %vm716_vm9 = vcmask 1043456  }
  0x4f   :  { %v6245_v48 = vand.u32 127, %v71_v47  ;;  %v5731_v21 = vld [vmem:[%s7427_s14 + $0x60] sm:$0xff]   ;;  %v5732_v22 = vld [vmem:[%s7427_s14 + $0x68] sm:$0xff]   ;;  %v5733_v23 = vld [vmem:[%s7427_s14 + $0x70] sm:$0xff]   ;;  %v6306_v35 = vshrl.u32 %v71_v47, 7  ;;  %vm712_vm10 = vcmask 64512  }
  0x50   :  { %v4402_v37 = vld [vmem:[%s7429_s16] ss:$0 sm:$0xff] }
  0x54   :  { %v4361_v38 = vld [vmem:[%s7446_s6] ss:$0 sm:$0xff] }
  0x55   :  { %vm111_vm8 = vcmp.eq.s32.totalorder %v6306_v35, %v4361_v38  ;;  %v5758_v38 = vld [vmem:[%s7426_s13 + $0x178] sm:$0xff]  }
  0x56   :  { %v4362_v46 = vsel %vm111_vm8, 1.0, %v5951_v1 }
  0x8d   :  { %v91_v4 = vpop.permute.xlu1 %90 }
  0x8e   :  { %v75_v49 = vpop.permute.xlu0 %74  ;;  %vm92_vm5 = vcmp.eq.s32.totalorder %v6245_v48, %v91_v4  ;;  %v5735_v4 = vld [vmem:[%s7427_s14] sm:$0xff]  }
  0x8f   :  { %vm76_vm1 = vcmp.eq.s32.totalorder %v6245_v48, %v75_v49  ;;  %v4359_v5 = vsel %vm92_vm5, 1.0, %v5951_v1 }
  0x90   :  { %v4357_v51 = vsel %vm76_vm1, 1.0, %v5951_v1  ;;  %v6269_v10 = vpack.c.bf16 %v4359_v5, %v4359_v5 }
  0x91   :  { %v6250_v57 = vpack.c.bf16 %v4357_v51, %v4357_v51  ;;  %v5719_v51 = vld [vmem:[%s7427_s14 + $0x80] sm:$0xff]  }
  0x92   :  { %v83_v58 = vpop.permute.xlu0 %82 }
  0x93   :  { %vm84_vm4 = vcmp.eq.s32.totalorder %v6245_v48, %v83_v58  ;;  %v5725_v58 = vld [vmem:[%s7427_s14 + $0xb0] sm:$0xff]  }
  0x94   :  { %v4358_v2 = vsel %vm84_vm4, 1.0, %v5951_v1 }
  0x95   :  { %v6261_v3 = vpack.c.bf16 %v4358_v2, %v4358_v2 }
  0xfb   :  { %v253_v50 = vpop.f32.mrb[0].mxu0 }
  0xfc   :  { %v259_v52 = vpack.c.bf16 %v253_v50, %v253_v50  ;;  %v4973_v53 = vpop.f32.mrb[1].mxu0  ;;  %v6322_v50 = vpack.c.bf16 %v4362_v46, %v4362_v46 }
  0xfd   :  { %v256_v54 = vpop.f32.mrb[2].mxu0  ;;  %v5721_v53 = vld [vmem:[%s7427_s14 + $0x90] sm:$0xff]  }
  0xfe   :  { %v476_v55 = vsel %vm474_vm2, %v259_v52, 0  ;;  %v4974_v56 = vpop.f32.mrb[3].mxu0  ;;  %v358_v59 = vpop.f32.mrb[0].mxu1  ;;  %v5720_v52 = vld [vmem:[%s7427_s14 + $0x88] sm:$0xff]   ;;  %v5722_v54 = vld [vmem:[%s7427_s14 + $0x98] sm:$0xff]  }
  0xff   :  { %5016 = vmatpush3.bf16.msra.mxu0 %v476_v55  ;;  %v364_v60 = vpack.c.bf16 %v358_v59, %v358_v59  ;;  %v4993_v61 = vpop.f32.mrb[1].mxu1  ;;  %v5723_v55 = vld [vmem:[%s7427_s14 + $0xa0] sm:$0xff]   ;;  %v5724_v56 = vld [vmem:[%s7427_s14 + $0xa8] sm:$0xff]   ;;  %v5726_v59 = vld [vmem:[%s7427_s14 + $0xb8] sm:$0xff]  }
 0x100   :  { %5041 = vmatprep.subr.bf16.mxu0 %v5951_v1  ;;  %v361_v62 = vpop.f32.mrb[2].mxu1  ;;  %v6369_v61 = vpop.permute.xlu1 %762 }
 0x101   :  { %v610_v63 = vsel %vm474_vm2, %v364_v60, 0  ;;  %v4994_v0 = vpop.f32.mrb[3].mxu1  ;;  %v5734_v60 = vld [vmem:[%s7427_s14 + $0x78] sm:$0xff]  }
 0x102   :  { %5018 = vmatmul.mubr.msk.bf16.vlgmr.msra.gmra.mrb[8].mxu0 %vm470_vm3, %v6250_v57 }
 0x103   :  { %5042 = vmatpush3.bf16.msra.mxu0 %v610_v63  ;;  %5043 = vmatprep.mubr.msk.bf16.mxu0 %vm5952_vm0, %v5951_v1 }
 0x104   :  { %5047 = vmatprep.subr.bf16.mxu0 %v5951_v1 }
 0x10a   :  { %5044 = vmatmul.mubr.msk.bf16.vlgmr.msra.gmra.mrb[12].mxu0 %vm470_vm3, %v6261_v3 }
 0x10b   :  { %5049 = vmatprep.mubr.msk.bf16.mxu0 %vm5952_vm0, %v5951_v1 }
 0x11b   :  { %v463_v6 = vpop.f32.mrb[4].mxu0 }
 0x11c   :  { %v469_v7 = vpack.c.bf16 %v463_v6, %v463_v6  ;;  %v5013_v8 = vpop.f32.mrb[5].mxu0 }
 0x11d   :  { %v466_v9 = vpop.f32.mrb[6].mxu0  ;;  %v5737_v8 = vld [vmem:[%s7427_s14 + $0x10] sm:$0xff]  }
 0x11e   :  { %v659_v11 = vsel %vm657_vm6, %v469_v7, 0  ;;  %v5014_v12 = vpop.f32.mrb[7].mxu0  ;;  %v600_v13 = vpop.f32.mrb[4].mxu1  ;;  %v5736_v7 = vld [vmem:[%s7427_s14 + $0x8] sm:$0xff]   ;;  %v5738_v9 = vld [vmem:[%s7427_s14 + $0x18] sm:$0xff]  }
 0x11f   :  { %5048 = vmatpush3.bf16.msra.mxu0 %v659_v11  ;;  %v5039_v14 = vpop.f32.mrb[5].mxu1  ;;  %v5739_v11 = vld [vmem:[%s7427_s14 + $0x20] sm:$0xff]   ;;  %v5740_v12 = vld [vmem:[%s7427_s14 + $0x28] sm:$0xff]  }
 0x120   :  { %5059 = vmatprep.subr.bf16.mxu0 %v5951_v1  ;;  %v603_v15 = vpop.f32.mrb[6].mxu1  ;;  %v99_v14 = vpop.permute.xlu0 %98 }
 0x121   :  { %v5040_v16 = vpop.f32.mrb[7].mxu1  ;;  %v5742_v15 = vld [vmem:[%s7427_s14 + $0x38] sm:$0xff]   ;;  %vm100_vm11 = vcmp.eq.s32.totalorder %v6245_v48, %v99_v14 }
 0x122   :  { %5050 = vmatmul.mubr.msk.bf16.vlgmr.msra.gmra.mrb[16].mxu0 %vm653_vm7, %v6269_v10 }
 0x123   :  { %5075 = vmatprep.mubr.msk.bf16.mxu0 %vm5952_vm0, %v5951_v1  ;;  %5060 = vmatpush3.bf16.msra.mxu0 %v5727_v17 }
 0x124   :  { %5061 = vmatprep.subr.bf16.mxu0 %v5951_v1 }
 0x127   :  { %5062 = vmatpush3.bf16.msra.mxu0 %v5728_v18 }
 0x128   :  { %5063 = vmatprep.subr.bf16.mxu0 %v5951_v1 }
 0x12b   :  { %5064 = vmatpush3.bf16.msra.mxu0 %v5729_v19  ;;  %v4360_v19 = vsel %vm100_vm11, 1.0, %v5951_v1 }
 0x12c   :  { %5065 = vmatprep.subr.bf16.mxu0 %v5951_v1  ;;  %v6412_v48 = vpack.c.bf16 %v4360_v19, %v4360_v19  ;;  %v5766_v19 = vld [vmem:[%s7428_s15 + $0x78] sm:$0xff]  }
 0x12f   :  { %5066 = vmatpush3.bf16.msra.mxu0 %v5730_v20 }
 0x130   :  { %5067 = vmatprep.subr.bf16.mxu0 %v5951_v1 }
 0x133   :  { %5068 = vmatpush3.bf16.msra.mxu0 %v5731_v21  ;;  %v5743_v21 = vld [vmem:[%s7428_s15] sm:$0xff]  }
 0x134   :  { %5069 = vmatprep.subr.bf16.mxu0 %v5951_v1 }
 0x137   :  { %5070 = vmatpush3.bf16.msra.mxu0 %v5732_v22 }
 0x138   :  { %5071 = vmatprep.subr.bf16.mxu0 %v5951_v1 }
 0x13b   :  { %5072 = vmatpush3.bf16.msra.mxu0 %v5733_v23 }
 0x13c   :  { %5073 = vmatprep.subr.bf16.mxu0 %v5951_v1 }
 0x13f   :  { %5074 = vmatpush3.bf16.msra.mxu0 %v5734_v60 }
 0x140   :  { %5099 = vmatprep.subr.bf16.mxu0 %v5951_v1 }
 0x1d5   :  { %v512_v25 = vpop.f32.mrb[8].mxu0 }
 0x1d6   :  { %v5019_v26 = vpop.f32.mrb[9].mxu0  ;;  %v601_v27 = vadd.f32 %v600_v13, %v512_v25  ;;  %v5741_v13 = vld [vmem:[%s7427_s14 + $0x30] sm:$0xff]   ;;  %v5744_v25 = vld [vmem:[%s7428_s15 + $0x8] sm:$0xff]  }
 0x1d7   :  { %v515_v28 = vpop.f32.mrb[10].mxu0  ;;  %v5746_v26 = vld [vmem:[%s7428_s15 + $0x18] sm:$0xff]  }
 0x1d8   :  { %v5020_v29 = vpop.f32.mrb[11].mxu0  ;;  %v5748_v28 = vld [vmem:[%s7428_s15 + $0x28] sm:$0xff]  }
 0x1d9   :  { %v5749_v29 = vld [vmem:[%s7428_s15 + $0x30] sm:$0xff]  }
 0x1dd   :  { %v646_v30 = vpop.f32.mrb[12].mxu0 }
 0x1de   :  { %v5045_v31 = vpop.f32.mrb[13].mxu0  ;;  %v652_v32 = vadd.f32 %v646_v30, %v601_v27  ;;  %v5747_v27 = vld [vmem:[%s7428_s15 + $0x20] sm:$0xff]   ;;  %v5750_v30 = vld [vmem:[%s7428_s15 + $0x38] sm:$0xff]  }
 0x1df   :  { %v649_v33 = vpop.f32.mrb[14].mxu0  ;;  %v5751_v31 = vld [vmem:[%s7426_s13 + $0x140] sm:$0xff]  }
 0x1e0   :  { %v5046_v34 = vpop.f32.mrb[15].mxu0  ;;  %v5753_v33 = vld [vmem:[%s7426_s13 + $0x150] sm:$0xff]  }
 0x1e1   :  { %v5755_v34 = vld [vmem:[%s7426_s13 + $0x160] sm:$0xff]  }
 0x1f5   :  { %v695_v36 = vpop.f32.mrb[16].mxu0 }
 0x1f6   :  { %v701_v40 = vadd.f32 %v695_v36, %v652_v32  ;;  %v5051_v41 = vpop.f32.mrb[17].mxu0  ;;  %v5752_v32 = vld [vmem:[%s7426_s13 + $0x148] sm:$0xff]  }
 0x1f7   :  { %v698_v42 = vpop.f32.mrb[18].mxu0  ;;  %v5756_v36 = vld [vmem:[%s7426_s13 + $0x168] sm:$0xff]  }
 0x1f8   :  { %v709_v43 = vadd.f32 %v4402_v37, %v701_v40  ;;  %v5052_v44 = vpop.f32.mrb[19].mxu0  ;;  %v5757_v37 = vld [vmem:[%s7426_s13 + $0x170] sm:$0xff]  }
 0x1fa   :  { %v710_v45 = vmax.f32 %v709_v43, 0.0 }
 0x1fc   :  { %v6316_v47 = vpack.c.bf16 %v710_v45, %v710_v45 }
 0x1fe   :  { %v6320_v49 = vsel %vm716_vm9, %v6316_v47, 0 }
 0x1ff   :  { %5054 = vmatpush3.bf16.msra.mxu1 %v6320_v49 }
 0x200   :  { %5079 = vmatprep.subr.bf16.mxu1 %v5951_v1 }
 0x202   :  { %5056 = vmatmul.mubr.msk.bf16.vlgmr.msra.gmra.mrb[8].mxu1 %vm712_vm10, %v6322_v50 }
 0x203   :  { %5080 = vmatpush3.bf16.msra.mxu1 %v5719_v51  ;;  %5095 = vmatprep.mubr.msk.bf16.mxu1 %vm5952_vm0, %v5951_v1 }
 0x204   :  { %5081 = vmatprep.subr.bf16.mxu1 %v5951_v1 }
 0x207   :  { %5082 = vmatpush3.bf16.msra.mxu1 %v5720_v52 }
 0x208   :  { %5083 = vmatprep.subr.bf16.mxu1 %v5951_v1 }
 0x20b   :  { %5084 = vmatpush3.bf16.msra.mxu1 %v5721_v53  ;;  %v4429_v53 = vld [vmem:[%s7430_s17] ss:$0 sm:$0xff] }
 0x20c   :  { %5085 = vmatprep.subr.bf16.mxu1 %v5951_v1 }
 0x20f   :  { %5086 = vmatpush3.bf16.msra.mxu1 %v5722_v54  ;;  %v4363_v54 = vld [vmem:[%s7422_s9] ss:$0 sm:$0xff] }
 0x210   :  { %5087 = vmatprep.subr.bf16.mxu1 %v5951_v1  ;;  %vm120_vm12 = vcmp.eq.s32.totalorder %v6306_v35, %v4363_v54  ;;  %v5778_v54 = vld [vmem:[%s7426_s13 + $0x198] sm:$0xff]  }
 0x213   :  { %5088 = vmatpush3.bf16.msra.mxu1 %v5723_v55 }
 0x214   :  { %5089 = vmatprep.subr.bf16.mxu1 %v5951_v1 }
 0x217   :  { %5090 = vmatpush3.bf16.msra.mxu1 %v5724_v56 }
 0x218   :  { %5091 = vmatprep.subr.bf16.mxu1 %v5951_v1 }
 0x21b   :  { %5092 = vmatpush3.bf16.msra.mxu1 %v5725_v58 }
 0x21c   :  { %5093 = vmatprep.subr.bf16.mxu1 %v5951_v1 }
 0x21f   :  { %5094 = vmatpush3.bf16.msra.mxu1 %v5726_v59 }
 0x220   :  { %5119 = vmatprep.subr.bf16.mxu1 %v5951_v1 }
 0x222   :  { %5096 = vmatmul.mubr.bf16.vlgmr.msra.gmra.mrb[12].mxu1 %v6213_v39 }
 0x223   :  { %5121 = vmatprep.mubr.msk.bf16.mxu1 %vm5952_vm0, %v5951_v1 }
 0x2d5   :  { %v754_v62 = vpop.f32.mrb[8].mxu1 }
 0x2d6   :  { %v765_v63 = vmul.f32 %v6369_v61, %v754_v62  ;;  %v5057_v0 = vpop.f32.mrb[9].mxu1 }
 0x2d7   :  { %v757_v2 = vpop.f32.mrb[10].mxu1  ;;  %v4364_v0 = vsel %vm120_vm12, 1.0, %v5951_v1 }
 0x2d8   :  { %v782_v5 = vpack.c.bf16 %v765_v63, %v765_v63  ;;  %v5058_v6 = vpop.f32.mrb[11].mxu1 }
 0x2d9   :  { %v6502_v6 = vpack.c.bf16 %v4364_v0, %v4364_v0  ;;  %v5784_v0 = vld [vmem:[%s7426_s13 + $0x1c8] sm:$0xff]  }
 0x2da   :  { %5076 = vmatmul.mubr.bf16.vlgmr.msra.gmra.mrb[20].mxu0 %v782_v5 }
 0x2db   :  { %5100 = vmatpush3.bf16.msra.mxu0 %v5735_v4  ;;  %5115 = vmatprep.mubr.msk.bf16.mxu0 %vm5952_vm0, %v5951_v1  ;;  %v4365_v4 = vld [vmem:[%s7420_s7] ss:$0 sm:$0xff] }
 0x2dc   :  { %5101 = vmatprep.subr.bf16.mxu0 %v5951_v1  ;;  %vm129_vm13 = vcmp.eq.s32.totalorder %v6306_v35, %v4365_v4  ;;  %v5760_v35 = vld [vmem:[%s7428_s15 + $0x48] sm:$0xff]   ;;  %v5785_v4 = vld [vmem:[%s7426_s13 + $0x1d0] sm:$0xff]  }
 0x2df   :  { %5102 = vmatpush3.bf16.msra.mxu0 %v5736_v7  ;;  %v4366_v7 = vsel %vm129_vm13, 1.0, %v5951_v1 }
 0x2e0   :  { %5103 = vmatprep.subr.bf16.mxu0 %v5951_v1 }
 0x2e3   :  { %5104 = vmatpush3.bf16.msra.mxu0 %v5737_v8  ;;  %v6515_v8 = vpack.c.bf16 %v4366_v7, %v4366_v7  ;;  %v5787_v7 = vld [vmem:[%s7426_s13 + $0x1e0] sm:$0xff]  }
 0x2e4   :  { %5105 = vmatprep.subr.bf16.mxu0 %v5951_v1 }
 0x2e7   :  { %5106 = vmatpush3.bf16.msra.mxu0 %v5738_v9  ;;  %v5759_v9 = vld [vmem:[%s7428_s15 + $0x40] sm:$0xff]  }
 0x2e8   :  { %5107 = vmatprep.subr.bf16.mxu0 %v5951_v1 }
 0x2eb   :  { %5108 = vmatpush3.bf16.msra.mxu0 %v5739_v11  ;;  %v5762_v11 = vld [vmem:[%s7428_s15 + $0x58] sm:$0xff]  }
 0x2ec   :  { %5109 = vmatprep.subr.bf16.mxu0 %v5951_v1 }
 0x2ef   :  { %5110 = vmatpush3.bf16.msra.mxu0 %v5740_v12  ;;  %v5763_v12 = vld [vmem:[%s7428_s15 + $0x60] sm:$0xff]  }
 0x2f0   :  { %5111 = vmatprep.subr.bf16.mxu0 %v5951_v1 }
 0x2f3   :  { %5112 = vmatpush3.bf16.msra.mxu0 %v5741_v13  ;;  %v5764_v13 = vld [vmem:[%s7428_s15 + $0x68] sm:$0xff]  }
 0x2f4   :  { %5113 = vmatprep.subr.bf16.mxu0 %v5951_v1 }
 0x2f5   :  { %v985_v16 = vpop.f32.mrb[12].mxu1 }
 0x2f6   :  { %v991_v17 = vpack.c.bf16 %v985_v16, %v985_v16  ;;  %v5097_v18 = vpop.f32.mrb[13].mxu1 }
 0x2f7   :  { %5114 = vmatpush3.bf16.msra.mxu0 %v5742_v15  ;;  %v988_v20 = vpop.f32.mrb[14].mxu1  ;;  %v5765_v18 = vld [vmem:[%s7428_s15 + $0x70] sm:$0xff]  }
 0x2f8   :  { %v1084_v22 = vsel %vm657_vm6, %v991_v17, 0  ;;  %v5098_v23 = vpop.f32.mrb[15].mxu1  ;;  %5157 = vmatprep.subr.bf16.mxu0 %v5951_v1 }
 0x2f9   :  { %5120 = vmatpush3.bf16.msra.mxu1 %v1084_v22 }
 0x2fa   :  { %5116 = vmatmul.mubr.bf16.vlgmr.msra.gmra.mrb[24].mxu0 %v6150_v24  ;;  %5125 = vmatprep.subr.bf16.mxu1 %v5951_v1  ;;  %v5745_v24 = vld [vmem:[%s7428_s15 + $0x10] sm:$0xff]  }
 0x2fb   :  { %5158 = vmatpush3.bf16.msra.mxu0 %v5743_v21  ;;  %5173 = vmatprep.mubr.msk.bf16.mxu0 %vm5952_vm0, %v5951_v1 }
 0x2fc   :  { %5122 = vmatmul.mubr.msk.bf16.vlgmr.msra.gmra.mrb[16].mxu1 %vm653_vm7, %v6412_v48  ;;  %5159 = vmatprep.subr.bf16.mxu0 %v5951_v1 }
 0x2fd   :  { %5127 = vmatprep.mubr.msk.bf16.mxu1 %vm5952_vm0, %v5951_v1 }
 0x2ff   :  { %5160 = vmatpush3.bf16.msra.mxu0 %v5744_v25  ;;  %v6557_v25 = vpop.permute.xlu1 %1228 }
 0x300   :  { %5161 = vmatprep.subr.bf16.mxu0 %v5951_v1 }
 0x303   :  { %5162 = vmatpush3.bf16.msra.mxu0 %v5745_v24 }
 0x304   :  { %5163 = vmatprep.subr.bf16.mxu0 %v5951_v1 }
 0x307   :  { %5164 = vmatpush3.bf16.msra.mxu0 %v5746_v26 }
 0x308   :  { %5165 = vmatprep.subr.bf16.mxu0 %v5951_v1 }
 0x30b   :  { %5166 = vmatpush3.bf16.msra.mxu0 %v5747_v27 }
 0x30c   :  { %5167 = vmatprep.subr.bf16.mxu0 %v5951_v1 }
 0x30f   :  { %5168 = vmatpush3.bf16.msra.mxu0 %v5748_v28 }
 0x310   :  { %5169 = vmatprep.subr.bf16.mxu0 %v5951_v1 }
 0x313   :  { %5170 = vmatpush3.bf16.msra.mxu0 %v5749_v29  ;;  %v5767_v29 = vld [vmem:[%s7428_s15 + $0x80] sm:$0xff]  }
 0x314   :  { %5171 = vmatprep.subr.bf16.mxu0 %v5951_v1 }
 0x317   :  { %5172 = vmatpush3.bf16.msra.mxu0 %v5750_v30 }
 0x318   :  { %5197 = vmatprep.subr.bf16.mxu0 %v5951_v1 }
 0x31a   :  { %5174 = vmatmul.mubr.bf16.vlgmr.msra.gmra.mrb[28].mxu0 %v6213_v39  ;;  %v5754_v39 = vld [vmem:[%s7426_s13 + $0x158] sm:$0xff]  }
 0x31b   :  { %5198 = vmatpush3.bf16.msra.mxu0 %v5751_v31  ;;  %5213 = vmatprep.mubr.msk.bf16.mxu0 %vm5952_vm0, %v5951_v1 }
 0x31c   :  { %5199 = vmatprep.subr.bf16.mxu0 %v5951_v1 }
 0x31f   :  { %5200 = vmatpush3.bf16.msra.mxu0 %v5752_v32  ;;  %v5768_v32 = vld [vmem:[%s7428_s15 + $0x88] sm:$0xff]  }
 0x320   :  { %5201 = vmatprep.subr.bf16.mxu0 %v5951_v1 }
 0x323   :  { %5202 = vmatpush3.bf16.msra.mxu0 %v5753_v33 }
 0x324   :  { %5203 = vmatprep.subr.bf16.mxu0 %v5951_v1 }
 0x327   :  { %5204 = vmatpush3.bf16.msra.mxu0 %v5754_v39 }
 0x328   :  { %5205 = vmatprep.subr.bf16.mxu0 %v5951_v1 }
 0x32b   :  { %5206 = vmatpush3.bf16.msra.mxu0 %v5755_v34  ;;  %v5769_v34 = vld [vmem:[%s7428_s15 + $0x90] sm:$0xff]  }
 0x32c   :  { %5207 = vmatprep.subr.bf16.mxu0 %v5951_v1 }
 0x32f   :  { %5208 = vmatpush3.bf16.msra.mxu0 %v5756_v36 }
 0x330   :  { %5209 = vmatprep.subr.bf16.mxu0 %v5951_v1 }
 0x333   :  { %5210 = vmatpush3.bf16.msra.mxu0 %v5757_v37 }
 0x334   :  { %5211 = vmatprep.subr.bf16.mxu0 %v5951_v1 }
 0x337   :  { %5212 = vmatpush3.bf16.msra.mxu0 %v5758_v38  ;;  %v5770_v38 = vld [vmem:[%s7428_s15 + $0x98] sm:$0xff]  }
 0x338   :  { %5237 = vmatprep.subr.bf16.mxu0 %v5951_v1 }
 0x3ad   :  { %v881_v40 = vpop.f32.mrb[20].mxu0 }
 0x3ae   :  { %v5077_v41 = vpop.f32.mrb[21].mxu0 }
 0x3af   :  { %v884_v42 = vpop.f32.mrb[22].mxu0  ;;  %v5772_v41 = vld [vmem:[%s7428_s15 + $0xa8] sm:$0xff]  }
 0x3b0   :  { %v5078_v43 = vpop.f32.mrb[23].mxu0  ;;  %v5773_v42 = vld [vmem:[%s7428_s15 + $0xb0] sm:$0xff]  }
 0x3b1   :  { %v6589_v43 = vpop.permute.xlu0 %1234 }
 0x3cd   :  { %v1074_v44 = vpop.f32.mrb[24].mxu0 }
 0x3ce   :  { %v1075_v45 = vadd.f32 %v1074_v44, %v881_v40  ;;  %v5117_v46 = vpop.f32.mrb[25].mxu0  ;;  %v5771_v40 = vld [vmem:[%s7428_s15 + $0xa0] sm:$0xff]   ;;  %v5774_v44 = vld [vmem:[%s7428_s15 + $0xb8] sm:$0xff]  }
 0x3cf   :  { %v1077_v51 = vpop.f32.mrb[26].mxu0  ;;  %v1120_v52 = vpop.f32.mrb[16].mxu1  ;;  %v5775_v46 = vld [vmem:[%s7426_s13 + $0x180] sm:$0xff]  }
 0x3d0   :  { %v5118_v55 = vpop.f32.mrb[27].mxu0  ;;  %v1126_v56 = vadd.f32 %v1120_v52, %v1075_v45  ;;  %v5123_v58 = vpop.f32.mrb[17].mxu1  ;;  %v5776_v52 = vld [vmem:[%s7426_s13 + $0x188] sm:$0xff]  }
 0x3d1   :  { %v1123_v59 = vpop.f32.mrb[18].mxu1  ;;  %v5779_v55 = vld [vmem:[%s7426_s13 + $0x1a0] sm:$0xff]   ;;  %v5781_v58 = vld [vmem:[%s7426_s13 + $0x1b0] sm:$0xff]  }
 0x3d2   :  { %v1134_v60 = vadd.f32 %v4429_v53, %v1126_v56  ;;  %v5124_v62 = vpop.f32.mrb[19].mxu1  ;;  %v5777_v53 = vld [vmem:[%s7426_s13 + $0x190] sm:$0xff]   ;;  %v5780_v56 = vld [vmem:[%s7426_s13 + $0x1a8] sm:$0xff]   ;;  %v5782_v59 = vld [vmem:[%s7426_s13 + $0x1b8] sm:$0xff]  }
 0x3d4   :  { %v1135_v63 = vmax.f32 %v1134_v60, 0.0 }
 0x3d6   :  { %v6494_v2 = vpack.c.bf16 %v1135_v63, %v1135_v63  ;;  %v5783_v63 = vld [vmem:[%s7426_s13 + $0x1c0] sm:$0xff]  }
 0x3d8   :  { %5214 = vmatmul.mubr.bf16.vlgmr.msra.gmra.mrb[32].mxu0 %v6494_v2  ;;  %v1141_v5 = vsel %vm474_vm2, %v6494_v2, 0 }
 0x3d9   :  { %5126 = vmatpush3.bf16.msra.mxu1 %v1141_v5  ;;  %5253 = vmatprep.mubr.msk.bf16.mxu0 %vm5952_vm0, %v5951_v1  ;;  %v5786_v5 = vld [vmem:[%s7426_s13 + $0x1d8] sm:$0xff]  }
 0x3da   :  { %5131 = vmatprep.subr.bf16.mxu1 %v5951_v1  ;;  %5238 = vmatpush3.bf16.msra.mxu0 %v5783_v63 }
 0x3db   :  { %5239 = vmatprep.subr.bf16.mxu0 %v5951_v1 }
 0x3dc   :  { %5128 = vmatmul.mubr.msk.bf16.vlgmr.msra.gmra.mrb[20].mxu1 %vm470_vm3, %v6502_v6 }
 0x3dd   :  { %5132 = vmatpush3.bf16.msra.mxu1 %v6320_v49  ;;  %5133 = vmatprep.mubr.msk.bf16.mxu1 %vm5952_vm0, %v5951_v1  ;;  %v5761_v49 = vld [vmem:[%s7428_s15 + $0x50] sm:$0xff]  }
 0x3de   :  { %5137 = vmatprep.subr.bf16.mxu1 %v5951_v1  ;;  %5240 = vmatpush3.bf16.msra.mxu0 %v5784_v0 }
 0x3df   :  { %5241 = vmatprep.subr.bf16.mxu0 %v5951_v1 }
 0x3e2   :  { %5242 = vmatpush3.bf16.msra.mxu0 %v5785_v4 }
 0x3e3   :  { %5243 = vmatprep.subr.bf16.mxu0 %v5951_v1 }
 0x3e4   :  { %5134 = vmatmul.mubr.msk.bf16.vlgmr.msra.gmra.mrb[24].mxu1 %vm712_vm10, %v6515_v8 }
 0x3e5   :  { %5138 = vmatpush3.bf16.msra.mxu1 %v5759_v9  ;;  %5153 = vmatprep.mubr.msk.bf16.mxu1 %vm5952_vm0, %v5951_v1  ;;  %v5788_v9 = vld [vmem:[%s7426_s13 + $0x1e8] sm:$0xff]  }
 0x3e6   :  { %5139 = vmatprep.subr.bf16.mxu1 %v5951_v1  ;;  %5244 = vmatpush3.bf16.msra.mxu0 %v5786_v5 }
 0x3e7   :  { %5245 = vmatprep.subr.bf16.mxu0 %v5951_v1 }
 0x3e9   :  { %5140 = vmatpush3.bf16.msra.mxu1 %v5760_v35  ;;  %v5789_v35 = vld [vmem:[%s7426_s13 + $0x1f0] sm:$0xff]  }
 0x3ea   :  { %5141 = vmatprep.subr.bf16.mxu1 %v5951_v1  ;;  %5246 = vmatpush3.bf16.msra.mxu0 %v5787_v7 }
 0x3eb   :  { %5247 = vmatprep.subr.bf16.mxu0 %v5951_v1 }
 0x3ed   :  { %5142 = vmatpush3.bf16.msra.mxu1 %v5761_v49  ;;  %v6545_v14 = vpop.f32.mrb[28].mxu0  ;;  %v5790_v49 = vld [vmem:[%s7426_s13 + $0x1f8] sm:$0xff]  }
 0x3ee   :  { %5143 = vmatprep.subr.bf16.mxu1 %v5951_v1  ;;  %v5175_v15 = vpop.f32.mrb[29].mxu0  ;;  %5248 = vmatpush3.bf16.msra.mxu0 %v5788_v9 }
 0x3ef   :  { %v1444_v16 = vpop.f32.mrb[30].mxu0  ;;  %5249 = vmatprep.subr.bf16.mxu0 %v5951_v1 }
 0x3f0   :  { %v5176_v17 = vpop.f32.mrb[31].mxu0 }
 0x3f1   :  { %5144 = vmatpush3.bf16.msra.mxu1 %v5762_v11 }
 0x3f2   :  { %5145 = vmatprep.subr.bf16.mxu1 %v5951_v1  ;;  %5250 = vmatpush3.bf16.msra.mxu0 %v5789_v35 }
 0x3f3   :  { %5251 = vmatprep.subr.bf16.mxu0 %v5951_v1 }
 0x3f5   :  { %5146 = vmatpush3.bf16.msra.mxu1 %v5763_v12 }
 0x3f6   :  { %5147 = vmatprep.subr.bf16.mxu1 %v5951_v1  ;;  %5252 = vmatpush3.bf16.msra.mxu0 %v5790_v49 }
 0x3f7   :  { %5263 = vmatprep.subr.bf16.mxu0 %v5951_v1 }
 0x3f9   :  { %5148 = vmatpush3.bf16.msra.mxu1 %v5764_v13 }
 0x3fa   :  { %5149 = vmatprep.subr.bf16.mxu1 %v5951_v1 }
 0x3fd   :  { %5150 = vmatpush3.bf16.msra.mxu1 %v5765_v18  ;;  %v4456_v18 = vld [vmem:[%s7431_s18] ss:$0 sm:$0xff] }
 0x3fe   :  { %5151 = vmatprep.subr.bf16.mxu1 %v5951_v1 }
 0x401   :  { %5152 = vmatpush3.bf16.msra.mxu1 %v5766_v19 }
 0x402   :  { %5177 = vmatprep.subr.bf16.mxu1 %v5951_v1 }
 0x4ab   :  { %v6555_v20 = vpop.f32.mrb[32].mxu0 }
 0x4ac   :  { %v5215_v21 = vpop.f32.mrb[33].mxu0  ;;  %v1683_v60 = vpack.c.bf16 %v6555_v20, %v6555_v20 }
 0x4ad   :  { %v1680_v22 = vpop.f32.mrb[34].mxu0 }
 0x4ae   :  { %v5216_v23 = vpop.f32.mrb[35].mxu0  ;;  %v1895_v62 = vsel %vm474_vm2, %v1683_v60, 0 }
 0x4af   :  { %v1177_v24 = vpop.f32.mrb[20].mxu1 }
 0x4b0   :  { %v1231_v26 = vmul.f32 %v6557_v25, %v1177_v24  ;;  %v5129_v27 = vpop.f32.mrb[21].mxu1 }
 0x4b1   :  { %v1180_v28 = vpop.f32.mrb[22].mxu1 }
 0x4b2   :  { %v1254_v30 = vpack.c.bf16 %v1231_v26, %v1231_v26  ;;  %v5130_v31 = vpop.f32.mrb[23].mxu1  ;;  %v5791_v26 = vld [vmem:[%s7426_s13 + $0x100] sm:$0xff]   ;;  %v5793_v28 = vld [vmem:[%s7426_s13 + $0x110] sm:$0xff]  }
 0x4b3   :  { %v5796_v31 = vld [vmem:[%s7426_s13 + $0x128] sm:$0xff]  }
 0x4b4   :  { %5154 = vmatmul.mubr.bf16.vlgmr.msra.gmra.mrb[28].mxu1 %v1254_v30  ;;  %v5795_v30 = vld [vmem:[%s7426_s13 + $0x120] sm:$0xff]  }
 0x4b5   :  { %5178 = vmatpush3.bf16.msra.mxu1 %v5767_v29  ;;  %5193 = vmatprep.mubr.msk.bf16.mxu1 %vm5952_vm0, %v5951_v1  ;;  %v5794_v29 = vld [vmem:[%s7426_s13 + $0x118] sm:$0xff]  }
 0x4b6   :  { %5179 = vmatprep.subr.bf16.mxu1 %v5951_v1 }
 0x4b7   :  { %v1220_v33 = vpop.f32.mrb[24].mxu1 }
 0x4b8   :  { %v5135_v39 = vpop.f32.mrb[25].mxu1  ;;  %v1237_v45 = vmul.f32 %v6589_v43, %v1220_v33 }
 0x4b9   :  { %5180 = vmatpush3.bf16.msra.mxu1 %v5768_v32  ;;  %v1223_v36 = vpop.f32.mrb[26].mxu1  ;;  %v5797_v32 = vld [vmem:[%s7426_s13 + $0x130] sm:$0xff]  }
 0x4ba   :  { %5181 = vmatprep.subr.bf16.mxu1 %v5951_v1  ;;  %v5136_v37 = vpop.f32.mrb[27].mxu1  ;;  %v1447_v51 = vpack.c.bf16 %v1237_v45, %v1237_v45 }
 0x4bb   :  { %v5798_v37 = vld [vmem:[%s7426_s13 + $0x138] sm:$0xff]  }
 0x4bd   :  { %5182 = vmatpush3.bf16.msra.mxu1 %v5769_v34 }
 0x4be   :  { %5183 = vmatprep.subr.bf16.mxu1 %v5951_v1 }
 0x4c1   :  { %5184 = vmatpush3.bf16.msra.mxu1 %v5770_v38 }
 0x4c2   :  { %5185 = vmatprep.subr.bf16.mxu1 %v5951_v1 }
 0x4c5   :  { %5186 = vmatpush3.bf16.msra.mxu1 %v5771_v40 }
 0x4c6   :  { %5187 = vmatprep.subr.bf16.mxu1 %v5951_v1 }
 0x4c9   :  { %5188 = vmatpush3.bf16.msra.mxu1 %v5772_v41  ;;  %v5799_v41 = vld [vmem:[%s7427_s14 + $0x140] sm:$0xff]  }
 0x4ca   :  { %5189 = vmatprep.subr.bf16.mxu1 %v5951_v1 }
 0x4cd   :  { %5190 = vmatpush3.bf16.msra.mxu1 %v5773_v42 }
 0x4ce   :  { %5191 = vmatprep.subr.bf16.mxu1 %v5951_v1 }
 0x4d1   :  { %5192 = vmatpush3.bf16.msra.mxu1 %v5774_v44 }
 0x4d2   :  { %5217 = vmatprep.subr.bf16.mxu1 %v5951_v1 }
 0x4d4   :  { %5194 = vmatmul.mubr.bf16.vlgmr.msra.gmra.mrb[32].mxu1 %v1447_v51 }
 0x4d5   :  { %5218 = vmatpush3.bf16.msra.mxu1 %v5775_v46  ;;  %5233 = vmatprep.mubr.msk.bf16.mxu1 %vm5952_vm0, %v5951_v1  ;;  %v5800_v46 = vld [vmem:[%s7427_s14 + $0x148] sm:$0xff]  }
 0x4d6   :  { %5219 = vmatprep.subr.bf16.mxu1 %v5951_v1 }
 0x4d9   :  { %5220 = vmatpush3.bf16.msra.mxu1 %v5776_v52  ;;  %v5801_v52 = vld [vmem:[%s7427_s14 + $0x150] sm:$0xff]  }
 0x4da   :  { %5221 = vmatprep.subr.bf16.mxu1 %v5951_v1 }
 0x4dd   :  { %5222 = vmatpush3.bf16.msra.mxu1 %v5777_v53  ;;  %v5803_v53 = vld [vmem:[%s7427_s14 + $0x160] sm:$0xff]  }
 0x4de   :  { %5223 = vmatprep.subr.bf16.mxu1 %v5951_v1 }
 0x4e1   :  { %5224 = vmatpush3.bf16.msra.mxu1 %v5778_v54  ;;  %v5804_v54 = vld [vmem:[%s7427_s14 + $0x168] sm:$0xff]  }
 0x4e2   :  { %5225 = vmatprep.subr.bf16.mxu1 %v5951_v1 }
 0x4e5   :  { %5226 = vmatpush3.bf16.msra.mxu1 %v5779_v55  ;;  %v5805_v55 = vld [vmem:[%s7427_s14 + $0x170] sm:$0xff]  }
 0x4e6   :  { %5227 = vmatprep.subr.bf16.mxu1 %v5951_v1 }
 0x4e9   :  { %5228 = vmatpush3.bf16.msra.mxu1 %v5780_v56  ;;  %v5806_v56 = vld [vmem:[%s7427_s14 + $0x178] sm:$0xff]  }
 0x4ea   :  { %5229 = vmatprep.subr.bf16.mxu1 %v5951_v1 }
 0x4ed   :  { %5230 = vmatpush3.bf16.msra.mxu1 %v5781_v58 }
 0x4ee   :  { %5231 = vmatprep.subr.bf16.mxu1 %v5951_v1 }
 0x4f1   :  { %5232 = vmatpush3.bf16.msra.mxu1 %v5782_v59 }
 0x4f2   :  { %5257 = vmatprep.subr.bf16.mxu1 %v5951_v1 }
 0x4f4   :  { %5234 = vmatmul.mubr.bf16.vlgmr.msra.gmra.mrb[36].mxu1 %v6494_v2 }
 0x4f5   :  { %5258 = vmatpush3.bf16.msra.mxu1 %v1895_v62  ;;  %5259 = vmatprep.mubr.msk.bf16.mxu1 %vm5952_vm0, %v5951_v1 }
 0x4f6   :  { %5283 = vmatprep.subr.bf16.mxu1 %v5951_v1 }
 0x4fc   :  { %5260 = vmatmul.mubr.msk.bf16.vlgmr.msra.gmra.mrb[40].mxu1 %vm470_vm3, %v6250_v57 }
 0x4fd   :  { %5285 = vmatprep.mubr.msk.bf16.mxu1 %vm5952_vm0, %v5951_v1 }
 0x587   :  { %v1353_v11 = vpop.f32.mrb[28].mxu1 }
 0x588   :  { %v1442_v12 = vadd.f32 %v6545_v14, %v1353_v11  ;;  %v5155_v13 = vpop.f32.mrb[29].mxu1  ;;  %v5792_v14 = vld [vmem:[%s7426_s13 + $0x108] sm:$0xff]  }
 0x589   :  { %v1356_v15 = vpop.f32.mrb[30].mxu1 }
 0x58a   :  { %v5156_v16 = vpop.f32.mrb[31].mxu1 }
 0x5a7   :  { %v1546_v17 = vpop.f32.mrb[32].mxu1 }
 0x5a8   :  { %v1552_v19 = vadd.f32 %v1546_v17, %v1442_v12  ;;  %v5195_v20 = vpop.f32.mrb[33].mxu1 }
 0x5a9   :  { %v1549_v21 = vpop.f32.mrb[34].mxu1 }
 0x5aa   :  { %v1560_v22 = vadd.f32 %v4456_v18, %v1552_v19  ;;  %v5196_v23 = vpop.f32.mrb[35].mxu1 }
 0x5ab   :  { %v4493_v23 = vld [vmem:[%s7429_s16 + $0x1] ss:$0 sm:$0xff] }
 0x5ac   :  { %v1561_v24 = vmax.f32 %v1560_v22, 0.0 }
 0x5ae   :  { %v6681_v27 = vpack.c.bf16 %v1561_v24, %v1561_v24 }
 0x5b0   :  { %5254 = vmatmul.mubr.bf16.vlgmr.msra.gmra.mrb[36].mxu0 %v6681_v27 }
 0x5b1   :  { %5264 = vmatpush3.bf16.msra.mxu0 %v5791_v26  ;;  %5279 = vmatprep.mubr.msk.bf16.mxu0 %vm5952_vm0, %v5951_v1 }
 0x5b2   :  { %5265 = vmatprep.subr.bf16.mxu0 %v5951_v1 }
 0x5b5   :  { %5266 = vmatpush3.bf16.msra.mxu0 %v5792_v14 }
 0x5b6   :  { %5267 = vmatprep.subr.bf16.mxu0 %v5951_v1 }
 0x5b9   :  { %5268 = vmatpush3.bf16.msra.mxu0 %v5793_v28 }
 0x5ba   :  { %5269 = vmatprep.subr.bf16.mxu0 %v5951_v1 }
 0x5bd   :  { %5270 = vmatpush3.bf16.msra.mxu0 %v5794_v29 }
 0x5be   :  { %5271 = vmatprep.subr.bf16.mxu0 %v5951_v1 }
 0x5c1   :  { %5272 = vmatpush3.bf16.msra.mxu0 %v5795_v30 }
 0x5c2   :  { %5273 = vmatprep.subr.bf16.mxu0 %v5951_v1 }
 0x5c5   :  { %5274 = vmatpush3.bf16.msra.mxu0 %v5796_v31 }
 0x5c6   :  { %5275 = vmatprep.subr.bf16.mxu0 %v5951_v1 }
 0x5c7   :  { %v1782_v33 = vpop.f32.mrb[36].mxu1 }
 0x5c8   :  { %v1788_v39 = vpack.c.bf16 %v1782_v33, %v1782_v33  ;;  %v5235_v34 = vpop.f32.mrb[37].mxu1  ;;  %v5807_v33 = vld [vmem:[%s7427_s14 + $0x100] sm:$0xff]  }
 0x5c9   :  { %5276 = vmatpush3.bf16.msra.mxu0 %v5797_v32  ;;  %v1785_v36 = vpop.f32.mrb[38].mxu1  ;;  %v5809_v34 = vld [vmem:[%s7427_s14 + $0x110] sm:$0xff]  }
 0x5ca   :  { %v2026_v38 = vsel %vm474_vm2, %v1788_v39, 0  ;;  %v5236_v40 = vpop.f32.mrb[39].mxu1  ;;  %5277 = vmatprep.subr.bf16.mxu0 %v5951_v1  ;;  %v5808_v39 = vld [vmem:[%s7427_s14 + $0x108] sm:$0xff]   ;;  %v5810_v36 = vld [vmem:[%s7427_s14 + $0x118] sm:$0xff]  }
 0x5cb   :  { %5284 = vmatpush3.bf16.msra.mxu1 %v2026_v38  ;;  %v5812_v38 = vld [vmem:[%s7427_s14 + $0x128] sm:$0xff]   ;;  %v5813_v40 = vld [vmem:[%s7427_s14 + $0x130] sm:$0xff]  }
 0x5cc   :  { %5289 = vmatprep.subr.bf16.mxu1 %v5951_v1 }
 0x5cd   :  { %5278 = vmatpush3.bf16.msra.mxu0 %v5798_v37  ;;  %v5811_v37 = vld [vmem:[%s7427_s14 + $0x120] sm:$0xff]  }
 0x5ce   :  { %5286 = vmatmul.mubr.msk.bf16.vlgmr.msra.gmra.mrb[44].mxu1 %vm470_vm3, %v6261_v3  ;;  %5321 = vmatprep.subr.bf16.mxu0 %v5951_v1 }
 0x5cf   :  { %v1931_v42 = vpop.f32.mrb[40].mxu1  ;;  %5291 = vmatprep.mubr.msk.bf16.mxu1 %vm5952_vm0, %v5951_v1 }
 0x5d0   :  { %5280 = vmatmul.mubr.bf16.vlgmr.msra.gmra.mrb[40].mxu0 %v6316_v47  ;;  %v5261_v44 = vpop.f32.mrb[41].mxu1  ;;  %v5802_v47 = vld [vmem:[%s7427_s14 + $0x158] sm:$0xff]  }
 0x5d1   :  { %5322 = vmatpush3.bf16.msra.mxu0 %v5799_v41  ;;  %v1934_v45 = vpop.f32.mrb[42].mxu1  ;;  %5337 = vmatprep.mubr.msk.bf16.mxu0 %vm5952_vm0, %v5951_v1 }
 0x5d2   :  { %v5262_v51 = vpop.f32.mrb[43].mxu1  ;;  %5323 = vmatprep.subr.bf16.mxu0 %v5951_v1 }
 0x5d5   :  { %5324 = vmatpush3.bf16.msra.mxu0 %v5800_v46  ;;  %v5814_v46 = vld [vmem:[%s7427_s14 + $0x138] sm:$0xff]  }
 0x5d6   :  { %5325 = vmatprep.subr.bf16.mxu0 %v5951_v1 }
 0x5d9   :  { %5326 = vmatpush3.bf16.msra.mxu0 %v5801_v52 }
 0x5da   :  { %5327 = vmatprep.subr.bf16.mxu0 %v5951_v1 }
 0x5dd   :  { %5328 = vmatpush3.bf16.msra.mxu0 %v5802_v47 }
 0x5de   :  { %5329 = vmatprep.subr.bf16.mxu0 %v5951_v1 }
 0x5e1   :  { %5330 = vmatpush3.bf16.msra.mxu0 %v5803_v53 }
 0x5e2   :  { %5331 = vmatprep.subr.bf16.mxu0 %v5951_v1 }
 0x5e5   :  { %5332 = vmatpush3.bf16.msra.mxu0 %v5804_v54  ;;  %v5815_v54 = vld [vmem:[%s7427_s14 + $0xc0] sm:$0xff]  }
 0x5e6   :  { %5333 = vmatprep.subr.bf16.mxu0 %v5951_v1 }
 0x5e9   :  { %5334 = vmatpush3.bf16.msra.mxu0 %v5805_v55 }
 0x5ea   :  { %5335 = vmatprep.subr.bf16.mxu0 %v5951_v1 }
 0x5ed   :  { %5336 = vmatpush3.bf16.msra.mxu0 %v5806_v56 }
 0x5ee   :  { %5361 = vmatprep.subr.bf16.mxu0 %v5951_v1 }
 0x5f0   :  { %5338 = vmatmul.mubr.bf16.vlgmr.msra.gmra.mrb[44].mxu0 %v6681_v27 }
 0x5f1   :  { %5363 = vmatprep.mubr.msk.bf16.mxu0 %vm5952_vm0, %v5951_v1 }
 0x683   :  { %v1887_v58 = vpop.f32.mrb[36].mxu0 }
 0x684   :  { %v1893_v59 = vpack.c.bf16 %v1887_v58, %v1887_v58  ;;  %v5255_v60 = vpop.f32.mrb[37].mxu0  ;;  %v5816_v58 = vld [vmem:[%s7427_s14 + $0xc8] sm:$0xff]  }
 0x685   :  { %v1890_v62 = vpop.f32.mrb[38].mxu0  ;;  %v5818_v60 = vld [vmem:[%s7427_s14 + $0xd8] sm:$0xff]  }
 0x686   :  { %v2070_v63 = vsel %vm657_vm6, %v1893_v59, 0  ;;  %v5256_v0 = vpop.f32.mrb[39].mxu0  ;;  %v5817_v59 = vld [vmem:[%s7427_s14 + $0xd0] sm:$0xff]   ;;  %v5819_v62 = vld [vmem:[%s7427_s14 + $0xe0] sm:$0xff]  }
 0x687   :  { %5290 = vmatpush3.bf16.msra.mxu1 %v2070_v63  ;;  %v5820_v63 = vld [vmem:[%s7427_s14 + $0xe8] sm:$0xff]   ;;  %v5821_v0 = vld [vmem:[%s7427_s14 + $0xf0] sm:$0xff]  }
 0x688   :  { %5295 = vmatprep.subr.bf16.mxu1 %v5951_v1 }
 0x68a   :  { %5292 = vmatmul.mubr.msk.bf16.vlgmr.msra.gmra.mrb[48].mxu1 %vm653_vm7, %v6269_v10 }
 0x68b   :  { %5297 = vmatprep.mubr.msk.bf16.mxu1 %vm5952_vm0, %v5951_v1 }
 0x6a1   :  { %v2062_v4 = vpop.f32.mrb[44].mxu1 }
 0x6a2   :  { %v5287_v5 = vpop.f32.mrb[45].mxu1 }
 0x6a3   :  { %v2019_v7 = vpop.f32.mrb[40].mxu0  ;;  %v2065_v9 = vpop.f32.mrb[46].mxu1  ;;  %v5823_v5 = vld [vmem:[%s7428_s15 + $0xc0] sm:$0xff]  }
 0x6a4   :  { %v2020_v35 = vadd.f32 %v2019_v7, %v1931_v42  ;;  %v5281_v49 = vpop.f32.mrb[41].mxu0  ;;  %v5288_v11 = vpop.f32.mrb[47].mxu1  ;;  %v5824_v7 = vld [vmem:[%s7428_s15 + $0xc8] sm:$0xff]   ;;  %v5825_v9 = vld [vmem:[%s7428_s15 + $0xd0] sm:$0xff]  }
 0x6a5   :  { %v2022_v12 = vpop.f32.mrb[42].mxu0  ;;  %v5828_v49 = vld [vmem:[%s7428_s15 + $0xe8] sm:$0xff]   ;;  %v5829_v11 = vld [vmem:[%s7428_s15 + $0xf0] sm:$0xff]  }
 0x6a6   :  { %v5282_v13 = vpop.f32.mrb[43].mxu0  ;;  %v2068_v15 = vadd.f32 %v2062_v4, %v2020_v35  ;;  %v5822_v4 = vld [vmem:[%s7427_s14 + $0xf8] sm:$0xff]   ;;  %v5827_v35 = vld [vmem:[%s7428_s15 + $0xe0] sm:$0xff]  }
 0x6a7   :  { %v5830_v12 = vld [vmem:[%s7428_s15 + $0xf8] sm:$0xff]   ;;  %v5831_v13 = vld [vmem:[%s7426_s13 + $0x240] sm:$0xff]  }
 0x6c3   :  { %v2387_v16 = vpop.f32.mrb[44].mxu0 }
 0x6c4   :  { %v2393_v17 = vpack.c.bf16 %v2387_v16, %v2387_v16  ;;  %v5339_v18 = vpop.f32.mrb[45].mxu0  ;;  %v5833_v16 = vld [vmem:[%s7426_s13 + $0x250] sm:$0xff]  }
 0x6c5   :  { %v2390_v19 = vpop.f32.mrb[46].mxu0  ;;  %v5836_v18 = vld [vmem:[%s7426_s13 + $0x268] sm:$0xff]  }
 0x6c6   :  { %v2483_v20 = vsel %vm657_vm6, %v2393_v17, 0  ;;  %v5340_v21 = vpop.f32.mrb[47].mxu0  ;;  %v5835_v17 = vld [vmem:[%s7426_s13 + $0x260] sm:$0xff]   ;;  %v5837_v19 = vld [vmem:[%s7426_s13 + $0x270] sm:$0xff]  }
 0x6c7   :  { %5362 = vmatpush3.bf16.msra.mxu0 %v2483_v20  ;;  %v5838_v20 = vld [vmem:[%s7426_s13 + $0x278] sm:$0xff]  }
 0x6c8   :  { %5367 = vmatprep.subr.bf16.mxu0 %v5951_v1 }
 0x6ca   :  { %5364 = vmatmul.mubr.msk.bf16.vlgmr.msra.gmra.mrb[48].mxu0 %vm653_vm7, %v6412_v48 }
 0x6cb   :  { %5369 = vmatprep.mubr.msk.bf16.mxu0 %vm5952_vm0, %v5951_v1 }
 0x75d   :  { %v2106_v22 = vpop.f32.mrb[48].mxu1 }
 0x75e   :  { %v2112_v24 = vadd.f32 %v2106_v22, %v2068_v15  ;;  %v5293_v26 = vpop.f32.mrb[49].mxu1  ;;  %v5832_v15 = vld [vmem:[%s7426_s13 + $0x248] sm:$0xff]  }
 0x75f   :  { %v2109_v14 = vpop.f32.mrb[50].mxu1 }
 0x760   :  { %v2121_v28 = vadd.f32 %v4493_v23, %v2112_v24  ;;  %v5294_v29 = vpop.f32.mrb[51].mxu1 }
 0x761   :  { %v4521_v29 = vld [vmem:[%s7430_s17 + $0x1] ss:$0 sm:$0xff] }
 0x762   :  { %v2122_v30 = vmax.f32 %v2121_v28, 0.0 }
 0x764   :  { %v6774_v31 = vpack.c.bf16 %v2122_v30, %v2122_v30 }
 0x766   :  { %v6778_v32 = vsel %vm716_vm9, %v6774_v31, 0 }
 0x767   :  { %5296 = vmatpush3.bf16.msra.mxu1 %v6778_v32 }
 0x768   :  { %5301 = vmatprep.subr.bf16.mxu1 %v5951_v1 }
 0x76a   :  { %5298 = vmatmul.mubr.msk.bf16.vlgmr.msra.gmra.mrb[52].mxu1 %vm712_vm10, %v6322_v50 }
 0x76b   :  { %5302 = vmatpush3.bf16.msra.mxu1 %v5807_v33  ;;  %5317 = vmatprep.mubr.msk.bf16.mxu1 %vm5952_vm0, %v5951_v1 }
 0x76c   :  { %5303 = vmatprep.subr.bf16.mxu1 %v5951_v1 }
 0x76f   :  { %5304 = vmatpush3.bf16.msra.mxu1 %v5808_v39 }
 0x770   :  { %5305 = vmatprep.subr.bf16.mxu1 %v5951_v1 }
 0x773   :  { %5306 = vmatpush3.bf16.msra.mxu1 %v5809_v34 }
 0x774   :  { %5307 = vmatprep.subr.bf16.mxu1 %v5951_v1 }
 0x777   :  { %5308 = vmatpush3.bf16.msra.mxu1 %v5810_v36 }
 0x778   :  { %5309 = vmatprep.subr.bf16.mxu1 %v5951_v1 }
 0x77b   :  { %5310 = vmatpush3.bf16.msra.mxu1 %v5811_v37 }
 0x77c   :  { %5311 = vmatprep.subr.bf16.mxu1 %v5951_v1 }
 0x77f   :  { %5312 = vmatpush3.bf16.msra.mxu1 %v5812_v38 }
 0x780   :  { %5313 = vmatprep.subr.bf16.mxu1 %v5951_v1 }
 0x783   :  { %5314 = vmatpush3.bf16.msra.mxu1 %v5813_v40  ;;  %v5839_v40 = vld [vmem:[%s7428_s15 + $0x100] sm:$0xff]  }
 0x784   :  { %5315 = vmatprep.subr.bf16.mxu1 %v5951_v1 }
 0x787   :  { %5316 = vmatpush3.bf16.msra.mxu1 %v5814_v46 }
 0x788   :  { %5341 = vmatprep.subr.bf16.mxu1 %v5951_v1 }
 0x79d   :  { %v6814_v41 = vpop.f32.mrb[48].mxu0 }
 0x79e   :  { %v5365_v42 = vpop.f32.mrb[49].mxu0 }
 0x79f   :  { %v2522_v44 = vpop.f32.mrb[50].mxu0 }
 0x7a0   :  { %v5366_v45 = vpop.f32.mrb[51].mxu0  ;;  %v5842_v44 = vld [vmem:[%s7428_s15 + $0x118] sm:$0xff]  }
 0x83d   :  { %v2161_v51 = vpop.f32.mrb[52].mxu1 }
 0x83e   :  { %v2167_v52 = vmul.f32 %v2161_v51, %v6369_v61  ;;  %v5299_v47 = vpop.f32.mrb[53].mxu1 }
 0x83f   :  { %v2164_v53 = vpop.f32.mrb[54].mxu1  ;;  %v5844_v47 = vld [vmem:[%s7428_s15 + $0x128] sm:$0xff]  }
 0x840   :  { %v2184_v55 = vpack.c.bf16 %v2167_v52, %v2167_v52  ;;  %v5300_v56 = vpop.f32.mrb[55].mxu1  ;;  %v5843_v52 = vld [vmem:[%s7428_s15 + $0x120] sm:$0xff]   ;;  %v5845_v53 = vld [vmem:[%s7428_s15 + $0x130] sm:$0xff]  }
 0x842   :  { %5318 = vmatmul.mubr.bf16.vlgmr.msra.gmra.mrb[56].mxu1 %v2184_v55 }
 0x843   :  { %5342 = vmatpush3.bf16.msra.mxu1 %v5815_v54  ;;  %5357 = vmatprep.mubr.msk.bf16.mxu1 %vm5952_vm0, %v5951_v1  ;;  %v5846_v54 = vld [vmem:[%s7428_s15 + $0x138] sm:$0xff]  }
 0x844   :  { %5343 = vmatprep.subr.bf16.mxu1 %v5951_v1 }
 0x847   :  { %5344 = vmatpush3.bf16.msra.mxu1 %v5816_v58 }
 0x848   :  { %5345 = vmatprep.subr.bf16.mxu1 %v5951_v1 }
 0x84b   :  { %5346 = vmatpush3.bf16.msra.mxu1 %v5817_v59 }
 0x84c   :  { %5347 = vmatprep.subr.bf16.mxu1 %v5951_v1 }
 0x84f   :  { %5348 = vmatpush3.bf16.msra.mxu1 %v5818_v60 }
 0x850   :  { %5349 = vmatprep.subr.bf16.mxu1 %v5951_v1 }
 0x853   :  { %5350 = vmatpush3.bf16.msra.mxu1 %v5819_v62 }
 0x854   :  { %5351 = vmatprep.subr.bf16.mxu1 %v5951_v1 }
 0x857   :  { %5352 = vmatpush3.bf16.msra.mxu1 %v5820_v63 }
 0x858   :  { %5353 = vmatprep.subr.bf16.mxu1 %v5951_v1 }
 0x85b   :  { %5354 = vmatpush3.bf16.msra.mxu1 %v5821_v0 }
 0x85c   :  { %5355 = vmatprep.subr.bf16.mxu1 %v5951_v1 }
 0x85f   :  { %5356 = vmatpush3.bf16.msra.mxu1 %v5822_v4  ;;  %v5847_v4 = vld [vmem:[%s7428_s15 + $0x140] sm:$0xff]  }
 0x860   :  { %5399 = vmatprep.subr.bf16.mxu1 %v5951_v1 }
 0x862   :  { %5358 = vmatmul.mubr.bf16.vlgmr.msra.gmra.mrb[60].mxu1 %v6494_v2  ;;  %v5826_v2 = vld [vmem:[%s7428_s15 + $0xd8] sm:$0xff]  }
 0x863   :  { %5400 = vmatpush3.bf16.msra.mxu1 %v5823_v5  ;;  %5415 = vmatprep.mubr.msk.bf16.mxu1 %vm5952_vm0, %v5951_v1 }
 0x864   :  { %5401 = vmatprep.subr.bf16.mxu1 %v5951_v1 }
 0x867   :  { %5402 = vmatpush3.bf16.msra.mxu1 %v5824_v7 }
 0x868   :  { %5403 = vmatprep.subr.bf16.mxu1 %v5951_v1 }
 0x86b   :  { %5404 = vmatpush3.bf16.msra.mxu1 %v5825_v9  ;;  %v5848_v9 = vld [vmem:[%s7428_s15 + $0x148] sm:$0xff]  }
 0x86c   :  { %5405 = vmatprep.subr.bf16.mxu1 %v5951_v1 }
 0x86f   :  { %5406 = vmatpush3.bf16.msra.mxu1 %v5826_v2 }
 0x870   :  { %5407 = vmatprep.subr.bf16.mxu1 %v5951_v1 }
 0x873   :  { %5408 = vmatpush3.bf16.msra.mxu1 %v5827_v35 }
 0x874   :  { %5409 = vmatprep.subr.bf16.mxu1 %v5951_v1 }
 0x877   :  { %5410 = vmatpush3.bf16.msra.mxu1 %v5828_v49  ;;  %v5849_v49 = vld [vmem:[%s7428_s15 + $0x150] sm:$0xff]  }
 0x878   :  { %5411 = vmatprep.subr.bf16.mxu1 %v5951_v1 }
 0x87b   :  { %5412 = vmatpush3.bf16.msra.mxu1 %v5829_v11 }
 0x87c   :  { %5413 = vmatprep.subr.bf16.mxu1 %v5951_v1 }
 0x87f   :  { %5414 = vmatpush3.bf16.msra.mxu1 %v5830_v12 }
 0x880   :  { %5439 = vmatprep.subr.bf16.mxu1 %v5951_v1 }
 0x882   :  { %5416 = vmatmul.mubr.bf16.vlgmr.msra.gmra.mrb[64].mxu1 %v6681_v27  ;;  %v5834_v27 = vld [vmem:[%s7426_s13 + $0x258] sm:$0xff]  }
 0x883   :  { %5455 = vmatprep.mubr.msk.bf16.mxu1 %vm5952_vm0, %v5951_v1  ;;  %5440 = vmatpush3.bf16.msra.mxu1 %v5831_v13  ;;  %v5850_v13 = vld [vmem:[%s7428_s15 + $0x158] sm:$0xff]  }
 0x884   :  { %5441 = vmatprep.subr.bf16.mxu1 %v5951_v1 }
 0x887   :  { %5442 = vmatpush3.bf16.msra.mxu1 %v5832_v15  ;;  %v5851_v15 = vld [vmem:[%s7428_s15 + $0x160] sm:$0xff]  }
 0x888   :  { %5443 = vmatprep.subr.bf16.mxu1 %v5951_v1 }
 0x88b   :  { %5444 = vmatpush3.bf16.msra.mxu1 %v5833_v16  ;;  %v5852_v16 = vld [vmem:[%s7428_s15 + $0x168] sm:$0xff]  }
 0x88c   :  { %5445 = vmatprep.subr.bf16.mxu1 %v5951_v1 }
 0x88f   :  { %5446 = vmatpush3.bf16.msra.mxu1 %v5834_v27  ;;  %v5853_v27 = vld [vmem:[%s7428_s15 + $0x170] sm:$0xff]  }
 0x890   :  { %5447 = vmatprep.subr.bf16.mxu1 %v5951_v1 }
 0x893   :  { %5448 = vmatpush3.bf16.msra.mxu1 %v5835_v17  ;;  %v5854_v17 = vld [vmem:[%s7428_s15 + $0x178] sm:$0xff]  }
 0x894   :  { %5449 = vmatprep.subr.bf16.mxu1 %v5951_v1 }
 0x897   :  { %5450 = vmatpush3.bf16.msra.mxu1 %v5836_v18 }
 0x898   :  { %5451 = vmatprep.subr.bf16.mxu1 %v5951_v1 }
 0x89b   :  { %5452 = vmatpush3.bf16.msra.mxu1 %v5837_v19  ;;  %v5855_v19 = vld [vmem:[%s7426_s13 + $0x280] sm:$0xff]  }
 0x89c   :  { %5453 = vmatprep.subr.bf16.mxu1 %v5951_v1 }
 0x89f   :  { %5454 = vmatpush3.bf16.msra.mxu1 %v5838_v20 }
 0x8a0   :  { %5479 = vmatprep.subr.bf16.mxu1 %v5951_v1 }
 0x915   :  { %v2283_v21 = vpop.f32.mrb[56].mxu1 }
 0x916   :  { %v5319_v22 = vpop.f32.mrb[57].mxu1 }
 0x917   :  { %v2286_v23 = vpop.f32.mrb[58].mxu1  ;;  %v5857_v22 = vld [vmem:[%s7426_s13 + $0x290] sm:$0xff]  }
 0x918   :  { %v5320_v24 = vpop.f32.mrb[59].mxu1  ;;  %v5858_v23 = vld [vmem:[%s7426_s13 + $0x298] sm:$0xff]  }
 0x919   :  { %v5859_v24 = vld [vmem:[%s7426_s13 + $0x2a0] sm:$0xff]  }
 0x935   :  { %v2476_v26 = vpop.f32.mrb[60].mxu1 }
 0x936   :  { %v2477_v14 = vadd.f32 %v2476_v26, %v2283_v21  ;;  %v5359_v28 = vpop.f32.mrb[61].mxu1  ;;  %v5856_v21 = vld [vmem:[%s7426_s13 + $0x288] sm:$0xff]  }
 0x937   :  { %v2479_v30 = vpop.f32.mrb[62].mxu1  ;;  %v5860_v26 = vld [vmem:[%s7426_s13 + $0x2a8] sm:$0xff]   ;;  %v5862_v28 = vld [vmem:[%s7426_s13 + $0x2b8] sm:$0xff]  }
 0x938   :  { %v2525_v33 = vadd.f32 %v6814_v41, %v2477_v14  ;;  %v5360_v39 = vpop.f32.mrb[63].mxu1  ;;  %v5840_v41 = vld [vmem:[%s7428_s15 + $0x108] sm:$0xff]   ;;  %v5861_v14 = vld [vmem:[%s7426_s13 + $0x2b0] sm:$0xff]  }
 0x939   :  { %v5864_v39 = vld [vmem:[%s7426_s13 + $0x2c8] sm:$0xff]  }
 0x93a   :  { %v2534_v34 = vadd.f32 %v4521_v29, %v2525_v33  ;;  %v5863_v33 = vld [vmem:[%s7426_s13 + $0x2c0] sm:$0xff]  }
 0x93c   :  { %v2535_v36 = vmax.f32 %v2534_v34, 0.0  ;;  %v5865_v34 = vld [vmem:[%s7426_s13 + $0x2d0] sm:$0xff]  }
 0x93e   :  { %v6929_v37 = vpack.c.bf16 %v2535_v36, %v2535_v36  ;;  %v5867_v36 = vld [vmem:[%s7426_s13 + $0x2e0] sm:$0xff]  }
 0x940   :  { %5456 = vmatmul.mubr.bf16.vlgmr.msra.gmra.mrb[68].mxu1 %v6929_v37  ;;  %v2538_v38 = vsel %vm474_vm2, %v6929_v37, 0 }
 0x941   :  { %5368 = vmatpush3.bf16.msra.mxu0 %v2538_v38  ;;  %5495 = vmatprep.mubr.msk.bf16.mxu1 %vm5952_vm0, %v5951_v1  ;;  %v5868_v38 = vld [vmem:[%s7426_s13 + $0x2e8] sm:$0xff]  }
 0x942   :  { %5373 = vmatprep.subr.bf16.mxu0 %v5951_v1  ;;  %5480 = vmatpush3.bf16.msra.mxu1 %v5863_v33 }
 0x943   :  { %5481 = vmatprep.subr.bf16.mxu1 %v5951_v1 }
 0x944   :  { %5370 = vmatmul.mubr.msk.bf16.vlgmr.msra.gmra.mrb[52].mxu0 %vm470_vm3, %v6502_v6 }
 0x945   :  { %5374 = vmatpush3.bf16.msra.mxu0 %v6778_v32  ;;  %5375 = vmatprep.mubr.msk.bf16.mxu0 %vm5952_vm0, %v5951_v1  ;;  %v5841_v32 = vld [vmem:[%s7428_s15 + $0x110] sm:$0xff]  }
 0x946   :  { %5379 = vmatprep.subr.bf16.mxu0 %v5951_v1  ;;  %5482 = vmatpush3.bf16.msra.mxu1 %v5864_v39 }
 0x947   :  { %5483 = vmatprep.subr.bf16.mxu1 %v5951_v1 }
 0x94a   :  { %5484 = vmatpush3.bf16.msra.mxu1 %v5865_v34 }
 0x94b   :  { %5485 = vmatprep.subr.bf16.mxu1 %v5951_v1 }
 0x94c   :  { %5376 = vmatmul.mubr.msk.bf16.vlgmr.msra.gmra.mrb[56].mxu0 %vm712_vm10, %v6515_v8 }
 0x94d   :  { %5380 = vmatpush3.bf16.msra.mxu0 %v5839_v40  ;;  %5395 = vmatprep.mubr.msk.bf16.mxu0 %vm5952_vm0, %v5951_v1  ;;  %v5869_v40 = vld [vmem:[%s7426_s13 + $0x2f0] sm:$0xff]  }
 0x94e   :  { %5381 = vmatprep.subr.bf16.mxu0 %v5951_v1 }
 0x951   :  { %5382 = vmatpush3.bf16.msra.mxu0 %v5840_v41  ;;  %v5870_v41 = vld [vmem:[%s7426_s13 + $0x2f8] sm:$0xff]  }
 0x952   :  { %5383 = vmatprep.subr.bf16.mxu0 %v5951_v1 }
 0x955   :  { %v6958_v42 = vpop.f32.mrb[64].mxu1  ;;  %5384 = vmatpush3.bf16.msra.mxu0 %v5841_v32 }
 0x956   :  { %v5417_v45 = vpop.f32.mrb[65].mxu1  ;;  %5385 = vmatprep.subr.bf16.mxu0 %v5951_v1 }
 0x957   :  { %v2828_v46 = vpop.f32.mrb[66].mxu1 }
 0x958   :  { %v5418_v51 = vpop.f32.mrb[67].mxu1 }
 0x959   :  { %5386 = vmatpush3.bf16.msra.mxu0 %v5842_v44 }
 0x95a   :  { %5387 = vmatprep.subr.bf16.mxu0 %v5951_v1 }
 0x95d   :  { %5388 = vmatpush3.bf16.msra.mxu0 %v5843_v52 }
 0x95e   :  { %5389 = vmatprep.subr.bf16.mxu0 %v5951_v1 }
 0x961   :  { %5390 = vmatpush3.bf16.msra.mxu0 %v5844_v47  ;;  %v4549_v47 = vld [vmem:[%s7431_s18 + $0x1] ss:$0 sm:$0xff] }
 0x962   :  { %5391 = vmatprep.subr.bf16.mxu0 %v5951_v1 }
 0x965   :  { %5392 = vmatpush3.bf16.msra.mxu0 %v5845_v53 }
 0x966   :  { %5393 = vmatprep.subr.bf16.mxu0 %v5951_v1 }
 0x969   :  { %5394 = vmatpush3.bf16.msra.mxu0 %v5846_v54 }
 0x96a   :  { %5419 = vmatprep.subr.bf16.mxu0 %v5951_v1 }
 0xa13   :  { %v6981_v55 = vpop.f32.mrb[68].mxu1 }
 0xa14   :  { %v5457_v56 = vpop.f32.mrb[69].mxu1  ;;  %v3068_v29 = vpack.c.bf16 %v6981_v55, %v6981_v55 }
 0xa15   :  { %v3065_v58 = vpop.f32.mrb[70].mxu1 }
 0xa16   :  { %v5458_v59 = vpop.f32.mrb[71].mxu1  ;;  %v3280_v30 = vsel %vm474_vm2, %v3068_v29, 0 }
 0xa17   :  { %v2574_v60 = vpop.f32.mrb[52].mxu0 }
 0xa18   :  { %v2620_v62 = vmul.f32 %v2574_v60, %v6557_v25  ;;  %v5371_v63 = vpop.f32.mrb[53].mxu0  ;;  %v5871_v60 = vld [vmem:[%s7426_s13 + $0x200] sm:$0xff]  }
 0xa19   :  { %v2577_v0 = vpop.f32.mrb[54].mxu0  ;;  %v5873_v63 = vld [vmem:[%s7426_s13 + $0x210] sm:$0xff]  }
 0xa1a   :  { %v2638_v5 = vpack.c.bf16 %v2620_v62, %v2620_v62  ;;  %v5372_v7 = vpop.f32.mrb[55].mxu0  ;;  %v5874_v0 = vld [vmem:[%s7426_s13 + $0x218] sm:$0xff]  }
 0xa1b   :  { %v5877_v7 = vld [vmem:[%s7426_s13 + $0x230] sm:$0xff]  }
 0xa1c   :  { %5396 = vmatmul.mubr.bf16.vlgmr.msra.gmra.mrb[60].mxu0 %v2638_v5  ;;  %v5876_v5 = vld [vmem:[%s7426_s13 + $0x228] sm:$0xff]  }
 0xa1d   :  { %5420 = vmatpush3.bf16.msra.mxu0 %v5847_v4  ;;  %5435 = vmatprep.mubr.msk.bf16.mxu0 %vm5952_vm0, %v5951_v1  ;;  %v5875_v4 = vld [vmem:[%s7426_s13 + $0x220] sm:$0xff]  }
 0xa1e   :  { %5421 = vmatprep.subr.bf16.mxu0 %v5951_v1 }
 0xa1f   :  { %v2614_v2 = vpop.f32.mrb[56].mxu0 }
 0xa20   :  { %v5377_v35 = vpop.f32.mrb[57].mxu0  ;;  %v2621_v18 = vmul.f32 %v2614_v2, %v6589_v43 }
 0xa21   :  { %5422 = vmatpush3.bf16.msra.mxu0 %v5848_v9  ;;  %v2617_v11 = vpop.f32.mrb[58].mxu0 }
 0xa22   :  { %5423 = vmatprep.subr.bf16.mxu0 %v5951_v1  ;;  %v5378_v12 = vpop.f32.mrb[59].mxu0  ;;  %v2831_v20 = vpack.c.bf16 %v2621_v18, %v2621_v18  ;;  %v5878_v11 = vld [vmem:[%s7426_s13 + $0x238] sm:$0xff]   ;;  %v5880_v18 = vld [vmem:[%s7427_s14 + $0x208] sm:$0xff]  }
 0xa25   :  { %5424 = vmatpush3.bf16.msra.mxu0 %v5849_v49 }
 0xa26   :  { %5425 = vmatprep.subr.bf16.mxu0 %v5951_v1 }
 0xa29   :  { %5426 = vmatpush3.bf16.msra.mxu0 %v5850_v13 }
 0xa2a   :  { %5427 = vmatprep.subr.bf16.mxu0 %v5951_v1 }
 0xa2d   :  { %5428 = vmatpush3.bf16.msra.mxu0 %v5851_v15  ;;  %v5879_v15 = vld [vmem:[%s7427_s14 + $0x200] sm:$0xff]  }
 0xa2e   :  { %5429 = vmatprep.subr.bf16.mxu0 %v5951_v1 }
 0xa31   :  { %5430 = vmatpush3.bf16.msra.mxu0 %v5852_v16 }
 0xa32   :  { %5431 = vmatprep.subr.bf16.mxu0 %v5951_v1 }
 0xa35   :  { %5432 = vmatpush3.bf16.msra.mxu0 %v5853_v27 }
 0xa36   :  { %5433 = vmatprep.subr.bf16.mxu0 %v5951_v1 }
 0xa39   :  { %5434 = vmatpush3.bf16.msra.mxu0 %v5854_v17 }
 0xa3a   :  { %5459 = vmatprep.subr.bf16.mxu0 %v5951_v1 }
 0xa3c   :  { %5436 = vmatmul.mubr.bf16.vlgmr.msra.gmra.mrb[64].mxu0 %v2831_v20  ;;  %v5883_v20 = vld [vmem:[%s7427_s14 + $0x220] sm:$0xff]  }
 0xa3d   :  { %5460 = vmatpush3.bf16.msra.mxu0 %v5855_v19  ;;  %5475 = vmatprep.mubr.msk.bf16.mxu0 %vm5952_vm0, %v5951_v1 }
 0xa3e   :  { %5461 = vmatprep.subr.bf16.mxu0 %v5951_v1 }
 0xa41   :  { %5462 = vmatpush3.bf16.msra.mxu0 %v5856_v21  ;;  %v5884_v21 = vld [vmem:[%s7427_s14 + $0x228] sm:$0xff]  }
 0xa42   :  { %5463 = vmatprep.subr.bf16.mxu0 %v5951_v1 }
 0xa45   :  { %5464 = vmatpush3.bf16.msra.mxu0 %v5857_v22  ;;  %v5885_v22 = vld [vmem:[%s7427_s14 + $0x230] sm:$0xff]  }
 0xa46   :  { %5465 = vmatprep.subr.bf16.mxu0 %v5951_v1 }
 0xa49   :  { %5466 = vmatpush3.bf16.msra.mxu0 %v5858_v23  ;;  %v5886_v23 = vld [vmem:[%s7427_s14 + $0x238] sm:$0xff]  }
 0xa4a   :  { %5467 = vmatprep.subr.bf16.mxu0 %v5951_v1 }
 0xa4d   :  { %5468 = vmatpush3.bf16.msra.mxu0 %v5859_v24 }
 0xa4e   :  { %5469 = vmatprep.subr.bf16.mxu0 %v5951_v1 }
 0xa51   :  { %5470 = vmatpush3.bf16.msra.mxu0 %v5860_v26 }
 0xa52   :  { %5471 = vmatprep.subr.bf16.mxu0 %v5951_v1 }
 0xa55   :  { %5472 = vmatpush3.bf16.msra.mxu0 %v5861_v14 }
 0xa56   :  { %5473 = vmatprep.subr.bf16.mxu0 %v5951_v1 }
 0xa59   :  { %5474 = vmatpush3.bf16.msra.mxu0 %v5862_v28 }
 0xa5a   :  { %5499 = vmatprep.subr.bf16.mxu0 %v5951_v1 }
 0xa5c   :  { %5476 = vmatmul.mubr.bf16.vlgmr.msra.gmra.mrb[68].mxu0 %v6929_v37 }
 0xa5d   :  { %5500 = vmatpush3.bf16.msra.mxu0 %v3280_v30  ;;  %5501 = vmatprep.mubr.msk.bf16.mxu0 %vm5952_vm0, %v5951_v1 }
 0xa5e   :  { %5525 = vmatprep.subr.bf16.mxu0 %v5951_v1 }
 0xa64   :  { %5502 = vmatmul.mubr.msk.bf16.vlgmr.msra.gmra.mrb[72].mxu0 %vm470_vm3, %v6250_v57  ;;  %v5866_v57 = vld [vmem:[%s7426_s13 + $0x2d8] sm:$0xff]  }
 0xa65   :  { %5527 = vmatprep.mubr.msk.bf16.mxu0 %vm5952_vm0, %v5951_v1  ;;  %5486 = vmatpush3.bf16.msra.mxu1 %v5866_v57 }
 0xa66   :  { %5487 = vmatprep.subr.bf16.mxu1 %v5951_v1 }
 0xa69   :  { %5488 = vmatpush3.bf16.msra.mxu1 %v5867_v36 }
 0xa6a   :  { %5489 = vmatprep.subr.bf16.mxu1 %v5951_v1 }
 0xa6d   :  { %5490 = vmatpush3.bf16.msra.mxu1 %v5868_v38 }
 0xa6e   :  { %5491 = vmatprep.subr.bf16.mxu1 %v5951_v1 }
 0xa71   :  { %5492 = vmatpush3.bf16.msra.mxu1 %v5869_v40 }
 0xa72   :  { %5493 = vmatprep.subr.bf16.mxu1 %v5951_v1 }
 0xa75   :  { %5494 = vmatpush3.bf16.msra.mxu1 %v5870_v41 }
 0xa76   :  { %5505 = vmatprep.subr.bf16.mxu1 %v5951_v1 }
 0xaef   :  { %v2737_v32 = vpop.f32.mrb[60].mxu0 }
 0xaf0   :  { %v2826_v44 = vadd.f32 %v6958_v42, %v2737_v32  ;;  %v5397_v45 = vpop.f32.mrb[61].mxu0  ;;  %v5872_v42 = vld [vmem:[%s7426_s13 + $0x208] sm:$0xff]  }
 0xaf1   :  { %v2740_v46 = vpop.f32.mrb[62].mxu0 }
 0xaf2   :  { %v5398_v51 = vpop.f32.mrb[63].mxu0 }
 0xb0f   :  { %v2930_v52 = vpop.f32.mrb[64].mxu0 }
 0xb10   :  { %v2936_v53 = vadd.f32 %v2930_v52, %v2826_v44  ;;  %v5437_v54 = vpop.f32.mrb[65].mxu0 }
 0xb11   :  { %v2933_v55 = vpop.f32.mrb[66].mxu0  ;;  %v4586_v54 = vld [vmem:[%s7429_s16 + $0x2] ss:$0 sm:$0xff] }
 0xb12   :  { %v2945_v56 = vadd.f32 %v4549_v47, %v2936_v53  ;;  %v5438_v58 = vpop.f32.mrb[67].mxu0 }
 0xb14   :  { %v2946_v59 = vmax.f32 %v2945_v56, 0.0 }
 0xb16   :  { %v7103_v62 = vpack.c.bf16 %v2946_v59, %v2946_v59 }
 0xb18   :  { %5496 = vmatmul.mubr.bf16.vlgmr.msra.gmra.mrb[72].mxu1 %v7103_v62 }
 0xb19   :  { %5506 = vmatpush3.bf16.msra.mxu1 %v5871_v60  ;;  %5521 = vmatprep.mubr.msk.bf16.mxu1 %vm5952_vm0, %v5951_v1 }
 0xb1a   :  { %5507 = vmatprep.subr.bf16.mxu1 %v5951_v1 }
 0xb1d   :  { %5508 = vmatpush3.bf16.msra.mxu1 %v5872_v42 }
 0xb1e   :  { %5509 = vmatprep.subr.bf16.mxu1 %v5951_v1 }
 0xb21   :  { %5510 = vmatpush3.bf16.msra.mxu1 %v5873_v63 }
 0xb22   :  { %5511 = vmatprep.subr.bf16.mxu1 %v5951_v1 }
 0xb25   :  { %5512 = vmatpush3.bf16.msra.mxu1 %v5874_v0  ;;  %v5887_v0 = vld [vmem:[%s7427_s14 + $0x1c0] sm:$0xff]  }
 0xb26   :  { %5513 = vmatprep.subr.bf16.mxu1 %v5951_v1 }
 0xb29   :  { %5514 = vmatpush3.bf16.msra.mxu1 %v5875_v4  ;;  %v5888_v4 = vld [vmem:[%s7427_s14 + $0x1c8] sm:$0xff]  }
 0xb2a   :  { %5515 = vmatprep.subr.bf16.mxu1 %v5951_v1 }
 0xb2d   :  { %5516 = vmatpush3.bf16.msra.mxu1 %v5876_v5  ;;  %v5889_v5 = vld [vmem:[%s7427_s14 + $0x1d0] sm:$0xff]  }
 0xb2e   :  { %5517 = vmatprep.subr.bf16.mxu1 %v5951_v1 }
 0xb2f   :  { %v3167_v9 = vpop.f32.mrb[68].mxu0 }
 0xb30   :  { %v3173_v2 = vpack.c.bf16 %v3167_v9, %v3167_v9  ;;  %v5477_v35 = vpop.f32.mrb[69].mxu0  ;;  %v5892_v9 = vld [vmem:[%s7427_s14 + $0x1e8] sm:$0xff]  }
 0xb31   :  { %5518 = vmatpush3.bf16.msra.mxu1 %v5877_v7  ;;  %v3170_v49 = vpop.f32.mrb[70].mxu0  ;;  %v5891_v7 = vld [vmem:[%s7427_s14 + $0x1e0] sm:$0xff]  }
 0xb32   :  { %v3411_v12 = vsel %vm474_vm2, %v3173_v2, 0  ;;  %v5478_v13 = vpop.f32.mrb[71].mxu0  ;;  %5519 = vmatprep.subr.bf16.mxu1 %v5951_v1  ;;  %v5893_v2 = vld [vmem:[%s7427_s14 + $0x1f0] sm:$0xff]  }
 0xb33   :  { %5526 = vmatpush3.bf16.msra.mxu0 %v3411_v12  ;;  %v5894_v13 = vld [vmem:[%s7427_s14 + $0x1f8] sm:$0xff]  }
 0xb34   :  { %5531 = vmatprep.subr.bf16.mxu0 %v5951_v1 }
 0xb35   :  { %5520 = vmatpush3.bf16.msra.mxu1 %v5878_v11 }
 0xb36   :  { %5528 = vmatmul.mubr.msk.bf16.vlgmr.msra.gmra.mrb[76].mxu0 %vm470_vm3, %v6261_v3  ;;  %5563 = vmatprep.subr.bf16.mxu1 %v5951_v1  ;;  %v5881_v3 = vld [vmem:[%s7427_s14 + $0x210] sm:$0xff]  }
 0xb37   :  { %v3316_v16 = vpop.f32.mrb[72].mxu0  ;;  %5533 = vmatprep.mubr.msk.bf16.mxu0 %vm5952_vm0, %v5951_v1 }
 0xb38   :  { %5522 = vmatmul.mubr.bf16.vlgmr.msra.gmra.mrb[76].mxu1 %v6774_v31  ;;  %v5503_v27 = vpop.f32.mrb[73].mxu0  ;;  %v5882_v31 = vld [vmem:[%s7427_s14 + $0x218] sm:$0xff]  }
 0xb39   :  { %5564 = vmatpush3.bf16.msra.mxu1 %v5879_v15  ;;  %v3319_v17 = vpop.f32.mrb[74].mxu0  ;;  %5579 = vmatprep.mubr.msk.bf16.mxu1 %vm5952_vm0, %v5951_v1 }
 0xb3a   :  { %v5504_v19 = vpop.f32.mrb[75].mxu0  ;;  %5565 = vmatprep.subr.bf16.mxu1 %v5951_v1 }
 0xb3d   :  { %5566 = vmatpush3.bf16.msra.mxu1 %v5880_v18  ;;  %v5895_v18 = vld [vmem:[%s7427_s14 + $0x180] sm:$0xff]  }
 0xb3e   :  { %5567 = vmatprep.subr.bf16.mxu1 %v5951_v1 }
 0xb41   :  { %5568 = vmatpush3.bf16.msra.mxu1 %v5881_v3 }
 0xb42   :  { %5569 = vmatprep.subr.bf16.mxu1 %v5951_v1 }
 0xb45   :  { %5570 = vmatpush3.bf16.msra.mxu1 %v5882_v31  ;;  %v5896_v31 = vld [vmem:[%s7427_s14 + $0x188] sm:$0xff]  }
 0xb46   :  { %5571 = vmatprep.subr.bf16.mxu1 %v5951_v1 }
 0xb49   :  { %5572 = vmatpush3.bf16.msra.mxu1 %v5883_v20  ;;  %v5898_v20 = vld [vmem:[%s7427_s14 + $0x198] sm:$0xff]  }
 0xb4a   :  { %5573 = vmatprep.subr.bf16.mxu1 %v5951_v1 }
 0xb4d   :  { %5574 = vmatpush3.bf16.msra.mxu1 %v5884_v21  ;;  %v5899_v21 = vld [vmem:[%s7427_s14 + $0x1a0] sm:$0xff]  }
 0xb4e   :  { %5575 = vmatprep.subr.bf16.mxu1 %v5951_v1 }
 0xb51   :  { %5576 = vmatpush3.bf16.msra.mxu1 %v5885_v22  ;;  %v5900_v22 = vld [vmem:[%s7427_s14 + $0x1a8] sm:$0xff]  }
 0xb52   :  { %5577 = vmatprep.subr.bf16.mxu1 %v5951_v1 }
 0xb55   :  { %5578 = vmatpush3.bf16.msra.mxu1 %v5886_v23  ;;  %v5901_v23 = vld [vmem:[%s7427_s14 + $0x1b0] sm:$0xff]  }
 0xb56   :  { %5603 = vmatprep.subr.bf16.mxu1 %v5951_v1 }
 0xb58   :  { %5580 = vmatmul.mubr.bf16.vlgmr.msra.gmra.mrb[80].mxu1 %v7103_v62 }
 0xb59   :  { %5605 = vmatprep.mubr.msk.bf16.mxu1 %vm5952_vm0, %v5951_v1 }
 0xbeb   :  { %v3272_v24 = vpop.f32.mrb[72].mxu1 }
 0xbec   :  { %v3278_v26 = vpack.c.bf16 %v3272_v24, %v3272_v24  ;;  %v5497_v14 = vpop.f32.mrb[73].mxu1  ;;  %v5902_v24 = vld [vmem:[%s7427_s14 + $0x1b8] sm:$0xff]  }
 0xbed   :  { %v3275_v28 = vpop.f32.mrb[74].mxu1  ;;  %v5904_v14 = vld [vmem:[%s7428_s15 + $0x188] sm:$0xff]  }
 0xbee   :  { %v3455_v29 = vsel %vm657_vm6, %v3278_v26, 0  ;;  %v5498_v30 = vpop.f32.mrb[75].mxu1  ;;  %v5903_v26 = vld [vmem:[%s7428_s15 + $0x180] sm:$0xff]   ;;  %v5905_v28 = vld [vmem:[%s7428_s15 + $0x190] sm:$0xff]  }
 0xbef   :  { %5532 = vmatpush3.bf16.msra.mxu0 %v3455_v29  ;;  %v5907_v29 = vld [vmem:[%s7428_s15 + $0x1a0] sm:$0xff]   ;;  %v5908_v30 = vld [vmem:[%s7428_s15 + $0x1a8] sm:$0xff]  }
 0xbf0   :  { %5537 = vmatprep.subr.bf16.mxu0 %v5951_v1 }
 0xbf2   :  { %5534 = vmatmul.mubr.msk.bf16.vlgmr.msra.gmra.mrb[80].mxu0 %vm653_vm7, %v6269_v10 }
 0xbf3   :  { %5539 = vmatprep.mubr.msk.bf16.mxu0 %vm5952_vm0, %v5951_v1 }
 0xc09   :  { %v3447_v33 = vpop.f32.mrb[76].mxu0 }
 0xc0a   :  { %v5529_v39 = vpop.f32.mrb[77].mxu0 }
 0xc0b   :  { %v3404_v34 = vpop.f32.mrb[76].mxu1  ;;  %v3450_v57 = vpop.f32.mrb[78].mxu0  ;;  %v5910_v39 = vld [vmem:[%s7428_s15 + $0x1b8] sm:$0xff]  }
 0xc0c   :  { %v3405_v36 = vadd.f32 %v3404_v34, %v3316_v16  ;;  %v5523_v38 = vpop.f32.mrb[77].mxu1  ;;  %v5530_v40 = vpop.f32.mrb[79].mxu0 }
 0xc0d   :  { %v3407_v41 = vpop.f32.mrb[78].mxu1 }
 0xc0e   :  { %v5524_v32 = vpop.f32.mrb[79].mxu1  ;;  %v3453_v44 = vadd.f32 %v3447_v33, %v3405_v36  ;;  %v5909_v33 = vld [vmem:[%s7428_s15 + $0x1b0] sm:$0xff]  }
 0xc2b   :  { %v3772_v45 = vpop.f32.mrb[80].mxu1 }
 0xc2c   :  { %v3778_v46 = vpack.c.bf16 %v3772_v45, %v3772_v45  ;;  %v5581_v51 = vpop.f32.mrb[81].mxu1 }
 0xc2d   :  { %v3775_v52 = vpop.f32.mrb[82].mxu1 }
 0xc2e   :  { %v3868_v47 = vsel %vm657_vm6, %v3778_v46, 0  ;;  %v5582_v10 = vpop.f32.mrb[83].mxu1 }
 0xc2f   :  { %5604 = vmatpush3.bf16.msra.mxu1 %v3868_v47 }
 0xc30   :  { %5609 = vmatprep.subr.bf16.mxu1 %v5951_v1 }
 0xc32   :  { %5606 = vmatmul.mubr.msk.bf16.vlgmr.msra.gmra.mrb[84].mxu1 %vm653_vm7, %v6412_v48 }
 0xc33   :  { %5611 = vmatprep.mubr.msk.bf16.mxu1 %vm5952_vm0, %v5951_v1 }
 0xcc5   :  { %v3491_v53 = vpop.f32.mrb[80].mxu0 }
 0xcc6   :  { %v3497_v55 = vadd.f32 %v3491_v53, %v3453_v44  ;;  %v5535_v56 = vpop.f32.mrb[81].mxu0  ;;  %v4614_v44 = vld [vmem:[%s7430_s17 + $0x2] ss:$0 sm:$0xff] }
 0xcc7   :  { %v3494_v58 = vpop.f32.mrb[82].mxu0  ;;  %v5911_v53 = vld [vmem:[%s7428_s15 + $0x1c0] sm:$0xff]  }
 0xcc8   :  { %v3506_v59 = vadd.f32 %v4586_v54, %v3497_v55  ;;  %v5536_v60 = vpop.f32.mrb[83].mxu0  ;;  %v5912_v54 = vld [vmem:[%s7428_s15 + $0x1c8] sm:$0xff]  }
 0xcc9   :  { %v5915_v60 = vld [vmem:[%s7428_s15 + $0x1e0] sm:$0xff]  }
 0xcca   :  { %v3507_v42 = vmax.f32 %v3506_v59, 0.0 }
 0xccc   :  { %v3508_v63 = vpack.c.bf16 %v3507_v42, %v3507_v42  ;;  %4334 = vst [vmem:[%s7434_s21] sm:$0xff] %v3507_v42  ;;  %v5916_v42 = vld [vmem:[%s7428_s15 + $0x1e8] sm:$0xff]  }
 0xcce   :  { %v7200_v48 = vsel %vm716_vm9, %v3508_v63, 0  ;;  %v5917_v63 = vld [vmem:[%s7428_s15 + $0x1f0] sm:$0xff]  }
 0xccf   :  { %5538 = vmatpush3.bf16.msra.mxu0 %v7200_v48 }
 0xcd0   :  { %5543 = vmatprep.subr.bf16.mxu0 %v5951_v1 }
 0xcd2   :  { %5540 = vmatmul.mubr.msk.bf16.vlgmr.msra.gmra.mrb[84].mxu0 %vm712_vm10, %v6322_v50  ;;  %v5890_v50 = vld [vmem:[%s7427_s14 + $0x1d8] sm:$0xff]  }
 0xcd3   :  { %5544 = vmatpush3.bf16.msra.mxu0 %v5887_v0  ;;  %5559 = vmatprep.mubr.msk.bf16.mxu0 %vm5952_vm0, %v5951_v1 }
 0xcd4   :  { %5545 = vmatprep.subr.bf16.mxu0 %v5951_v1 }
 0xcd7   :  { %5546 = vmatpush3.bf16.msra.mxu0 %v5888_v4 }
 0xcd8   :  { %5547 = vmatprep.subr.bf16.mxu0 %v5951_v1 }
 0xcdb   :  { %5548 = vmatpush3.bf16.msra.mxu0 %v5889_v5 }
 0xcdc   :  { %5549 = vmatprep.subr.bf16.mxu0 %v5951_v1 }
 0xcdf   :  { %5550 = vmatpush3.bf16.msra.mxu0 %v5890_v50 }
 0xce0   :  { %5551 = vmatprep.subr.bf16.mxu0 %v5951_v1 }
 0xce3   :  { %5552 = vmatpush3.bf16.msra.mxu0 %v5891_v7  ;;  %v5919_v7 = vld [vmem:[%s7428_s15 + $0x200] sm:$0xff]  }
 0xce4   :  { %5553 = vmatprep.subr.bf16.mxu0 %v5951_v1 }
 0xce7   :  { %5554 = vmatpush3.bf16.msra.mxu0 %v5892_v9 }
 0xce8   :  { %5555 = vmatprep.subr.bf16.mxu0 %v5951_v1 }
 0xceb   :  { %5556 = vmatpush3.bf16.msra.mxu0 %v5893_v2 }
 0xcec   :  { %5557 = vmatprep.subr.bf16.mxu0 %v5951_v1 }
 0xcef   :  { %5558 = vmatpush3.bf16.msra.mxu0 %v5894_v13 }
 0xcf0   :  { %5583 = vmatprep.subr.bf16.mxu0 %v5951_v1 }
 0xd05   :  { %v7236_v35 = vpop.f32.mrb[84].mxu1 }
 0xd06   :  { %v5607_v49 = vpop.f32.mrb[85].mxu1 }
 0xd07   :  { %v3907_v11 = vpop.f32.mrb[86].mxu1 }
 0xd08   :  { %v5608_v12 = vpop.f32.mrb[87].mxu1  ;;  %v5921_v11 = vld [vmem:[%s7428_s15 + $0x210] sm:$0xff]  }
 0xda5   :  { %v3546_v15 = vpop.f32.mrb[84].mxu0 }
 0xda6   :  { %v3552_v16 = vmul.f32 %v3546_v15, %v6369_v61  ;;  %v5541_v27 = vpop.f32.mrb[85].mxu0  ;;  %v5897_v61 = vld [vmem:[%s7427_s14 + $0x190] sm:$0xff]   ;;  %v5922_v15 = vld [vmem:[%s7428_s15 + $0x218] sm:$0xff]  }
 0xda7   :  { %v3549_v17 = vpop.f32.mrb[86].mxu0  ;;  %v5924_v27 = vld [vmem:[%s7428_s15 + $0x228] sm:$0xff]  }
 0xda8   :  { %v3569_v19 = vpack.c.bf16 %v3552_v16, %v3552_v16  ;;  %v5542_v3 = vpop.f32.mrb[87].mxu0  ;;  %v5923_v16 = vld [vmem:[%s7428_s15 + $0x220] sm:$0xff]   ;;  %v5925_v17 = vld [vmem:[%s7428_s15 + $0x230] sm:$0xff]  }
 0xdaa   :  { %5560 = vmatmul.mubr.bf16.vlgmr.msra.gmra.mrb[88].mxu0 %v3569_v19 }
 0xdab   :  { %5584 = vmatpush3.bf16.msra.mxu0 %v5895_v18  ;;  %5599 = vmatprep.mubr.msk.bf16.mxu0 %vm5952_vm0, %v5951_v1  ;;  %v5926_v18 = vld [vmem:[%s7428_s15 + $0x238] sm:$0xff]  }
 0xdac   :  { %5585 = vmatprep.subr.bf16.mxu0 %v5951_v1 }
 0xdaf   :  { %5586 = vmatpush3.bf16.msra.mxu0 %v5896_v31 }
 0xdb0   :  { %5587 = vmatprep.subr.bf16.mxu0 %v5951_v1 }
 0xdb3   :  { %5588 = vmatpush3.bf16.msra.mxu0 %v5897_v61 }
 0xdb4   :  { %5589 = vmatprep.subr.bf16.mxu0 %v5951_v1 }
 0xdb7   :  { %5590 = vmatpush3.bf16.msra.mxu0 %v5898_v20 }
 0xdb8   :  { %5591 = vmatprep.subr.bf16.mxu0 %v5951_v1 }
 0xdbb   :  { %5592 = vmatpush3.bf16.msra.mxu0 %v5899_v21 }
 0xdbc   :  { %5593 = vmatprep.subr.bf16.mxu0 %v5951_v1 }
 0xdbf   :  { %5594 = vmatpush3.bf16.msra.mxu0 %v5900_v22 }
 0xdc0   :  { %5595 = vmatprep.subr.bf16.mxu0 %v5951_v1 }
 0xdc3   :  { %5596 = vmatpush3.bf16.msra.mxu0 %v5901_v23 }
 0xdc4   :  { %5597 = vmatprep.subr.bf16.mxu0 %v5951_v1 }
 0xdc7   :  { %5598 = vmatpush3.bf16.msra.mxu0 %v5902_v24  ;;  %v4642_v24 = vld [vmem:[%s7431_s18 + $0x2] ss:$0 sm:$0xff] }
 0xdc8   :  { %5641 = vmatprep.subr.bf16.mxu0 %v5951_v1 }
 0xdca   :  { %5600 = vmatmul.mubr.bf16.vlgmr.msra.gmra.mrb[92].mxu0 %v6929_v37  ;;  %v5906_v37 = vld [vmem:[%s7428_s15 + $0x198] sm:$0xff]  }
 0xdcb   :  { %5642 = vmatpush3.bf16.msra.mxu0 %v5903_v26  ;;  %5657 = vmatprep.mubr.msk.bf16.mxu0 %vm5952_vm0, %v5951_v1 }
 0xdcc   :  { %5643 = vmatprep.subr.bf16.mxu0 %v5951_v1 }
 0xdcf   :  { %5644 = vmatpush3.bf16.msra.mxu0 %v5904_v14 }
 0xdd0   :  { %5645 = vmatprep.subr.bf16.mxu0 %v5951_v1 }
 0xdd3   :  { %5646 = vmatpush3.bf16.msra.mxu0 %v5905_v28 }
 0xdd4   :  { %5647 = vmatprep.subr.bf16.mxu0 %v5951_v1 }
 0xdd7   :  { %5648 = vmatpush3.bf16.msra.mxu0 %v5906_v37 }
 0xdd8   :  { %5649 = vmatprep.subr.bf16.mxu0 %v5951_v1 }
 0xddb   :  { %5650 = vmatpush3.bf16.msra.mxu0 %v5907_v29 }
 0xddc   :  { %5651 = vmatprep.subr.bf16.mxu0 %v5951_v1 }
 0xddf   :  { %5652 = vmatpush3.bf16.msra.mxu0 %v5908_v30 }
 0xde0   :  { %5653 = vmatprep.subr.bf16.mxu0 %v5951_v1 }
 0xde3   :  { %5654 = vmatpush3.bf16.msra.mxu0 %v5909_v33 }
 0xde4   :  { %5655 = vmatprep.subr.bf16.mxu0 %v5951_v1 }
 0xde7   :  { %5656 = vmatpush3.bf16.msra.mxu0 %v5910_v39 }
 0xdea   :  { %5658 = vmatmul.mubr.bf16.vlgmr.msra.gmra.mrb[96].mxu0 %v7103_v62 }
 0xe7d   :  { %v3668_v34 = vpop.f32.mrb[88].mxu0 }
 0xe7e   :  { %v5561_v57 = vpop.f32.mrb[89].mxu0 }
 0xe7f   :  { %v3671_v36 = vpop.f32.mrb[90].mxu0 }
 0xe80   :  { %v5562_v38 = vpop.f32.mrb[91].mxu0 }
 0xe9d   :  { %v3861_v40 = vpop.f32.mrb[92].mxu0 }
 0xe9e   :  { %v3862_v41 = vadd.f32 %v3861_v40, %v3668_v34  ;;  %v5601_v32 = vpop.f32.mrb[93].mxu0 }
 0xe9f   :  { %v3864_v45 = vpop.f32.mrb[94].mxu0 }
 0xea0   :  { %v3910_v46 = vadd.f32 %v7236_v35, %v3862_v41  ;;  %v5602_v51 = vpop.f32.mrb[95].mxu0  ;;  %v5920_v35 = vld [vmem:[%s7428_s15 + $0x208] sm:$0xff]  }
 0xea2   :  { %v3919_v52 = vadd.f32 %v4614_v44, %v3910_v46 }
 0xea4   :  { %v3920_v47 = vmax.f32 %v3919_v52, 0.0 }
 0xea6   :  { %4333 = vst [vmem:[%s7433_s20] sm:$0x3f] %v3920_v47  ;;  %v3921_v62 = vpack.c.bf16 %v3920_v47, %v3920_v47 }
 0xea8   :  { %v3923_v10 = vsel %vm474_vm2, %v3921_v62, 0 }
 0xea9   :  { %5610 = vmatpush3.bf16.msra.mxu1 %v3923_v10 }
 0xeaa   :  { %5615 = vmatprep.subr.bf16.mxu1 %v5951_v1 }
 0xeac   :  { %5612 = vmatmul.mubr.msk.bf16.vlgmr.msra.gmra.mrb[88].mxu1 %vm470_vm3, %v6502_v6  ;;  %v5913_v6 = vld [vmem:[%s7428_s15 + $0x1d0] sm:$0xff]  }
 0xead   :  { %5616 = vmatpush3.bf16.msra.mxu1 %v7200_v48  ;;  %5617 = vmatprep.mubr.msk.bf16.mxu1 %vm5952_vm0, %v5951_v1  ;;  %v5918_v48 = vld [vmem:[%s7428_s15 + $0x1f8] sm:$0xff]  }
 0xeae   :  { %5621 = vmatprep.subr.bf16.mxu1 %v5951_v1 }
 0xeb4   :  { %5618 = vmatmul.mubr.msk.bf16.vlgmr.msra.gmra.mrb[92].mxu1 %vm712_vm10, %v6515_v8  ;;  %v5914_v8 = vld [vmem:[%s7428_s15 + $0x1d8] sm:$0xff]   ;;  %s5954_s15 = smov [#allocation2]  }
 0xeb5   :  { %5622 = vmatpush3.bf16.msra.mxu1 %v5911_v53  ;;  %5637 = vmatprep.mubr.msk.bf16.mxu1 %vm5952_vm0, %v5951_v1  ;;  %s4341_s24 = sshll.u32 %s5954_s15, 4  ;;  %s4342_s24 = int_to_ptr.vmem [resolvable:$true] %s4341_s24 }
 0xeb6   :  { %5623 = vmatprep.subr.bf16.mxu1 %v5951_v1  ;;  %s5927_s2 = scalar_lea.vmem %s4342_s24, 32  ;;  %p5932_p1 = scmp.lt.s32.totalorder %s4342_s24, %s4342_s24 }
 0xeb7   :  { %p5928_p0 = scmp.ne.s32.totalorder %s4342_s24, %s5927_s2  ;;  %p5933_p2 = scmp.lt.s32.totalorder %s5927_s2, %s5927_s2 }
 0xeb9   :  { %5624 = vmatpush3.bf16.msra.mxu1 %v5912_v54  ;;  %p5934_p3 = por %p5933_p2, %p5932_p1 }
 0xeba   :  { %5625 = vmatprep.subr.bf16.mxu1 %v5951_v1 }
 0xebb   :  { %p5935_p4 = pnand %p5934_p3, %p5928_p0 }
 0xebd   :  { %v4210_v55 = vpop.f32.mrb[96].mxu0  ;;  %5626 = vmatpush3.bf16.msra.mxu1 %v5913_v6 }
 0xebe   :  { %v5659_v56 = vpop.f32.mrb[97].mxu0  ;;  %5627 = vmatprep.subr.bf16.mxu1 %v5951_v1 }
 0xebf   :  { %v4213_v58 = vpop.f32.mrb[98].mxu0 }
 0xec0   :  { %v5660_v59 = vpop.f32.mrb[99].mxu0 }
 0xec1   :  { %5628 = vmatpush3.bf16.msra.mxu1 %v5914_v8 }
 0xec2   :  { %5629 = vmatprep.subr.bf16.mxu1 %v5951_v1 }
 0xec5   :  { %5630 = vmatpush3.bf16.msra.mxu1 %v5915_v60 }
 0xec6   :  { %5631 = vmatprep.subr.bf16.mxu1 %v5951_v1 }
 0xec9   :  { %5632 = vmatpush3.bf16.msra.mxu1 %v5916_v42 }
 0xeca   :  { %5633 = vmatprep.subr.bf16.mxu1 %v5951_v1 }
 0xecd   :  { %5634 = vmatpush3.bf16.msra.mxu1 %v5917_v63 }
 0xece   :  { %5635 = vmatprep.subr.bf16.mxu1 %v5951_v1 }
 0xed1   :  { %5636 = vmatpush3.bf16.msra.mxu1 %v5918_v48 }
 0xed2   :  { %5661 = vmatprep.subr.bf16.mxu1 %v5951_v1 }
 0xf7f   :  { %v3959_v0 = vpop.f32.mrb[88].mxu1 }
 0xf80   :  { %v4005_v4 = vmul.f32 %v3959_v0, %v6557_v25  ;;  %v5613_v5 = vpop.f32.mrb[89].mxu1 }
 0xf81   :  { %v3962_v50 = vpop.f32.mrb[90].mxu1 }
 0xf82   :  { %v4023_v9 = vpack.c.bf16 %v4005_v4, %v4005_v4  ;;  %v5614_v2 = vpop.f32.mrb[91].mxu1 }
 0xf84   :  { %5638 = vmatmul.mubr.bf16.vlgmr.msra.gmra.mrb[96].mxu1 %v4023_v9 }
 0xf85   :  { %5662 = vmatpush3.bf16.msra.mxu1 %v5919_v7  ;;  %5677 = vmatprep.mubr.msk.bf16.mxu1 %vm5952_vm0, %v5951_v1 }
 0xf86   :  { %5663 = vmatprep.subr.bf16.mxu1 %v5951_v1 }
 0xf87   :  { %v3999_v25 = vpop.f32.mrb[92].mxu1 }
 0xf88   :  { %v5619_v49 = vpop.f32.mrb[93].mxu1  ;;  %v4006_v19 = vmul.f32 %v3999_v25, %v6589_v43 }
 0xf89   :  { %5664 = vmatpush3.bf16.msra.mxu1 %v5920_v35  ;;  %v4002_v12 = vpop.f32.mrb[94].mxu1 }
 0xf8a   :  { %5665 = vmatprep.subr.bf16.mxu1 %v5951_v1  ;;  %v5620_v13 = vpop.f32.mrb[95].mxu1  ;;  %v4216_v3 = vpack.c.bf16 %v4006_v19, %v4006_v19 }
 0xf8d   :  { %5666 = vmatpush3.bf16.msra.mxu1 %v5921_v11 }
 0xf8e   :  { %5667 = vmatprep.subr.bf16.mxu1 %v5951_v1 }
 0xf91   :  { %5668 = vmatpush3.bf16.msra.mxu1 %v5922_v15 }
 0xf92   :  { %5669 = vmatprep.subr.bf16.mxu1 %v5951_v1 }
 0xf95   :  { %5670 = vmatpush3.bf16.msra.mxu1 %v5923_v16 }
 0xf96   :  { %5671 = vmatprep.subr.bf16.mxu1 %v5951_v1 }
 0xf99   :  { %5672 = vmatpush3.bf16.msra.mxu1 %v5924_v27 }
 0xf9a   :  { %5673 = vmatprep.subr.bf16.mxu1 %v5951_v1 }
 0xf9d   :  { %5674 = vmatpush3.bf16.msra.mxu1 %v5925_v17 }
 0xf9e   :  { %5675 = vmatprep.subr.bf16.mxu1 %v5951_v1 }
 0xfa1   :  { %5676 = vmatpush3.bf16.msra.mxu1 %v5926_v18 }
 0xfa4   :  { %5678 = vmatmul.mubr.bf16.vlgmr.msra.gmra.mrb[100].mxu1 %v4216_v3 }
0x1057   :  { %v4122_v31 = vpop.f32.mrb[96].mxu1 }
0x1058   :  { %v4211_v61 = vadd.f32 %v4210_v55, %v4122_v31  ;;  %v5639_v20 = vpop.f32.mrb[97].mxu1 }
0x1059   :  { %v4125_v21 = vpop.f32.mrb[98].mxu1 }
0x105a   :  { %v5640_v22 = vpop.f32.mrb[99].mxu1 }
0x1077   :  { %v4315_v23 = vpop.f32.mrb[100].mxu1 }
0x1078   :  { %v4321_v26 = vadd.f32 %v4315_v23, %v4211_v61  ;;  %v5679_v14 = vpop.f32.mrb[101].mxu1 }
0x1079   :  { %v4318_v28 = vpop.f32.mrb[102].mxu1 }
0x107a   :  { %v4330_v43 = vadd.f32 %v4642_v24, %v4321_v26  ;;  %v5680_v1 = vpop.f32.mrb[103].mxu1 }
0x107c   :  { %v4331_v37 = vmax.f32 %v4330_v43, 0.0 }
0x107e   :  { %4332 = vst [vmem:[#allocation2] sm:$0x3] %v4331_v37 }
0x107f   :  { %5938 = shalt.err (!%p5935_p4)
}
0x1080   :  { %s5939_s18 = scalar_lea.hbm %s7432_s19, 32 }
0x1081   :  { %p5940_p5 = scmp.ne.s32.totalorder %s7432_s19, %s5939_s18  ;;  %p5943_p6 = scmp.lt.u32.totalorder %s5939_s18, %s7432_s19 }
0x1083   :  { %p5945_p7 = pnand %p5943_p6, %p5940_p5 }
0x1085   :  { %5948 = shalt.err (!%p5945_p7)
}
0x1086   :  { %4344 = dma.vmem_to_hbm [thread:$0]  %s4342_s24, 32, %s7432_s19, [#allocation3]  }
0x1087   :  { %5949 = dma.done.wait [#allocation3], 32  }
0x1088   :  { %5950 = vsyncadd [#allocation3], 4294967264 }
0x1089   :  { %4356 = vsyncpa [#allocation3], 1 }

// kernel: graph_net_forward.2
= control target key start
LH: loop header
LB: loop body
LE: loop exit
PB: predicated region body
PF: predicated region fallthrough
CT: control target
= control target key end

     0   :  { %v6403_v1 = vmov 0   ;;  %v286_v53 = vlaneseq  ;;  %v6404_v62 = vmov 1.0|1.0   ;;  %s7807_s1 = inlined_call_operand.vmem [shape: bf16[128,128], index: 1, kind: input, shape index: {}]   ;;  %s7808_s0 = inlined_call_operand.vmem [shape: bf16[128,128], index: 0, kind: input, shape index: {}]   ;;  %s7809_s3 = inlined_call_operand.vmem [shape: s32[9,32,1], index: 3, kind: input, shape index: {}]   ;;  %s7810_s2 = inlined_call_operand.vmem [shape: f32[1,128], index: 2, kind: input, shape index: {}]   ;;  %s7811_s4 = inlined_call_operand.vmem [shape: bf16[1152,128], index: 4, kind: input, shape index: {}]   ;;  %s7812_s6 = inlined_call_operand.vmem [shape: bf16[2048,128], index: 6, kind: input, shape index: {}]   ;;  %s7813_s5 = inlined_call_operand.vmem [shape: f32[1,128], index: 5, kind: input, shape index: {}]   ;;  %s7814_s7 = inlined_call_operand.vmem [shape: f32[1,128], index: 7, kind: input, shape index: {}]   ;;  %s7815_s8 = inlined_call_operand.vmem [shape: f32[2,128], index: 8, kind: output, shape index: {}]  }
   0x1   :  { %v6187_v0 = vld [vmem:[%s7807_s1] sm:$0xff]   ;;  %6186 = vset.pattern.permute.xlu1 %v6403_v1  ;;  %6185 = vset.pattern.permute.xlu0 %v6403_v1  ;;  %v6188_v2 = vld [vmem:[%s7807_s1 + $0x8] sm:$0xff]   ;;  %v6189_v3 = vld [vmem:[%s7807_s1 + $0x10] sm:$0xff]  }
   0x2   :  { %5309 = vmatprep.subr.bf16.mxu0 %v6187_v0  ;;  %v6190_v4 = vld [vmem:[%s7807_s1 + $0x18] sm:$0xff]   ;;  %v6195_v5 = vld [vmem:[%s7808_s0] sm:$0xff]   ;;  %v6192_v7 = vld [vmem:[%s7807_s1 + $0x28] sm:$0xff]   ;;  %v6609_v54 = vand.u32 127, %v286_v53 }
   0x3   :  { %5310 = vmatpush3.bf16.msra.mxu0 %v6187_v0  ;;  %5325 = vmatprep.mubr.bf16.mxu0 %v6195_v5  ;;  %v6191_v6 = vld [vmem:[%s7807_s1 + $0x20] sm:$0xff]   ;;  %v4593_v8 = vld [vmem:[%s7809_s3 + $0x30] sm:$0xff]  ;;  %v4594_v10 = vld [vmem:[%s7809_s3 + $0x38] sm:$0xff] }
   0x4   :  { %5311 = vmatprep.subr.bf16.mxu0 %v6188_v2  ;;  %v4591_v9 = vld [vmem:[%s7809_s3 + $0x20] sm:$0xff]  ;;  %397 = vperm.xlu1 %6186, %v4593_v8   ;;  %v4592_v11 = vld [vmem:[%s7809_s3 + $0x28] sm:$0xff]  ;;  %v6193_v12 = vld [vmem:[%s7807_s1 + $0x30] sm:$0xff]  }
   0x5   :  { %391 = vperm.xlu0 %6185, %v4591_v9   ;;  %v289_v13 = vld [vmem:[%s7809_s3 + $0x8] sm:$0xff]  ;;  %v288_v14 = vld [vmem:[%s7809_s3] sm:$0xff]  ;;  %v6194_v15 = vld [vmem:[%s7807_s1 + $0x38] sm:$0xff]  }
   0x6   :  { %v291_v16 = vld [vmem:[%s7809_s3 + $0x18] sm:$0xff]  ;;  %v290_v17 = vld [vmem:[%s7809_s3 + $0x10] sm:$0xff]  ;;  %v6196_v18 = vld [vmem:[%s7808_s0 + $0x8] sm:$0xff]  }
   0x7   :  { %5312 = vmatpush3.bf16.msra.mxu0 %v6188_v2  ;;  %v4620_v19 = vld [vmem:[%s7809_s3 + $0x48] sm:$0xff]  ;;  %v4619_v20 = vld [vmem:[%s7809_s3 + $0x40] sm:$0xff]  ;;  %v6197_v21 = vld [vmem:[%s7808_s0 + $0x10] sm:$0xff]  }
   0x8   :  { %5313 = vmatprep.subr.bf16.mxu0 %v6189_v3  ;;  %400 = vperm.xlu1 %6186, %v4594_v10   ;;  %v4622_v22 = vld [vmem:[%s7809_s3 + $0x58] sm:$0xff]  ;;  %v4621_v23 = vld [vmem:[%s7809_s3 + $0x50] sm:$0xff]  ;;  %v4640_v25 = vld [vmem:[%s7809_s3 + $0x68] sm:$0xff] }
   0x9   :  { %394 = vperm.xlu0 %6185, %v4592_v11   ;;  %v6198_v24 = vld [vmem:[%s7808_s0 + $0x18] sm:$0xff]   ;;  %v4639_v26 = vld [vmem:[%s7809_s3 + $0x60] sm:$0xff]  ;;  %v4641_v29 = vld [vmem:[%s7809_s3 + $0x70] sm:$0xff] }
   0xa   :  { %v6199_v27 = vld [vmem:[%s7808_s0 + $0x20] sm:$0xff]   ;;  %v4642_v28 = vld [vmem:[%s7809_s3 + $0x78] sm:$0xff]  ;;  %v6200_v30 = vld [vmem:[%s7808_s0 + $0x28] sm:$0xff]  }
   0xb   :  { %5314 = vmatpush3.bf16.msra.mxu0 %v6189_v3  ;;  %v4660_v31 = vld [vmem:[%s7809_s3 + $0x88] sm:$0xff]  ;;  %v4659_v32 = vld [vmem:[%s7809_s3 + $0x80] sm:$0xff]  ;;  %v6201_v33 = vld [vmem:[%s7808_s0 + $0x30] sm:$0xff]  }
   0xc   :  { %5315 = vmatprep.subr.bf16.mxu0 %v6190_v4  ;;  %296 = vperm.xlu1 %6186, %v289_v13   ;;  %v4662_v34 = vld [vmem:[%s7809_s3 + $0x98] sm:$0xff]  ;;  %v4661_v35 = vld [vmem:[%s7809_s3 + $0x90] sm:$0xff]  ;;  %v4680_v37 = vld [vmem:[%s7809_s3 + $0xa8] sm:$0xff] }
   0xd   :  { %293 = vperm.xlu0 %6185, %v288_v14   ;;  %v6202_v36 = vld [vmem:[%s7808_s0 + $0x38] sm:$0xff]   ;;  %v4679_v38 = vld [vmem:[%s7809_s3 + $0xa0] sm:$0xff]  ;;  %v4681_v40 = vld [vmem:[%s7809_s3 + $0xb0] sm:$0xff] }
   0xe   :  { %v4682_v39 = vld [vmem:[%s7809_s3 + $0xb8] sm:$0xff]  ;;  %v4700_v41 = vld [vmem:[%s7809_s3 + $0xc8] sm:$0xff]  ;;  %v4699_v42 = vld [vmem:[%s7809_s3 + $0xc0] sm:$0xff] }
   0xf   :  { %5316 = vmatpush3.bf16.msra.mxu0 %v6190_v4  ;;  %v4702_v43 = vld [vmem:[%s7809_s3 + $0xd8] sm:$0xff]  ;;  %v4701_v44 = vld [vmem:[%s7809_s3 + $0xd0] sm:$0xff]  ;;  %v4720_v45 = vld [vmem:[%s7809_s3 + $0xe8] sm:$0xff] }
  0x10   :  { %5317 = vmatprep.subr.bf16.mxu0 %v6191_v6  ;;  %302 = vperm.xlu1 %6186, %v291_v16   ;;  %v4719_v46 = vld [vmem:[%s7809_s3 + $0xe0] sm:$0xff]  ;;  %v4722_v47 = vld [vmem:[%s7809_s3 + $0xf8] sm:$0xff]  ;;  %v4721_v48 = vld [vmem:[%s7809_s3 + $0xf0] sm:$0xff] }
  0x11   :  { %299 = vperm.xlu0 %6185, %v290_v17   ;;  %v4740_v49 = vld [vmem:[%s7809_s3 + $0x108] sm:$0xff]  ;;  %v4739_v50 = vld [vmem:[%s7809_s3 + $0x100] sm:$0xff]  ;;  %v4742_v51 = vld [vmem:[%s7809_s3 + $0x118] sm:$0xff] }
  0x12   :  { %v4741_v52 = vld [vmem:[%s7809_s3 + $0x110] sm:$0xff]  ;;  %v6626_v63 = vld [vmem:[%s7810_s2] ss:$0 sm:$0xff] }
  0x13   :  { %5318 = vmatpush3.bf16.msra.mxu0 %v6191_v6 }
  0x14   :  { %5319 = vmatprep.subr.bf16.mxu0 %v6192_v7  ;;  %686 = vperm.xlu1 %6186, %v4620_v19  }
  0x15   :  { %683 = vperm.xlu0 %6185, %v4619_v20  }
  0x17   :  { %5320 = vmatpush3.bf16.msra.mxu0 %v6192_v7 }
  0x18   :  { %5321 = vmatprep.subr.bf16.mxu0 %v6193_v12  ;;  %692 = vperm.xlu1 %6186, %v4622_v22  }
  0x19   :  { %689 = vperm.xlu0 %6185, %v4621_v23  }
  0x1b   :  { %5322 = vmatpush3.bf16.msra.mxu0 %v6193_v12 }
  0x1c   :  { %5323 = vmatprep.subr.bf16.mxu0 %v6194_v15  ;;  %885 = vperm.xlu1 %6186, %v4640_v25  }
  0x1d   :  { %882 = vperm.xlu0 %6185, %v4639_v26  }
  0x1f   :  { %5324 = vmatpush3.bf16.msra.mxu0 %v6194_v15 }
  0x20   :  { %891 = vperm.xlu1 %6186, %v4642_v28  }
  0x21   :  { %888 = vperm.xlu0 %6185, %v4641_v29  }
  0x22   :  { %5326 = vmatmul.mubr.bf16.vlgmr.msra.gmra.mrb[0].mxu0 %v6196_v18 }
  0x23   :  { %5329 = vmatprep.mubr.bf16.mxu0 %v6197_v21 }
  0x24   :  { %1084 = vperm.xlu1 %6186, %v4660_v31  }
  0x25   :  { %1081 = vperm.xlu0 %6185, %v4659_v32  }
  0x28   :  { %1090 = vperm.xlu1 %6186, %v4662_v34  }
  0x29   :  { %1087 = vperm.xlu0 %6185, %v4661_v35  }
  0x2a   :  { %5330 = vmatmul.mubr.bf16.gmra.mrb[4].mxu0 %v6198_v24 }
  0x2b   :  { %5333 = vmatprep.mubr.bf16.mxu0 %v6199_v27 }
  0x2c   :  { %1283 = vperm.xlu1 %6186, %v4680_v37  }
  0x2d   :  { %1280 = vperm.xlu0 %6185, %v4679_v38  }
  0x30   :  { %1289 = vperm.xlu1 %6186, %v4682_v39  }
  0x31   :  { %1286 = vperm.xlu0 %6185, %v4681_v40  }
  0x32   :  { %5334 = vmatmul.mubr.bf16.gmra.mrb[8].mxu0 %v6200_v30 }
  0x33   :  { %5337 = vmatprep.mubr.bf16.mxu0 %v6201_v33 }
  0x34   :  { %1482 = vperm.xlu1 %6186, %v4700_v41  }
  0x35   :  { %1479 = vperm.xlu0 %6185, %v4699_v42  }
  0x38   :  { %1488 = vperm.xlu1 %6186, %v4702_v43  }
  0x39   :  { %1485 = vperm.xlu0 %6185, %v4701_v44  }
  0x3a   :  { %5338 = vmatmul.mubr.bf16.gmra.mrb[12].mxu0 %v6202_v36 }
  0x3c   :  { %1681 = vperm.xlu1 %6186, %v4720_v45  }
  0x3d   :  { %1678 = vperm.xlu0 %6185, %v4719_v46  }
  0x40   :  { %1687 = vperm.xlu1 %6186, %v4722_v47  }
  0x41   :  { %1684 = vperm.xlu0 %6185, %v4721_v48  }
  0x44   :  { %1880 = vperm.xlu1 %6186, %v4740_v49  }
  0x45   :  { %1877 = vperm.xlu0 %6185, %v4739_v50  }
  0x48   :  { %1886 = vperm.xlu1 %6186, %v4742_v51  }
  0x49   :  { %1883 = vperm.xlu0 %6185, %v4741_v52  }
  0x83   :  { %v398_v55 = vpop.permute.xlu1 %397 }
  0x84   :  { %v392_v56 = vpop.permute.xlu0 %391  ;;  %vm404_vm0 = vcmp.eq.s32.totalorder %v6609_v54, %v398_v55 }
  0x85   :  { %vm402_vm1 = vcmp.eq.s32.totalorder %v6609_v54, %v392_v56 }
  0x87   :  { %v401_v57 = vpop.permute.xlu1 %400 }
  0x88   :  { %v395_v58 = vpop.permute.xlu0 %394  ;;  %vm405_vm2 = vcmp.eq.s32.totalorder %v6609_v54, %v401_v57 }
  0x89   :  { %vm403_vm3 = vcmp.eq.s32.totalorder %v6609_v54, %v395_v58  ;;  %vm6615_vm4 = vmpackc.low %vm405_vm2, %vm404_vm0 }
  0x8a   :  { %vm4599_vm5 = vmpackc.low %vm403_vm3, %vm402_vm1 }
  0x8b   :  { %v297_v60 = vpop.permute.xlu1 %296  ;;  %5377 = vmatprep.mubr.msk.bf16.mxu0 %vm4599_vm5, %v6404_v62 }
  0x8c   :  { %v294_v61 = vpop.permute.xlu0 %293  ;;  %vm305_vm6 = vcmp.eq.s32.totalorder %v6609_v54, %v297_v60 }
  0x8d   :  { %vm304_vm7 = vcmp.eq.s32.totalorder %v6609_v54, %v294_v61 }
  0x8e   :  { %vm4587_vm8 = vmpackc.low %vm305_vm6, %vm304_vm7 }
  0x8f   :  { %5357 = vmatprep.mubr.msk.bf16.mxu1 %vm4587_vm8, %v6404_v62  ;;  %v303_v57 = vpop.permute.xlu1 %302 }
  0x90   :  { %v300_v58 = vpop.permute.xlu0 %299  ;;  %vm307_vm9 = vcmp.eq.s32.totalorder %v6609_v54, %v303_v57 }
  0x91   :  { %vm306_vm10 = vcmp.eq.s32.totalorder %v6609_v54, %v300_v58 }
  0x92   :  { %vm4589_vm13 = vmpackc.low %vm307_vm9, %vm306_vm10 }
  0x93   :  { %v687_v61 = vpop.permute.xlu1 %686 }
  0x94   :  { %vm695_vm11 = vcmp.eq.s32.totalorder %v6609_v54, %v687_v61 }
  0x97   :  { %v693_v59 = vpop.permute.xlu1 %692 }
  0x98   :  { %vm697_vm15 = vcmp.eq.s32.totalorder %v6609_v54, %v693_v59  ;;  %v6221_v59 = vld [vmem:[%s7811_s4 + $0x90] sm:$0xff]  }
  0xf5   :  { %v5327_v0 = vpop.f32.mrb[0].mxu0 }
  0xf6   :  { %v208_v1 = vadd.f32 %v5327_v0, %v6626_v63  ;;  %v199_v2 = vpop.f32.mrb[1].mxu0 }
  0xf7   :  { %v200_v3 = vadd.f32 %v6626_v63, %v199_v2  ;;  %v5328_v4 = vpop.f32.mrb[2].mxu0 }
  0xf8   :  { %v211_v5 = vadd.f32 %v5328_v4, %v6626_v63  ;;  %v202_v6 = vpop.f32.mrb[3].mxu0  ;;  %v264_v8 = vmax.f32 %v208_v1, 0.0  ;;  %v886_v1 = vpop.permute.xlu1 %885 }
  0xf9   :  { %v203_v7 = vadd.f32 %v6626_v63, %v202_v6  ;;  %v262_v10 = vmax.f32 %v200_v3, 0.0  ;;  %vm894_vm1 = vcmp.eq.s32.totalorder %v6609_v54, %v886_v1  ;;  %v6223_v1 = vld [vmem:[%s7811_s4 + $0xa0] sm:$0xff]  }
  0xfa   :  { %v265_v9 = vmax.f32 %v211_v5, 0.0 }
  0xfb   :  { %v263_v11 = vmax.f32 %v203_v7, 0.0  ;;  %v6203_v7 = vld [vmem:[%s7811_s4 + $0x40] sm:$0xff]  }
  0xfc   :  { %v6632_v12 = vpack.c.bf16 %v265_v9, %v264_v8  ;;  %v892_v3 = vpop.permute.xlu1 %891  ;;  %v6204_v8 = vld [vmem:[%s7811_s4 + $0x48] sm:$0xff]   ;;  %v6205_v9 = vld [vmem:[%s7811_s4 + $0x50] sm:$0xff]  }
  0xfd   :  { %v6634_v13 = vpack.c.bf16 %v263_v11, %v262_v10  ;;  %v5331_v14 = vpop.f32.mrb[4].mxu0  ;;  %vm896_vm5 = vcmp.eq.s32.totalorder %v6609_v54, %v892_v3  ;;  %v6206_v10 = vld [vmem:[%s7811_s4 + $0x58] sm:$0xff]   ;;  %v6207_v11 = vld [vmem:[%s7811_s4 + $0x60] sm:$0xff]   ;;  %v6225_v3 = vld [vmem:[%s7811_s4 + $0xb0] sm:$0xff]  }
  0xfe   :  { %v224_v15 = vadd.f32 %v5331_v14, %v6626_v63  ;;  %v215_v16 = vpop.f32.mrb[5].mxu0  ;;  %v6208_v14 = vld [vmem:[%s7811_s4 + $0x68] sm:$0xff]  }
  0xff   :  { %v216_v17 = vadd.f32 %v6626_v63, %v215_v16  ;;  %v5332_v18 = vpop.f32.mrb[6].mxu0  ;;  %5341 = vmatprep.subr.bf16.mxu1 %v6634_v13  ;;  %5361 = vmatprep.subr.bf16.mxu0 %v6634_v13  ;;  %v6210_v16 = vld [vmem:[%s7811_s4 + $0x78] sm:$0xff]  }
 0x100   :  { %v227_v19 = vadd.f32 %v5332_v18, %v6626_v63  ;;  %v218_v20 = vpop.f32.mrb[7].mxu0  ;;  %5342 = vmatpush3.bf16.msra.mxu1 %v6634_v13  ;;  %5362 = vmatpush3.bf16.msra.mxu0 %v6634_v13  ;;  %v268_v22 = vmax.f32 %v224_v15, 0.0  ;;  %v1085_v5 = vpop.permute.xlu1 %1084  ;;  %v6209_v15 = vld [vmem:[%s7811_s4 + $0x70] sm:$0xff]  }
 0x101   :  { %v219_v21 = vadd.f32 %v6626_v63, %v218_v20  ;;  %5343 = vmatprep.subr.bf16.mxu1 %v6632_v12  ;;  %5363 = vmatprep.subr.bf16.mxu0 %v6632_v12  ;;  %v266_v24 = vmax.f32 %v216_v17, 0.0  ;;  %vm1093_vm7 = vcmp.eq.s32.totalorder %v6609_v54, %v1085_v5 }
 0x102   :  { %v269_v23 = vmax.f32 %v227_v19, 0.0  ;;  %v6785_v19 = vld [vmem:[%s7811_s4] sm:$0xff]  }
 0x103   :  { %v267_v25 = vmax.f32 %v219_v21, 0.0 }
 0x104   :  { %v6646_v26 = vpack.c.bf16 %v269_v23, %v268_v22  ;;  %5344 = vmatpush3.bf16.msra.mxu1 %v6632_v12  ;;  %5364 = vmatpush3.bf16.msra.mxu0 %v6632_v12  ;;  %v1091_v17 = vpop.permute.xlu1 %1090 }
 0x105   :  { %v6650_v27 = vpack.c.bf16 %v267_v25, %v266_v24  ;;  %v5335_v28 = vpop.f32.mrb[8].mxu0 }
 0x106   :  { %v240_v29 = vadd.f32 %v5335_v28, %v6626_v63  ;;  %v231_v30 = vpop.f32.mrb[9].mxu0 }
 0x107   :  { %v232_v31 = vadd.f32 %v6626_v63, %v231_v30  ;;  %v5336_v32 = vpop.f32.mrb[10].mxu0  ;;  %5345 = vmatprep.subr.bf16.mxu1 %v6650_v27  ;;  %5365 = vmatprep.subr.bf16.mxu0 %v6650_v27 }
 0x108   :  { %v243_v33 = vadd.f32 %v5336_v32, %v6626_v63  ;;  %v234_v34 = vpop.f32.mrb[11].mxu0  ;;  %5346 = vmatpush3.bf16.msra.mxu1 %v6650_v27  ;;  %5366 = vmatpush3.bf16.msra.mxu0 %v6650_v27  ;;  %v272_v36 = vmax.f32 %v240_v29, 0.0  ;;  %v1284_v20 = vpop.permute.xlu1 %1283 }
 0x109   :  { %v235_v35 = vadd.f32 %v6626_v63, %v234_v34  ;;  %5347 = vmatprep.subr.bf16.mxu1 %v6646_v26  ;;  %5367 = vmatprep.subr.bf16.mxu0 %v6646_v26  ;;  %v270_v38 = vmax.f32 %v232_v31, 0.0 }
 0x10a   :  { %v273_v37 = vmax.f32 %v243_v33, 0.0 }
 0x10b   :  { %v271_v39 = vmax.f32 %v235_v35, 0.0 }
 0x10c   :  { %v6662_v40 = vpack.c.bf16 %v273_v37, %v272_v36  ;;  %5348 = vmatpush3.bf16.msra.mxu1 %v6646_v26  ;;  %5368 = vmatpush3.bf16.msra.mxu0 %v6646_v26  ;;  %v1290_v22 = vpop.permute.xlu1 %1289 }
 0x10d   :  { %v6666_v41 = vpack.c.bf16 %v271_v39, %v270_v38  ;;  %v5339_v42 = vpop.f32.mrb[12].mxu0 }
 0x10e   :  { %v256_v43 = vadd.f32 %v5339_v42, %v6626_v63  ;;  %v247_v44 = vpop.f32.mrb[13].mxu0 }
 0x10f   :  { %v248_v45 = vadd.f32 %v6626_v63, %v247_v44  ;;  %v5340_v46 = vpop.f32.mrb[14].mxu0  ;;  %5349 = vmatprep.subr.bf16.mxu1 %v6666_v41  ;;  %5369 = vmatprep.subr.bf16.mxu0 %v6666_v41 }
 0x110   :  { %v259_v47 = vadd.f32 %v5340_v46, %v6626_v63  ;;  %v250_v48 = vpop.f32.mrb[15].mxu0  ;;  %5350 = vmatpush3.bf16.msra.mxu1 %v6666_v41  ;;  %5370 = vmatpush3.bf16.msra.mxu0 %v6666_v41  ;;  %v276_v50 = vmax.f32 %v256_v43, 0.0  ;;  %v1483_v24 = vpop.permute.xlu1 %1482 }
 0x111   :  { %v251_v49 = vadd.f32 %v6626_v63, %v250_v48  ;;  %5351 = vmatprep.subr.bf16.mxu1 %v6662_v40  ;;  %5371 = vmatprep.subr.bf16.mxu0 %v6662_v40  ;;  %v274_v52 = vmax.f32 %v248_v45, 0.0  ;;  %v684_v63 = vpop.permute.xlu0 %683  ;;  %v6214_v48 = vld [vmem:[%s7811_s4 + $0x18] sm:$0xff]  }
 0x112   :  { %v277_v51 = vmax.f32 %v259_v47, 0.0  ;;  %vm694_vm12 = vcmp.eq.s32.totalorder %v6609_v54, %v684_v63  ;;  %v6220_v63 = vld [vmem:[%s7811_s4 + $0x88] sm:$0xff]  }
 0x113   :  { %v275_v55 = vmax.f32 %v251_v49, 0.0  ;;  %vm4627_vm14 = vmpackc.low %vm695_vm11, %vm694_vm12  ;;  %vm1095_vm11 = vcmp.eq.s32.totalorder %v6609_v54, %v1091_v17  ;;  %v6215_v49 = vld [vmem:[%s7811_s4 + $0x20] sm:$0xff]  }
 0x114   :  { %v6678_v56 = vpack.c.bf16 %v277_v51, %v276_v50  ;;  %5352 = vmatpush3.bf16.msra.mxu1 %v6662_v40  ;;  %5372 = vmatpush3.bf16.msra.mxu0 %v6662_v40  ;;  %v1489_v28 = vpop.permute.xlu1 %1488  ;;  %v6216_v50 = vld [vmem:[%s7811_s4 + $0x28] sm:$0xff]   ;;  %v6218_v51 = vld [vmem:[%s7811_s4 + $0x38] sm:$0xff]   ;;  %v6231_v17 = vld [vmem:[%s7811_s4 + $0xe0] sm:$0xff]  }
 0x115   :  { %v6682_v60 = vpack.c.bf16 %v275_v55, %v274_v52  ;;  %v690_v0 = vpop.permute.xlu0 %689 }
 0x116   :  { %vm696_vm0 = vcmp.eq.s32.totalorder %v6609_v54, %v690_v0  ;;  %v6222_v0 = vld [vmem:[%s7811_s4 + $0x98] sm:$0xff]  }
 0x117   :  { %5353 = vmatprep.subr.bf16.mxu1 %v6682_v60  ;;  %5373 = vmatprep.subr.bf16.mxu0 %v6682_v60  ;;  %vm4629_vm3 = vmpackc.low %vm697_vm15, %vm696_vm0 }
 0x118   :  { %5354 = vmatpush3.bf16.msra.mxu1 %v6682_v60  ;;  %5374 = vmatpush3.bf16.msra.mxu0 %v6682_v60  ;;  %v1682_v30 = vpop.permute.xlu1 %1681 }
 0x119   :  { %5355 = vmatprep.subr.bf16.mxu1 %v6678_v56  ;;  %5375 = vmatprep.subr.bf16.mxu0 %v6678_v56  ;;  %v883_v2 = vpop.permute.xlu0 %882 }
 0x11a   :  { %vm893_vm2 = vcmp.eq.s32.totalorder %v6609_v54, %v883_v2  ;;  %v6224_v2 = vld [vmem:[%s7811_s4 + $0xa8] sm:$0xff]  }
 0x11c   :  { %5356 = vmatpush3.bf16.msra.mxu1 %v6678_v56  ;;  %5376 = vmatpush3.bf16.msra.mxu0 %v6678_v56  ;;  %v1688_v32 = vpop.permute.xlu1 %1687 }
 0x11d   :  { %5421 = vmatprep.subr.bf16.mxu0 %v6634_v13  ;;  %v889_v4 = vpop.permute.xlu0 %888  ;;  %5381 = vmatprep.subr.bf16.mxu1 %v6203_v7 }
 0x11e   :  { %vm895_vm6 = vcmp.eq.s32.totalorder %v6609_v54, %v889_v4  ;;  %v6226_v4 = vld [vmem:[%s7811_s4 + $0xb8] sm:$0xff]  }
 0x11f   :  { %5358 = vmatmul.mubr.msk.bf16.vlgmr.msra.gmra.mrb[0].mxu1 %vm4589_vm13, %v6404_v62  ;;  %5378 = vmatmul.mubr.msk.bf16.vlgmr.msra.gmra.mrb[16].mxu0 %vm6615_vm4, %v6404_v62  ;;  %vm4647_vm4 = vmpackc.low %vm894_vm1, %vm893_vm2  ;;  %vm1294_vm1 = vcmp.eq.s32.totalorder %v6609_v54, %v1290_v22 }
 0x120   :  { %5422 = vmatpush3.bf16.msra.mxu0 %v6634_v13  ;;  %5437 = vmatprep.mubr.msk.bf16.mxu0 %vm4627_vm14, %v6404_v62  ;;  %vm4649_vm9 = vmpackc.low %vm896_vm5, %vm895_vm6  ;;  %vm1292_vm14 = vcmp.eq.s32.totalorder %v6609_v54, %v1284_v20  ;;  %v1881_v34 = vpop.permute.xlu1 %1880  ;;  %v6234_v20 = vld [vmem:[%s7811_s4 + $0xf8] sm:$0xff]  }
 0x121   :  { %5423 = vmatprep.subr.bf16.mxu0 %v6632_v12  ;;  %v1082_v6 = vpop.permute.xlu0 %1081  ;;  %5382 = vmatpush3.bf16.msra.mxu1 %v6203_v7  ;;  %v6227_v7 = vld [vmem:[%s7811_s4 + $0xc0] sm:$0xff]  }
 0x122   :  { %vm1092_vm8 = vcmp.eq.s32.totalorder %v6609_v54, %v1082_v6  ;;  %5383 = vmatprep.subr.bf16.mxu1 %v6204_v8 }
 0x123   :  { %vm4667_vm10 = vmpackc.low %vm1093_vm7, %vm1092_vm8  ;;  %vm1493_vm7 = vcmp.eq.s32.totalorder %v6609_v54, %v1489_v28 }
 0x124   :  { %5424 = vmatpush3.bf16.msra.mxu0 %v6632_v12  ;;  %v1887_v46 = vpop.permute.xlu1 %1886 }
 0x125   :  { %5425 = vmatprep.subr.bf16.mxu0 %v6650_v27  ;;  %5384 = vmatpush3.bf16.msra.mxu1 %v6204_v8  ;;  %v1088_v18 = vpop.permute.xlu0 %1087 }
 0x126   :  { %5385 = vmatprep.subr.bf16.mxu1 %v6205_v9  ;;  %vm1094_vm12 = vcmp.eq.s32.totalorder %v6609_v54, %v1088_v18  ;;  %v6232_v18 = vld [vmem:[%s7811_s4 + $0xe8] sm:$0xff]  }
 0x127   :  { %vm4669_vm13 = vmpackc.low %vm1095_vm11, %vm1094_vm12 }
 0x128   :  { %5426 = vmatpush3.bf16.msra.mxu0 %v6650_v27 }
 0x129   :  { %5427 = vmatprep.subr.bf16.mxu0 %v6646_v26  ;;  %5386 = vmatpush3.bf16.msra.mxu1 %v6205_v9  ;;  %v1281_v21 = vpop.permute.xlu0 %1280 }
 0x12a   :  { %5387 = vmatprep.subr.bf16.mxu1 %v6206_v10  ;;  %vm1291_vm15 = vcmp.eq.s32.totalorder %v6609_v54, %v1281_v21 }
 0x12b   :  { %vm4687_vm0 = vmpackc.low %vm1292_vm14, %vm1291_vm15  ;;  %vm1889_vm15 = vcmp.eq.s32.totalorder %v6609_v54, %v1881_v34  ;;  %v6240_v34 = vld [vmem:[%s7811_s4 + $0x128] sm:$0xff]  }
 0x12c   :  { %5428 = vmatpush3.bf16.msra.mxu0 %v6646_v26 }
 0x12d   :  { %5429 = vmatprep.subr.bf16.mxu0 %v6666_v41  ;;  %5388 = vmatpush3.bf16.msra.mxu1 %v6206_v10  ;;  %v1287_v23 = vpop.permute.xlu0 %1286 }
 0x12e   :  { %5389 = vmatprep.subr.bf16.mxu1 %v6207_v11  ;;  %vm1293_vm2 = vcmp.eq.s32.totalorder %v6609_v54, %v1287_v23  ;;  %v6235_v23 = vld [vmem:[%s7811_s4 + $0x100] sm:$0xff]  }
 0x12f   :  { %vm4689_vm5 = vmpackc.low %vm1294_vm1, %vm1293_vm2 }
 0x130   :  { %5430 = vmatpush3.bf16.msra.mxu0 %v6666_v41 }
 0x131   :  { %5431 = vmatprep.subr.bf16.mxu0 %v6662_v40  ;;  %5390 = vmatpush3.bf16.msra.mxu1 %v6207_v11  ;;  %v1480_v25 = vpop.permute.xlu0 %1479 }
 0x132   :  { %5391 = vmatprep.subr.bf16.mxu1 %v6208_v14 }
 0x134   :  { %5432 = vmatpush3.bf16.msra.mxu0 %v6662_v40 }
 0x135   :  { %5433 = vmatprep.subr.bf16.mxu0 %v6682_v60  ;;  %5392 = vmatpush3.bf16.msra.mxu1 %v6208_v14  ;;  %v1486_v29 = vpop.permute.xlu0 %1485  ;;  %v6228_v14 = vld [vmem:[%s7811_s4 + $0xc8] sm:$0xff]  }
 0x136   :  { %5393 = vmatprep.subr.bf16.mxu1 %v6209_v15  ;;  %vm1492_vm8 = vcmp.eq.s32.totalorder %v6609_v54, %v1486_v29 }
 0x137   :  { %vm4709_vm11 = vmpackc.low %vm1493_vm7, %vm1492_vm8  ;;  %vm2094_vm8 = vcmask 261120  }
 0x138   :  { %5434 = vmatpush3.bf16.msra.mxu0 %v6682_v60 }
 0x139   :  { %5435 = vmatprep.subr.bf16.mxu0 %v6678_v56  ;;  %5394 = vmatpush3.bf16.msra.mxu1 %v6209_v15  ;;  %v1679_v31 = vpop.permute.xlu0 %1678  ;;  %v6229_v15 = vld [vmem:[%s7811_s4 + $0xd0] sm:$0xff]  }
 0x13a   :  { %5395 = vmatprep.subr.bf16.mxu1 %v6210_v16 }
 0x13c   :  { %5436 = vmatpush3.bf16.msra.mxu0 %v6678_v56 }
 0x13d   :  { %5461 = vmatprep.subr.bf16.mxu0 %v6634_v13  ;;  %5396 = vmatpush3.bf16.msra.mxu1 %v6210_v16  ;;  %v1685_v33 = vpop.permute.xlu0 %1684  ;;  %v6230_v16 = vld [vmem:[%s7811_s4 + $0xd8] sm:$0xff]  }
 0x13e   :  { %5401 = vmatprep.subr.bf16.mxu1 %v6785_v19  ;;  %vm1691_vm14 = vcmp.eq.s32.totalorder %v6609_v54, %v1685_v33  ;;  %v6239_v33 = vld [vmem:[%s7811_s4 + $0x120] sm:$0xff]  }
 0x13f   :  { %5438 = vmatmul.mubr.msk.bf16.vlgmr.msra.gmra.mrb[20].mxu0 %vm4629_vm3, %v6404_v62  ;;  %vm1491_vm3 = vcmp.eq.s32.totalorder %v6609_v54, %v1483_v24 }
 0x140   :  { %5462 = vmatpush3.bf16.msra.mxu0 %v6634_v13  ;;  %5477 = vmatprep.mubr.msk.bf16.mxu0 %vm4647_vm4, %v6404_v62  ;;  %vm1490_vm4 = vcmp.eq.s32.totalorder %v6609_v54, %v1480_v25 }
 0x141   :  { %5463 = vmatprep.subr.bf16.mxu0 %v6632_v12  ;;  %vm4707_vm6 = vmpackc.low %vm1491_vm3, %vm1490_vm4  ;;  %v1878_v35 = vpop.permute.xlu0 %1877  ;;  %vm1891_vm3 = vcmp.eq.s32.totalorder %v6609_v54, %v1887_v46  ;;  %v6249_v46 = vld [vmem:[%s7811_s4 + $0x170] sm:$0xff]  }
 0x144   :  { %5464 = vmatpush3.bf16.msra.mxu0 %v6632_v12 }
 0x145   :  { %5465 = vmatprep.subr.bf16.mxu0 %v6650_v27  ;;  %v1884_v47 = vpop.permute.xlu0 %1883 }
 0x146   :  { %vm1890_vm4 = vcmp.eq.s32.totalorder %v6609_v54, %v1884_v47  ;;  %v6250_v47 = vld [vmem:[%s7811_s4 + $0x178] sm:$0xff]  }
 0x148   :  { %5466 = vmatpush3.bf16.msra.mxu0 %v6650_v27 }
 0x149   :  { %5467 = vmatprep.subr.bf16.mxu0 %v6646_v26 }
 0x14c   :  { %5468 = vmatpush3.bf16.msra.mxu0 %v6646_v26 }
 0x14d   :  { %5469 = vmatprep.subr.bf16.mxu0 %v6666_v41 }
 0x150   :  { %5470 = vmatpush3.bf16.msra.mxu0 %v6666_v41 }
 0x151   :  { %5471 = vmatprep.subr.bf16.mxu0 %v6662_v40 }
 0x154   :  { %5472 = vmatpush3.bf16.msra.mxu0 %v6662_v40 }
 0x155   :  { %5473 = vmatprep.subr.bf16.mxu0 %v6682_v60 }
 0x158   :  { %5474 = vmatpush3.bf16.msra.mxu0 %v6682_v60 }
 0x159   :  { %5475 = vmatprep.subr.bf16.mxu0 %v6678_v56 }
 0x15c   :  { %5476 = vmatpush3.bf16.msra.mxu0 %v6678_v56 }
 0x15d   :  { %5501 = vmatprep.subr.bf16.mxu0 %v6634_v13 }
 0x15f   :  { %5478 = vmatmul.mubr.msk.bf16.vlgmr.msra.gmra.mrb[24].mxu0 %vm4649_vm9, %v6404_v62  ;;  %vm1690_vm9 = vcmp.eq.s32.totalorder %v6609_v54, %v1682_v30  ;;  %v6236_v30 = vld [vmem:[%s7811_s4 + $0x108] sm:$0xff]  }
 0x160   :  { %5502 = vmatpush3.bf16.msra.mxu0 %v6634_v13  ;;  %5517 = vmatprep.mubr.msk.bf16.mxu0 %vm4667_vm10, %v6404_v62  ;;  %vm1689_vm10 = vcmp.eq.s32.totalorder %v6609_v54, %v1679_v31  ;;  %v6237_v31 = vld [vmem:[%s7811_s4 + $0x110] sm:$0xff]  }
 0x161   :  { %5503 = vmatprep.subr.bf16.mxu0 %v6632_v12  ;;  %vm4727_vm12 = vmpackc.low %vm1690_vm9, %vm1689_vm10 }
 0x164   :  { %5504 = vmatpush3.bf16.msra.mxu0 %v6632_v12 }
 0x165   :  { %5505 = vmatprep.subr.bf16.mxu0 %v6650_v27 }
 0x168   :  { %5506 = vmatpush3.bf16.msra.mxu0 %v6650_v27 }
 0x169   :  { %5507 = vmatprep.subr.bf16.mxu0 %v6646_v26 }
 0x16c   :  { %5508 = vmatpush3.bf16.msra.mxu0 %v6646_v26 }
 0x16d   :  { %5509 = vmatprep.subr.bf16.mxu0 %v6666_v41 }
 0x170   :  { %5510 = vmatpush3.bf16.msra.mxu0 %v6666_v41 }
 0x171   :  { %5511 = vmatprep.subr.bf16.mxu0 %v6662_v40 }
 0x174   :  { %5512 = vmatpush3.bf16.msra.mxu0 %v6662_v40 }
 0x175   :  { %5513 = vmatprep.subr.bf16.mxu0 %v6682_v60 }
 0x178   :  { %5514 = vmatpush3.bf16.msra.mxu0 %v6682_v60 }
 0x179   :  { %5515 = vmatprep.subr.bf16.mxu0 %v6678_v56 }
 0x17c   :  { %5516 = vmatpush3.bf16.msra.mxu0 %v6678_v56 }
 0x17d   :  { %5541 = vmatprep.subr.bf16.mxu0 %v6634_v13 }
 0x17f   :  { %5518 = vmatmul.mubr.msk.bf16.vlgmr.msra.gmra.mrb[28].mxu0 %vm4669_vm13, %v6404_v62  ;;  %vm1692_vm13 = vcmp.eq.s32.totalorder %v6609_v54, %v1688_v32  ;;  %v6238_v32 = vld [vmem:[%s7811_s4 + $0x118] sm:$0xff]  }
 0x180   :  { %5542 = vmatpush3.bf16.msra.mxu0 %v6634_v13  ;;  %5557 = vmatprep.mubr.msk.bf16.mxu0 %vm4687_vm0, %v6404_v62  ;;  %vm1888_vm0 = vcmp.eq.s32.totalorder %v6609_v54, %v1878_v35  ;;  %vm4729_vm1 = vmpackc.low %vm1692_vm13, %vm1691_vm14  ;;  %v6241_v35 = vld [vmem:[%s7811_s4 + $0x130] sm:$0xff]  }
 0x181   :  { %5543 = vmatprep.subr.bf16.mxu0 %v6632_v12  ;;  %vm4747_vm2 = vmpackc.low %vm1889_vm15, %vm1888_vm0 }
 0x184   :  { %5544 = vmatpush3.bf16.msra.mxu0 %v6632_v12 }
 0x185   :  { %5545 = vmatprep.subr.bf16.mxu0 %v6650_v27 }
 0x188   :  { %5546 = vmatpush3.bf16.msra.mxu0 %v6650_v27 }
 0x189   :  { %5547 = vmatprep.subr.bf16.mxu0 %v6646_v26 }
 0x18c   :  { %5548 = vmatpush3.bf16.msra.mxu0 %v6646_v26 }
 0x18d   :  { %5549 = vmatprep.subr.bf16.mxu0 %v6666_v41 }
 0x190   :  { %5550 = vmatpush3.bf16.msra.mxu0 %v6666_v41 }
 0x191   :  { %5551 = vmatprep.subr.bf16.mxu0 %v6662_v40 }
 0x194   :  { %5552 = vmatpush3.bf16.msra.mxu0 %v6662_v40 }
 0x195   :  { %5553 = vmatprep.subr.bf16.mxu0 %v6682_v60 }
 0x198   :  { %5554 = vmatpush3.bf16.msra.mxu0 %v6682_v60 }
 0x199   :  { %5555 = vmatprep.subr.bf16.mxu0 %v6678_v56 }
 0x19c   :  { %5556 = vmatpush3.bf16.msra.mxu0 %v6678_v56 }
 0x19d   :  { %5581 = vmatprep.subr.bf16.mxu0 %v6634_v13 }
 0x19f   :  { %5558 = vmatmul.mubr.msk.bf16.vlgmr.msra.gmra.mrb[32].mxu0 %vm4689_vm5, %v6404_v62  ;;  %vm4749_vm5 = vmpackc.low %vm1891_vm3, %vm1890_vm4 }
 0x1a0   :  { %5582 = vmatpush3.bf16.msra.mxu0 %v6634_v13  ;;  %5597 = vmatprep.mubr.msk.bf16.mxu0 %vm4707_vm6, %v6404_v62  ;;  %vm6406_vm6 = vmmov 0  }
 0x1a1   :  { %5583 = vmatprep.subr.bf16.mxu0 %v6632_v12 }
 0x1a4   :  { %5584 = vmatpush3.bf16.msra.mxu0 %v6632_v12 }
 0x1a5   :  { %5585 = vmatprep.subr.bf16.mxu0 %v6650_v27 }
 0x1a8   :  { %5586 = vmatpush3.bf16.msra.mxu0 %v6650_v27 }
 0x1a9   :  { %5587 = vmatprep.subr.bf16.mxu0 %v6646_v26 }
 0x1ac   :  { %5588 = vmatpush3.bf16.msra.mxu0 %v6646_v26 }
 0x1ad   :  { %5589 = vmatprep.subr.bf16.mxu0 %v6666_v41 }
 0x1b0   :  { %5590 = vmatpush3.bf16.msra.mxu0 %v6666_v41 }
 0x1b1   :  { %5591 = vmatprep.subr.bf16.mxu0 %v6662_v40 }
 0x1b4   :  { %5592 = vmatpush3.bf16.msra.mxu0 %v6662_v40 }
 0x1b5   :  { %5593 = vmatprep.subr.bf16.mxu0 %v6682_v60 }
 0x1b8   :  { %5594 = vmatpush3.bf16.msra.mxu0 %v6682_v60 }
 0x1b9   :  { %5595 = vmatprep.subr.bf16.mxu0 %v6678_v56 }
 0x1bc   :  { %5596 = vmatpush3.bf16.msra.mxu0 %v6678_v56 }
 0x1bd   :  { %5621 = vmatprep.subr.bf16.mxu0 %v6634_v13 }
 0x1bf   :  { %5598 = vmatmul.mubr.msk.bf16.vlgmr.msra.gmra.mrb[36].mxu0 %vm4709_vm11, %v6404_v62 }
 0x1c0   :  { %5622 = vmatpush3.bf16.msra.mxu0 %v6634_v13  ;;  %5637 = vmatprep.mubr.msk.bf16.mxu0 %vm4727_vm12, %v6404_v62 }
 0x1c1   :  { %5623 = vmatprep.subr.bf16.mxu0 %v6632_v12 }
 0x1c4   :  { %5624 = vmatpush3.bf16.msra.mxu0 %v6632_v12 }
 0x1c5   :  { %5625 = vmatprep.subr.bf16.mxu0 %v6650_v27 }
 0x1c8   :  { %5626 = vmatpush3.bf16.msra.mxu0 %v6650_v27 }
 0x1c9   :  { %5627 = vmatprep.subr.bf16.mxu0 %v6646_v26 }
 0x1cc   :  { %5628 = vmatpush3.bf16.msra.mxu0 %v6646_v26 }
 0x1cd   :  { %5629 = vmatprep.subr.bf16.mxu0 %v6666_v41 }
 0x1d0   :  { %5630 = vmatpush3.bf16.msra.mxu0 %v6666_v41 }
 0x1d1   :  { %5631 = vmatprep.subr.bf16.mxu0 %v6662_v40 }
 0x1d4   :  { %5632 = vmatpush3.bf16.msra.mxu0 %v6662_v40 }
 0x1d5   :  { %5633 = vmatprep.subr.bf16.mxu0 %v6682_v60 }
 0x1d8   :  { %5634 = vmatpush3.bf16.msra.mxu0 %v6682_v60 }
 0x1d9   :  { %5635 = vmatprep.subr.bf16.mxu0 %v6678_v56 }
 0x1dc   :  { %5636 = vmatpush3.bf16.msra.mxu0 %v6678_v56 }
 0x1dd   :  { %5661 = vmatprep.subr.bf16.mxu0 %v6634_v13 }
 0x1df   :  { %5638 = vmatmul.mubr.msk.bf16.vlgmr.msra.gmra.mrb[40].mxu0 %vm4729_vm1, %v6404_v62 }
 0x1e0   :  { %5662 = vmatpush3.bf16.msra.mxu0 %v6634_v13  ;;  %5677 = vmatprep.mubr.msk.bf16.mxu0 %vm4747_vm2, %v6404_v62 }
 0x1e1   :  { %5663 = vmatprep.subr.bf16.mxu0 %v6632_v12 }
 0x1e4   :  { %5664 = vmatpush3.bf16.msra.mxu0 %v6632_v12 }
 0x1e5   :  { %5665 = vmatprep.subr.bf16.mxu0 %v6650_v27 }
 0x1e8   :  { %5666 = vmatpush3.bf16.msra.mxu0 %v6650_v27 }
 0x1e9   :  { %5667 = vmatprep.subr.bf16.mxu0 %v6646_v26 }
 0x1ec   :  { %5668 = vmatpush3.bf16.msra.mxu0 %v6646_v26 }
 0x1ed   :  { %5669 = vmatprep.subr.bf16.mxu0 %v6666_v41 }
 0x1f0   :  { %5670 = vmatpush3.bf16.msra.mxu0 %v6666_v41  ;;  %v6212_v41 = vld [vmem:[%s7811_s4 + $0x8] sm:$0xff]  }
 0x1f1   :  { %5671 = vmatprep.subr.bf16.mxu0 %v6662_v40 }
 0x1f2   :  { %v5359_v13 = vpop.f32.mrb[0].mxu1  ;;  %v5379_v36 = vpop.f32.mrb[16].mxu0 }
 0x1f3   :  { %v352_v37 = vpop.f32.mrb[1].mxu1  ;;  %v450_v38 = vpop.f32.mrb[17].mxu0 }
 0x1f4   :  { %v5360_v39 = vpop.f32.mrb[2].mxu1  ;;  %v5380_v12 = vpop.f32.mrb[18].mxu0  ;;  %5672 = vmatpush3.bf16.msra.mxu0 %v6662_v40  ;;  %v6213_v40 = vld [vmem:[%s7811_s4 + $0x10] sm:$0xff]  }
 0x1f5   :  { %v368_v42 = vpack.c.bf16 %v5360_v39, %v5359_v13  ;;  %v466_v27 = vpack.c.bf16 %v5380_v12, %v5379_v36  ;;  %v355_v43 = vpop.f32.mrb[3].mxu1  ;;  %v453_v44 = vpop.f32.mrb[19].mxu0  ;;  %5673 = vmatprep.subr.bf16.mxu0 %v6682_v60  ;;  %v6242_v13 = vld [vmem:[%s7811_s4 + $0x138] sm:$0xff]  }
 0x1f6   :  { %v367_v26 = vpack.c.bf16 %v355_v43, %v352_v37  ;;  %v465_v45 = vpack.c.bf16 %v453_v44, %v450_v38  ;;  %v6243_v38 = vld [vmem:[%s7811_s4 + $0x140] sm:$0xff]   ;;  %v6244_v43 = vld [vmem:[%s7811_s4 + $0x148] sm:$0xff]   ;;  %v6245_v44 = vld [vmem:[%s7811_s4 + $0x150] sm:$0xff]  }
 0x1f8   :  { %5397 = vmatprep.mubr.bf16.mxu1 %v465_v45  ;;  %5674 = vmatpush3.bf16.msra.mxu0 %v6682_v60  ;;  %v6247_v45 = vld [vmem:[%s7811_s4 + $0x160] sm:$0xff]  }
 0x1f9   :  { %5398 = vmatmul.mubr.bf16.vlgmr.msra.gmra.mrb[4].mxu1 %v466_v27  ;;  %5675 = vmatprep.subr.bf16.mxu0 %v6678_v56 }
 0x1fa   :  { %5402 = vmatpush3.bf16.msra.mxu1 %v6785_v19  ;;  %5417 = vmatprep.mubr.bf16.mxu1 %v367_v26  ;;  %v6233_v19 = vld [vmem:[%s7811_s4 + $0xf0] sm:$0xff]   ;;  %v6246_v26 = vld [vmem:[%s7811_s4 + $0x158] sm:$0xff]  }
 0x1fb   :  { %5403 = vmatprep.subr.bf16.mxu1 %v6212_v41 }
 0x1fc   :  { %5676 = vmatpush3.bf16.msra.mxu0 %v6678_v56  ;;  %v6219_v56 = vld [vmem:[%s7811_s4 + $0x80] sm:$0xff]  }
 0x1fe   :  { %5404 = vmatpush3.bf16.msra.mxu1 %v6212_v41  ;;  %v6248_v41 = vld [vmem:[%s7811_s4 + $0x168] sm:$0xff]  }
 0x1ff   :  { %5678 = vmatmul.mubr.msk.bf16.vlgmr.msra.gmra.mrb[44].mxu0 %vm4749_vm5, %v6404_v62  ;;  %5405 = vmatprep.subr.bf16.mxu1 %v6213_v40  ;;  %v6217_v62 = vld [vmem:[%s7811_s4 + $0x30] sm:$0xff]  }
 0x202   :  { %5406 = vmatpush3.bf16.msra.mxu1 %v6213_v40 }
 0x203   :  { %5407 = vmatprep.subr.bf16.mxu1 %v6214_v48 }
 0x206   :  { %5408 = vmatpush3.bf16.msra.mxu1 %v6214_v48 }
 0x207   :  { %5409 = vmatprep.subr.bf16.mxu1 %v6215_v49 }
 0x20a   :  { %5410 = vmatpush3.bf16.msra.mxu1 %v6215_v49  ;;  %v6251_v49 = vld [vmem:[%s7811_s4 + $0x180] sm:$0xff]  }
 0x20b   :  { %5411 = vmatprep.subr.bf16.mxu1 %v6216_v50 }
 0x20e   :  { %5412 = vmatpush3.bf16.msra.mxu1 %v6216_v50 }
 0x20f   :  { %5413 = vmatprep.subr.bf16.mxu1 %v6217_v62 }
 0x212   :  { %5414 = vmatpush3.bf16.msra.mxu1 %v6217_v62  ;;  %v5439_v52 = vpop.f32.mrb[20].mxu0 }
 0x213   :  { %v742_v55 = vpop.f32.mrb[21].mxu0  ;;  %5415 = vmatprep.subr.bf16.mxu1 %v6218_v51 }
 0x214   :  { %v5440_v57 = vpop.f32.mrb[22].mxu0 }
 0x215   :  { %v758_v58 = vpack.c.bf16 %v5440_v57, %v5439_v52  ;;  %v745_v60 = vpop.f32.mrb[23].mxu0  ;;  %v6254_v57 = vld [vmem:[%s7811_s4 + $0x198] sm:$0xff]  }
 0x216   :  { %5416 = vmatpush3.bf16.msra.mxu1 %v6218_v51  ;;  %v757_v61 = vpack.c.bf16 %v745_v60, %v742_v55  ;;  %v6252_v55 = vld [vmem:[%s7811_s4 + $0x188] sm:$0xff]  }
 0x217   :  { %5441 = vmatprep.subr.bf16.mxu1 %v6219_v56  ;;  %v6256_v60 = vld [vmem:[%s7811_s4 + $0x1a8] sm:$0xff]  }
 0x219   :  { %5418 = vmatmul.mubr.bf16.vlgmr.msra.gmra.mrb[4].mxu1 %v368_v42 }
 0x21a   :  { %5442 = vmatpush3.bf16.msra.mxu1 %v6219_v56  ;;  %5457 = vmatprep.mubr.bf16.mxu1 %v757_v61  ;;  %v6253_v56 = vld [vmem:[%s7811_s4 + $0x190] sm:$0xff]  }
 0x21b   :  { %5443 = vmatprep.subr.bf16.mxu1 %v6220_v63  ;;  %v6257_v61 = vld [vmem:[%s7811_s4 + $0x1b0] sm:$0xff]  }
 0x21e   :  { %5444 = vmatpush3.bf16.msra.mxu1 %v6220_v63  ;;  %v6258_v63 = vld [vmem:[%s7811_s4 + $0x1b8] sm:$0xff]  }
 0x21f   :  { %5445 = vmatprep.subr.bf16.mxu1 %v6221_v59 }
 0x222   :  { %5446 = vmatpush3.bf16.msra.mxu1 %v6221_v59 }
 0x223   :  { %5447 = vmatprep.subr.bf16.mxu1 %v6222_v0 }
 0x226   :  { %5448 = vmatpush3.bf16.msra.mxu1 %v6222_v0 }
 0x227   :  { %5449 = vmatprep.subr.bf16.mxu1 %v6223_v1 }
 0x22a   :  { %5450 = vmatpush3.bf16.msra.mxu1 %v6223_v1  ;;  %v6259_v1 = vld [vmem:[%s7811_s4 + $0x1c0] sm:$0xff]  }
 0x22b   :  { %5451 = vmatprep.subr.bf16.mxu1 %v6224_v2 }
 0x22e   :  { %5452 = vmatpush3.bf16.msra.mxu1 %v6224_v2 }
 0x22f   :  { %5453 = vmatprep.subr.bf16.mxu1 %v6225_v3 }
 0x232   :  { %5454 = vmatpush3.bf16.msra.mxu1 %v6225_v3  ;;  %v5479_v5 = vpop.f32.mrb[24].mxu0 }
 0x233   :  { %v941_v6 = vpop.f32.mrb[25].mxu0  ;;  %5455 = vmatprep.subr.bf16.mxu1 %v6226_v4 }
 0x234   :  { %v5480_v8 = vpop.f32.mrb[26].mxu0 }
 0x235   :  { %v957_v9 = vpack.c.bf16 %v5480_v8, %v5479_v5  ;;  %v944_v10 = vpop.f32.mrb[27].mxu0  ;;  %v6262_v8 = vld [vmem:[%s7811_s4 + $0x1d8] sm:$0xff]  }
 0x236   :  { %5456 = vmatpush3.bf16.msra.mxu1 %v6226_v4  ;;  %v956_v11 = vpack.c.bf16 %v944_v10, %v941_v6  ;;  %v6260_v6 = vld [vmem:[%s7811_s4 + $0x1c8] sm:$0xff]  }
 0x237   :  { %5481 = vmatprep.subr.bf16.mxu1 %v6227_v7  ;;  %v6264_v10 = vld [vmem:[%s7811_s4 + $0x1e8] sm:$0xff]  }
 0x239   :  { %5458 = vmatmul.mubr.bf16.vlgmr.msra.gmra.mrb[4].mxu1 %v758_v58  ;;  %v6255_v58 = vld [vmem:[%s7811_s4 + $0x1a0] sm:$0xff]  }
 0x23a   :  { %5482 = vmatpush3.bf16.msra.mxu1 %v6227_v7  ;;  %5497 = vmatprep.mubr.bf16.mxu1 %v956_v11  ;;  %v6261_v7 = vld [vmem:[%s7811_s4 + $0x1d0] sm:$0xff]  }
 0x23b   :  { %5483 = vmatprep.subr.bf16.mxu1 %v6228_v14  ;;  %v6265_v11 = vld [vmem:[%s7811_s4 + $0x1f0] sm:$0xff]  }
 0x23e   :  { %5484 = vmatpush3.bf16.msra.mxu1 %v6228_v14  ;;  %v6266_v14 = vld [vmem:[%s7811_s4 + $0x1f8] sm:$0xff]  }
 0x23f   :  { %5485 = vmatprep.subr.bf16.mxu1 %v6229_v15 }
 0x242   :  { %5486 = vmatpush3.bf16.msra.mxu1 %v6229_v15 }
 0x243   :  { %5487 = vmatprep.subr.bf16.mxu1 %v6230_v16 }
 0x246   :  { %5488 = vmatpush3.bf16.msra.mxu1 %v6230_v16 }
 0x247   :  { %5489 = vmatprep.subr.bf16.mxu1 %v6231_v17 }
 0x24a   :  { %5490 = vmatpush3.bf16.msra.mxu1 %v6231_v17  ;;  %v6267_v17 = vld [vmem:[%s7811_s4 + $0x200] sm:$0xff]  }
 0x24b   :  { %5491 = vmatprep.subr.bf16.mxu1 %v6232_v18 }
 0x24e   :  { %5492 = vmatpush3.bf16.msra.mxu1 %v6232_v18 }
 0x24f   :  { %5493 = vmatprep.subr.bf16.mxu1 %v6233_v19 }
 0x252   :  { %5494 = vmatpush3.bf16.msra.mxu1 %v6233_v19  ;;  %v5519_v21 = vpop.f32.mrb[28].mxu0 }
 0x253   :  { %v1140_v22 = vpop.f32.mrb[29].mxu0  ;;  %5495 = vmatprep.subr.bf16.mxu1 %v6234_v20 }
 0x254   :  { %v5520_v24 = vpop.f32.mrb[30].mxu0 }
 0x255   :  { %v1156_v25 = vpack.c.bf16 %v5520_v24, %v5519_v21  ;;  %v1143_v28 = vpop.f32.mrb[31].mxu0  ;;  %v6270_v24 = vld [vmem:[%s7811_s4 + $0x218] sm:$0xff]  }
 0x256   :  { %5496 = vmatpush3.bf16.msra.mxu1 %v6234_v20  ;;  %v1155_v29 = vpack.c.bf16 %v1143_v28, %v1140_v22  ;;  %v6268_v22 = vld [vmem:[%s7811_s4 + $0x208] sm:$0xff]  }
 0x257   :  { %5521 = vmatprep.subr.bf16.mxu1 %v6235_v23  ;;  %v6272_v28 = vld [vmem:[%s7811_s4 + $0x228] sm:$0xff]  }
 0x259   :  { %5498 = vmatmul.mubr.bf16.vlgmr.msra.gmra.mrb[4].mxu1 %v957_v9  ;;  %v6263_v9 = vld [vmem:[%s7811_s4 + $0x1e0] sm:$0xff]  }
 0x25a   :  { %5522 = vmatpush3.bf16.msra.mxu1 %v6235_v23  ;;  %5537 = vmatprep.mubr.bf16.mxu1 %v1155_v29  ;;  %v6269_v23 = vld [vmem:[%s7811_s4 + $0x210] sm:$0xff]  }
 0x25b   :  { %5523 = vmatprep.subr.bf16.mxu1 %v6236_v30  ;;  %v6273_v29 = vld [vmem:[%s7811_s4 + $0x230] sm:$0xff]  }
 0x25e   :  { %5524 = vmatpush3.bf16.msra.mxu1 %v6236_v30  ;;  %v6274_v30 = vld [vmem:[%s7811_s4 + $0x238] sm:$0xff]  }
 0x25f   :  { %5525 = vmatprep.subr.bf16.mxu1 %v6237_v31 }
 0x262   :  { %5526 = vmatpush3.bf16.msra.mxu1 %v6237_v31  ;;  %v6405_v31 = vmov 0.0  }
 0x263   :  { %5527 = vmatprep.subr.bf16.mxu1 %v6238_v32  ;;  %5701 = vmatprep.subr.bf16.mxu0 %v6405_v31 }
 0x264   :  { %5705 = vmatprep.mubr.msk.bf16.mxu0 %vm6406_vm6, %v6405_v31 }
 0x266   :  { %5528 = vmatpush3.bf16.msra.mxu1 %v6238_v32  ;;  %v6275_v32 = vld [vmem:[%s7812_s6] sm:$0xff]  }
 0x267   :  { %5529 = vmatprep.subr.bf16.mxu1 %v6239_v33 }
 0x26a   :  { %5530 = vmatpush3.bf16.msra.mxu1 %v6239_v33  ;;  %v6276_v33 = vld [vmem:[%s7812_s6 + $0x8] sm:$0xff]  }
 0x26b   :  { %5531 = vmatprep.subr.bf16.mxu1 %v6240_v34 }
 0x26e   :  { %5532 = vmatpush3.bf16.msra.mxu1 %v6240_v34  ;;  %v6278_v34 = vld [vmem:[%s7812_s6 + $0x10] sm:$0xff]  }
 0x26f   :  { %5533 = vmatprep.subr.bf16.mxu1 %v6241_v35 }
 0x272   :  { %5534 = vmatpush3.bf16.msra.mxu1 %v6241_v35  ;;  %v5559_v36 = vpop.f32.mrb[32].mxu0  ;;  %v6280_v35 = vld [vmem:[%s7812_s6 + $0x18] sm:$0xff]  }
 0x273   :  { %v1339_v37 = vpop.f32.mrb[33].mxu0  ;;  %5535 = vmatprep.subr.bf16.mxu1 %v6242_v13 }
 0x274   :  { %v5560_v39 = vpop.f32.mrb[34].mxu0 }
 0x275   :  { %v1355_v12 = vpack.c.bf16 %v5560_v39, %v5559_v36  ;;  %v1342_v42 = vpop.f32.mrb[35].mxu0  ;;  %v6284_v36 = vld [vmem:[%s7812_s6 + $0x28] sm:$0xff]   ;;  %v2088_v39 = vshrl.u32 %v286_v53, 7 }
 0x276   :  { %5536 = vmatpush3.bf16.msra.mxu1 %v6242_v13  ;;  %v1354_v27 = vpack.c.bf16 %v1342_v42, %v1339_v37  ;;  %v6282_v13 = vld [vmem:[%s7812_s6 + $0x20] sm:$0xff]   ;;  %v6286_v37 = vld [vmem:[%s7812_s6 + $0x30] sm:$0xff]  }
 0x277   :  { %5561 = vmatprep.subr.bf16.mxu1 %v6243_v38 }
 0x279   :  { %5538 = vmatmul.mubr.bf16.vlgmr.msra.gmra.mrb[4].mxu1 %v1156_v25  ;;  %v6271_v25 = vld [vmem:[%s7811_s4 + $0x220] sm:$0xff]  }
 0x27a   :  { %5562 = vmatpush3.bf16.msra.mxu1 %v6243_v38  ;;  %5577 = vmatprep.mubr.bf16.mxu1 %v1354_v27  ;;  %v4759_v38 = vld [vmem:[%s7813_s5] ss:$0 sm:$0xff] }
 0x27b   :  { %5563 = vmatprep.subr.bf16.mxu1 %v6244_v43 }
 0x27e   :  { %5564 = vmatpush3.bf16.msra.mxu1 %v6244_v43 }
 0x27f   :  { %5565 = vmatprep.subr.bf16.mxu1 %v6245_v44 }
 0x282   :  { %5566 = vmatpush3.bf16.msra.mxu1 %v6245_v44 }
 0x283   :  { %5567 = vmatprep.subr.bf16.mxu1 %v6246_v26 }
 0x286   :  { %5568 = vmatpush3.bf16.msra.mxu1 %v6246_v26 }
 0x287   :  { %5569 = vmatprep.subr.bf16.mxu1 %v6247_v45 }
 0x28a   :  { %5570 = vmatpush3.bf16.msra.mxu1 %v6247_v45 }
 0x28b   :  { %5571 = vmatprep.subr.bf16.mxu1 %v6248_v41 }
 0x28e   :  { %5572 = vmatpush3.bf16.msra.mxu1 %v6248_v41  ;;  %v7110_v41 = vmul.u32 16, %v2088_v39 }
 0x28f   :  { %5573 = vmatprep.subr.bf16.mxu1 %v6249_v46 }
 0x290   :  { %vm2090_vm7 = vcmp.eq.s32.totalorder %v6609_v54, %v7110_v41 }
 0x292   :  { %5574 = vmatpush3.bf16.msra.mxu1 %v6249_v46  ;;  %v5599_v40 = vpop.f32.mrb[36].mxu0 }
 0x293   :  { %v1538_v48 = vpop.f32.mrb[37].mxu0  ;;  %5575 = vmatprep.subr.bf16.mxu1 %v6250_v47 }
 0x294   :  { %v5600_v50 = vpop.f32.mrb[38].mxu0 }
 0x295   :  { %v1554_v62 = vpack.c.bf16 %v5600_v50, %v5599_v40  ;;  %v1541_v51 = vpop.f32.mrb[39].mxu0 }
 0x296   :  { %5576 = vmatpush3.bf16.msra.mxu1 %v6250_v47  ;;  %v1553_v52 = vpack.c.bf16 %v1541_v51, %v1538_v48  ;;  %v2155_v51 = vadd.s32 1, %v7110_v41 }
 0x297   :  { %5601 = vmatprep.subr.bf16.mxu1 %v6251_v49 }
 0x298   :  { %vm2156_vm9 = vcmp.eq.s32.totalorder %v6609_v54, %v2155_v51 }
 0x299   :  { %5578 = vmatmul.mubr.bf16.vlgmr.msra.gmra.mrb[4].mxu1 %v1355_v12 }
 0x29a   :  { %5602 = vmatpush3.bf16.msra.mxu1 %v6251_v49  ;;  %5617 = vmatprep.mubr.bf16.mxu1 %v1553_v52 }
 0x29b   :  { %5603 = vmatprep.subr.bf16.mxu1 %v6252_v55 }
 0x29e   :  { %5604 = vmatpush3.bf16.msra.mxu1 %v6252_v55  ;;  %v4762_v55 = vsel %vm2156_vm9, 1.0, %v6405_v31 }
 0x29f   :  { %5605 = vmatprep.subr.bf16.mxu1 %v6253_v56 }
 0x2a2   :  { %5606 = vmatpush3.bf16.msra.mxu1 %v6253_v56  ;;  %v2159_v56 = vpack.c.bf16 %v4762_v55, %v4762_v55  ;;  %v6304_v55 = vld [vmem:[%s7812_s6 + $0x108] sm:$0xff]  }
 0x2a3   :  { %5607 = vmatprep.subr.bf16.mxu1 %v6254_v57 }
 0x2a6   :  { %5608 = vmatpush3.bf16.msra.mxu1 %v6254_v57  ;;  %v6277_v57 = vld [vmem:[%s7812_s6 + $0x40] sm:$0xff]  }
 0x2a7   :  { %5609 = vmatprep.subr.bf16.mxu1 %v6255_v58 }
 0x2aa   :  { %5610 = vmatpush3.bf16.msra.mxu1 %v6255_v58  ;;  %v6279_v58 = vld [vmem:[%s7812_s6 + $0x48] sm:$0xff]  }
 0x2ab   :  { %5611 = vmatprep.subr.bf16.mxu1 %v6256_v60 }
 0x2ae   :  { %5612 = vmatpush3.bf16.msra.mxu1 %v6256_v60  ;;  %v6281_v60 = vld [vmem:[%s7812_s6 + $0x50] sm:$0xff]  }
 0x2af   :  { %5613 = vmatprep.subr.bf16.mxu1 %v6257_v61 }
 0x2b2   :  { %5614 = vmatpush3.bf16.msra.mxu1 %v6257_v61  ;;  %v5639_v59 = vpop.f32.mrb[40].mxu0  ;;  %v6283_v61 = vld [vmem:[%s7812_s6 + $0x58] sm:$0xff]  }
 0x2b3   :  { %v1737_v0 = vpop.f32.mrb[41].mxu0  ;;  %5615 = vmatprep.subr.bf16.mxu1 %v6258_v63 }
 0x2b4   :  { %v5640_v2 = vpop.f32.mrb[42].mxu0 }
 0x2b5   :  { %v1753_v3 = vpack.c.bf16 %v5640_v2, %v5639_v59  ;;  %v1740_v4 = vpop.f32.mrb[43].mxu0  ;;  %v6287_v59 = vld [vmem:[%s7812_s6 + $0x68] sm:$0xff]   ;;  %v6290_v2 = vld [vmem:[%s7812_s6 + $0x78] sm:$0xff]  }
 0x2b6   :  { %5616 = vmatpush3.bf16.msra.mxu1 %v6258_v63  ;;  %v1752_v5 = vpack.c.bf16 %v1740_v4, %v1737_v0  ;;  %v6285_v63 = vld [vmem:[%s7812_s6 + $0x60] sm:$0xff]   ;;  %v6288_v0 = vld [vmem:[%s7812_s6 + $0x38] sm:$0xff]  }
 0x2b7   :  { %5641 = vmatprep.subr.bf16.mxu1 %v6259_v1 }
 0x2b9   :  { %5618 = vmatmul.mubr.bf16.vlgmr.msra.gmra.mrb[4].mxu1 %v1554_v62  ;;  %v4760_v62 = vsel %vm2090_vm7, 1.0, %v6405_v31 }
 0x2ba   :  { %5642 = vmatpush3.bf16.msra.mxu1 %v6259_v1  ;;  %5657 = vmatprep.mubr.bf16.mxu1 %v1752_v5  ;;  %v2093_v52 = vpack.c.bf16 %v4760_v62, %v4760_v62  ;;  %v6289_v1 = vld [vmem:[%s7812_s6 + $0x70] sm:$0xff]  }
 0x2bb   :  { %5643 = vmatprep.subr.bf16.mxu1 %v6260_v6 }
 0x2be   :  { %5644 = vmatpush3.bf16.msra.mxu1 %v6260_v6 }
 0x2bf   :  { %5645 = vmatprep.subr.bf16.mxu1 %v6261_v7 }
 0x2c2   :  { %5646 = vmatpush3.bf16.msra.mxu1 %v6261_v7 }
 0x2c3   :  { %5647 = vmatprep.subr.bf16.mxu1 %v6262_v8 }
 0x2c6   :  { %5648 = vmatpush3.bf16.msra.mxu1 %v6262_v8  ;;  %v2396_v8 = vadd.s32 2, %v7110_v41 }
 0x2c7   :  { %5649 = vmatprep.subr.bf16.mxu1 %v6263_v9 }
 0x2c8   :  { %vm2397_vm10 = vcmp.eq.s32.totalorder %v6609_v54, %v2396_v8 }
 0x2ca   :  { %5650 = vmatpush3.bf16.msra.mxu1 %v6263_v9 }
 0x2cb   :  { %5651 = vmatprep.subr.bf16.mxu1 %v6264_v10 }
 0x2ce   :  { %5652 = vmatpush3.bf16.msra.mxu1 %v6264_v10 }
 0x2cf   :  { %5653 = vmatprep.subr.bf16.mxu1 %v6265_v11 }
 0x2d2   :  { %5654 = vmatpush3.bf16.msra.mxu1 %v6265_v11  ;;  %v5679_v15 = vpop.f32.mrb[44].mxu0 }
 0x2d3   :  { %v1936_v16 = vpop.f32.mrb[45].mxu0  ;;  %5655 = vmatprep.subr.bf16.mxu1 %v6266_v14 }
 0x2d4   :  { %v5680_v18 = vpop.f32.mrb[46].mxu0 }
 0x2d5   :  { %v1952_v19 = vpack.c.bf16 %v5680_v18, %v5679_v15  ;;  %v1939_v20 = vpop.f32.mrb[47].mxu0  ;;  %v6291_v18 = vld [vmem:[%s7812_s6 + $0x80] sm:$0xff]  }
 0x2d6   :  { %5656 = vmatpush3.bf16.msra.mxu1 %v6266_v14  ;;  %v1951_v21 = vpack.c.bf16 %v1939_v20, %v1936_v16  ;;  %v4780_v16 = vsel %vm2397_vm10, 1.0, %v6405_v31  ;;  %v6293_v20 = vld [vmem:[%s7812_s6 + $0x90] sm:$0xff]  }
 0x2d7   :  { %5681 = vmatprep.subr.bf16.mxu1 %v6267_v17 }
 0x2d9   :  { %5658 = vmatmul.mubr.bf16.vlgmr.msra.gmra.mrb[4].mxu1 %v1753_v3 }
 0x2da   :  { %5682 = vmatpush3.bf16.msra.mxu1 %v6267_v17  ;;  %5697 = vmatprep.mubr.bf16.mxu1 %v1951_v21  ;;  %v2400_v17 = vpack.c.bf16 %v4780_v16, %v4780_v16  ;;  %v6294_v21 = vld [vmem:[%s7812_s6 + $0x98] sm:$0xff]  }
 0x2db   :  { %5683 = vmatprep.subr.bf16.mxu1 %v6268_v22 }
 0x2de   :  { %5684 = vmatpush3.bf16.msra.mxu1 %v6268_v22  ;;  %v6295_v22 = vld [vmem:[%s7812_s6 + $0xa0] sm:$0xff]  }
 0x2df   :  { %5685 = vmatprep.subr.bf16.mxu1 %v6269_v23 }
 0x2e2   :  { %5686 = vmatpush3.bf16.msra.mxu1 %v6269_v23  ;;  %v6296_v23 = vld [vmem:[%s7812_s6 + $0xa8] sm:$0xff]  }
 0x2e3   :  { %5687 = vmatprep.subr.bf16.mxu1 %v6270_v24 }
 0x2e6   :  { %5688 = vmatpush3.bf16.msra.mxu1 %v6270_v24  ;;  %v6297_v24 = vld [vmem:[%s7812_s6 + $0xb0] sm:$0xff]  }
 0x2e7   :  { %5689 = vmatprep.subr.bf16.mxu1 %v6271_v25 }
 0x2ea   :  { %5690 = vmatpush3.bf16.msra.mxu1 %v6271_v25  ;;  %v6298_v25 = vld [vmem:[%s7812_s6 + $0xb8] sm:$0xff]  }
 0x2eb   :  { %5691 = vmatprep.subr.bf16.mxu1 %v6272_v28 }
 0x2ee   :  { %5692 = vmatpush3.bf16.msra.mxu1 %v6272_v28  ;;  %v6299_v28 = vld [vmem:[%s7812_s6 + $0xc0] sm:$0xff]  }
 0x2ef   :  { %5693 = vmatprep.subr.bf16.mxu1 %v6273_v29 }
 0x2f2   :  { %5694 = vmatpush3.bf16.msra.mxu1 %v6273_v29  ;;  %v6300_v29 = vld [vmem:[%s7812_s6 + $0xc8] sm:$0xff]  }
 0x2f3   :  { %5695 = vmatprep.subr.bf16.mxu1 %v6274_v30 }
 0x2f6   :  { %5696 = vmatpush3.bf16.msra.mxu1 %v6274_v30  ;;  %v6301_v30 = vld [vmem:[%s7812_s6 + $0xd0] sm:$0xff]  }
 0x2f7   :  { %5737 = vmatprep.subr.bf16.mxu1 %v6405_v31 }
 0x2f9   :  { %5698 = vmatmul.mubr.bf16.vlgmr.msra.gmra.mrb[4].mxu1 %v1952_v19  ;;  %v6292_v19 = vld [vmem:[%s7812_s6 + $0x88] sm:$0xff]  }
 0x2fa   :  { %5753 = vmatprep.mubr.msk.bf16.mxu1 %vm6406_vm6, %v6405_v31  ;;  %5738 = vmatpush3.bf16.msra.mxu1 %v6275_v32  ;;  %v6303_v32 = vld [vmem:[%s7812_s6 + $0xd8] sm:$0xff]  }
 0x2fb   :  { %5739 = vmatprep.subr.bf16.mxu1 %v6405_v31 }
 0x2fe   :  { %5740 = vmatpush3.bf16.msra.mxu1 %v6276_v33  ;;  %v6305_v33 = vld [vmem:[%s7812_s6 + $0xe0] sm:$0xff]  }
 0x2ff   :  { %5741 = vmatprep.subr.bf16.mxu1 %v6405_v31 }
 0x302   :  { %5742 = vmatpush3.bf16.msra.mxu1 %v6278_v34  ;;  %v6307_v34 = vld [vmem:[%s7812_s6 + $0xe8] sm:$0xff]  }
 0x303   :  { %5743 = vmatprep.subr.bf16.mxu1 %v6405_v31 }
 0x306   :  { %5744 = vmatpush3.bf16.msra.mxu1 %v6280_v35 }
 0x307   :  { %5745 = vmatprep.subr.bf16.mxu1 %v6405_v31 }
 0x30a   :  { %5746 = vmatpush3.bf16.msra.mxu1 %v6282_v13 }
 0x30b   :  { %5747 = vmatprep.subr.bf16.mxu1 %v6405_v31 }
 0x30e   :  { %5748 = vmatpush3.bf16.msra.mxu1 %v6284_v36 }
 0x30f   :  { %5749 = vmatprep.subr.bf16.mxu1 %v6405_v31 }
 0x312   :  { %5750 = vmatpush3.bf16.msra.mxu1 %v6286_v37 }
 0x313   :  { %5751 = vmatprep.subr.bf16.mxu1 %v6405_v31 }
 0x316   :  { %5752 = vmatpush3.bf16.msra.mxu1 %v6288_v0  ;;  %v6314_v0 = vld [vmem:[%s7812_s6 + $0x138] sm:$0xff]  }
 0x317   :  { %5793 = vmatprep.subr.bf16.mxu1 %v6405_v31 }
 0x3cc   :  { %v5699_v12 = vpop.f32.mrb[4].mxu1 }
 0x3cd   :  { %v2079_v42 = vadd.f32 %v5699_v12, %v4759_v38  ;;  %v2051_v27 = vpop.f32.mrb[5].mxu1 }
 0x3ce   :  { %v2077_v43 = vadd.f32 %v4759_v38, %v2051_v27  ;;  %v5700_v44 = vpop.f32.mrb[6].mxu1 }
 0x3cf   :  { %v2080_v26 = vadd.f32 %v5700_v44, %v4759_v38  ;;  %v2054_v45 = vpop.f32.mrb[7].mxu1  ;;  %v2083_v47 = vmax.f32 %v2079_v42, 0.0 }
 0x3d0   :  { %v2078_v46 = vadd.f32 %v4759_v38, %v2054_v45  ;;  %v2081_v48 = vmax.f32 %v2077_v43, 0.0  ;;  %v2550_v43 = vadd.s32 3, %v7110_v41 }
 0x3d1   :  { %v2084_v40 = vmax.f32 %v2080_v26, 0.0 }
 0x3d2   :  { %v2082_v49 = vmax.f32 %v2078_v46, 0.0  ;;  %vm2551_vm11 = vcmp.eq.s32.totalorder %v6609_v54, %v2550_v43 }
 0x3d3   :  { %v7112_v50 = vpack.c.bf16 %v2084_v40, %v2083_v47  ;;  %v4790_v40 = vsel %vm2551_vm11, 1.0, %v6405_v31 }
 0x3d4   :  { %v7116_v53 = vpack.c.bf16 %v2082_v49, %v2081_v48  ;;  %v2704_v48 = vadd.s32 4, %v7110_v41  ;;  %v2554_v49 = vpack.c.bf16 %v4790_v40, %v4790_v40 }
 0x3d6   :  { %5702 = vmatpush3.bf16.msra.mxu0 %v7116_v53  ;;  %vm2705_vm12 = vcmp.eq.s32.totalorder %v6609_v54, %v2704_v48 }
 0x3d7   :  { %5703 = vmatprep.subr.bf16.mxu0 %v6405_v31  ;;  %v4800_v62 = vsel %vm2705_vm12, 1.0, %v6405_v31 }
 0x3d8   :  { %v2708_v51 = vpack.c.bf16 %v4800_v62, %v4800_v62 }
 0x3da   :  { %5704 = vmatpush3.bf16.msra.mxu0 %v7112_v50 }
 0x3db   :  { %5709 = vmatprep.subr.bf16.mxu0 %v6405_v31 }
 0x3dd   :  { %5706 = vmatmul.mubr.msk.bf16.vlgmr.msra.gmra.mrb[48].mxu0 %vm2094_vm8, %v2093_v52  ;;  %v6302_v52 = vld [vmem:[%s7812_s6 + $0x100] sm:$0xff]  }
 0x3de   :  { %5710 = vmatpush3.bf16.msra.mxu0 %v7116_v53  ;;  %5713 = vmatprep.mubr.msk.bf16.mxu0 %vm6406_vm6, %v6405_v31 }
 0x3df   :  { %5711 = vmatprep.subr.bf16.mxu0 %v6405_v31 }
 0x3e2   :  { %5712 = vmatpush3.bf16.msra.mxu0 %v7112_v50 }
 0x3e3   :  { %5717 = vmatprep.subr.bf16.mxu0 %v6405_v31 }
 0x3e5   :  { %5714 = vmatmul.mubr.msk.bf16.vlgmr.msra.gmra.mrb[52].mxu0 %vm2094_vm8, %v2159_v56  ;;  %v6306_v56 = vld [vmem:[%s7812_s6 + $0x110] sm:$0xff]  }
 0x3e6   :  { %5718 = vmatpush3.bf16.msra.mxu0 %v6277_v57  ;;  %5733 = vmatprep.mubr.msk.bf16.mxu0 %vm6406_vm6, %v6405_v31  ;;  %v6308_v57 = vld [vmem:[%s7812_s6 + $0x118] sm:$0xff]  }
 0x3e7   :  { %5719 = vmatprep.subr.bf16.mxu0 %v6405_v31 }
 0x3ea   :  { %5720 = vmatpush3.bf16.msra.mxu0 %v6279_v58  ;;  %v6309_v58 = vld [vmem:[%s7812_s6 + $0xf0] sm:$0xff]  }
 0x3eb   :  { %5721 = vmatprep.subr.bf16.mxu0 %v6405_v31 }
 0x3ee   :  { %5722 = vmatpush3.bf16.msra.mxu0 %v6281_v60  ;;  %v6310_v60 = vld [vmem:[%s7812_s6 + $0x120] sm:$0xff]  }
 0x3ef   :  { %5723 = vmatprep.subr.bf16.mxu0 %v6405_v31 }
 0x3f2   :  { %5724 = vmatpush3.bf16.msra.mxu0 %v6283_v61  ;;  %v6311_v61 = vld [vmem:[%s7812_s6 + $0xf8] sm:$0xff]  }
 0x3f3   :  { %5725 = vmatprep.subr.bf16.mxu0 %v6405_v31 }
 0x3f6   :  { %5726 = vmatpush3.bf16.msra.mxu0 %v6285_v63  ;;  %v6312_v63 = vld [vmem:[%s7812_s6 + $0x128] sm:$0xff]  }
 0x3f7   :  { %5727 = vmatprep.subr.bf16.mxu0 %v6405_v31 }
 0x3fa   :  { %5728 = vmatpush3.bf16.msra.mxu0 %v6287_v59  ;;  %v6313_v59 = vld [vmem:[%s7812_s6 + $0x130] sm:$0xff]  }
 0x3fb   :  { %5729 = vmatprep.subr.bf16.mxu0 %v6405_v31 }
 0x3fe   :  { %5730 = vmatpush3.bf16.msra.mxu0 %v6289_v1 }
 0x3ff   :  { %5731 = vmatprep.subr.bf16.mxu0 %v6405_v31 }
 0x402   :  { %5732 = vmatpush3.bf16.msra.mxu0 %v6290_v2 }
 0x403   :  { %5757 = vmatprep.subr.bf16.mxu0 %v6405_v31 }
 0x4b0   :  { %v2132_v3 = vpop.f32.mrb[48].mxu0 }
 0x4b1   :  { %v2138_v4 = vpack.c.bf16 %v2132_v3, %v2132_v3  ;;  %v5707_v5 = vpop.f32.mrb[49].mxu0 }
 0x4b2   :  { %v2135_v6 = vpop.f32.mrb[50].mxu0 }
 0x4b3   :  { %v5708_v7 = vpop.f32.mrb[51].mxu0  ;;  %5754 = vmatmul.mubr.bf16.vlgmr.msra.gmra.mrb[8].mxu1 %v2138_v4  ;;  %v2858_v6 = vadd.s32 5, %v7110_v41 }
 0x4b4   :  { %5809 = vmatprep.mubr.msk.bf16.mxu1 %vm6406_vm6, %v6405_v31  ;;  %5794 = vmatpush3.bf16.msra.mxu1 %v6299_v28  ;;  %v6318_v28 = vld [vmem:[%s7812_s6 + $0x180] sm:$0xff]  }
 0x4b5   :  { %5795 = vmatprep.subr.bf16.mxu1 %v6405_v31  ;;  %vm2859_vm13 = vcmp.eq.s32.totalorder %v6609_v54, %v2858_v6 }
 0x4b8   :  { %v2197_v9 = vpop.f32.mrb[52].mxu0  ;;  %5796 = vmatpush3.bf16.msra.mxu1 %v6300_v29  ;;  %v6317_v29 = vld [vmem:[%s7812_s6 + $0x150] sm:$0xff]  }
 0x4b9   :  { %v2203_v10 = vpack.c.bf16 %v2197_v9, %v2197_v9  ;;  %v5715_v11 = vpop.f32.mrb[53].mxu0  ;;  %5797 = vmatprep.subr.bf16.mxu1 %v6405_v31 }
 0x4ba   :  { %v2200_v14 = vpop.f32.mrb[54].mxu0 }
 0x4bb   :  { %v5716_v15 = vpop.f32.mrb[55].mxu0  ;;  %5734 = vmatmul.mubr.bf16.vlgmr.msra.gmra.mrb[56].mxu0 %v2203_v10  ;;  %v4810_v14 = vsel %vm2859_vm13, 1.0, %v6405_v31 }
 0x4bc   :  { %5758 = vmatpush3.bf16.msra.mxu0 %v7116_v53  ;;  %5761 = vmatprep.mubr.msk.bf16.mxu0 %vm6406_vm6, %v6405_v31  ;;  %v3012_v15 = vadd.s32 6, %v7110_v41  ;;  %v2862_v16 = vpack.c.bf16 %v4810_v14, %v4810_v14  ;;  %v6337_v14 = vld [vmem:[%s7812_s6 + $0x1e0] sm:$0xff]  }
 0x4bd   :  { %5759 = vmatprep.subr.bf16.mxu0 %v6405_v31  ;;  %5798 = vmatpush3.bf16.msra.mxu1 %v6301_v30  ;;  %v6320_v30 = vld [vmem:[%s7812_s6 + $0x188] sm:$0xff]  }
 0x4be   :  { %5799 = vmatprep.subr.bf16.mxu1 %v6405_v31  ;;  %vm3013_vm14 = vcmp.eq.s32.totalorder %v6609_v54, %v3012_v15  ;;  %v6340_v15 = vld [vmem:[%s7812_s6 + $0x218] sm:$0xff]  }
 0x4c0   :  { %5760 = vmatpush3.bf16.msra.mxu0 %v7112_v50 }
 0x4c1   :  { %5765 = vmatprep.subr.bf16.mxu0 %v6405_v31  ;;  %5800 = vmatpush3.bf16.msra.mxu1 %v6303_v32  ;;  %v6319_v32 = vld [vmem:[%s7812_s6 + $0x158] sm:$0xff]  }
 0x4c2   :  { %5801 = vmatprep.subr.bf16.mxu1 %v6405_v31 }
 0x4c3   :  { %5762 = vmatmul.mubr.msk.bf16.vlgmr.msra.gmra.mrb[60].mxu0 %vm2094_vm8, %v2400_v17 }
 0x4c4   :  { %5766 = vmatpush3.bf16.msra.mxu0 %v6291_v18  ;;  %5781 = vmatprep.mubr.msk.bf16.mxu0 %vm6406_vm6, %v6405_v31 }
 0x4c5   :  { %5767 = vmatprep.subr.bf16.mxu0 %v6405_v31  ;;  %5802 = vmatpush3.bf16.msra.mxu1 %v6305_v33  ;;  %v6322_v33 = vld [vmem:[%s7812_s6 + $0x190] sm:$0xff]  }
 0x4c6   :  { %5803 = vmatprep.subr.bf16.mxu1 %v6405_v31 }
 0x4c8   :  { %5768 = vmatpush3.bf16.msra.mxu0 %v6292_v19  ;;  %v6315_v19 = vld [vmem:[%s7812_s6 + $0x140] sm:$0xff]  }
 0x4c9   :  { %5769 = vmatprep.subr.bf16.mxu0 %v6405_v31  ;;  %5804 = vmatpush3.bf16.msra.mxu1 %v6307_v34  ;;  %v6321_v34 = vld [vmem:[%s7812_s6 + $0x160] sm:$0xff]  }
 0x4ca   :  { %5805 = vmatprep.subr.bf16.mxu1 %v6405_v31 }
 0x4cc   :  { %5770 = vmatpush3.bf16.msra.mxu0 %v6293_v20 }
 0x4cd   :  { %5771 = vmatprep.subr.bf16.mxu0 %v6405_v31  ;;  %5806 = vmatpush3.bf16.msra.mxu1 %v6309_v58 }
 0x4ce   :  { %5807 = vmatprep.subr.bf16.mxu1 %v6405_v31 }
 0x4d0   :  { %5772 = vmatpush3.bf16.msra.mxu0 %v6294_v21 }
 0x4d1   :  { %5773 = vmatprep.subr.bf16.mxu0 %v6405_v31  ;;  %5808 = vmatpush3.bf16.msra.mxu1 %v6311_v61 }
 0x4d2   :  { %5841 = vmatprep.subr.bf16.mxu1 %v6405_v31 }
 0x4d4   :  { %5774 = vmatpush3.bf16.msra.mxu0 %v6295_v22 }
 0x4d5   :  { %5775 = vmatprep.subr.bf16.mxu0 %v6405_v31 }
 0x4d8   :  { %5776 = vmatpush3.bf16.msra.mxu0 %v6296_v23  ;;  %v4820_v23 = vsel %vm3013_vm14, 1.0, %v6405_v31 }
 0x4d9   :  { %5777 = vmatprep.subr.bf16.mxu0 %v6405_v31 }
 0x4dc   :  { %5778 = vmatpush3.bf16.msra.mxu0 %v6297_v24  ;;  %v6316_v24 = vld [vmem:[%s7812_s6 + $0x148] sm:$0xff]  }
 0x4dd   :  { %5779 = vmatprep.subr.bf16.mxu0 %v6405_v31 }
 0x4e0   :  { %5780 = vmatpush3.bf16.msra.mxu0 %v6298_v25  ;;  %v3016_v25 = vpack.c.bf16 %v4820_v23, %v4820_v23 }
 0x4e1   :  { %5785 = vmatprep.subr.bf16.mxu0 %v6405_v31 }
 0x586   :  { %v2390_v35 = vpop.f32.mrb[8].mxu1 }
 0x587   :  { %v5755_v13 = vpop.f32.mrb[9].mxu1 }
 0x588   :  { %v2393_v36 = vpop.f32.mrb[10].mxu1  ;;  %v6323_v13 = vld [vmem:[%s7812_s6 + $0x168] sm:$0xff]  }
 0x589   :  { %v5756_v37 = vpop.f32.mrb[11].mxu1  ;;  %v6325_v36 = vld [vmem:[%s7812_s6 + $0x170] sm:$0xff]  }
 0x58a   :  { %v6326_v37 = vld [vmem:[%s7812_s6 + $0x1a0] sm:$0xff]  }
 0x58e   :  { %v2302_v38 = vpop.f32.mrb[56].mxu0 }
 0x58f   :  { %v2391_v39 = vadd.f32 %v2390_v35, %v2302_v38  ;;  %v5735_v12 = vpop.f32.mrb[57].mxu0  ;;  %v6324_v35 = vld [vmem:[%s7812_s6 + $0x198] sm:$0xff]  }
 0x590   :  { %v2305_v42 = vpop.f32.mrb[58].mxu0  ;;  %v6327_v38 = vld [vmem:[%s7812_s6 + $0x178] sm:$0xff]   ;;  %v6329_v12 = vld [vmem:[%s7812_s6 + $0x1b0] sm:$0xff]  }
 0x591   :  { %v5736_v27 = vpop.f32.mrb[59].mxu0  ;;  %v6330_v42 = vld [vmem:[%s7812_s6 + $0x1b8] sm:$0xff]  }
 0x596   :  { %v2438_v44 = vpop.f32.mrb[60].mxu0 }
 0x597   :  { %v2444_v26 = vpack.c.bf16 %v2438_v44, %v2438_v44  ;;  %v5763_v45 = vpop.f32.mrb[61].mxu0 }
 0x598   :  { %v2441_v46 = vpop.f32.mrb[62].mxu0 }
 0x599   :  { %v5764_v47 = vpop.f32.mrb[63].mxu0  ;;  %5782 = vmatmul.mubr.bf16.vlgmr.msra.gmra.mrb[64].mxu0 %v2444_v26  ;;  %v3166_v46 = vadd.s32 7, %v7110_v41 }
 0x59a   :  { %5786 = vmatpush3.bf16.msra.mxu0 %v7116_v53  ;;  %5789 = vmatprep.mubr.msk.bf16.mxu0 %vm6406_vm6, %v6405_v31 }
 0x59b   :  { %5787 = vmatprep.subr.bf16.mxu0 %v6405_v31  ;;  %vm3167_vm15 = vcmp.eq.s32.totalorder %v6609_v54, %v3166_v46 }
 0x59c   :  { %v4830_v58 = vsel %vm3167_vm15, 1.0, %v6405_v31 }
 0x59d   :  { %v3170_v61 = vpack.c.bf16 %v4830_v58, %v4830_v58  ;;  %v6353_v58 = vld [vmem:[%s7812_s6 + $0x260] sm:$0xff]  }
 0x59e   :  { %5788 = vmatpush3.bf16.msra.mxu0 %v7112_v50 }
 0x59f   :  { %5813 = vmatprep.subr.bf16.mxu0 %v6405_v31 }
 0x5a1   :  { %5790 = vmatmul.mubr.msk.bf16.vlgmr.msra.gmra.mrb[68].mxu0 %vm2094_vm8, %v2554_v49 }
 0x5a2   :  { %5814 = vmatpush3.bf16.msra.mxu0 %v7116_v53  ;;  %5817 = vmatprep.mubr.msk.bf16.mxu0 %vm6406_vm6, %v6405_v31 }
 0x5a3   :  { %5815 = vmatprep.subr.bf16.mxu0 %v6405_v31 }
 0x5a6   :  { %5816 = vmatpush3.bf16.msra.mxu0 %v7112_v50 }
 0x5a7   :  { %5821 = vmatprep.subr.bf16.mxu0 %v6405_v31 }
 0x5a9   :  { %5818 = vmatmul.mubr.msk.bf16.vlgmr.msra.gmra.mrb[72].mxu0 %vm2094_vm8, %v2708_v51 }
 0x5aa   :  { %5822 = vmatpush3.bf16.msra.mxu0 %v6302_v52  ;;  %5837 = vmatprep.mubr.msk.bf16.mxu0 %vm6406_vm6, %v6405_v31 }
 0x5ab   :  { %5823 = vmatprep.subr.bf16.mxu0 %v6405_v31 }
 0x5ae   :  { %5824 = vmatpush3.bf16.msra.mxu0 %v6304_v55 }
 0x5af   :  { %5825 = vmatprep.subr.bf16.mxu0 %v6405_v31 }
 0x5b2   :  { %5826 = vmatpush3.bf16.msra.mxu0 %v6306_v56 }
 0x5b3   :  { %5827 = vmatprep.subr.bf16.mxu0 %v6405_v31 }
 0x5b6   :  { %5828 = vmatpush3.bf16.msra.mxu0 %v6308_v57 }
 0x5b7   :  { %5829 = vmatprep.subr.bf16.mxu0 %v6405_v31 }
 0x5ba   :  { %5830 = vmatpush3.bf16.msra.mxu0 %v6310_v60  ;;  %v3320_v60 = vadd.s32 8, %v7110_v41 }
 0x5bb   :  { %5831 = vmatprep.subr.bf16.mxu0 %v6405_v31 }
 0x5bc   :  { %vm3321_vm0 = vcmp.eq.s32.totalorder %v6609_v54, %v3320_v60  ;;  %v6356_v60 = vld [vmem:[%s7812_s6 + $0x298] sm:$0xff]  }
 0x5be   :  { %5832 = vmatpush3.bf16.msra.mxu0 %v6312_v63 }
 0x5bf   :  { %5833 = vmatprep.subr.bf16.mxu0 %v6405_v31 }
 0x5c2   :  { %5834 = vmatpush3.bf16.msra.mxu0 %v6313_v59 }
 0x5c3   :  { %5835 = vmatprep.subr.bf16.mxu0 %v6405_v31 }
 0x5c6   :  { %5836 = vmatpush3.bf16.msra.mxu0 %v6314_v0  ;;  %v6331_v0 = vld [vmem:[%s7812_s6 + $0x1c0] sm:$0xff]  }
 0x5c7   :  { %5869 = vmatprep.subr.bf16.mxu0 %v6405_v31 }
 0x66c   :  { %v2543_v1 = vpop.f32.mrb[64].mxu0 }
 0x66d   :  { %v7304_v2 = vadd.f32 %v2543_v1, %v2391_v39  ;;  %v5783_v3 = vpop.f32.mrb[65].mxu0  ;;  %v6328_v39 = vld [vmem:[%s7812_s6 + $0x1a8] sm:$0xff]  }
 0x66e   :  { %v2546_v4 = vpop.f32.mrb[66].mxu0 }
 0x66f   :  { %v5784_v5 = vpop.f32.mrb[67].mxu0  ;;  %v4840_v4 = vsel %vm3321_vm0, 1.0, %v6405_v31 }
 0x670   :  { %v6332_v5 = vld [vmem:[%s7812_s6 + $0x1c8] sm:$0xff]   ;;  %v3324_v6 = vpack.c.bf16 %v4840_v4, %v4840_v4 }
 0x674   :  { %v2592_v7 = vpop.f32.mrb[68].mxu0 }
 0x675   :  { %v2598_v8 = vpack.c.bf16 %v2592_v7, %v2592_v7  ;;  %v5791_v9 = vpop.f32.mrb[69].mxu0  ;;  %v6334_v7 = vld [vmem:[%s7812_s6 + $0x200] sm:$0xff]  }
 0x676   :  { %v2595_v10 = vpop.f32.mrb[70].mxu0  ;;  %v6336_v9 = vld [vmem:[%s7812_s6 + $0x208] sm:$0xff]  }
 0x677   :  { %v5792_v11 = vpop.f32.mrb[71].mxu0  ;;  %5810 = vmatmul.mubr.bf16.vlgmr.msra.gmra.mrb[12].mxu1 %v2598_v8  ;;  %v6333_v8 = vld [vmem:[%s7812_s6 + $0x1d0] sm:$0xff]   ;;  %v6335_v10 = vld [vmem:[%s7812_s6 + $0x1d8] sm:$0xff]  }
 0x678   :  { %5842 = vmatpush3.bf16.msra.mxu1 %v7116_v53  ;;  %5845 = vmatprep.mubr.msk.bf16.mxu1 %vm6406_vm6, %v6405_v31  ;;  %v6338_v11 = vld [vmem:[%s7812_s6 + $0x210] sm:$0xff]  }
 0x679   :  { %5843 = vmatprep.subr.bf16.mxu1 %v6405_v31 }
 0x67c   :  { %5844 = vmatpush3.bf16.msra.mxu1 %v7112_v50  ;;  %v2746_v17 = vpop.f32.mrb[72].mxu0 }
 0x67d   :  { %v2752_v18 = vpack.c.bf16 %v2746_v17, %v2746_v17  ;;  %5849 = vmatprep.subr.bf16.mxu1 %v6405_v31  ;;  %v5819_v20 = vpop.f32.mrb[73].mxu0  ;;  %v6341_v17 = vld [vmem:[%s7812_s6 + $0x1f0] sm:$0xff]  }
 0x67e   :  { %v2749_v21 = vpop.f32.mrb[74].mxu0  ;;  %v6344_v20 = vld [vmem:[%s7812_s6 + $0x228] sm:$0xff]  }
 0x67f   :  { %5838 = vmatmul.mubr.bf16.vlgmr.msra.gmra.mrb[76].mxu0 %v2752_v18  ;;  %5846 = vmatmul.mubr.msk.bf16.vlgmr.msra.gmra.mrb[16].mxu1 %vm2094_vm8, %v2862_v16  ;;  %v5820_v22 = vpop.f32.mrb[75].mxu0  ;;  %v6339_v16 = vld [vmem:[%s7812_s6 + $0x1e8] sm:$0xff]   ;;  %v6342_v18 = vld [vmem:[%s7812_s6 + $0x220] sm:$0xff]   ;;  %v6345_v21 = vld [vmem:[%s7812_s6 + $0x230] sm:$0xff]  }
 0x680   :  { %5870 = vmatpush3.bf16.msra.mxu0 %v7116_v53  ;;  %5873 = vmatprep.mubr.msk.bf16.mxu0 %vm6406_vm6, %v6405_v31  ;;  %v6346_v22 = vld [vmem:[%s7812_s6 + $0x238] sm:$0xff]  }
 0x681   :  { %5871 = vmatprep.subr.bf16.mxu0 %v6405_v31  ;;  %5850 = vmatpush3.bf16.msra.mxu1 %v6315_v19  ;;  %v6343_v19 = vld [vmem:[%s7812_s6 + $0x1f8] sm:$0xff]  }
 0x682   :  { %5851 = vmatprep.subr.bf16.mxu1 %v6405_v31  ;;  %5865 = vmatprep.mubr.msk.bf16.mxu1 %vm6406_vm6, %v6405_v31 }
 0x684   :  { %5872 = vmatpush3.bf16.msra.mxu0 %v7112_v50 }
 0x685   :  { %5852 = vmatpush3.bf16.msra.mxu1 %v6316_v24  ;;  %5877 = vmatprep.subr.bf16.mxu0 %v6405_v31 }
 0x686   :  { %5853 = vmatprep.subr.bf16.mxu1 %v6405_v31 }
 0x687   :  { %5874 = vmatmul.mubr.msk.bf16.vlgmr.msra.gmra.mrb[80].mxu0 %vm2094_vm8, %v3016_v25 }
 0x688   :  { %5878 = vmatpush3.bf16.msra.mxu0 %v6318_v28  ;;  %5893 = vmatprep.mubr.msk.bf16.mxu0 %vm6406_vm6, %v6405_v31 }
 0x689   :  { %5854 = vmatpush3.bf16.msra.mxu1 %v6317_v29  ;;  %5879 = vmatprep.subr.bf16.mxu0 %v6405_v31 }
 0x68a   :  { %5855 = vmatprep.subr.bf16.mxu1 %v6405_v31 }
 0x68c   :  { %5880 = vmatpush3.bf16.msra.mxu0 %v6320_v30  ;;  %v3474_v30 = vadd.s32 9, %v7110_v41 }
 0x68d   :  { %5856 = vmatpush3.bf16.msra.mxu1 %v6319_v32  ;;  %5881 = vmatprep.subr.bf16.mxu0 %v6405_v31 }
 0x68e   :  { %5857 = vmatprep.subr.bf16.mxu1 %v6405_v31  ;;  %vm3475_vm1 = vcmp.eq.s32.totalorder %v6609_v54, %v3474_v30 }
 0x690   :  { %5882 = vmatpush3.bf16.msra.mxu0 %v6322_v33 }
 0x691   :  { %5858 = vmatpush3.bf16.msra.mxu1 %v6321_v34  ;;  %5883 = vmatprep.subr.bf16.mxu0 %v6405_v31 }
 0x692   :  { %5859 = vmatprep.subr.bf16.mxu1 %v6405_v31 }
 0x694   :  { %5884 = vmatpush3.bf16.msra.mxu0 %v6324_v35 }
 0x695   :  { %5860 = vmatpush3.bf16.msra.mxu1 %v6323_v13  ;;  %5885 = vmatprep.subr.bf16.mxu0 %v6405_v31 }
 0x696   :  { %5861 = vmatprep.subr.bf16.mxu1 %v6405_v31 }
 0x698   :  { %5886 = vmatpush3.bf16.msra.mxu0 %v6326_v37 }
 0x699   :  { %5862 = vmatpush3.bf16.msra.mxu1 %v6325_v36  ;;  %5887 = vmatprep.subr.bf16.mxu0 %v6405_v31 }
 0x69a   :  { %5863 = vmatprep.subr.bf16.mxu1 %v6405_v31 }
 0x69c   :  { %5888 = vmatpush3.bf16.msra.mxu0 %v6328_v39 }
 0x69d   :  { %5864 = vmatpush3.bf16.msra.mxu1 %v6327_v38  ;;  %5889 = vmatprep.subr.bf16.mxu0 %v6405_v31 }
 0x69e   :  { %5897 = vmatprep.subr.bf16.mxu1 %v6405_v31 }
 0x6a0   :  { %5890 = vmatpush3.bf16.msra.mxu0 %v6329_v12 }
 0x6a1   :  { %5891 = vmatprep.subr.bf16.mxu0 %v6405_v31 }
 0x6a4   :  { %5892 = vmatpush3.bf16.msra.mxu0 %v6330_v42  ;;  %v4850_v42 = vsel %vm3475_vm1, 1.0, %v6405_v31 }
 0x6a5   :  { %5925 = vmatprep.subr.bf16.mxu0 %v6405_v31 }
 0x74a   :  { %v2697_v27 = vpop.f32.mrb[12].mxu1 }
 0x74b   :  { %v2703_v43 = vadd.f32 %v2697_v27, %v7304_v2  ;;  %v5811_v44 = vpop.f32.mrb[13].mxu1  ;;  %v3628_v27 = vadd.s32 10, %v7110_v41 }
 0x74c   :  { %v2700_v26 = vpop.f32.mrb[14].mxu1 }
 0x74d   :  { %v5812_v45 = vpop.f32.mrb[15].mxu1  ;;  %vm3629_vm2 = vcmp.eq.s32.totalorder %v6609_v54, %v3628_v27  ;;  %v6372_v27 = vld [vmem:[%s7812_s6 + $0x318] sm:$0xff]  }
 0x74e   :  { %v6347_v45 = vld [vmem:[%s7812_s6 + $0x240] sm:$0xff]  }
 0x752   :  { %v2851_v47 = vpop.f32.mrb[76].mxu0  ;;  %v2900_v40 = vpop.f32.mrb[16].mxu1 }
 0x753   :  { %v7396_v48 = vadd.f32 %v2851_v47, %v2703_v43  ;;  %v2906_v49 = vpack.c.bf16 %v2900_v40, %v2900_v40  ;;  %v5847_v62 = vpop.f32.mrb[17].mxu1  ;;  %v5839_v51 = vpop.f32.mrb[77].mxu0  ;;  %v3478_v43 = vpack.c.bf16 %v4850_v42, %v4850_v42  ;;  %v6369_v42 = vld [vmem:[%s7812_s6 + $0x2e0] sm:$0xff]  }
 0x754   :  { %v2903_v52 = vpop.f32.mrb[18].mxu1  ;;  %v2854_v55 = vpop.f32.mrb[78].mxu0  ;;  %v6350_v51 = vld [vmem:[%s7812_s6 + $0x280] sm:$0xff]  }
 0x755   :  { %v5848_v56 = vpop.f32.mrb[19].mxu1  ;;  %5866 = vmatmul.mubr.bf16.vlgmr.msra.gmra.mrb[20].mxu1 %v2906_v49  ;;  %v5840_v57 = vpop.f32.mrb[79].mxu0  ;;  %v6348_v49 = vld [vmem:[%s7812_s6 + $0x248] sm:$0xff]   ;;  %v6349_v52 = vld [vmem:[%s7812_s6 + $0x250] sm:$0xff]  }
 0x756   :  { %5898 = vmatpush3.bf16.msra.mxu1 %v7116_v53  ;;  %5901 = vmatprep.mubr.msk.bf16.mxu1 %vm6406_vm6, %v6405_v31  ;;  %v6352_v55 = vld [vmem:[%s7812_s6 + $0x288] sm:$0xff]   ;;  %v6351_v56 = vld [vmem:[%s7812_s6 + $0x258] sm:$0xff]   ;;  %v6354_v57 = vld [vmem:[%s7812_s6 + $0x290] sm:$0xff]  }
 0x757   :  { %5899 = vmatprep.subr.bf16.mxu1 %v6405_v31 }
 0x75a   :  { %5900 = vmatpush3.bf16.msra.mxu1 %v7112_v50  ;;  %v3054_v63 = vpop.f32.mrb[80].mxu0 }
 0x75b   :  { %v3060_v59 = vpack.c.bf16 %v3054_v63, %v3054_v63  ;;  %5905 = vmatprep.subr.bf16.mxu1 %v6405_v31  ;;  %v5875_v1 = vpop.f32.mrb[81].mxu0  ;;  %v6357_v63 = vld [vmem:[%s7812_s6 + $0x270] sm:$0xff]  }
 0x75c   :  { %v3057_v2 = vpop.f32.mrb[82].mxu0  ;;  %v6360_v1 = vld [vmem:[%s7812_s6 + $0x2a8] sm:$0xff]  }
 0x75d   :  { %5894 = vmatmul.mubr.bf16.vlgmr.msra.gmra.mrb[84].mxu0 %v3060_v59  ;;  %5902 = vmatmul.mubr.msk.bf16.vlgmr.msra.gmra.mrb[24].mxu1 %vm2094_vm8, %v3170_v61  ;;  %v5876_v3 = vpop.f32.mrb[83].mxu0  ;;  %v6355_v61 = vld [vmem:[%s7812_s6 + $0x268] sm:$0xff]   ;;  %v6358_v59 = vld [vmem:[%s7812_s6 + $0x2a0] sm:$0xff]   ;;  %v6361_v2 = vld [vmem:[%s7812_s6 + $0x2b0] sm:$0xff]  }
 0x75e   :  { %5926 = vmatpush3.bf16.msra.mxu0 %v7116_v53  ;;  %5929 = vmatprep.mubr.msk.bf16.mxu0 %vm6406_vm6, %v6405_v31  ;;  %v6362_v3 = vld [vmem:[%s7812_s6 + $0x2b8] sm:$0xff]  }
 0x75f   :  { %5927 = vmatprep.subr.bf16.mxu0 %v6405_v31  ;;  %5906 = vmatpush3.bf16.msra.mxu1 %v6331_v0  ;;  %v6359_v0 = vld [vmem:[%s7812_s6 + $0x278] sm:$0xff]  }
 0x760   :  { %5907 = vmatprep.subr.bf16.mxu1 %v6405_v31  ;;  %5921 = vmatprep.mubr.msk.bf16.mxu1 %vm6406_vm6, %v6405_v31 }
 0x762   :  { %5928 = vmatpush3.bf16.msra.mxu0 %v7112_v50 }
 0x763   :  { %5908 = vmatpush3.bf16.msra.mxu1 %v6332_v5  ;;  %5933 = vmatprep.subr.bf16.mxu0 %v6405_v31 }
 0x764   :  { %5909 = vmatprep.subr.bf16.mxu1 %v6405_v31 }
 0x765   :  { %5930 = vmatmul.mubr.msk.bf16.vlgmr.msra.gmra.mrb[88].mxu0 %vm2094_vm8, %v3324_v6 }
 0x766   :  { %5934 = vmatpush3.bf16.msra.mxu0 %v6334_v7  ;;  %5949 = vmatprep.mubr.msk.bf16.mxu0 %vm6406_vm6, %v6405_v31 }
 0x767   :  { %5910 = vmatpush3.bf16.msra.mxu1 %v6333_v8  ;;  %5935 = vmatprep.subr.bf16.mxu0 %v6405_v31 }
 0x768   :  { %5911 = vmatprep.subr.bf16.mxu1 %v6405_v31 }
 0x76a   :  { %5936 = vmatpush3.bf16.msra.mxu0 %v6336_v9  ;;  %v3782_v9 = vadd.s32 11, %v7110_v41 }
 0x76b   :  { %5912 = vmatpush3.bf16.msra.mxu1 %v6335_v10  ;;  %5937 = vmatprep.subr.bf16.mxu0 %v6405_v31 }
 0x76c   :  { %5913 = vmatprep.subr.bf16.mxu1 %v6405_v31  ;;  %vm3783_vm3 = vcmp.eq.s32.totalorder %v6609_v54, %v3782_v9 }
 0x76e   :  { %5938 = vmatpush3.bf16.msra.mxu0 %v6338_v11 }
 0x76f   :  { %5914 = vmatpush3.bf16.msra.mxu1 %v6337_v14  ;;  %5939 = vmatprep.subr.bf16.mxu0 %v6405_v31 }
 0x770   :  { %5915 = vmatprep.subr.bf16.mxu1 %v6405_v31 }
 0x772   :  { %5940 = vmatpush3.bf16.msra.mxu0 %v6340_v15 }
 0x773   :  { %5916 = vmatpush3.bf16.msra.mxu1 %v6339_v16  ;;  %5941 = vmatprep.subr.bf16.mxu0 %v6405_v31 }
 0x774   :  { %5917 = vmatprep.subr.bf16.mxu1 %v6405_v31 }
 0x776   :  { %5942 = vmatpush3.bf16.msra.mxu0 %v6342_v18 }
 0x777   :  { %5918 = vmatpush3.bf16.msra.mxu1 %v6341_v17  ;;  %5943 = vmatprep.subr.bf16.mxu0 %v6405_v31 }
 0x778   :  { %5919 = vmatprep.subr.bf16.mxu1 %v6405_v31 }
 0x77a   :  { %5944 = vmatpush3.bf16.msra.mxu0 %v6344_v20 }
 0x77b   :  { %5920 = vmatpush3.bf16.msra.mxu1 %v6343_v19  ;;  %5945 = vmatprep.subr.bf16.mxu0 %v6405_v31 }
 0x77c   :  { %5953 = vmatprep.subr.bf16.mxu1 %v6405_v31 }
 0x77e   :  { %5946 = vmatpush3.bf16.msra.mxu0 %v6345_v21 }
 0x77f   :  { %5947 = vmatprep.subr.bf16.mxu0 %v6405_v31 }
 0x782   :  { %5948 = vmatpush3.bf16.msra.mxu0 %v6346_v22  ;;  %v4870_v22 = vsel %vm3783_vm3, 1.0, %v6405_v31 }
 0x783   :  { %5981 = vmatprep.subr.bf16.mxu0 %v6405_v31 }
 0x828   :  { %v3005_v23 = vpop.f32.mrb[20].mxu1 }
 0x829   :  { %v3011_v24 = vadd.f32 %v3005_v23, %v7396_v48  ;;  %v5867_v25 = vpop.f32.mrb[21].mxu1  ;;  %v4860_v48 = vsel %vm3629_vm2, 1.0, %v6405_v31  ;;  %v3936_v23 = vadd.s32 12, %v7110_v41 }
 0x82a   :  { %v3008_v28 = vpop.f32.mrb[22].mxu1  ;;  %v3632_v62 = vpack.c.bf16 %v4860_v48, %v4860_v48 }
 0x82b   :  { %v5868_v29 = vpop.f32.mrb[23].mxu1  ;;  %vm3937_vm4 = vcmp.eq.s32.totalorder %v6609_v54, %v3936_v23  ;;  %v6387_v23 = vld [vmem:[%s7812_s6 + $0x368] sm:$0xff]  }
 0x82c   :  { %v6363_v29 = vld [vmem:[%s7812_s6 + $0x2c0] sm:$0xff]  }
 0x830   :  { %v3159_v32 = vpop.f32.mrb[84].mxu0  ;;  %v3208_v33 = vpop.f32.mrb[24].mxu1 }
 0x831   :  { %v7487_v34 = vadd.f32 %v3159_v32, %v3011_v24  ;;  %v3214_v35 = vpack.c.bf16 %v3208_v33, %v3208_v33  ;;  %v5903_v13 = vpop.f32.mrb[25].mxu1  ;;  %v5895_v36 = vpop.f32.mrb[85].mxu0  ;;  %v3786_v24 = vpack.c.bf16 %v4870_v22, %v4870_v22  ;;  %v6385_v22 = vld [vmem:[%s7812_s6 + $0x360] sm:$0xff]  }
 0x832   :  { %v3211_v37 = vpop.f32.mrb[26].mxu1  ;;  %v3162_v38 = vpop.f32.mrb[86].mxu0  ;;  %v6366_v36 = vld [vmem:[%s7812_s6 + $0x300] sm:$0xff]  }
 0x833   :  { %v5904_v39 = vpop.f32.mrb[27].mxu1  ;;  %5922 = vmatmul.mubr.bf16.vlgmr.msra.gmra.mrb[28].mxu1 %v3214_v35  ;;  %v5896_v12 = vpop.f32.mrb[87].mxu0  ;;  %v6364_v35 = vld [vmem:[%s7812_s6 + $0x2c8] sm:$0xff]   ;;  %v6365_v37 = vld [vmem:[%s7812_s6 + $0x2d0] sm:$0xff]  }
 0x834   :  { %5954 = vmatpush3.bf16.msra.mxu1 %v7116_v53  ;;  %5957 = vmatprep.mubr.msk.bf16.mxu1 %vm6406_vm6, %v6405_v31  ;;  %v6368_v38 = vld [vmem:[%s7812_s6 + $0x308] sm:$0xff]   ;;  %v6367_v39 = vld [vmem:[%s7812_s6 + $0x2d8] sm:$0xff]   ;;  %v6370_v12 = vld [vmem:[%s7812_s6 + $0x310] sm:$0xff]  }
 0x835   :  { %5955 = vmatprep.subr.bf16.mxu1 %v6405_v31 }
 0x838   :  { %5956 = vmatpush3.bf16.msra.mxu1 %v7112_v50  ;;  %v3362_v44 = vpop.f32.mrb[88].mxu0 }
 0x839   :  { %v3368_v26 = vpack.c.bf16 %v3362_v44, %v3362_v44  ;;  %5961 = vmatprep.subr.bf16.mxu1 %v6405_v31  ;;  %v5931_v46 = vpop.f32.mrb[89].mxu0  ;;  %v6373_v44 = vld [vmem:[%s7812_s6 + $0x2f0] sm:$0xff]  }
 0x83a   :  { %v3365_v47 = vpop.f32.mrb[90].mxu0  ;;  %v6376_v46 = vld [vmem:[%s7812_s6 + $0x328] sm:$0xff]  }
 0x83b   :  { %5950 = vmatmul.mubr.bf16.vlgmr.msra.gmra.mrb[92].mxu0 %v3368_v26  ;;  %5958 = vmatmul.mubr.msk.bf16.vlgmr.msra.gmra.mrb[32].mxu1 %vm2094_vm8, %v3478_v43  ;;  %v5932_v40 = vpop.f32.mrb[91].mxu0  ;;  %v6371_v43 = vld [vmem:[%s7812_s6 + $0x2e8] sm:$0xff]   ;;  %v6374_v26 = vld [vmem:[%s7812_s6 + $0x320] sm:$0xff]   ;;  %v6377_v47 = vld [vmem:[%s7812_s6 + $0x330] sm:$0xff]  }
 0x83c   :  { %5982 = vmatpush3.bf16.msra.mxu0 %v7116_v53  ;;  %5985 = vmatprep.mubr.msk.bf16.mxu0 %vm6406_vm6, %v6405_v31  ;;  %v6378_v40 = vld [vmem:[%s7812_s6 + $0x338] sm:$0xff]  }
 0x83d   :  { %5983 = vmatprep.subr.bf16.mxu0 %v6405_v31  ;;  %5962 = vmatpush3.bf16.msra.mxu1 %v6347_v45  ;;  %v6375_v45 = vld [vmem:[%s7812_s6 + $0x2f8] sm:$0xff]  }
 0x83e   :  { %5963 = vmatprep.subr.bf16.mxu1 %v6405_v31  ;;  %5977 = vmatprep.mubr.msk.bf16.mxu1 %vm6406_vm6, %v6405_v31 }
 0x840   :  { %5984 = vmatpush3.bf16.msra.mxu0 %v7112_v50 }
 0x841   :  { %5964 = vmatpush3.bf16.msra.mxu1 %v6348_v49  ;;  %5989 = vmatprep.subr.bf16.mxu0 %v6405_v31 }
 0x842   :  { %5965 = vmatprep.subr.bf16.mxu1 %v6405_v31 }
 0x843   :  { %5986 = vmatmul.mubr.msk.bf16.vlgmr.msra.gmra.mrb[96].mxu0 %vm2094_vm8, %v3632_v62 }
 0x844   :  { %5990 = vmatpush3.bf16.msra.mxu0 %v6350_v51  ;;  %6005 = vmatprep.mubr.msk.bf16.mxu0 %vm6406_vm6, %v6405_v31 }
 0x845   :  { %5966 = vmatpush3.bf16.msra.mxu1 %v6349_v52  ;;  %5991 = vmatprep.subr.bf16.mxu0 %v6405_v31 }
 0x846   :  { %5967 = vmatprep.subr.bf16.mxu1 %v6405_v31 }
 0x848   :  { %5992 = vmatpush3.bf16.msra.mxu0 %v6352_v55  ;;  %v4090_v55 = vadd.s32 13, %v7110_v41 }
 0x849   :  { %5968 = vmatpush3.bf16.msra.mxu1 %v6351_v56  ;;  %5993 = vmatprep.subr.bf16.mxu0 %v6405_v31 }
 0x84a   :  { %5969 = vmatprep.subr.bf16.mxu1 %v6405_v31  ;;  %vm4091_vm5 = vcmp.eq.s32.totalorder %v6609_v54, %v4090_v55  ;;  %v6398_v55 = vld [vmem:[%s7812_s6 + $0x3d8] sm:$0xff]  }
 0x84c   :  { %5994 = vmatpush3.bf16.msra.mxu0 %v6354_v57 }
 0x84d   :  { %5970 = vmatpush3.bf16.msra.mxu1 %v6353_v58  ;;  %5995 = vmatprep.subr.bf16.mxu0 %v6405_v31 }
 0x84e   :  { %5971 = vmatprep.subr.bf16.mxu1 %v6405_v31 }
 0x850   :  { %5996 = vmatpush3.bf16.msra.mxu0 %v6356_v60 }
 0x851   :  { %5972 = vmatpush3.bf16.msra.mxu1 %v6355_v61  ;;  %5997 = vmatprep.subr.bf16.mxu0 %v6405_v31 }
 0x852   :  { %5973 = vmatprep.subr.bf16.mxu1 %v6405_v31 }
 0x854   :  { %5998 = vmatpush3.bf16.msra.mxu0 %v6358_v59 }
 0x855   :  { %5974 = vmatpush3.bf16.msra.mxu1 %v6357_v63  ;;  %5999 = vmatprep.subr.bf16.mxu0 %v6405_v31 }
 0x856   :  { %5975 = vmatprep.subr.bf16.mxu1 %v6405_v31 }
 0x858   :  { %6000 = vmatpush3.bf16.msra.mxu0 %v6360_v1 }
 0x859   :  { %5976 = vmatpush3.bf16.msra.mxu1 %v6359_v0  ;;  %6001 = vmatprep.subr.bf16.mxu0 %v6405_v31 }
 0x85a   :  { %6009 = vmatprep.subr.bf16.mxu1 %v6405_v31 }
 0x85c   :  { %6002 = vmatpush3.bf16.msra.mxu0 %v6361_v2 }
 0x85d   :  { %6003 = vmatprep.subr.bf16.mxu0 %v6405_v31 }
 0x860   :  { %6004 = vmatpush3.bf16.msra.mxu0 %v6362_v3  ;;  %v4890_v3 = vsel %vm4091_vm5, 1.0, %v6405_v31 }
 0x861   :  { %6037 = vmatprep.subr.bf16.mxu0 %v6405_v31 }
 0x906   :  { %v3313_v4 = vpop.f32.mrb[28].mxu1 }
 0x907   :  { %v3319_v5 = vadd.f32 %v3313_v4, %v7487_v34  ;;  %v5923_v6 = vpop.f32.mrb[29].mxu1  ;;  %v4880_v34 = vsel %vm3937_vm4, 1.0, %v6405_v31  ;;  %v4244_v4 = vadd.s32 14, %v7110_v41 }
 0x908   :  { %v3316_v7 = vpop.f32.mrb[30].mxu1  ;;  %v3940_v13 = vpack.c.bf16 %v4880_v34, %v4880_v34 }
 0x909   :  { %v5924_v8 = vpop.f32.mrb[31].mxu1  ;;  %vm4245_vm7 = vcmp.eq.s32.totalorder %v6609_v54, %v4244_v4 }
 0x90a   :  { %v6379_v8 = vld [vmem:[%s7812_s6 + $0x340] sm:$0xff]  }
 0x90e   :  { %v3467_v10 = vpop.f32.mrb[92].mxu0  ;;  %v3516_v11 = vpop.f32.mrb[32].mxu1 }
 0x90f   :  { %v7578_v14 = vadd.f32 %v3467_v10, %v3319_v5  ;;  %v3522_v15 = vpack.c.bf16 %v3516_v11, %v3516_v11  ;;  %v5959_v16 = vpop.f32.mrb[33].mxu1  ;;  %v5951_v17 = vpop.f32.mrb[93].mxu0  ;;  %v4094_v5 = vpack.c.bf16 %v4890_v3, %v4890_v3 }
 0x910   :  { %v3519_v18 = vpop.f32.mrb[34].mxu1  ;;  %v3470_v19 = vpop.f32.mrb[94].mxu0  ;;  %v6382_v17 = vld [vmem:[%s7812_s6 + $0x380] sm:$0xff]  }
 0x911   :  { %v5960_v20 = vpop.f32.mrb[35].mxu1  ;;  %5978 = vmatmul.mubr.bf16.vlgmr.msra.gmra.mrb[36].mxu1 %v3522_v15  ;;  %v5952_v21 = vpop.f32.mrb[95].mxu0  ;;  %v6380_v15 = vld [vmem:[%s7812_s6 + $0x348] sm:$0xff]   ;;  %v6381_v18 = vld [vmem:[%s7812_s6 + $0x350] sm:$0xff]  }
 0x912   :  { %6010 = vmatpush3.bf16.msra.mxu1 %v7116_v53  ;;  %6013 = vmatprep.mubr.msk.bf16.mxu1 %vm6406_vm6, %v6405_v31  ;;  %v6384_v19 = vld [vmem:[%s7812_s6 + $0x388] sm:$0xff]   ;;  %v6383_v20 = vld [vmem:[%s7812_s6 + $0x358] sm:$0xff]   ;;  %v6386_v21 = vld [vmem:[%s7812_s6 + $0x390] sm:$0xff]  }
 0x913   :  { %6011 = vmatprep.subr.bf16.mxu1 %v6405_v31 }
 0x916   :  { %6012 = vmatpush3.bf16.msra.mxu1 %v7112_v50  ;;  %v3670_v25 = vpop.f32.mrb[96].mxu0 }
 0x917   :  { %v3676_v28 = vpack.c.bf16 %v3670_v25, %v3670_v25  ;;  %6017 = vmatprep.subr.bf16.mxu1 %v6405_v31  ;;  %v5987_v30 = vpop.f32.mrb[97].mxu0  ;;  %v6389_v25 = vld [vmem:[%s7812_s6 + $0x370] sm:$0xff]  }
 0x918   :  { %v3673_v32 = vpop.f32.mrb[98].mxu0  ;;  %v6392_v30 = vld [vmem:[%s7812_s6 + $0x3a8] sm:$0xff]  }
 0x919   :  { %6006 = vmatmul.mubr.bf16.vlgmr.msra.gmra.mrb[100].mxu0 %v3676_v28  ;;  %6014 = vmatmul.mubr.msk.bf16.vlgmr.msra.gmra.mrb[40].mxu1 %vm2094_vm8, %v3786_v24  ;;  %v5988_v33 = vpop.f32.mrb[99].mxu0  ;;  %v6388_v24 = vld [vmem:[%s7812_s6 + $0x398] sm:$0xff]   ;;  %v6390_v28 = vld [vmem:[%s7812_s6 + $0x3a0] sm:$0xff]   ;;  %v6393_v32 = vld [vmem:[%s7812_s6 + $0x3b0] sm:$0xff]  }
 0x91a   :  { %6038 = vmatpush3.bf16.msra.mxu0 %v7116_v53  ;;  %6041 = vmatprep.mubr.msk.bf16.mxu0 %vm6406_vm6, %v6405_v31  ;;  %v6394_v33 = vld [vmem:[%s7812_s6 + $0x3b8] sm:$0xff]  }
 0x91b   :  { %6039 = vmatprep.subr.bf16.mxu0 %v6405_v31  ;;  %6018 = vmatpush3.bf16.msra.mxu1 %v6363_v29  ;;  %v6391_v29 = vld [vmem:[%s7812_s6 + $0x378] sm:$0xff]  }
 0x91c   :  { %6019 = vmatprep.subr.bf16.mxu1 %v6405_v31  ;;  %6033 = vmatprep.mubr.msk.bf16.mxu1 %vm6406_vm6, %v6405_v31 }
 0x91e   :  { %6040 = vmatpush3.bf16.msra.mxu0 %v7112_v50 }
 0x91f   :  { %6020 = vmatpush3.bf16.msra.mxu1 %v6364_v35  ;;  %6045 = vmatprep.subr.bf16.mxu0 %v6405_v31 }
 0x920   :  { %6021 = vmatprep.subr.bf16.mxu1 %v6405_v31 }
 0x921   :  { %6042 = vmatmul.mubr.msk.bf16.vlgmr.msra.gmra.mrb[104].mxu0 %vm2094_vm8, %v3940_v13 }
 0x922   :  { %6046 = vmatpush3.bf16.msra.mxu0 %v6366_v36  ;;  %6061 = vmatprep.mubr.msk.bf16.mxu0 %vm6406_vm6, %v6405_v31 }
 0x923   :  { %6022 = vmatpush3.bf16.msra.mxu1 %v6365_v37  ;;  %6047 = vmatprep.subr.bf16.mxu0 %v6405_v31 }
 0x924   :  { %6023 = vmatprep.subr.bf16.mxu1 %v6405_v31 }
 0x926   :  { %6048 = vmatpush3.bf16.msra.mxu0 %v6368_v38  ;;  %v4398_v38 = vadd.s32 15, %v7110_v41 }
 0x927   :  { %6024 = vmatpush3.bf16.msra.mxu1 %v6367_v39  ;;  %6049 = vmatprep.subr.bf16.mxu0 %v6405_v31 }
 0x928   :  { %6025 = vmatprep.subr.bf16.mxu1 %v6405_v31  ;;  %vm4399_vm9 = vcmp.eq.s32.totalorder %v6609_v54, %v4398_v38  ;;  %v6395_v54 = vld [vmem:[%s7812_s6 + $0x3c0] sm:$0xff]  }
 0x929   :  { %v4910_v41 = vsel %vm4399_vm9, 1.0, %v6405_v31 }
 0x92a   :  { %6050 = vmatpush3.bf16.msra.mxu0 %v6370_v12 }
 0x92b   :  { %6026 = vmatpush3.bf16.msra.mxu1 %v6369_v42  ;;  %6051 = vmatprep.subr.bf16.mxu0 %v6405_v31 }
 0x92c   :  { %6027 = vmatprep.subr.bf16.mxu1 %v6405_v31 }
 0x92e   :  { %6052 = vmatpush3.bf16.msra.mxu0 %v6372_v27 }
 0x92f   :  { %6028 = vmatpush3.bf16.msra.mxu1 %v6371_v43  ;;  %6053 = vmatprep.subr.bf16.mxu0 %v6405_v31 }
 0x930   :  { %6029 = vmatprep.subr.bf16.mxu1 %v6405_v31 }
 0x932   :  { %6054 = vmatpush3.bf16.msra.mxu0 %v6374_v26 }
 0x933   :  { %6030 = vmatpush3.bf16.msra.mxu1 %v6373_v44  ;;  %6055 = vmatprep.subr.bf16.mxu0 %v6405_v31 }
 0x934   :  { %6031 = vmatprep.subr.bf16.mxu1 %v6405_v31 }
 0x936   :  { %6056 = vmatpush3.bf16.msra.mxu0 %v6376_v46 }
 0x937   :  { %6032 = vmatpush3.bf16.msra.mxu1 %v6375_v45  ;;  %6057 = vmatprep.subr.bf16.mxu0 %v6405_v31 }
 0x938   :  { %6065 = vmatprep.subr.bf16.mxu1 %v6405_v31 }
 0x93a   :  { %6058 = vmatpush3.bf16.msra.mxu0 %v6377_v47 }
 0x93b   :  { %6059 = vmatprep.subr.bf16.mxu0 %v6405_v31 }
 0x93e   :  { %6060 = vmatpush3.bf16.msra.mxu0 %v6378_v40  ;;  %v4402_v40 = vpack.c.bf16 %v4910_v41, %v4910_v41 }
 0x93f   :  { %6093 = vmatprep.subr.bf16.mxu0 %v6405_v31 }
 0x9e4   :  { %v3621_v48 = vpop.f32.mrb[36].mxu1 }
 0x9e5   :  { %v3627_v49 = vadd.f32 %v3621_v48, %v7578_v14  ;;  %v5979_v62 = vpop.f32.mrb[37].mxu1  ;;  %v4900_v14 = vsel %vm4245_vm7, 1.0, %v6405_v31 }
 0x9e6   :  { %v3624_v51 = vpop.f32.mrb[38].mxu1  ;;  %v4248_v16 = vpack.c.bf16 %v4900_v14, %v4900_v14  ;;  %v4920_v14 = vld [vmem:[%s7814_s7] ss:$0 sm:$0xff] }
 0x9e7   :  { %v5980_v52 = vpop.f32.mrb[39].mxu1 }
 0x9e8   :  { %v6396_v52 = vld [vmem:[%s7812_s6 + $0x3c8] sm:$0xff]  }
 0x9ec   :  { %v3775_v56 = vpop.f32.mrb[100].mxu0  ;;  %v3824_v57 = vpop.f32.mrb[40].mxu1 }
 0x9ed   :  { %v7669_v58 = vadd.f32 %v3775_v56, %v3627_v49  ;;  %v3830_v60 = vpack.c.bf16 %v3824_v57, %v3824_v57  ;;  %v6015_v61 = vpop.f32.mrb[41].mxu1  ;;  %v6007_v63 = vpop.f32.mrb[101].mxu0  ;;  %v6399_v56 = vld [vmem:[%s7812_s6 + $0x3e0] sm:$0xff]   ;;  %v6400_v57 = vld [vmem:[%s7812_s6 + $0x3e8] sm:$0xff]  }
 0x9ee   :  { %v3827_v59 = vpop.f32.mrb[42].mxu1  ;;  %v3778_v0 = vpop.f32.mrb[102].mxu0 }
 0x9ef   :  { %v6016_v1 = vpop.f32.mrb[43].mxu1  ;;  %6034 = vmatmul.mubr.bf16.vlgmr.msra.gmra.mrb[44].mxu1 %v3830_v60  ;;  %v6008_v2 = vpop.f32.mrb[103].mxu0  ;;  %v6402_v60 = vld [vmem:[%s7812_s6 + $0x3f8] sm:$0xff]  }
 0x9f0   :  { %6066 = vmatpush3.bf16.msra.mxu1 %v7116_v53  ;;  %6069 = vmatprep.mubr.msk.bf16.mxu1 %vm6406_vm6, %v6405_v31 }
 0x9f1   :  { %6067 = vmatprep.subr.bf16.mxu1 %v6405_v31 }
 0x9f4   :  { %6068 = vmatpush3.bf16.msra.mxu1 %v7112_v50  ;;  %v3978_v6 = vpop.f32.mrb[104].mxu0 }
 0x9f5   :  { %v3984_v7 = vpack.c.bf16 %v3978_v6, %v3978_v6  ;;  %6073 = vmatprep.subr.bf16.mxu1 %v6405_v31  ;;  %v6043_v9 = vpop.f32.mrb[105].mxu0 }
 0x9f6   :  { %v3981_v10 = vpop.f32.mrb[106].mxu0 }
 0x9f7   :  { %6062 = vmatmul.mubr.bf16.vlgmr.msra.gmra.mrb[108].mxu0 %v3984_v7  ;;  %6070 = vmatmul.mubr.msk.bf16.vlgmr.msra.gmra.mrb[48].mxu1 %vm2094_vm8, %v4094_v5  ;;  %v6044_v11 = vpop.f32.mrb[107].mxu0 }
 0x9f8   :  { %6094 = vmatpush3.bf16.msra.mxu0 %v7116_v53  ;;  %6097 = vmatprep.mubr.msk.bf16.mxu0 %vm6406_vm6, %v6405_v31 }
 0x9f9   :  { %6095 = vmatprep.subr.bf16.mxu0 %v6405_v31  ;;  %6074 = vmatpush3.bf16.msra.mxu1 %v6379_v8 }
 0x9fa   :  { %6075 = vmatprep.subr.bf16.mxu1 %v6405_v31  ;;  %6089 = vmatprep.mubr.msk.bf16.mxu1 %vm6406_vm6, %v6405_v31 }
 0x9fc   :  { %6096 = vmatpush3.bf16.msra.mxu0 %v7112_v50 }
 0x9fd   :  { %6076 = vmatpush3.bf16.msra.mxu1 %v6380_v15  ;;  %6101 = vmatprep.subr.bf16.mxu0 %v6405_v31 }
 0x9fe   :  { %6077 = vmatprep.subr.bf16.mxu1 %v6405_v31 }
 0x9ff   :  { %6098 = vmatmul.mubr.msk.bf16.vlgmr.msra.gmra.mrb[112].mxu0 %vm2094_vm8, %v4248_v16 }
 0xa00   :  { %6102 = vmatpush3.bf16.msra.mxu0 %v6382_v17  ;;  %6117 = vmatprep.mubr.msk.bf16.mxu0 %vm6406_vm6, %v6405_v31 }
 0xa01   :  { %6078 = vmatpush3.bf16.msra.mxu1 %v6381_v18  ;;  %6103 = vmatprep.subr.bf16.mxu0 %v6405_v31 }
 0xa02   :  { %6079 = vmatprep.subr.bf16.mxu1 %v6405_v31 }
 0xa04   :  { %6104 = vmatpush3.bf16.msra.mxu0 %v6384_v19 }
 0xa05   :  { %6080 = vmatpush3.bf16.msra.mxu1 %v6383_v20  ;;  %6105 = vmatprep.subr.bf16.mxu0 %v6405_v31 }
 0xa06   :  { %6081 = vmatprep.subr.bf16.mxu1 %v6405_v31 }
 0xa08   :  { %6106 = vmatpush3.bf16.msra.mxu0 %v6386_v21 }
 0xa09   :  { %6082 = vmatpush3.bf16.msra.mxu1 %v6385_v22  ;;  %6107 = vmatprep.subr.bf16.mxu0 %v6405_v31 }
 0xa0a   :  { %6083 = vmatprep.subr.bf16.mxu1 %v6405_v31 }
 0xa0c   :  { %6108 = vmatpush3.bf16.msra.mxu0 %v6388_v24 }
 0xa0d   :  { %6084 = vmatpush3.bf16.msra.mxu1 %v6387_v23  ;;  %6109 = vmatprep.subr.bf16.mxu0 %v6405_v31 }
 0xa0e   :  { %6085 = vmatprep.subr.bf16.mxu1 %v6405_v31 }
 0xa10   :  { %6110 = vmatpush3.bf16.msra.mxu0 %v6390_v28 }
 0xa11   :  { %6086 = vmatpush3.bf16.msra.mxu1 %v6389_v25  ;;  %6111 = vmatprep.subr.bf16.mxu0 %v6405_v31 }
 0xa12   :  { %6087 = vmatprep.subr.bf16.mxu1 %v6405_v31 }
 0xa14   :  { %6112 = vmatpush3.bf16.msra.mxu0 %v6392_v30 }
 0xa15   :  { %6088 = vmatpush3.bf16.msra.mxu1 %v6391_v29  ;;  %6113 = vmatprep.subr.bf16.mxu0 %v6405_v31 }
 0xa16   :  { %6121 = vmatprep.subr.bf16.mxu1 %v6405_v31 }
 0xa18   :  { %6114 = vmatpush3.bf16.msra.mxu0 %v6393_v32 }
 0xa19   :  { %6115 = vmatprep.subr.bf16.mxu0 %v6405_v31 }
 0xa1c   :  { %6116 = vmatpush3.bf16.msra.mxu0 %v6394_v33 }
 0xac2   :  { %v3929_v34 = vpop.f32.mrb[44].mxu1 }
 0xac3   :  { %v3935_v35 = vadd.f32 %v3929_v34, %v7669_v58  ;;  %v6035_v13 = vpop.f32.mrb[45].mxu1  ;;  %v6401_v58 = vld [vmem:[%s7812_s6 + $0x3f0] sm:$0xff]  }
 0xac4   :  { %v3932_v36 = vpop.f32.mrb[46].mxu1 }
 0xac5   :  { %v6036_v37 = vpop.f32.mrb[47].mxu1 }
 0xaca   :  { %v4083_v39 = vpop.f32.mrb[108].mxu0  ;;  %v4132_v12 = vpop.f32.mrb[48].mxu1 }
 0xacb   :  { %v4089_v42 = vadd.f32 %v4083_v39, %v3935_v35  ;;  %v4138_v27 = vpack.c.bf16 %v4132_v12, %v4132_v12  ;;  %v6071_v43 = vpop.f32.mrb[49].mxu1  ;;  %v6063_v44 = vpop.f32.mrb[109].mxu0 }
 0xacc   :  { %v4135_v26 = vpop.f32.mrb[50].mxu1  ;;  %v4086_v45 = vpop.f32.mrb[110].mxu0 }
 0xacd   :  { %v6072_v46 = vpop.f32.mrb[51].mxu1  ;;  %6090 = vmatmul.mubr.bf16.vlgmr.msra.gmra.mrb[52].mxu1 %v4138_v27  ;;  %v6064_v47 = vpop.f32.mrb[111].mxu0 }
 0xace   :  { %6122 = vmatpush3.bf16.msra.mxu1 %v7116_v53  ;;  %6125 = vmatprep.mubr.msk.bf16.mxu1 %vm6406_vm6, %v6405_v31 }
 0xacf   :  { %6123 = vmatprep.subr.bf16.mxu1 %v6405_v31 }
 0xad2   :  { %6124 = vmatpush3.bf16.msra.mxu1 %v7112_v50  ;;  %v4286_v48 = vpop.f32.mrb[112].mxu0  ;;  %v6397_v50 = vld [vmem:[%s7812_s6 + $0x3d0] sm:$0xff]  }
 0xad3   :  { %v4292_v49 = vpack.c.bf16 %v4286_v48, %v4286_v48  ;;  %6129 = vmatprep.subr.bf16.mxu1 %v6405_v31  ;;  %v6099_v62 = vpop.f32.mrb[113].mxu0 }
 0xad4   :  { %v4289_v53 = vpop.f32.mrb[114].mxu0 }
 0xad5   :  { %6118 = vmatmul.mubr.bf16.vlgmr.msra.gmra.mrb[116].mxu0 %v4292_v49  ;;  %6126 = vmatmul.mubr.msk.bf16.vlgmr.msra.gmra.mrb[56].mxu1 %vm2094_vm8, %v4402_v40  ;;  %v6100_v51 = vpop.f32.mrb[115].mxu0 }
 0xad6   :  { %6130 = vmatpush3.bf16.msra.mxu1 %v6395_v54  ;;  %6145 = vmatprep.mubr.msk.bf16.mxu1 %vm6406_vm6, %v6405_v31 }
 0xad7   :  { %6131 = vmatprep.subr.bf16.mxu1 %v6405_v31 }
 0xada   :  { %6132 = vmatpush3.bf16.msra.mxu1 %v6396_v52 }
 0xadb   :  { %6133 = vmatprep.subr.bf16.mxu1 %v6405_v31 }
 0xade   :  { %6134 = vmatpush3.bf16.msra.mxu1 %v6397_v50 }
 0xadf   :  { %6135 = vmatprep.subr.bf16.mxu1 %v6405_v31 }
 0xae2   :  { %6136 = vmatpush3.bf16.msra.mxu1 %v6398_v55 }
 0xae3   :  { %6137 = vmatprep.subr.bf16.mxu1 %v6405_v31 }
 0xae6   :  { %6138 = vmatpush3.bf16.msra.mxu1 %v6399_v56 }
 0xae7   :  { %6139 = vmatprep.subr.bf16.mxu1 %v6405_v31 }
 0xaea   :  { %6140 = vmatpush3.bf16.msra.mxu1 %v6400_v57 }
 0xaeb   :  { %6141 = vmatprep.subr.bf16.mxu1 %v6405_v31 }
 0xaee   :  { %6142 = vmatpush3.bf16.msra.mxu1 %v6401_v58 }
 0xaef   :  { %6143 = vmatprep.subr.bf16.mxu1 %v6405_v31 }
 0xaf2   :  { %6144 = vmatpush3.bf16.msra.mxu1 %v6402_v60 }
 0xba0   :  { %v4237_v61 = vpop.f32.mrb[52].mxu1 }
 0xba1   :  { %v4243_v63 = vadd.f32 %v4237_v61, %v4089_v42  ;;  %v6091_v59 = vpop.f32.mrb[53].mxu1 }
 0xba2   :  { %v4240_v0 = vpop.f32.mrb[54].mxu1 }
 0xba3   :  { %v6092_v1 = vpop.f32.mrb[55].mxu1 }
 0xba8   :  { %v4391_v2 = vpop.f32.mrb[116].mxu0  ;;  %v4440_v3 = vpop.f32.mrb[56].mxu1 }
 0xba9   :  { %v4397_v4 = vadd.f32 %v4391_v2, %v4243_v63  ;;  %v4446_v5 = vpack.c.bf16 %v4440_v3, %v4440_v3  ;;  %v6127_v6 = vpop.f32.mrb[57].mxu1  ;;  %v6119_v7 = vpop.f32.mrb[117].mxu0 }
 0xbaa   :  { %v4443_v8 = vpop.f32.mrb[58].mxu1  ;;  %v4394_v9 = vpop.f32.mrb[118].mxu0 }
 0xbab   :  { %v6128_v10 = vpop.f32.mrb[59].mxu1  ;;  %6146 = vmatmul.mubr.bf16.vlgmr.msra.gmra.mrb[60].mxu1 %v4446_v5  ;;  %v6120_v31 = vpop.f32.mrb[119].mxu0 }
 0xc7e   :  { %v4545_v11 = vpop.f32.mrb[60].mxu1 }
 0xc7f   :  { %v4551_v15 = vadd.f32 %v4545_v11, %v4397_v4  ;;  %v6147_v16 = vpop.f32.mrb[61].mxu1 }
 0xc80   :  { %v4548_v17 = vpop.f32.mrb[62].mxu1 }
 0xc81   :  { %v4559_v18 = vadd.f32 %v4920_v14, %v4551_v15  ;;  %v6148_v19 = vpop.f32.mrb[63].mxu1 }
 0xc83   :  { %v4560_v20 = vmax.f32 %v4559_v18, 0.0 }
 0xc85   :  { %4561 = vst [vmem:[%s7815_s8] sm:$0x3] %v4560_v20 }

</bundles_post_ra>
